<compile_context>
chip_gen: v7x
topology: tpu7x:2x2x1
jax: 0.10.0
libtpu: 0.0.40
codegen_flags: <defaults>
</compile_context>

<pallas_src>
import math
from functools import partial

import jax
import jax.numpy as jnp
from jax import lax
from jax.experimental import pallas as pl
from jax.experimental.pallas import tpu as pltpu


MATMUL_DTYPE = jnp.bfloat16          # MXU operand dtype (accumulation is f32)
_VMEM_LIMIT = 48 * 1024 * 1024       # < 64 MiB (v7x physical), > default scope


def _pick_tile(n, candidates=(512, 256, 128, 64, 32, 16, 8)):
    for t in candidates:
        if n % t == 0 and n // t > 1:
            return t
    return n


def _cparams(*sem):
    return pltpu.CompilerParams(dimension_semantics=sem,
                                vmem_limit_bytes=_VMEM_LIMIT)


# --------------------------------------------------------------------------
# row-tiled fused linear kernel: out = x @ w_t + bias   (bf16 MXU, f32 acc)
# --------------------------------------------------------------------------
def _linear_kernel(x_ref, w_ref, b_ref, o_ref):
    o_ref[...] = (jnp.dot(x_ref[...], w_ref[...],
                          preferred_element_type=jnp.float32) + b_ref[...])


def linear_pallas(x, w_t, bias=None):
    R, K = x.shape
    N = w_t.shape[1]
    if bias is None:
        bias = jnp.zeros((N,), jnp.float32)
    TR = _pick_tile(R)
    ce = pl.CostEstimate(flops=int(2 * R * K * N), transcendentals=0,
                         bytes_accessed=int(2 * R * K + 2 * K * N + 4 * R * N))
    return pl.pallas_call(
        _linear_kernel,
        out_shape=jax.ShapeDtypeStruct((R, N), jnp.float32),
        grid=(R // TR,),
        in_specs=[
            pl.BlockSpec((TR, K), lambda i: (i, 0)),
            pl.BlockSpec((K, N), lambda i: (0, 0)),
            pl.BlockSpec((1, N), lambda i: (0, 0)),
        ],
        out_specs=pl.BlockSpec((TR, N), lambda i: (i, 0)),
        compiler_params=_cparams("parallel"),
        cost_estimate=ce,
    )(x.astype(MATMUL_DTYPE), w_t.astype(MATMUL_DTYPE),
      bias.reshape(1, N).astype(jnp.float32))


# --------------------------------------------------------------------------
# fused (x_proj + delta_proj) kernel producing [delta | B | C] in one matmul.
# Columns [0, d4) get bias + softplus (threshold 20, matching F.softplus).
# --------------------------------------------------------------------------
def _dbc_kernel(x_ref, w_ref, b_ref, o_ref, *, d4):
    y = jnp.dot(x_ref[...], w_ref[...], preferred_element_type=jnp.float32)
    y = y + b_ref[...]
    sp = jnp.where(y > 20.0, y, jnp.log(1.0 + jnp.exp(jnp.minimum(y, 20.0))))
    col = lax.broadcasted_iota(jnp.int32, y.shape, 1)
    o_ref[...] = jnp.where(col < d4, sp, y)


def dbc_proj_pallas(x, w_t, bias, d4):
    R, K = x.shape
    N = w_t.shape[1]
    TR = _pick_tile(R)
    ce = pl.CostEstimate(flops=int(2 * R * K * N), transcendentals=int(R * d4),
                         bytes_accessed=int(2 * R * K + 2 * K * N + 4 * R * N))
    return pl.pallas_call(
        partial(_dbc_kernel, d4=d4),
        out_shape=jax.ShapeDtypeStruct((R, N), jnp.float32),
        grid=(R // TR,),
        in_specs=[
            pl.BlockSpec((TR, K), lambda i: (i, 0)),
            pl.BlockSpec((K, N), lambda i: (0, 0)),
            pl.BlockSpec((1, N), lambda i: (0, 0)),
        ],
        out_specs=pl.BlockSpec((TR, N), lambda i: (i, 0)),
        compiler_params=_cparams("parallel"),
        cost_estimate=ce,
    )(x.astype(MATMUL_DTYPE), w_t.astype(MATMUL_DTYPE),
      bias.reshape(1, N).astype(jnp.float32))


# --------------------------------------------------------------------------
# depthwise 3x3 conv (padding=1) + SiLU, NHWC, grid over batch.
# Halo is built inside VMEM (no host-side jnp.pad HBM round trip); the
# interior lands at an 8-aligned sublane offset so the staging store is dense.
# --------------------------------------------------------------------------
_HALO = 8


def _dwconv_silu_kernel(x_ref, w_ref, b_ref, o_ref, xp_ref, *, H, W):
    xp_ref[...] = jnp.zeros_like(xp_ref)                    # halo = zeros
    xp_ref[1:H + 1, _HALO:_HALO + W, :] = x_ref[...]        # aligned interior
    xp = xp_ref[...]                                        # (H+2, W+16, D)
    wk = w_ref[...]                                         # (3, 3, D)
    acc = None
    for kh in range(3):
        for kw in range(3):
            sl = xp[kh:kh + H, _HALO - 1 + kw:_HALO - 1 + kw + W, :]
            term = sl * wk[kh, kw, :]
            acc = term if acc is None else acc + term
    acc = acc + b_ref[...]
    o_ref[...] = acc * (1.0 / (1.0 + jnp.exp(-acc)))        # SiLU


def dwconv3_silu_pallas(x_nhwc, w_hwd, b_d):
    B, H, W, D = x_nhwc.shape
    ce = pl.CostEstimate(flops=int(18 * B * H * W * D),
                         transcendentals=int(B * H * W * D),
                         bytes_accessed=int(8 * B * H * W * D + 4 * 9 * D))
    return pl.pallas_call(
        partial(_dwconv_silu_kernel, H=H, W=W),
        out_shape=jax.ShapeDtypeStruct((B, H, W, D), jnp.float32),
        grid=(B,),
        in_specs=[
            pl.BlockSpec((None, H, W, D), lambda b: (b, 0, 0, 0)),
            pl.BlockSpec((3, 3, D), lambda b: (0, 0, 0)),
            pl.BlockSpec((1, 1, D), lambda b: (0, 0, 0)),
        ],
        out_specs=pl.BlockSpec((None, H, W, D), lambda b: (b, 0, 0, 0)),
        scratch_shapes=[pltpu.VMEM((H + 2, W + 2 * _HALO, D), jnp.float32)],
        compiler_params=_cparams("parallel"),
        cost_estimate=ce,
    )(x_nhwc.astype(jnp.float32), w_hwd.astype(jnp.float32),
      b_d.reshape(1, 1, D).astype(jnp.float32))


# --------------------------------------------------------------------------
# selective scan (mamba recurrence)
#   h[n,d] <- exp(dt[d]*A[d,n]) * h[n,d] + B[n]*dt[d]*u[d]
#   y[d]    = sum_n C[n]*h[n,d] + D[d]*u[d]
# grid = (batch "parallel", L-tiles "arbitrary"); state lives in VMEM scratch.
# --------------------------------------------------------------------------
def _selective_scan_kernel(u_ref, dt_ref, b_ref, c_ref, at_ref, d_ref, y_ref,
                           h_ref, ybuf_ref, *, TL, T, N):
    @pl.when(pl.program_id(1) == 0)
    def _():
        h_ref[...] = jnp.zeros_like(h_ref)

    at = at_ref[...]                              # (N, D4) == A.T
    dv = d_ref[...]                               # (1, D4)
    ii = lax.broadcasted_iota(jnp.int32, (N, N), 0)
    jj = lax.broadcasted_iota(jnp.int32, (N, N), 1)
    eye = ii == jj

    def row_to_col(row):                          # (1,N) -> (N,1), no transpose
        m = jnp.where(eye, jnp.broadcast_to(row, (N, N)), 0.0)
        return jnp.sum(m, axis=1, keepdims=True)

    n_chunks = TL // T

    def chunk_body(ci, h):
        base = pl.multiple_of(ci * T, T)
        u_c = u_ref[pl.ds(base, T), :]            # (T, D4)
        dt_c = dt_ref[pl.ds(base, T), :]          # (T, D4)
        b_c = b_ref[pl.ds(base, T), :]            # (T, N)
        c_c = c_ref[pl.ds(base, T), :]            # (T, N)
        dtu_c = dt_c * u_c                        # (T, D4)
        for t in range(T):                        # unrolled inner steps
            dt_l = dt_c[t:t + 1, :]
            b_col = row_to_col(b_c[t:t + 1, :])                 # (N, 1)
            da = jnp.exp(dt_l * at)                             # (N, D4)  EUP
            h = da * h + b_col * dtu_c[t:t + 1, :]              # (N, D4)  VPU
            y_l = jnp.dot(c_c[t:t + 1, :], h,                   # (1, D4)  MXU
                          preferred_element_type=jnp.float32)
            ybuf_ref[t:t + 1, :] = y_l + dv * u_c[t:t + 1, :]
        y_ref[pl.ds(base, T), :] = ybuf_ref[...]                # dense store
        return h

    h_ref[...] = lax.fori_loop(0, n_chunks, chunk_body, h_ref[...])


def selective_scan_pallas(u, delta, A, Bm, Cm, Dvec):
    # u, delta: (b, L, D4); Bm, Cm: (b, L, N); A: (D4, N); Dvec: (D4,)
    b, L, D4 = u.shape
    N = Bm.shape[-1]
    TL = _pick_tile(L)
    T = 8 if TL % 8 == 0 else 1
    ce = pl.CostEstimate(flops=int(8 * b * L * N * D4),
                         transcendentals=int(b * L * N * D4),
                         bytes_accessed=int(4 * b * L * (3 * D4 + 2 * N)))
    return pl.pallas_call(
        partial(_selective_scan_kernel, TL=TL, T=T, N=N),
        out_shape=jax.ShapeDtypeStruct((b, L, D4), jnp.float32),
        grid=(b, L // TL),
        in_specs=[
            pl.BlockSpec((None, TL, D4), lambda i, l: (i, l, 0)),
            pl.BlockSpec((None, TL, D4), lambda i, l: (i, l, 0)),
            pl.BlockSpec((None, TL, N), lambda i, l: (i, l, 0)),
            pl.BlockSpec((None, TL, N), lambda i, l: (i, l, 0)),
            pl.BlockSpec((N, D4), lambda i, l: (0, 0)),
            pl.BlockSpec((1, D4), lambda i, l: (0, 0)),
        ],
        out_specs=pl.BlockSpec((None, TL, D4), lambda i, l: (i, l, 0)),
        scratch_shapes=[pltpu.VMEM((N, D4), jnp.float32),
                        pltpu.VMEM((T, D4), jnp.float32)],
        compiler_params=_cparams("parallel", "arbitrary"),
        cost_estimate=ce,
    )(u.astype(jnp.float32), delta.astype(jnp.float32),
      Bm.astype(jnp.float32), Cm.astype(jnp.float32),
      A.T.astype(jnp.float32), Dvec.reshape(1, D4).astype(jnp.float32))


# --------------------------------------------------------------------------
# row-tiled fused LayerNorm + SiLU gate + out_proj kernel (LN math in f32)
# --------------------------------------------------------------------------
def _out_fuse_kernel(y_ref, z_ref, g_ref, bt_ref, w_ref, o_ref, *, eps):
    y = y_ref[...]
    mu = jnp.mean(y, axis=-1, keepdims=True)
    var = jnp.mean((y - mu) ** 2, axis=-1, keepdims=True)
    yn = (y - mu) * lax.rsqrt(var + eps)
    yn = yn * g_ref[...] + bt_ref[...]
    z = z_ref[...]
    gated = yn * (z * (1.0 / (1.0 + jnp.exp(-z))))
    o_ref[...] = jnp.dot(gated.astype(w_ref.dtype), w_ref[...],
                         preferred_element_type=jnp.float32)


def out_fuse_pallas(y, z, gamma, beta, w_out_t, eps=1e-5):
    R, D = y.shape
    C = w_out_t.shape[1]
    TR = _pick_tile(R)
    ce = pl.CostEstimate(flops=int(2 * R * D * C + 10 * R * D),
                         transcendentals=int(R * D),
                         bytes_accessed=int(8 * R * D + 2 * D * C + 4 * R * C))
    return pl.pallas_call(
        partial(_out_fuse_kernel, eps=eps),
        out_shape=jax.ShapeDtypeStruct((R, C), jnp.float32),
        grid=(R // TR,),
        in_specs=[
            pl.BlockSpec((TR, D), lambda i: (i, 0)),
            pl.BlockSpec((TR, D), lambda i: (i, 0)),
            pl.BlockSpec((1, D), lambda i: (0, 0)),
            pl.BlockSpec((1, D), lambda i: (0, 0)),
            pl.BlockSpec((D, C), lambda i: (0, 0)),
        ],
        out_specs=pl.BlockSpec((TR, C), lambda i: (i, 0)),
        compiler_params=_cparams("parallel"),
        cost_estimate=ce,
    )(y.astype(jnp.float32), z.astype(jnp.float32),
      gamma.reshape(1, D).astype(jnp.float32),
      beta.reshape(1, D).astype(jnp.float32),
      w_out_t.astype(MATMUL_DTYPE))


# --------------------------------------------------------------------------
# parameters (deterministic, shapes per SpectralMamba.__init__)
# --------------------------------------------------------------------------
def make_params(dim, n=16, key=jax.random.PRNGKey(0)):
    c = dim
    d = 2 * c
    d4 = 4 * d
    dr = math.ceil(c / 16)
    ks = jax.random.split(key, 8)

    def u(k, shape, fan_in):
        bound = 1.0 / math.sqrt(fan_in)
        return jax.random.uniform(k, shape, jnp.float32, -bound, bound)

    return dict(
        in_proj_w=u(ks[0], (2 * d, c), c),            # Linear(c, 2d)
        in_proj_b=u(ks[1], (2 * d,), c),
        conv_w=u(ks[2], (d, 1, 3, 3), 9),             # depthwise Conv2d(d,d,3,groups=d)
        conv_b=u(ks[3], (d,), 9),
        x_proj_w=u(ks[4], (dr + 2 * n, d4), d4),      # Linear(4d, dr+2n), no bias
        delta_proj_w=u(ks[5], (d4, dr), dr),          # Linear(dr, 4d)
        delta_proj_b=u(ks[6], (d4,), dr),
        A_log=jnp.log(jnp.broadcast_to(
            jnp.arange(1, n + 1, dtype=jnp.float32), (d4, n))),
        D=jnp.ones((d4,), jnp.float32),
        ln_g=jnp.ones((d,), jnp.float32),
        ln_b=jnp.zeros((d,), jnp.float32),
        out_proj_w=u(ks[7], (c, d), d),               # Linear(d, c), no bias
    )
    # NOTE: conv1..conv4 from __init__ are never used in forward -> omitted.


# --------------------------------------------------------------------------
# full forward (glue in plain JAX, hot paths in Pallas kernels above)
# --------------------------------------------------------------------------
def ss2d_block_forward(x, params, n=16):
    b, c, h, w = x.shape
    d = 2 * c
    d4 = 4 * d
    dr = math.ceil(c / 16)
    s = 8 if h in (8, 16, 32, 64) else 1
    assert h % s == 0 and w % s == 0
    L = h * w
    R = b * h * w

    x = x.astype(jnp.float32)
    x_nhwc = jnp.transpose(x, (0, 2, 3, 1))                         # (b,h,w,c)

    # in_proj, chunk into x / z
    xz = linear_pallas(x_nhwc.reshape(R, c),
                       params["in_proj_w"].T, params["in_proj_b"])
    xz = xz.reshape(b, h, w, 2 * d)
    xin, z = xz[..., :d], xz[..., d:]

    # depthwise conv 3x3 + SiLU (halo built in-kernel)
    conv_w = jnp.transpose(params["conv_w"][:, 0], (1, 2, 0))       # (3,3,d)
    xc_nhwc = dwconv3_silu_pallas(xin, conv_w, params["conv_b"])    # (b,h,w,d)
    xc = jnp.transpose(xc_nhwc, (0, 3, 1, 2))                       # (b,d,h,w)

    # four scan orderings (einops rearranges with s and spatial flips)
    # TODO(synk): fold this permutation glue + inverse merge into Pallas.
    wp = w // s
    x1 = xc.reshape(b, d, h, s, wp).transpose(0, 1, 3, 2, 4).reshape(b, d, L)
    x2 = xc.reshape(b, d, L)
    xf = xc[:, :, ::-1, ::-1]
    x3 = xf.reshape(b, d, h, s, wp).transpose(0, 1, 3, 2, 4).reshape(b, d, L)
    x4 = xf.reshape(b, d, L)
    u = jnp.transpose(jnp.concatenate([x1, x2, x3, x4], axis=1), (0, 2, 1))  # (b,L,4d)

    # fused ssm projections: one matmul producing [delta | B | C]
    w_eff = params["x_proj_w"][:dr, :].T @ params["delta_proj_w"].T  # (d4, d4)
    w_dbc = jnp.concatenate(
        [w_eff,
         params["x_proj_w"][dr:dr + n, :].T,
         params["x_proj_w"][dr + n:, :].T], axis=1)                  # (d4, d4+2n)
    b_dbc = jnp.concatenate([params["delta_proj_b"],
                             jnp.zeros((2 * n,), jnp.float32)])
    dbc = dbc_proj_pallas(u.reshape(-1, d4), w_dbc, b_dbc, d4=d4)    # (bL, d4+2n)
    delta = dbc[:, :d4].reshape(b, L, d4)
    Bm = dbc[:, d4:d4 + n].reshape(b, L, n)
    Cm = dbc[:, d4 + n:].reshape(b, L, n)

    A = -jnp.exp(params["A_log"].astype(jnp.float32))               # (4d, n)
    y = selective_scan_pallas(u, delta, A, Bm, Cm, params["D"])     # (b, L, 4d)

    # merge the 4 directions back to (b, d, h, w)
    # (reference inverse rearranges pass h=h, w=w -> effectively s=1 reshapes)
    y = y.reshape(b, L, 4, d).transpose(0, 2, 3, 1)                 # (b,4,d,L)
    y1 = y[:, 0].reshape(b, d, h, w)
    y2 = y[:, 1].reshape(b, d, h, w)
    y3 = y[:, 2].reshape(b, d, h, w)[:, :, ::-1, ::-1]
    y4 = y[:, 3].reshape(b, d, h, w)[:, :, ::-1, ::-1]
    ysum = y1 + y2 + y3 + y4                                        # (b,d,h,w)

    # LayerNorm(d) + silu(z) gate + out_proj
    y_hwd = jnp.transpose(ysum, (0, 2, 3, 1)).reshape(R, d)
    z_flat = z.reshape(R, d)
    out = out_fuse_pallas(y_hwd, z_flat, params["ln_g"], params["ln_b"],
                          params["out_proj_w"].T)
    return out.reshape(b, h, w, c).transpose(0, 3, 1, 2)            # NCHW


if __name__ == "__main__":
    key = jax.random.PRNGKey(0)
    k_x, k_p = jax.random.split(key)
    dim = 4
    b, h, w = 2, 16, 16
    x = jax.random.normal(k_x, (b, dim, h, w), dtype=jnp.float32)
    params = make_params(dim, n=16, key=k_p)

    fwd = jax.jit(ss2d_block_forward)
    out = jax.block_until_ready(fwd(x, params))

    assert out.shape == (b, dim, h, w), out.shape
    assert bool(jnp.all(jnp.isfinite(out)))
    print("KERNEL_OK")
</pallas_src>

<mosaic_0001>
module attributes {stable_mosaic.version = 11 : i64} {
  func.func @_linear_kernel(%arg0: i32, %arg1: memref<256x4xbf16, #tpu.memory_space<vmem>>, %arg2: memref<4x16xbf16, #tpu.memory_space<vmem>>, %arg3: memref<1x16xf32, #tpu.memory_space<vmem>>, %arg4: memref<256x16xf32, #tpu.memory_space<vmem>>) attributes {dimension_semantics = [#tpu.dimension_semantics<parallel>], iteration_bounds = array<i64: 2>, scalar_prefetch = 0 : i64, scratch_operands = 0 : i64, tpu.core_type = #tpu.core_type<tc>, window_params = [{transform_indices = @transform_0, window_bounds = array<i64: 256, 4>}, {pipeline_mode = #tpu.pipeline_mode<synchronous>, transform_indices = @transform_1, window_bounds = array<i64: 4, 16>}, {pipeline_mode = #tpu.pipeline_mode<synchronous>, transform_indices = @transform_2, window_bounds = array<i64: 1, 16>}, {transform_indices = @transform_3, window_bounds = array<i64: 256, 16>}]} {
    %c0 = arith.constant 0 : index
    %c0_0 = arith.constant 0 : index
    %0 = vector.load %arg1[%c0, %c0_0] : memref<256x4xbf16, #tpu.memory_space<vmem>>, vector<256x4xbf16>
    %c0_1 = arith.constant 0 : index
    %c0_2 = arith.constant 0 : index
    %1 = vector.load %arg2[%c0_1, %c0_2] : memref<4x16xbf16, #tpu.memory_space<vmem>>, vector<4x16xbf16>
    %cst = arith.constant dense<0.000000e+00> : vector<256x16xf32>
    %2 = tpu.matmul %0, %1, %cst {dimension_numbers = #tpu.dot_dimension_numbers<[1], [0], [0], [1], [0, 0, 1, 1], [], []>} : vector<256x4xbf16>, vector<4x16xbf16>, vector<256x16xf32> -> vector<256x16xf32>
    %c0_3 = arith.constant 0 : index
    %c0_4 = arith.constant 0 : index
    %3 = vector.load %arg3[%c0_3, %c0_4] : memref<1x16xf32, #tpu.memory_space<vmem>>, vector<1x16xf32>
    %4 = vector.broadcast %3 : vector<1x16xf32> to vector<256x16xf32>
    %5 = arith.addf %2, %4 : vector<256x16xf32>
    %c0_5 = arith.constant 0 : index
    %c0_6 = arith.constant 0 : index
    %6 = vector.load %arg4[%c0_5, %c0_6] : memref<256x16xf32, #tpu.memory_space<vmem>>, vector<256x16xf32>
    tpu.vector_store %arg4[%c0_5, %c0_6], %5 {strides = array<i32>} : memref<256x16xf32, #tpu.memory_space<vmem>>, vector<256x16xf32>,
    return
  }
  func.func @transform_0(%arg0: i32) -> (i32, i32) {
    %c0_i32 = arith.constant 0 : i32
    %c0_i32_0 = arith.constant 0 : i32
    return %arg0, %c0_i32 : i32, i32
  }
  func.func @transform_1(%arg0: i32) -> (i32, i32) {
    %c0_i32 = arith.constant 0 : i32
    %c0_i32_0 = arith.constant 0 : i32
    %c0_i32_1 = arith.constant 0 : i32
    return %c0_i32, %c0_i32_0 : i32, i32
  }
  func.func @transform_2(%arg0: i32) -> (i32, i32) {
    %c0_i32 = arith.constant 0 : i32
    %c0_i32_0 = arith.constant 0 : i32
    %c0_i32_1 = arith.constant 0 : i32
    return %c0_i32, %c0_i32_0 : i32, i32
  }
  func.func @transform_3(%arg0: i32) -> (i32, i32) {
    %c0_i32 = arith.constant 0 : i32
    %c0_i32_0 = arith.constant 0 : i32
    return %arg0, %c0_i32 : i32, i32
  }
}

module attributes {stable_mosaic.version = 11 : i64} {
  func.func @_dwconv_silu_kernel(%arg0: i32, %arg1: memref<1x16x16x8xf32, #tpu.memory_space<vmem>>, %arg2: memref<3x3x8xf32, #tpu.memory_space<vmem>>, %arg3: memref<1x1x8xf32, #tpu.memory_space<vmem>>, %arg4: memref<1x16x16x8xf32, #tpu.memory_space<vmem>>, %arg5: memref<18x32x8xf32, #tpu.memory_space<vmem>>) attributes {dimension_semantics = [#tpu.dimension_semantics<parallel>], iteration_bounds = array<i64: 2>, scalar_prefetch = 0 : i64, scratch_operands = 1 : i64, tpu.core_type = #tpu.core_type<tc>, window_params = [{transform_indices = @transform_0, window_bounds = array<i64: 1, 16, 16, 8>}, {pipeline_mode = #tpu.pipeline_mode<synchronous>, transform_indices = @transform_1, window_bounds = array<i64: 3, 3, 8>}, {pipeline_mode = #tpu.pipeline_mode<synchronous>, transform_indices = @transform_2, window_bounds = array<i64: 1, 1, 8>}, {transform_indices = @transform_3, window_bounds = array<i64: 1, 16, 16, 8>}]} {
    %cst = arith.constant 0.000000e+00 : f32
    %0 = vector.broadcast %cst : f32 to vector<18x32x8xf32>
    %c0 = arith.constant 0 : index
    %c0_0 = arith.constant 0 : index
    %c0_1 = arith.constant 0 : index
    %1 = vector.load %arg5[%c0, %c0_0, %c0_1] : memref<18x32x8xf32, #tpu.memory_space<vmem>>, vector<18x32x8xf32>
    tpu.vector_store %arg5[%c0, %c0_0, %c0_1], %0 {strides = array<i32>} : memref<18x32x8xf32, #tpu.memory_space<vmem>>, vector<18x32x8xf32>,
    %c0_2 = arith.constant 0 : index
    %c0_3 = arith.constant 0 : index
    %c0_4 = arith.constant 0 : index
    %c0_5 = arith.constant 0 : index
    %2 = vector.load %arg1[%c0_2, %c0_3, %c0_4, %c0_5] : memref<1x16x16x8xf32, #tpu.memory_space<vmem>>, vector<1x16x16x8xf32>
    %3 = vector.shape_cast %2 : vector<1x16x16x8xf32> to vector<16x16x8xf32>
    %c1 = arith.constant 1 : index
    %c8 = arith.constant 8 : index
    %c0_6 = arith.constant 0 : index
    %4 = vector.load %arg5[%c1, %c8, %c0_6] : memref<18x32x8xf32, #tpu.memory_space<vmem>>, vector<16x16x8xf32>
    tpu.vector_store %arg5[%c1, %c8, %c0_6], %3 {strides = array<i32>} : memref<18x32x8xf32, #tpu.memory_space<vmem>>, vector<16x16x8xf32>,
    %c0_7 = arith.constant 0 : index
    %c0_8 = arith.constant 0 : index
    %c0_9 = arith.constant 0 : index
    %5 = vector.load %arg5[%c0_7, %c0_8, %c0_9] : memref<18x32x8xf32, #tpu.memory_space<vmem>>, vector<18x32x8xf32>
    %c0_10 = arith.constant 0 : index
    %c0_11 = arith.constant 0 : index
    %c0_12 = arith.constant 0 : index
    %6 = vector.load %arg2[%c0_10, %c0_11, %c0_12] : memref<3x3x8xf32, #tpu.memory_space<vmem>>, vector<3x3x8xf32>
    %7 = vector.extract_strided_slice %5 {offsets = [0, 7, 0], sizes = [16, 16, 8], strides = [1, 1, 1]} : vector<18x32x8xf32> to vector<16x16x8xf32>
    %8 = vector.extract_strided_slice %6 {offsets = [0, 0, 0], sizes = [1, 1, 8], strides = [1, 1, 1]} : vector<3x3x8xf32> to vector<1x1x8xf32>
    %9 = vector.shape_cast %8 : vector<1x1x8xf32> to vector<8xf32>
    %10 = vector.shape_cast %9 : vector<8xf32> to vector<1x1x8xf32>
    %11 = vector.broadcast %10 : vector<1x1x8xf32> to vector<16x16x8xf32>
    %12 = arith.mulf %7, %11 : vector<16x16x8xf32>
    %13 = vector.extract_strided_slice %5 {offsets = [0, 8, 0], sizes = [16, 16, 8], strides = [1, 1, 1]} : vector<18x32x8xf32> to vector<16x16x8xf32>
    %14 = vector.extract_strided_slice %6 {offsets = [0, 1, 0], sizes = [1, 1, 8], strides = [1, 1, 1]} : vector<3x3x8xf32> to vector<1x1x8xf32>
    %15 = vector.shape_cast %14 : vector<1x1x8xf32> to vector<8xf32>
    %16 = vector.shape_cast %15 : vector<8xf32> to vector<1x1x8xf32>
    %17 = vector.broadcast %16 : vector<1x1x8xf32> to vector<16x16x8xf32>
    %18 = arith.mulf %13, %17 : vector<16x16x8xf32>
    %19 = arith.addf %12, %18 : vector<16x16x8xf32>
    %20 = vector.extract_strided_slice %5 {offsets = [0, 9, 0], sizes = [16, 16, 8], strides = [1, 1, 1]} : vector<18x32x8xf32> to vector<16x16x8xf32>
    %21 = vector.extract_strided_slice %6 {offsets = [0, 2, 0], sizes = [1, 1, 8], strides = [1, 1, 1]} : vector<3x3x8xf32> to vector<1x1x8xf32>
    %22 = vector.shape_cast %21 : vector<1x1x8xf32> to vector<8xf32>
    %23 = vector.shape_cast %22 : vector<8xf32> to vector<1x1x8xf32>
    %24 = vector.broadcast %23 : vector<1x1x8xf32> to vector<16x16x8xf32>
    %25 = arith.mulf %20, %24 : vector<16x16x8xf32>
    %26 = arith.addf %19, %25 : vector<16x16x8xf32>
    %27 = vector.extract_strided_slice %5 {offsets = [1, 7, 0], sizes = [16, 16, 8], strides = [1, 1, 1]} : vector<18x32x8xf32> to vector<16x16x8xf32>
    %28 = vector.extract_strided_slice %6 {offsets = [1, 0, 0], sizes = [1, 1, 8], strides = [1, 1, 1]} : vector<3x3x8xf32> to vector<1x1x8xf32>
    %29 = vector.shape_cast %28 : vector<1x1x8xf32> to vector<8xf32>
    %30 = vector.shape_cast %29 : vector<8xf32> to vector<1x1x8xf32>
    %31 = vector.broadcast %30 : vector<1x1x8xf32> to vector<16x16x8xf32>
    %32 = arith.mulf %27, %31 : vector<16x16x8xf32>
    %33 = arith.addf %26, %32 : vector<16x16x8xf32>
    %34 = vector.extract_strided_slice %5 {offsets = [1, 8, 0], sizes = [16, 16, 8], strides = [1, 1, 1]} : vector<18x32x8xf32> to vector<16x16x8xf32>
    %35 = vector.extract_strided_slice %6 {offsets = [1, 1, 0], sizes = [1, 1, 8], strides = [1, 1, 1]} : vector<3x3x8xf32> to vector<1x1x8xf32>
    %36 = vector.shape_cast %35 : vector<1x1x8xf32> to vector<8xf32>
    %37 = vector.shape_cast %36 : vector<8xf32> to vector<1x1x8xf32>
    %38 = vector.broadcast %37 : vector<1x1x8xf32> to vector<16x16x8xf32>
    %39 = arith.mulf %34, %38 : vector<16x16x8xf32>
    %40 = arith.addf %33, %39 : vector<16x16x8xf32>
    %41 = vector.extract_strided_slice %5 {offsets = [1, 9, 0], sizes = [16, 16, 8], strides = [1, 1, 1]} : vector<18x32x8xf32> to vector<16x16x8xf32>
    %42 = vector.extract_strided_slice %6 {offsets = [1, 2, 0], sizes = [1, 1, 8], strides = [1, 1, 1]} : vector<3x3x8xf32> to vector<1x1x8xf32>
    %43 = vector.shape_cast %42 : vector<1x1x8xf32> to vector<8xf32>
    %44 = vector.shape_cast %43 : vector<8xf32> to vector<1x1x8xf32>
    %45 = vector.broadcast %44 : vector<1x1x8xf32> to vector<16x16x8xf32>
    %46 = arith.mulf %41, %45 : vector<16x16x8xf32>
    %47 = arith.addf %40, %46 : vector<16x16x8xf32>
    %48 = vector.extract_strided_slice %5 {offsets = [2, 7, 0], sizes = [16, 16, 8], strides = [1, 1, 1]} : vector<18x32x8xf32> to vector<16x16x8xf32>
    %49 = vector.extract_strided_slice %6 {offsets = [2, 0, 0], sizes = [1, 1, 8], strides = [1, 1, 1]} : vector<3x3x8xf32> to vector<1x1x8xf32>
    %50 = vector.shape_cast %49 : vector<1x1x8xf32> to vector<8xf32>
    %51 = vector.shape_cast %50 : vector<8xf32> to vector<1x1x8xf32>
    %52 = vector.broadcast %51 : vector<1x1x8xf32> to vector<16x16x8xf32>
    %53 = arith.mulf %48, %52 : vector<16x16x8xf32>
    %54 = arith.addf %47, %53 : vector<16x16x8xf32>
    %55 = vector.extract_strided_slice %5 {offsets = [2, 8, 0], sizes = [16, 16, 8], strides = [1, 1, 1]} : vector<18x32x8xf32> to vector<16x16x8xf32>
    %56 = vector.extract_strided_slice %6 {offsets = [2, 1, 0], sizes = [1, 1, 8], strides = [1, 1, 1]} : vector<3x3x8xf32> to vector<1x1x8xf32>
    %57 = vector.shape_cast %56 : vector<1x1x8xf32> to vector<8xf32>
    %58 = vector.shape_cast %57 : vector<8xf32> to vector<1x1x8xf32>
    %59 = vector.broadcast %58 : vector<1x1x8xf32> to vector<16x16x8xf32>
    %60 = arith.mulf %55, %59 : vector<16x16x8xf32>
    %61 = arith.addf %54, %60 : vector<16x16x8xf32>
    %62 = vector.extract_strided_slice %5 {offsets = [2, 9, 0], sizes = [16, 16, 8], strides = [1, 1, 1]} : vector<18x32x8xf32> to vector<16x16x8xf32>
    %63 = vector.extract_strided_slice %6 {offsets = [2, 2, 0], sizes = [1, 1, 8], strides = [1, 1, 1]} : vector<3x3x8xf32> to vector<1x1x8xf32>
    %64 = vector.shape_cast %63 : vector<1x1x8xf32> to vector<8xf32>
    %65 = vector.shape_cast %64 : vector<8xf32> to vector<1x1x8xf32>
    %66 = vector.broadcast %65 : vector<1x1x8xf32> to vector<16x16x8xf32>
    %67 = arith.mulf %62, %66 : vector<16x16x8xf32>
    %68 = arith.addf %61, %67 : vector<16x16x8xf32>
    %c0_13 = arith.constant 0 : index
    %c0_14 = arith.constant 0 : index
    %c0_15 = arith.constant 0 : index
    %69 = vector.load %arg3[%c0_13, %c0_14, %c0_15] : memref<1x1x8xf32, #tpu.memory_space<vmem>>, vector<1x1x8xf32>
    %70 = vector.broadcast %69 : vector<1x1x8xf32> to vector<16x16x8xf32>
    %71 = arith.addf %68, %70 : vector<16x16x8xf32>
    %cst_16 = arith.constant 0.000000e+00 : f32
    %72 = vector.broadcast %cst_16 : f32 to vector<16x16x8xf32>
    %73 = arith.subf %72, %71 : vector<16x16x8xf32>
    %74 = math.exp %73 : vector<16x16x8xf32>
    %cst_17 = arith.constant 1.000000e+00 : f32
    %75 = vector.broadcast %cst_17 : f32 to vector<16x16x8xf32>
    %76 = arith.addf %75, %74 : vector<16x16x8xf32>
    %cst_18 = arith.constant 1.000000e+00 : f32
    %77 = vector.broadcast %cst_18 : f32 to vector<16x16x8xf32>
    %78 = arith.divf %77, %76 : vector<16x16x8xf32>
    %79 = arith.mulf %71, %78 : vector<16x16x8xf32>
    %c0_19 = arith.constant 0 : index
    %c0_20 = arith.constant 0 : index
    %c0_21 = arith.constant 0 : index
    %c0_22 = arith.constant 0 : index
    %80 = vector.load %arg4[%c0_19, %c0_20, %c0_21, %c0_22] : memref<1x16x16x8xf32, #tpu.memory_space<vmem>>, vector<1x16x16x8xf32>
    %81 = vector.shape_cast %80 : vector<1x16x16x8xf32> to vector<16x16x8xf32>
    %82 = vector.shape_cast %79 : vector<16x16x8xf32> to vector<1x16x16x8xf32>
    tpu.vector_store %arg4[%c0_19, %c0_20, %c0_21, %c0_22], %82 {strides = array<i32>} : memref<1x16x16x8xf32, #tpu.memory_space<vmem>>, vector<1x16x16x8xf32>,
    return
  }
  func.func @transform_0(%arg0: i32) -> (i32, i32, i32, i32) {
    %c0_i32 = arith.constant 0 : i32
    %c0_i32_0 = arith.constant 0 : i32
    %c0_i32_1 = arith.constant 0 : i32
    %c0_i32_2 = arith.constant 0 : i32
    return %arg0, %c0_i32, %c0_i32_0, %c0_i32_1 : i32, i32, i32, i32
  }
  func.func @transform_1(%arg0: i32) -> (i32, i32, i32) {
    %c0_i32 = arith.constant 0 : i32
    %c0_i32_0 = arith.constant 0 : i32
    %c0_i32_1 = arith.constant 0 : i32
    %c0_i32_2 = arith.constant 0 : i32
    return %c0_i32, %c0_i32_0, %c0_i32_1 : i32, i32, i32
  }
  func.func @transform_2(%arg0: i32) -> (i32, i32, i32) {
    %c0_i32 = arith.constant 0 : i32
    %c0_i32_0 = arith.constant 0 : i32
    %c0_i32_1 = arith.constant 0 : i32
    %c0_i32_2 = arith.constant 0 : i32
    return %c0_i32, %c0_i32_0, %c0_i32_1 : i32, i32, i32
  }
  func.func @transform_3(%arg0: i32) -> (i32, i32, i32, i32) {
    %c0_i32 = arith.constant 0 : i32
    %c0_i32_0 = arith.constant 0 : i32
    %c0_i32_1 = arith.constant 0 : i32
    %c0_i32_2 = arith.constant 0 : i32
    return %arg0, %c0_i32, %c0_i32_0, %c0_i32_1 : i32, i32, i32, i32
  }
}

module attributes {stable_mosaic.version = 11 : i64} {
  func.func @_dbc_kernel(%arg0: i32, %arg1: memref<256x32xbf16, #tpu.memory_space<vmem>>, %arg2: memref<32x64xbf16, #tpu.memory_space<vmem>>, %arg3: memref<1x64xf32, #tpu.memory_space<vmem>>, %arg4: memref<256x64xf32, #tpu.memory_space<vmem>>) attributes {dimension_semantics = [#tpu.dimension_semantics<parallel>], iteration_bounds = array<i64: 2>, scalar_prefetch = 0 : i64, scratch_operands = 0 : i64, tpu.core_type = #tpu.core_type<tc>, window_params = [{transform_indices = @transform_0, window_bounds = array<i64: 256, 32>}, {pipeline_mode = #tpu.pipeline_mode<synchronous>, transform_indices = @transform_1, window_bounds = array<i64: 32, 64>}, {pipeline_mode = #tpu.pipeline_mode<synchronous>, transform_indices = @transform_2, window_bounds = array<i64: 1, 64>}, {transform_indices = @transform_3, window_bounds = array<i64: 256, 64>}]} {
    %c0 = arith.constant 0 : index
    %c0_0 = arith.constant 0 : index
    %0 = vector.load %arg1[%c0, %c0_0] : memref<256x32xbf16, #tpu.memory_space<vmem>>, vector<256x32xbf16>
    %c0_1 = arith.constant 0 : index
    %c0_2 = arith.constant 0 : index
    %1 = vector.load %arg2[%c0_1, %c0_2] : memref<32x64xbf16, #tpu.memory_space<vmem>>, vector<32x64xbf16>
    %cst = arith.constant dense<0.000000e+00> : vector<256x64xf32>
    %2 = tpu.matmul %0, %1, %cst {dimension_numbers = #tpu.dot_dimension_numbers<[1], [0], [0], [1], [0, 0, 1, 1], [], []>} : vector<256x32xbf16>, vector<32x64xbf16>, vector<256x64xf32> -> vector<256x64xf32>
    %c0_3 = arith.constant 0 : index
    %c0_4 = arith.constant 0 : index
    %3 = vector.load %arg3[%c0_3, %c0_4] : memref<1x64xf32, #tpu.memory_space<vmem>>, vector<1x64xf32>
    %4 = vector.broadcast %3 : vector<1x64xf32> to vector<256x64xf32>
    %5 = arith.addf %2, %4 : vector<256x64xf32>
    %cst_5 = arith.constant 2.000000e+01 : f32
    %6 = vector.broadcast %cst_5 : f32 to vector<256x64xf32>
    %7 = arith.cmpf ogt, %5, %6 : vector<256x64xf32>
    %cst_6 = arith.constant 2.000000e+01 : f32
    %8 = vector.broadcast %cst_6 : f32 to vector<256x64xf32>
    %9 = arith.minimumf %5, %8 : vector<256x64xf32>
    %10 = math.exp %9 : vector<256x64xf32>
    %cst_7 = arith.constant 1.000000e+00 : f32
    %11 = vector.broadcast %cst_7 : f32 to vector<256x64xf32>
    %12 = arith.addf %11, %10 : vector<256x64xf32>
    %13 = math.log %12 : vector<256x64xf32>
    %14 = arith.select %7, %5, %13 : vector<256x64xi1>, vector<256x64xf32>
    %15 = tpu.iota {dimensions = array<i32: 1>} : vector<256x64xi32>
    %c32_i32 = arith.constant 32 : i32
    %16 = vector.broadcast %c32_i32 : i32 to vector<256x64xi32>
    %17 = arith.cmpi slt, %15, %16 : vector<256x64xi32>
    %18 = arith.select %17, %14, %5 : vector<256x64xi1>, vector<256x64xf32>
    %c0_8 = arith.constant 0 : index
    %c0_9 = arith.constant 0 : index
    %19 = vector.load %arg4[%c0_8, %c0_9] : memref<256x64xf32, #tpu.memory_space<vmem>>, vector<256x64xf32>
    tpu.vector_store %arg4[%c0_8, %c0_9], %18 {strides = array<i32>} : memref<256x64xf32, #tpu.memory_space<vmem>>, vector<256x64xf32>,
    return
  }
  func.func @transform_0(%arg0: i32) -> (i32, i32) {
    %c0_i32 = arith.constant 0 : i32
    %c0_i32_0 = arith.constant 0 : i32
    return %arg0, %c0_i32 : i32, i32
  }
  func.func @transform_1(%arg0: i32) -> (i32, i32) {
    %c0_i32 = arith.constant 0 : i32
    %c0_i32_0 = arith.constant 0 : i32
    %c0_i32_1 = arith.constant 0 : i32
    return %c0_i32, %c0_i32_0 : i32, i32
  }
  func.func @transform_2(%arg0: i32) -> (i32, i32) {
    %c0_i32 = arith.constant 0 : i32
    %c0_i32_0 = arith.constant 0 : i32
    %c0_i32_1 = arith.constant 0 : i32
    return %c0_i32, %c0_i32_0 : i32, i32
  }
  func.func @transform_3(%arg0: i32) -> (i32, i32) {
    %c0_i32 = arith.constant 0 : i32
    %c0_i32_0 = arith.constant 0 : i32
    return %arg0, %c0_i32 : i32, i32
  }
}

module attributes {stable_mosaic.version = 11 : i64} {
  func.func @_selective_scan_kernel(%arg0: i32, %arg1: i32, %arg2: memref<1x128x32xf32, #tpu.memory_space<vmem>>, %arg3: memref<1x128x32xf32, #tpu.memory_space<vmem>>, %arg4: memref<1x128x16xf32, #tpu.memory_space<vmem>>, %arg5: memref<1x128x16xf32, #tpu.memory_space<vmem>>, %arg6: memref<16x32xf32, #tpu.memory_space<vmem>>, %arg7: memref<1x32xf32, #tpu.memory_space<vmem>>, %arg8: memref<1x128x32xf32, #tpu.memory_space<vmem>>, %arg9: memref<16x32xf32, #tpu.memory_space<vmem>>, %arg10: memref<8x32xf32, #tpu.memory_space<vmem>>) attributes {dimension_semantics = [#tpu.dimension_semantics<parallel>, #tpu.dimension_semantics<arbitrary>], iteration_bounds = array<i64: 2, 2>, scalar_prefetch = 0 : i64, scratch_operands = 2 : i64, tpu.core_type = #tpu.core_type<tc>, window_params = [{transform_indices = @transform_0, window_bounds = array<i64: 1, 128, 32>}, {transform_indices = @transform_1, window_bounds = array<i64: 1, 128, 32>}, {transform_indices = @transform_2, window_bounds = array<i64: 1, 128, 16>}, {transform_indices = @transform_3, window_bounds = array<i64: 1, 128, 16>}, {pipeline_mode = #tpu.pipeline_mode<synchronous>, transform_indices = @transform_4, window_bounds = array<i64: 16, 32>}, {pipeline_mode = #tpu.pipeline_mode<synchronous>, transform_indices = @transform_5, window_bounds = array<i64: 1, 32>}, {transform_indices = @transform_6, window_bounds = array<i64: 1, 128, 32>}]} {
    %c0_i32 = arith.constant 0 : i32
    %0 = arith.cmpi eq, %arg1, %c0_i32 : i32
    %1 = arith.extui %0 : i1 to i32
    %c0_i32_0 = arith.constant 0 : i32
    %2 = arith.cmpi ne, %1, %c0_i32_0 : i32
    scf.if %2 {
      %cst = arith.constant 0.000000e+00 : f32
      %12 = vector.broadcast %cst : f32 to vector<16x32xf32>
      %c0_10 = arith.constant 0 : index
      %c0_11 = arith.constant 0 : index
      %13 = vector.load %arg9[%c0_10, %c0_11] : memref<16x32xf32, #tpu.memory_space<vmem>>, vector<16x32xf32>
      tpu.vector_store %arg9[%c0_10, %c0_11], %12 {strides = array<i32>} : memref<16x32xf32, #tpu.memory_space<vmem>>, vector<16x32xf32>,
    } else {
    }
    %c0 = arith.constant 0 : index
    %c0_1 = arith.constant 0 : index
    %3 = vector.load %arg6[%c0, %c0_1] : memref<16x32xf32, #tpu.memory_space<vmem>>, vector<16x32xf32>
    %c0_2 = arith.constant 0 : index
    %c0_3 = arith.constant 0 : index
    %4 = vector.load %arg7[%c0_2, %c0_3] : memref<1x32xf32, #tpu.memory_space<vmem>>, vector<1x32xf32>
    %5 = tpu.iota {dimensions = array<i32: 0>} : vector<16x16xi32>
    %6 = tpu.iota {dimensions = array<i32: 1>} : vector<16x16xi32>
    %7 = arith.cmpi eq, %5, %6 : vector<16x16xi32>
    %c0_4 = arith.constant 0 : index
    %c0_5 = arith.constant 0 : index
    %8 = vector.load %arg9[%c0_4, %c0_5] : memref<16x32xf32, #tpu.memory_space<vmem>>, vector<16x32xf32>
    %c0_i32_6 = arith.constant 0 : i32
    %c16_i32 = arith.constant 16 : i32
    %9 = arith.addi %c0_i32_6, %c16_i32 : i32
    %c1_i32 = arith.constant 1 : i32
    %10 = scf.for %arg11 = %c0_i32_6 to %9 step %c1_i32 iter_args(%arg12 = %8) -> (vector<16x32xf32>)  : i32 {
      %c8_i32 = arith.constant 8 : i32
      %12 = arith.muli %arg11, %c8_i32 : i32
      %13 = tpu.assume_multiple %12, 8 : i32
      %c0_10 = arith.constant 0 : index
      %14 = arith.index_cast %13 : i32 to index
      %c0_11 = arith.constant 0 : index
      %15 = vector.load %arg2[%c0_10, %14, %c0_11] : memref<1x128x32xf32, #tpu.memory_space<vmem>>, vector<1x8x32xf32>
      %16 = vector.shape_cast %15 : vector<1x8x32xf32> to vector<8x32xf32>
      %c0_12 = arith.constant 0 : index
      %17 = arith.index_cast %13 : i32 to index
      %c0_13 = arith.constant 0 : index
      %18 = vector.load %arg3[%c0_12, %17, %c0_13] : memref<1x128x32xf32, #tpu.memory_space<vmem>>, vector<1x8x32xf32>
      %19 = vector.shape_cast %18 : vector<1x8x32xf32> to vector<8x32xf32>
      %c0_14 = arith.constant 0 : index
      %20 = arith.index_cast %13 : i32 to index
      %c0_15 = arith.constant 0 : index
      %21 = vector.load %arg4[%c0_14, %20, %c0_15] : memref<1x128x16xf32, #tpu.memory_space<vmem>>, vector<1x8x16xf32>
      %22 = vector.shape_cast %21 : vector<1x8x16xf32> to vector<8x16xf32>
      %c0_16 = arith.constant 0 : index
      %23 = arith.index_cast %13 : i32 to index
      %c0_17 = arith.constant 0 : index
      %24 = vector.load %arg5[%c0_16, %23, %c0_17] : memref<1x128x16xf32, #tpu.memory_space<vmem>>, vector<1x8x16xf32>
      %25 = vector.shape_cast %24 : vector<1x8x16xf32> to vector<8x16xf32>
      %26 = arith.mulf %19, %16 : vector<8x32xf32>
      %27 = vector.extract_strided_slice %19 {offsets = [0, 0], sizes = [1, 32], strides = [1, 1]} : vector<8x32xf32> to vector<1x32xf32>
      %28 = vector.extract_strided_slice %22 {offsets = [0, 0], sizes = [1, 16], strides = [1, 1]} : vector<8x16xf32> to vector<1x16xf32>
      %29 = vector.shape_cast %28 : vector<1x16xf32> to vector<1x16xf32>
      %30 = vector.broadcast %29 : vector<1x16xf32> to vector<16x16xf32>
      %cst = arith.constant 0.000000e+00 : f32
      %31 = vector.broadcast %cst : f32 to vector<16x16xf32>
      %32 = arith.select %7, %30, %31 : vector<16x16xi1>, vector<16x16xf32>
      %cst_18 = arith.constant dense<0.000000e+00> : vector<16xf32>
      %33 = vector.multi_reduction <add>, %32, %cst_18 [1] : vector<16x16xf32> to vector<16xf32>
      %34 = vector.shape_cast %33 : vector<16xf32> to vector<16x1xf32>
      %35 = vector.broadcast %27 : vector<1x32xf32> to vector<16x32xf32>
      %36 = arith.mulf %35, %3 : vector<16x32xf32>
      %37 = math.exp %36 : vector<16x32xf32>
      %38 = arith.mulf %37, %arg12 : vector<16x32xf32>
      %39 = vector.extract_strided_slice %26 {offsets = [0, 0], sizes = [1, 32], strides = [1, 1]} : vector<8x32xf32> to vector<1x32xf32>
      %40 = vector.broadcast %34 : vector<16x1xf32> to vector<16x32xf32>
      %41 = vector.broadcast %39 : vector<1x32xf32> to vector<16x32xf32>
      %42 = arith.mulf %40, %41 : vector<16x32xf32>
      %43 = arith.addf %38, %42 : vector<16x32xf32>
      %44 = vector.extract_strided_slice %25 {offsets = [0, 0], sizes = [1, 16], strides = [1, 1]} : vector<8x16xf32> to vector<1x16xf32>
      %cst_19 = arith.constant dense<0.000000e+00> : vector<1x32xf32>
      %45 = tpu.matmul %44, %43, %cst_19 {dimension_numbers = #tpu.dot_dimension_numbers<[1], [0], [0], [1], [0, 0, 1, 1], [], []>} : vector<1x16xf32>, vector<16x32xf32>, vector<1x32xf32> -> vector<1x32xf32>
      %46 = vector.extract_strided_slice %16 {offsets = [0, 0], sizes = [1, 32], strides = [1, 1]} : vector<8x32xf32> to vector<1x32xf32>
      %47 = arith.mulf %4, %46 : vector<1x32xf32>
      %48 = arith.addf %45, %47 : vector<1x32xf32>
      %c0_20 = arith.constant 0 : index
      %c0_21 = arith.constant 0 : index
      %49 = vector.load %arg10[%c0_20, %c0_21] : memref<8x32xf32, #tpu.memory_space<vmem>>, vector<1x32xf32>
      tpu.vector_store %arg10[%c0_20, %c0_21], %48 {strides = array<i32>} : memref<8x32xf32, #tpu.memory_space<vmem>>, vector<1x32xf32>,
      %50 = vector.extract_strided_slice %19 {offsets = [1, 0], sizes = [1, 32], strides = [1, 1]} : vector<8x32xf32> to vector<1x32xf32>
      %51 = vector.extract_strided_slice %22 {offsets = [1, 0], sizes = [1, 16], strides = [1, 1]} : vector<8x16xf32> to vector<1x16xf32>
      %52 = vector.shape_cast %51 : vector<1x16xf32> to vector<1x16xf32>
      %53 = vector.broadcast %52 : vector<1x16xf32> to vector<16x16xf32>
      %cst_22 = arith.constant 0.000000e+00 : f32
      %54 = vector.broadcast %cst_22 : f32 to vector<16x16xf32>
      %55 = arith.select %7, %53, %54 : vector<16x16xi1>, vector<16x16xf32>
      %cst_23 = arith.constant dense<0.000000e+00> : vector<16xf32>
      %56 = vector.multi_reduction <add>, %55, %cst_23 [1] : vector<16x16xf32> to vector<16xf32>
      %57 = vector.shape_cast %56 : vector<16xf32> to vector<16x1xf32>
      %58 = vector.broadcast %50 : vector<1x32xf32> to vector<16x32xf32>
      %59 = arith.mulf %58, %3 : vector<16x32xf32>
      %60 = math.exp %59 : vector<16x32xf32>
      %61 = arith.mulf %60, %43 : vector<16x32xf32>
      %62 = vector.extract_strided_slice %26 {offsets = [1, 0], sizes = [1, 32], strides = [1, 1]} : vector<8x32xf32> to vector<1x32xf32>
      %63 = vector.broadcast %57 : vector<16x1xf32> to vector<16x32xf32>
      %64 = vector.broadcast %62 : vector<1x32xf32> to vector<16x32xf32>
      %65 = arith.mulf %63, %64 : vector<16x32xf32>
      %66 = arith.addf %61, %65 : vector<16x32xf32>
      %67 = vector.extract_strided_slice %25 {offsets = [1, 0], sizes = [1, 16], strides = [1, 1]} : vector<8x16xf32> to vector<1x16xf32>
      %cst_24 = arith.constant dense<0.000000e+00> : vector<1x32xf32>
      %68 = tpu.matmul %67, %66, %cst_24 {dimension_numbers = #tpu.dot_dimension_numbers<[1], [0], [0], [1], [0, 0, 1, 1], [], []>} : vector<1x16xf32>, vector<16x32xf32>, vector<1x32xf32> -> vector<1x32xf32>
      %69 = vector.extract_strided_slice %16 {offsets = [1, 0], sizes = [1, 32], strides = [1, 1]} : vector<8x32xf32> to vector<1x32xf32>
      %70 = arith.mulf %4, %69 : vector<1x32xf32>
      %71 = arith.addf %68, %70 : vector<1x32xf32>
      %c1 = arith.constant 1 : index
      %c0_25 = arith.constant 0 : index
      %72 = vector.load %arg10[%c1, %c0_25] : memref<8x32xf32, #tpu.memory_space<vmem>>, vector<1x32xf32>
      tpu.vector_store %arg10[%c1, %c0_25], %71 {strides = array<i32>} : memref<8x32xf32, #tpu.memory_space<vmem>>, vector<1x32xf32>,
      %73 = vector.extract_strided_slice %19 {offsets = [2, 0], sizes = [1, 32], strides = [1, 1]} : vector<8x32xf32> to vector<1x32xf32>
      %74 = vector.extract_strided_slice %22 {offsets = [2, 0], sizes = [1, 16], strides = [1, 1]} : vector<8x16xf32> to vector<1x16xf32>
      %75 = vector.shape_cast %74 : vector<1x16xf32> to vector<1x16xf32>
      %76 = vector.broadcast %75 : vector<1x16xf32> to vector<16x16xf32>
      %cst_26 = arith.constant 0.000000e+00 : f32
      %77 = vector.broadcast %cst_26 : f32 to vector<16x16xf32>
      %78 = arith.select %7, %76, %77 : vector<16x16xi1>, vector<16x16xf32>
      %cst_27 = arith.constant dense<0.000000e+00> : vector<16xf32>
      %79 = vector.multi_reduction <add>, %78, %cst_27 [1] : vector<16x16xf32> to vector<16xf32>
      %80 = vector.shape_cast %79 : vector<16xf32> to vector<16x1xf32>
      %81 = vector.broadcast %73 : vector<1x32xf32> to vector<16x32xf32>
      %82 = arith.mulf %81, %3 : vector<16x32xf32>
      %83 = math.exp %82 : vector<16x32xf32>
      %84 = arith.mulf %83, %66 : vector<16x32xf32>
      %85 = vector.extract_strided_slice %26 {offsets = [2, 0], sizes = [1, 32], strides = [1, 1]} : vector<8x32xf32> to vector<1x32xf32>
      %86 = vector.broadcast %80 : vector<16x1xf32> to vector<16x32xf32>
      %87 = vector.broadcast %85 : vector<1x32xf32> to vector<16x32xf32>
      %88 = arith.mulf %86, %87 : vector<16x32xf32>
      %89 = arith.addf %84, %88 : vector<16x32xf32>
      %90 = vector.extract_strided_slice %25 {offsets = [2, 0], sizes = [1, 16], strides = [1, 1]} : vector<8x16xf32> to vector<1x16xf32>
      %cst_28 = arith.constant dense<0.000000e+00> : vector<1x32xf32>
      %91 = tpu.matmul %90, %89, %cst_28 {dimension_numbers = #tpu.dot_dimension_numbers<[1], [0], [0], [1], [0, 0, 1, 1], [], []>} : vector<1x16xf32>, vector<16x32xf32>, vector<1x32xf32> -> vector<1x32xf32>
      %92 = vector.extract_strided_slice %16 {offsets = [2, 0], sizes = [1, 32], strides = [1, 1]} : vector<8x32xf32> to vector<1x32xf32>
      %93 = arith.mulf %4, %92 : vector<1x32xf32>
      %94 = arith.addf %91, %93 : vector<1x32xf32>
      %c2 = arith.constant 2 : index
      %c0_29 = arith.constant 0 : index
      %95 = vector.load %arg10[%c2, %c0_29] : memref<8x32xf32, #tpu.memory_space<vmem>>, vector<1x32xf32>
      tpu.vector_store %arg10[%c2, %c0_29], %94 {strides = array<i32>} : memref<8x32xf32, #tpu.memory_space<vmem>>, vector<1x32xf32>,
      %96 = vector.extract_strided_slice %19 {offsets = [3, 0], sizes = [1, 32], strides = [1, 1]} : vector<8x32xf32> to vector<1x32xf32>
      %97 = vector.extract_strided_slice %22 {offsets = [3, 0], sizes = [1, 16], strides = [1, 1]} : vector<8x16xf32> to vector<1x16xf32>
      %98 = vector.shape_cast %97 : vector<1x16xf32> to vector<1x16xf32>
      %99 = vector.broadcast %98 : vector<1x16xf32> to vector<16x16xf32>
      %cst_30 = arith.constant 0.000000e+00 : f32
      %100 = vector.broadcast %cst_30 : f32 to vector<16x16xf32>
      %101 = arith.select %7, %99, %100 : vector<16x16xi1>, vector<16x16xf32>
      %cst_31 = arith.constant dense<0.000000e+00> : vector<16xf32>
      %102 = vector.multi_reduction <add>, %101, %cst_31 [1] : vector<16x16xf32> to vector<16xf32>
      %103 = vector.shape_cast %102 : vector<16xf32> to vector<16x1xf32>
      %104 = vector.broadcast %96 : vector<1x32xf32> to vector<16x32xf32>
      %105 = arith.mulf %104, %3 : vector<16x32xf32>
      %106 = math.exp %105 : vector<16x32xf32>
      %107 = arith.mulf %106, %89 : vector<16x32xf32>
      %108 = vector.extract_strided_slice %26 {offsets = [3, 0], sizes = [1, 32], strides = [1, 1]} : vector<8x32xf32> to vector<1x32xf32>
      %109 = vector.broadcast %103 : vector<16x1xf32> to vector<16x32xf32>
      %110 = vector.broadcast %108 : vector<1x32xf32> to vector<16x32xf32>
      %111 = arith.mulf %109, %110 : vector<16x32xf32>
      %112 = arith.addf %107, %111 : vector<16x32xf32>
      %113 = vector.extract_strided_slice %25 {offsets = [3, 0], sizes = [1, 16], strides = [1, 1]} : vector<8x16xf32> to vector<1x16xf32>
      %cst_32 = arith.constant dense<0.000000e+00> : vector<1x32xf32>
      %114 = tpu.matmul %113, %112, %cst_32 {dimension_numbers = #tpu.dot_dimension_numbers<[1], [0], [0], [1], [0, 0, 1, 1], [], []>} : vector<1x16xf32>, vector<16x32xf32>, vector<1x32xf32> -> vector<1x32xf32>
      %115 = vector.extract_strided_slice %16 {offsets = [3, 0], sizes = [1, 32], strides = [1, 1]} : vector<8x32xf32> to vector<1x32xf32>
      %116 = arith.mulf %4, %115 : vector<1x32xf32>
      %117 = arith.addf %114, %116 : vector<1x32xf32>
      %c3 = arith.constant 3 : index
      %c0_33 = arith.constant 0 : index
      %118 = vector.load %arg10[%c3, %c0_33] : memref<8x32xf32, #tpu.memory_space<vmem>>, vector<1x32xf32>
      tpu.vector_store %arg10[%c3, %c0_33], %117 {strides = array<i32>} : memref<8x32xf32, #tpu.memory_space<vmem>>, vector<1x32xf32>,
      %119 = vector.extract_strided_slice %19 {offsets = [4, 0], sizes = [1, 32], strides = [1, 1]} : vector<8x32xf32> to vector<1x32xf32>
      %120 = vector.extract_strided_slice %22 {offsets = [4, 0], sizes = [1, 16], strides = [1, 1]} : vector<8x16xf32> to vector<1x16xf32>
      %121 = vector.shape_cast %120 : vector<1x16xf32> to vector<1x16xf32>
      %122 = vector.broadcast %121 : vector<1x16xf32> to vector<16x16xf32>
      %cst_34 = arith.constant 0.000000e+00 : f32
      %123 = vector.broadcast %cst_34 : f32 to vector<16x16xf32>
      %124 = arith.select %7, %122, %123 : vector<16x16xi1>, vector<16x16xf32>
      %cst_35 = arith.constant dense<0.000000e+00> : vector<16xf32>
      %125 = vector.multi_reduction <add>, %124, %cst_35 [1] : vector<16x16xf32> to vector<16xf32>
      %126 = vector.shape_cast %125 : vector<16xf32> to vector<16x1xf32>
      %127 = vector.broadcast %119 : vector<1x32xf32> to vector<16x32xf32>
      %128 = arith.mulf %127, %3 : vector<16x32xf32>
      %129 = math.exp %128 : vector<16x32xf32>
      %130 = arith.mulf %129, %112 : vector<16x32xf32>
      %131 = vector.extract_strided_slice %26 {offsets = [4, 0], sizes = [1, 32], strides = [1, 1]} : vector<8x32xf32> to vector<1x32xf32>
      %132 = vector.broadcast %126 : vector<16x1xf32> to vector<16x32xf32>
      %133 = vector.broadcast %131 : vector<1x32xf32> to vector<16x32xf32>
      %134 = arith.mulf %132, %133 : vector<16x32xf32>
      %135 = arith.addf %130, %134 : vector<16x32xf32>
      %136 = vector.extract_strided_slice %25 {offsets = [4, 0], sizes = [1, 16], strides = [1, 1]} : vector<8x16xf32> to vector<1x16xf32>
      %cst_36 = arith.constant dense<0.000000e+00> : vector<1x32xf32>
      %137 = tpu.matmul %136, %135, %cst_36 {dimension_numbers = #tpu.dot_dimension_numbers<[1], [0], [0], [1], [0, 0, 1, 1], [], []>} : vector<1x16xf32>, vector<16x32xf32>, vector<1x32xf32> -> vector<1x32xf32>
      %138 = vector.extract_strided_slice %16 {offsets = [4, 0], sizes = [1, 32], strides = [1, 1]} : vector<8x32xf32> to vector<1x32xf32>
      %139 = arith.mulf %4, %138 : vector<1x32xf32>
      %140 = arith.addf %137, %139 : vector<1x32xf32>
      %c4 = arith.constant 4 : index
      %c0_37 = arith.constant 0 : index
      %141 = vector.load %arg10[%c4, %c0_37] : memref<8x32xf32, #tpu.memory_space<vmem>>, vector<1x32xf32>
      tpu.vector_store %arg10[%c4, %c0_37], %140 {strides = array<i32>} : memref<8x32xf32, #tpu.memory_space<vmem>>, vector<1x32xf32>,
      %142 = vector.extract_strided_slice %19 {offsets = [5, 0], sizes = [1, 32], strides = [1, 1]} : vector<8x32xf32> to vector<1x32xf32>
      %143 = vector.extract_strided_slice %22 {offsets = [5, 0], sizes = [1, 16], strides = [1, 1]} : vector<8x16xf32> to vector<1x16xf32>
      %144 = vector.shape_cast %143 : vector<1x16xf32> to vector<1x16xf32>
      %145 = vector.broadcast %144 : vector<1x16xf32> to vector<16x16xf32>
      %cst_38 = arith.constant 0.000000e+00 : f32
      %146 = vector.broadcast %cst_38 : f32 to vector<16x16xf32>
      %147 = arith.select %7, %145, %146 : vector<16x16xi1>, vector<16x16xf32>
      %cst_39 = arith.constant dense<0.000000e+00> : vector<16xf32>
      %148 = vector.multi_reduction <add>, %147, %cst_39 [1] : vector<16x16xf32> to vector<16xf32>
      %149 = vector.shape_cast %148 : vector<16xf32> to vector<16x1xf32>
      %150 = vector.broadcast %142 : vector<1x32xf32> to vector<16x32xf32>
      %151 = arith.mulf %150, %3 : vector<16x32xf32>
      %152 = math.exp %151 : vector<16x32xf32>
      %153 = arith.mulf %152, %135 : vector<16x32xf32>
      %154 = vector.extract_strided_slice %26 {offsets = [5, 0], sizes = [1, 32], strides = [1, 1]} : vector<8x32xf32> to vector<1x32xf32>
      %155 = vector.broadcast %149 : vector<16x1xf32> to vector<16x32xf32>
      %156 = vector.broadcast %154 : vector<1x32xf32> to vector<16x32xf32>
      %157 = arith.mulf %155, %156 : vector<16x32xf32>
      %158 = arith.addf %153, %157 : vector<16x32xf32>
      %159 = vector.extract_strided_slice %25 {offsets = [5, 0], sizes = [1, 16], strides = [1, 1]} : vector<8x16xf32> to vector<1x16xf32>
      %cst_40 = arith.constant dense<0.000000e+00> : vector<1x32xf32>
      %160 = tpu.matmul %159, %158, %cst_40 {dimension_numbers = #tpu.dot_dimension_numbers<[1], [0], [0], [1], [0, 0, 1, 1], [], []>} : vector<1x16xf32>, vector<16x32xf32>, vector<1x32xf32> -> vector<1x32xf32>
      %161 = vector.extract_strided_slice %16 {offsets = [5, 0], sizes = [1, 32], strides = [1, 1]} : vector<8x32xf32> to vector<1x32xf32>
      %162 = arith.mulf %4, %161 : vector<1x32xf32>
      %163 = arith.addf %160, %162 : vector<1x32xf32>
      %c5 = arith.constant 5 : index
      %c0_41 = arith.constant 0 : index
      %164 = vector.load %arg10[%c5, %c0_41] : memref<8x32xf32, #tpu.memory_space<vmem>>, vector<1x32xf32>
      tpu.vector_store %arg10[%c5, %c0_41], %163 {strides = array<i32>} : memref<8x32xf32, #tpu.memory_space<vmem>>, vector<1x32xf32>,
      %165 = vector.extract_strided_slice %19 {offsets = [6, 0], sizes = [1, 32], strides = [1, 1]} : vector<8x32xf32> to vector<1x32xf32>
      %166 = vector.extract_strided_slice %22 {offsets = [6, 0], sizes = [1, 16], strides = [1, 1]} : vector<8x16xf32> to vector<1x16xf32>
      %167 = vector.shape_cast %166 : vector<1x16xf32> to vector<1x16xf32>
      %168 = vector.broadcast %167 : vector<1x16xf32> to vector<16x16xf32>
      %cst_42 = arith.constant 0.000000e+00 : f32
      %169 = vector.broadcast %cst_42 : f32 to vector<16x16xf32>
      %170 = arith.select %7, %168, %169 : vector<16x16xi1>, vector<16x16xf32>
      %cst_43 = arith.constant dense<0.000000e+00> : vector<16xf32>
      %171 = vector.multi_reduction <add>, %170, %cst_43 [1] : vector<16x16xf32> to vector<16xf32>
      %172 = vector.shape_cast %171 : vector<16xf32> to vector<16x1xf32>
      %173 = vector.broadcast %165 : vector<1x32xf32> to vector<16x32xf32>
      %174 = arith.mulf %173, %3 : vector<16x32xf32>
      %175 = math.exp %174 : vector<16x32xf32>
      %176 = arith.mulf %175, %158 : vector<16x32xf32>
      %177 = vector.extract_strided_slice %26 {offsets = [6, 0], sizes = [1, 32], strides = [1, 1]} : vector<8x32xf32> to vector<1x32xf32>
      %178 = vector.broadcast %172 : vector<16x1xf32> to vector<16x32xf32>
      %179 = vector.broadcast %177 : vector<1x32xf32> to vector<16x32xf32>
      %180 = arith.mulf %178, %179 : vector<16x32xf32>
      %181 = arith.addf %176, %180 : vector<16x32xf32>
      %182 = vector.extract_strided_slice %25 {offsets = [6, 0], sizes = [1, 16], strides = [1, 1]} : vector<8x16xf32> to vector<1x16xf32>
      %cst_44 = arith.constant dense<0.000000e+00> : vector<1x32xf32>
      %183 = tpu.matmul %182, %181, %cst_44 {dimension_numbers = #tpu.dot_dimension_numbers<[1], [0], [0], [1], [0, 0, 1, 1], [], []>} : vector<1x16xf32>, vector<16x32xf32>, vector<1x32xf32> -> vector<1x32xf32>
      %184 = vector.extract_strided_slice %16 {offsets = [6, 0], sizes = [1, 32], strides = [1, 1]} : vector<8x32xf32> to vector<1x32xf32>
      %185 = arith.mulf %4, %184 : vector<1x32xf32>
      %186 = arith.addf %183, %185 : vector<1x32xf32>
      %c6 = arith.constant 6 : index
      %c0_45 = arith.constant 0 : index
      %187 = vector.load %arg10[%c6, %c0_45] : memref<8x32xf32, #tpu.memory_space<vmem>>, vector<1x32xf32>
      tpu.vector_store %arg10[%c6, %c0_45], %186 {strides = array<i32>} : memref<8x32xf32, #tpu.memory_space<vmem>>, vector<1x32xf32>,
      %188 = vector.extract_strided_slice %19 {offsets = [7, 0], sizes = [1, 32], strides = [1, 1]} : vector<8x32xf32> to vector<1x32xf32>
      %189 = vector.extract_strided_slice %22 {offsets = [7, 0], sizes = [1, 16], strides = [1, 1]} : vector<8x16xf32> to vector<1x16xf32>
      %190 = vector.shape_cast %189 : vector<1x16xf32> to vector<1x16xf32>
      %191 = vector.broadcast %190 : vector<1x16xf32> to vector<16x16xf32>
      %cst_46 = arith.constant 0.000000e+00 : f32
      %192 = vector.broadcast %cst_46 : f32 to vector<16x16xf32>
      %193 = arith.select %7, %191, %192 : vector<16x16xi1>, vector<16x16xf32>
      %cst_47 = arith.constant dense<0.000000e+00> : vector<16xf32>
      %194 = vector.multi_reduction <add>, %193, %cst_47 [1] : vector<16x16xf32> to vector<16xf32>
      %195 = vector.shape_cast %194 : vector<16xf32> to vector<16x1xf32>
      %196 = vector.broadcast %188 : vector<1x32xf32> to vector<16x32xf32>
      %197 = arith.mulf %196, %3 : vector<16x32xf32>
      %198 = math.exp %197 : vector<16x32xf32>
      %199 = arith.mulf %198, %181 : vector<16x32xf32>
      %200 = vector.extract_strided_slice %26 {offsets = [7, 0], sizes = [1, 32], strides = [1, 1]} : vector<8x32xf32> to vector<1x32xf32>
      %201 = vector.broadcast %195 : vector<16x1xf32> to vector<16x32xf32>
      %202 = vector.broadcast %200 : vector<1x32xf32> to vector<16x32xf32>
      %203 = arith.mulf %201, %202 : vector<16x32xf32>
      %204 = arith.addf %199, %203 : vector<16x32xf32>
      %205 = vector.extract_strided_slice %25 {offsets = [7, 0], sizes = [1, 16], strides = [1, 1]} : vector<8x16xf32> to vector<1x16xf32>
      %cst_48 = arith.constant dense<0.000000e+00> : vector<1x32xf32>
      %206 = tpu.matmul %205, %204, %cst_48 {dimension_numbers = #tpu.dot_dimension_numbers<[1], [0], [0], [1], [0, 0, 1, 1], [], []>} : vector<1x16xf32>, vector<16x32xf32>, vector<1x32xf32> -> vector<1x32xf32>
      %207 = vector.extract_strided_slice %16 {offsets = [7, 0], sizes = [1, 32], strides = [1, 1]} : vector<8x32xf32> to vector<1x32xf32>
      %208 = arith.mulf %4, %207 : vector<1x32xf32>
      %209 = arith.addf %206, %208 : vector<1x32xf32>
      %c7 = arith.constant 7 : index
      %c0_49 = arith.constant 0 : index
      %210 = vector.load %arg10[%c7, %c0_49] : memref<8x32xf32, #tpu.memory_space<vmem>>, vector<1x32xf32>
      tpu.vector_store %arg10[%c7, %c0_49], %209 {strides = array<i32>} : memref<8x32xf32, #tpu.memory_space<vmem>>, vector<1x32xf32>,
      %c0_50 = arith.constant 0 : index
      %c0_51 = arith.constant 0 : index
      %211 = vector.load %arg10[%c0_50, %c0_51] : memref<8x32xf32, #tpu.memory_space<vmem>>, vector<8x32xf32>
      %c0_52 = arith.constant 0 : index
      %212 = arith.index_cast %13 : i32 to index
      %c0_53 = arith.constant 0 : index
      %213 = vector.load %arg8[%c0_52, %212, %c0_53] : memref<1x128x32xf32, #tpu.memory_space<vmem>>, vector<1x8x32xf32>
      %214 = vector.shape_cast %213 : vector<1x8x32xf32> to vector<8x32xf32>
      %215 = vector.shape_cast %211 : vector<8x32xf32> to vector<1x8x32xf32>
      tpu.vector_store %arg8[%c0_52, %212, %c0_53], %215 {strides = array<i32>} : memref<1x128x32xf32, #tpu.memory_space<vmem>>, vector<1x8x32xf32>,
      scf.yield %204 : vector<16x32xf32>
    }
    %c16_i32_7 = arith.constant 16 : i32
    %c0_8 = arith.constant 0 : index
    %c0_9 = arith.constant 0 : index
    %11 = vector.load %arg9[%c0_8, %c0_9] : memref<16x32xf32, #tpu.memory_space<vmem>>, vector<16x32xf32>
    tpu.vector_store %arg9[%c0_8, %c0_9], %10 {strides = array<i32>} : memref<16x32xf32, #tpu.memory_space<vmem>>, vector<16x32xf32>,
    return
  }
  func.func @transform_0(%arg0: i32, %arg1: i32) -> (i32, i32, i32) {
    %c0_i32 = arith.constant 0 : i32
    %c0_i32_0 = arith.constant 0 : i32
    return %arg0, %arg1, %c0_i32 : i32, i32, i32
  }
  func.func @transform_1(%arg0: i32, %arg1: i32) -> (i32, i32, i32) {
    %c0_i32 = arith.constant 0 : i32
    %c0_i32_0 = arith.constant 0 : i32
    return %arg0, %arg1, %c0_i32 : i32, i32, i32
  }
  func.func @transform_2(%arg0: i32, %arg1: i32) -> (i32, i32, i32) {
    %c0_i32 = arith.constant 0 : i32
    %c0_i32_0 = arith.constant 0 : i32
    return %arg0, %arg1, %c0_i32 : i32, i32, i32
  }
  func.func @transform_3(%arg0: i32, %arg1: i32) -> (i32, i32, i32) {
    %c0_i32 = arith.constant 0 : i32
    %c0_i32_0 = arith.constant 0 : i32
    return %arg0, %arg1, %c0_i32 : i32, i32, i32
  }
  func.func @transform_4(%arg0: i32, %arg1: i32) -> (i32, i32) {
    %c0_i32 = arith.constant 0 : i32
    %c0_i32_0 = arith.constant 0 : i32
    %c0_i32_1 = arith.constant 0 : i32
    return %c0_i32, %c0_i32_0 : i32, i32
  }
  func.func @transform_5(%arg0: i32, %arg1: i32) -> (i32, i32) {
    %c0_i32 = arith.constant 0 : i32
    %c0_i32_0 = arith.constant 0 : i32
    %c0_i32_1 = arith.constant 0 : i32
    return %c0_i32, %c0_i32_0 : i32, i32
  }
  func.func @transform_6(%arg0: i32, %arg1: i32) -> (i32, i32, i32) {
    %c0_i32 = arith.constant 0 : i32
    %c0_i32_0 = arith.constant 0 : i32
    return %arg0, %arg1, %c0_i32 : i32, i32, i32
  }
}

module attributes {stable_mosaic.version = 11 : i64} {
  func.func @_out_fuse_kernel(%arg0: i32, %arg1: memref<256x8xf32, #tpu.memory_space<vmem>>, %arg2: memref<256x8xf32, #tpu.memory_space<vmem>>, %arg3: memref<1x8xf32, #tpu.memory_space<vmem>>, %arg4: memref<1x8xf32, #tpu.memory_space<vmem>>, %arg5: memref<8x4xbf16, #tpu.memory_space<vmem>>, %arg6: memref<256x4xf32, #tpu.memory_space<vmem>>) attributes {dimension_semantics = [#tpu.dimension_semantics<parallel>], iteration_bounds = array<i64: 2>, scalar_prefetch = 0 : i64, scratch_operands = 0 : i64, tpu.core_type = #tpu.core_type<tc>, window_params = [{transform_indices = @transform_0, window_bounds = array<i64: 256, 8>}, {transform_indices = @transform_1, window_bounds = array<i64: 256, 8>}, {pipeline_mode = #tpu.pipeline_mode<synchronous>, transform_indices = @transform_2, window_bounds = array<i64: 1, 8>}, {pipeline_mode = #tpu.pipeline_mode<synchronous>, transform_indices = @transform_3, window_bounds = array<i64: 1, 8>}, {pipeline_mode = #tpu.pipeline_mode<synchronous>, transform_indices = @transform_4, window_bounds = array<i64: 8, 4>}, {transform_indices = @transform_5, window_bounds = array<i64: 256, 4>}]} {
    %c0 = arith.constant 0 : index
    %c0_0 = arith.constant 0 : index
    %0 = vector.load %arg1[%c0, %c0_0] : memref<256x8xf32, #tpu.memory_space<vmem>>, vector<256x8xf32>
    %cst = arith.constant dense<0.000000e+00> : vector<256xf32>
    %1 = vector.multi_reduction <add>, %0, %cst [1] : vector<256x8xf32> to vector<256xf32>
    %2 = vector.shape_cast %1 : vector<256xf32> to vector<256x1xf32>
    %cst_1 = arith.constant 8.000000e+00 : f32
    %3 = vector.broadcast %cst_1 : f32 to vector<256x1xf32>
    %4 = arith.divf %2, %3 : vector<256x1xf32>
    %5 = vector.broadcast %4 : vector<256x1xf32> to vector<256x8xf32>
    %6 = arith.subf %0, %5 : vector<256x8xf32>
    %7 = arith.mulf %6, %6 : vector<256x8xf32>
    %cst_2 = arith.constant dense<0.000000e+00> : vector<256xf32>
    %8 = vector.multi_reduction <add>, %7, %cst_2 [1] : vector<256x8xf32> to vector<256xf32>
    %9 = vector.shape_cast %8 : vector<256xf32> to vector<256x1xf32>
    %cst_3 = arith.constant 8.000000e+00 : f32
    %10 = vector.broadcast %cst_3 : f32 to vector<256x1xf32>
    %11 = arith.divf %9, %10 : vector<256x1xf32>
    %12 = vector.broadcast %4 : vector<256x1xf32> to vector<256x8xf32>
    %13 = arith.subf %0, %12 : vector<256x8xf32>
    %cst_4 = arith.constant 9.99999974E-6 : f32
    %14 = vector.broadcast %cst_4 : f32 to vector<256x1xf32>
    %15 = arith.addf %11, %14 : vector<256x1xf32>
    %16 = math.rsqrt %15 : vector<256x1xf32>
    %17 = vector.broadcast %16 : vector<256x1xf32> to vector<256x8xf32>
    %18 = arith.mulf %13, %17 : vector<256x8xf32>
    %c0_5 = arith.constant 0 : index
    %c0_6 = arith.constant 0 : index
    %19 = vector.load %arg3[%c0_5, %c0_6] : memref<1x8xf32, #tpu.memory_space<vmem>>, vector<1x8xf32>
    %20 = vector.broadcast %19 : vector<1x8xf32> to vector<256x8xf32>
    %21 = arith.mulf %18, %20 : vector<256x8xf32>
    %c0_7 = arith.constant 0 : index
    %c0_8 = arith.constant 0 : index
    %22 = vector.load %arg4[%c0_7, %c0_8] : memref<1x8xf32, #tpu.memory_space<vmem>>, vector<1x8xf32>
    %23 = vector.broadcast %22 : vector<1x8xf32> to vector<256x8xf32>
    %24 = arith.addf %21, %23 : vector<256x8xf32>
    %c0_9 = arith.constant 0 : index
    %c0_10 = arith.constant 0 : index
    %25 = vector.load %arg2[%c0_9, %c0_10] : memref<256x8xf32, #tpu.memory_space<vmem>>, vector<256x8xf32>
    %cst_11 = arith.constant 0.000000e+00 : f32
    %26 = vector.broadcast %cst_11 : f32 to vector<256x8xf32>
    %27 = arith.subf %26, %25 : vector<256x8xf32>
    %28 = math.exp %27 : vector<256x8xf32>
    %cst_12 = arith.constant 1.000000e+00 : f32
    %29 = vector.broadcast %cst_12 : f32 to vector<256x8xf32>
    %30 = arith.addf %29, %28 : vector<256x8xf32>
    %cst_13 = arith.constant 1.000000e+00 : f32
    %31 = vector.broadcast %cst_13 : f32 to vector<256x8xf32>
    %32 = arith.divf %31, %30 : vector<256x8xf32>
    %33 = arith.mulf %25, %32 : vector<256x8xf32>
    %34 = arith.mulf %24, %33 : vector<256x8xf32>
    %35 = arith.truncf %34 : vector<256x8xf32> to vector<256x8xbf16>
    %c0_14 = arith.constant 0 : index
    %c0_15 = arith.constant 0 : index
    %36 = vector.load %arg5[%c0_14, %c0_15] : memref<8x4xbf16, #tpu.memory_space<vmem>>, vector<8x4xbf16>
    %cst_16 = arith.constant dense<0.000000e+00> : vector<256x4xf32>
    %37 = tpu.matmul %35, %36, %cst_16 {dimension_numbers = #tpu.dot_dimension_numbers<[1], [0], [0], [1], [0, 0, 1, 1], [], []>} : vector<256x8xbf16>, vector<8x4xbf16>, vector<256x4xf32> -> vector<256x4xf32>
    %c0_17 = arith.constant 0 : index
    %c0_18 = arith.constant 0 : index
    %38 = vector.load %arg6[%c0_17, %c0_18] : memref<256x4xf32, #tpu.memory_space<vmem>>, vector<256x4xf32>
    tpu.vector_store %arg6[%c0_17, %c0_18], %37 {strides = array<i32>} : memref<256x4xf32, #tpu.memory_space<vmem>>, vector<256x4xf32>,
    return
  }
  func.func @transform_0(%arg0: i32) -> (i32, i32) {
    %c0_i32 = arith.constant 0 : i32
    %c0_i32_0 = arith.constant 0 : i32
    return %arg0, %c0_i32 : i32, i32
  }
  func.func @transform_1(%arg0: i32) -> (i32, i32) {
    %c0_i32 = arith.constant 0 : i32
    %c0_i32_0 = arith.constant 0 : i32
    return %arg0, %c0_i32 : i32, i32
  }
  func.func @transform_2(%arg0: i32) -> (i32, i32) {
    %c0_i32 = arith.constant 0 : i32
    %c0_i32_0 = arith.constant 0 : i32
    %c0_i32_1 = arith.constant 0 : i32
    return %c0_i32, %c0_i32_0 : i32, i32
  }
  func.func @transform_3(%arg0: i32) -> (i32, i32) {
    %c0_i32 = arith.constant 0 : i32
    %c0_i32_0 = arith.constant 0 : i32
    %c0_i32_1 = arith.constant 0 : i32
    return %c0_i32, %c0_i32_0 : i32, i32
  }
  func.func @transform_4(%arg0: i32) -> (i32, i32) {
    %c0_i32 = arith.constant 0 : i32
    %c0_i32_0 = arith.constant 0 : i32
    %c0_i32_1 = arith.constant 0 : i32
    return %c0_i32, %c0_i32_0 : i32, i32
  }
  func.func @transform_5(%arg0: i32) -> (i32, i32) {
    %c0_i32 = arith.constant 0 : i32
    %c0_i32_0 = arith.constant 0 : i32
    return %arg0, %c0_i32 : i32, i32
  }
}

</mosaic_0001>

<bundles_post_ra>
// kernel: ss2d_block_forward.5
= control target key start
LH: loop header
LB: loop body
LE: loop exit
PB: predicated region body
PF: predicated region fallthrough
CT: control target
= control target key end

     0   :  { %s749_s12 = smov 0   ;;  %s910_s0 = inlined_call_operand.vmem [shape: bf16[512,4], index: 0, kind: input, shape index: {}]   ;;  %s911_s1 = inlined_call_operand.vmem [shape: bf16[4,16], index: 1, kind: input, shape index: {}]   ;;  %s912_s2 = inlined_call_operand.vmem [shape: f32[1,16], index: 2, kind: input, shape index: {}]   ;;  %s913_s3 = inlined_call_operand.vmem [shape: f32[512,16], index: 3, kind: output, shape index: {}]  }
   0x1 LB: > { %s598_s13 = sadd.s32 4294967295, %s727_s12   ;;  %p602_p0 = scmp.ge.s32.totalorder %s727_s12, 1  ;;  %s727_s12 = sphi %s749_s12, %s13_s12  }
   0x2   : > { %p138_p1 = scmp.lt.s32.totalorder %s727_s12, 3 }
   0x4   : > { %p139_p2 = pnand %p602_p0, %p138_p1 }
   0x5   : > { %v207_v0 = vld [vmem:[%s911_s1] sm:$0x3] (!%p139_p2)  ;;  %vm344_vm0 = vcmask (!%p139_p2), 1041408   ;;  %s603_s16 = sshll.u32 (!%p139_p2), %s598_s13, 5  ;;  %vm295_vm1 = vcmask (!%p139_p2), 31744   ;;  %vm509_vm2 = vcmask (!%p139_p2), 130048  }
   0x6   : > { %142 = sbr.rel (%p139_p2) target bundleno = 261 (0x105), region = 32  ;;  %695 = vmatprep.subr.msk.bf16.mxu0 (!%p139_p2), %vm344_vm0, %v207_v0  ;;  %696 = vmatprep.subr.msk.bf16.mxu1 (!%p139_p2), %vm344_vm0, %v207_v0  ;;  %v346_v1 = vsel (!%p139_p2), %vm344_vm0, %v207_v0, 0  ;;  %p163_p3 = scmp.lt.s32.totalorder (!%p139_p2), %s603_s16, 63  ;;  %v804_v18 = vld [vmem:[%s912_s2] ss:$0 sm:$0xff] (!%p139_p2) }
   0x7   : > { %660 = vmatpush3.bf16.msra.mxu0 (!%p139_p2), %v346_v1  ;;  %694 = vmatpush3.bf16.msra.mxu1 (!%p139_p2), %v346_v1 }
   0xd   : > { %s915_s16 = smov (!%p163_p3, %s603_s16), 63 }
   0xe   : > { %s604_s17 = sshll.u32 %s915_s16, 2  ;;  %s606_s21 = sshll.u32 %s915_s16, 3 }
   0xf   : > { %s766_s20 = scalar_lea.vmem %s910_s0, %s604_s17  ;;  %s809_s26 = scalar_lea.vmem %s913_s3, %s606_s21 }
  0x10   : > { %v705_v2 = vld [vmem:[%s766_s20] sm:$0xff]   ;;  %v707_v4 = vld [vmem:[%s766_s20 + $0x8] sm:$0xff]   ;;  %v709_v6 = vld [vmem:[%s766_s20 + $0x10] sm:$0xff]  }
  0x11   : > { %v706_v3 = vld [vmem:[%s766_s20 + $0x40] sm:$0xff]   ;;  %661 = vmatprep.mubr.msk.bf16.mxu0 %vm295_vm1, %v705_v2  ;;  %v708_v5 = vld [vmem:[%s766_s20 + $0x48] sm:$0xff]   ;;  %v710_v7 = vld [vmem:[%s766_s20 + $0x50] sm:$0xff]  }
  0x12   : > { %677 = vmatprep.mubr.msk.bf16.mxu1 %vm295_vm1, %v706_v3  ;;  %662 = vmatmul.mubr.msk.bf16.vlgmr.msra.gmra.mrb[0].mxu0 %vm295_vm1, %v707_v4  ;;  %v711_v8 = vld [vmem:[%s766_s20 + $0x18] sm:$0xff]   ;;  %v713_v10 = vld [vmem:[%s766_s20 + $0x20] sm:$0xff]   ;;  %v715_v12 = vld [vmem:[%s766_s20 + $0x28] sm:$0xff]  }
  0x13   : > { %678 = vmatmul.mubr.msk.bf16.vlgmr.msra.gmra.mrb[0].mxu1 %vm295_vm1, %v708_v5  ;;  %665 = vmatprep.mubr.msk.bf16.mxu0 %vm295_vm1, %v709_v6  ;;  %v712_v9 = vld [vmem:[%s766_s20 + $0x58] sm:$0xff]   ;;  %v714_v11 = vld [vmem:[%s766_s20 + $0x60] sm:$0xff]   ;;  %v716_v13 = vld [vmem:[%s766_s20 + $0x68] sm:$0xff]  }
  0x14   : > { %681 = vmatprep.mubr.msk.bf16.mxu1 %vm295_vm1, %v710_v7  ;;  %v717_v14 = vld [vmem:[%s766_s20 + $0x30] sm:$0xff]   ;;  %v719_v16 = vld [vmem:[%s766_s20 + $0x38] sm:$0xff]  }
  0x15   : > { %v718_v15 = vld [vmem:[%s766_s20 + $0x70] sm:$0xff]   ;;  %v720_v17 = vld [vmem:[%s766_s20 + $0x78] sm:$0xff]  }
  0x1a   : > { %666 = vmatmul.mubr.msk.bf16.gmra.mrb[4].mxu0 %vm295_vm1, %v711_v8 }
  0x1b   : > { %682 = vmatmul.mubr.msk.bf16.gmra.mrb[4].mxu1 %vm295_vm1, %v712_v9  ;;  %669 = vmatprep.mubr.msk.bf16.mxu0 %vm295_vm1, %v713_v10 }
  0x1c   : > { %685 = vmatprep.mubr.msk.bf16.mxu1 %vm295_vm1, %v714_v11 }
  0x22   : > { %670 = vmatmul.mubr.msk.bf16.gmra.mrb[8].mxu0 %vm295_vm1, %v715_v12 }
  0x23   : > { %686 = vmatmul.mubr.msk.bf16.gmra.mrb[8].mxu1 %vm295_vm1, %v716_v13  ;;  %673 = vmatprep.mubr.msk.bf16.mxu0 %vm295_vm1, %v717_v14 }
  0x24   : > { %689 = vmatprep.mubr.msk.bf16.mxu1 %vm295_vm1, %v718_v15 }
  0x2a   : > { %674 = vmatmul.mubr.msk.bf16.gmra.mrb[12].mxu0 %vm295_vm1, %v719_v16 }
  0x2b   : > { %690 = vmatmul.mubr.msk.bf16.gmra.mrb[12].mxu1 %vm295_vm1, %v720_v17 }
  0xe5   : > { %v663_v19 = vpop.f32.mrb[0].mxu0 }
  0xe6   : > { %v391_v20 = vadd.f32 %v663_v19, %v804_v18  ;;  %v679_v21 = vpop.f32.mrb[0].mxu1  ;;  %v382_v22 = vpop.f32.mrb[1].mxu0 }
  0xe7   : > { %v455_v23 = vadd.f32 %v679_v21, %v804_v18  ;;  %v383_v24 = vadd.f32 %v804_v18, %v382_v22  ;;  %v446_v25 = vpop.f32.mrb[1].mxu1  ;;  %v664_v26 = vpop.f32.mrb[2].mxu0 }
  0xe8   : > { %512 = vst.msk [vmem:[%s809_s26 + $0x10] sm:$0xff] %vm509_vm2, %v391_v20  ;;  %v447_v27 = vadd.f32 %v804_v18, %v446_v25  ;;  %v394_v28 = vadd.f32 %v664_v26, %v804_v18  ;;  %v680_v29 = vpop.f32.mrb[2].mxu1  ;;  %v385_v30 = vpop.f32.mrb[3].mxu0 }
  0xe9   : > { %528 = vst.msk [vmem:[%s809_s26 + $0x90] sm:$0xff] %vm509_vm2, %v455_v23  ;;  %510 = vst.msk [vmem:[%s809_s26] sm:$0xff] %vm509_vm2, %v383_v24  ;;  %v458_v31 = vadd.f32 %v680_v29, %v804_v18  ;;  %v386_v32 = vadd.f32 %v804_v18, %v385_v30  ;;  %v449_v33 = vpop.f32.mrb[3].mxu1 }
  0xea   : > { %526 = vst.msk [vmem:[%s809_s26 + $0x80] sm:$0xff] %vm509_vm2, %v447_v27  ;;  %513 = vst.msk [vmem:[%s809_s26 + $0x18] sm:$0xff] %vm509_vm2, %v394_v28  ;;  %v450_v34 = vadd.f32 %v804_v18, %v449_v33 }
  0xeb   : > { %529 = vst.msk [vmem:[%s809_s26 + $0x98] sm:$0xff] %vm509_vm2, %v458_v31  ;;  %511 = vst.msk [vmem:[%s809_s26 + $0x8] sm:$0xff] %vm509_vm2, %v386_v32 }
  0xec   : > { %527 = vst.msk [vmem:[%s809_s26 + $0x88] sm:$0xff] %vm509_vm2, %v450_v34 }
  0xed   : > { %v667_v35 = vpop.f32.mrb[4].mxu0 }
  0xee   : > { %v407_v36 = vadd.f32 %v667_v35, %v804_v18  ;;  %v683_v37 = vpop.f32.mrb[4].mxu1  ;;  %v398_v38 = vpop.f32.mrb[5].mxu0 }
  0xef   : > { %v471_v39 = vadd.f32 %v683_v37, %v804_v18  ;;  %v399_v40 = vadd.f32 %v804_v18, %v398_v38  ;;  %v462_v41 = vpop.f32.mrb[5].mxu1  ;;  %v668_v42 = vpop.f32.mrb[6].mxu0 }
  0xf0   : > { %516 = vst.msk [vmem:[%s809_s26 + $0x30] sm:$0xff] %vm509_vm2, %v407_v36  ;;  %v463_v43 = vadd.f32 %v804_v18, %v462_v41  ;;  %v410_v44 = vadd.f32 %v668_v42, %v804_v18  ;;  %v684_v45 = vpop.f32.mrb[6].mxu1  ;;  %v401_v46 = vpop.f32.mrb[7].mxu0 }
  0xf1   : > { %532 = vst.msk [vmem:[%s809_s26 + $0xb0] sm:$0xff] %vm509_vm2, %v471_v39  ;;  %514 = vst.msk [vmem:[%s809_s26 + $0x20] sm:$0xff] %vm509_vm2, %v399_v40  ;;  %v474_v47 = vadd.f32 %v684_v45, %v804_v18  ;;  %v402_v48 = vadd.f32 %v804_v18, %v401_v46  ;;  %v465_v49 = vpop.f32.mrb[7].mxu1 }
  0xf2   : > { %530 = vst.msk [vmem:[%s809_s26 + $0xa0] sm:$0xff] %vm509_vm2, %v463_v43  ;;  %517 = vst.msk [vmem:[%s809_s26 + $0x38] sm:$0xff] %vm509_vm2, %v410_v44  ;;  %v466_v50 = vadd.f32 %v804_v18, %v465_v49 }
  0xf3   : > { %533 = vst.msk [vmem:[%s809_s26 + $0xb8] sm:$0xff] %vm509_vm2, %v474_v47  ;;  %515 = vst.msk [vmem:[%s809_s26 + $0x28] sm:$0xff] %vm509_vm2, %v402_v48 }
  0xf4   : > { %531 = vst.msk [vmem:[%s809_s26 + $0xa8] sm:$0xff] %vm509_vm2, %v466_v50 }
  0xf5   : > { %v671_v51 = vpop.f32.mrb[8].mxu0 }
  0xf6   : > { %v423_v52 = vadd.f32 %v671_v51, %v804_v18  ;;  %v687_v53 = vpop.f32.mrb[8].mxu1  ;;  %v414_v54 = vpop.f32.mrb[9].mxu0 }
  0xf7   : > { %v487_v55 = vadd.f32 %v687_v53, %v804_v18  ;;  %v415_v56 = vadd.f32 %v804_v18, %v414_v54  ;;  %v478_v57 = vpop.f32.mrb[9].mxu1  ;;  %v672_v58 = vpop.f32.mrb[10].mxu0 }
  0xf8   : > { %520 = vst.msk [vmem:[%s809_s26 + $0x50] sm:$0xff] %vm509_vm2, %v423_v52  ;;  %v479_v59 = vadd.f32 %v804_v18, %v478_v57  ;;  %v426_v60 = vadd.f32 %v672_v58, %v804_v18  ;;  %v688_v61 = vpop.f32.mrb[10].mxu1  ;;  %v417_v62 = vpop.f32.mrb[11].mxu0 }
  0xf9   : > { %536 = vst.msk [vmem:[%s809_s26 + $0xd0] sm:$0xff] %vm509_vm2, %v487_v55  ;;  %518 = vst.msk [vmem:[%s809_s26 + $0x40] sm:$0xff] %vm509_vm2, %v415_v56  ;;  %v490_v63 = vadd.f32 %v688_v61, %v804_v18  ;;  %v418_v0 = vadd.f32 %v804_v18, %v417_v62  ;;  %v481_v1 = vpop.f32.mrb[11].mxu1 }
  0xfa   : > { %534 = vst.msk [vmem:[%s809_s26 + $0xc0] sm:$0xff] %vm509_vm2, %v479_v59  ;;  %521 = vst.msk [vmem:[%s809_s26 + $0x58] sm:$0xff] %vm509_vm2, %v426_v60  ;;  %v482_v2 = vadd.f32 %v804_v18, %v481_v1 }
  0xfb   : > { %537 = vst.msk [vmem:[%s809_s26 + $0xd8] sm:$0xff] %vm509_vm2, %v490_v63  ;;  %519 = vst.msk [vmem:[%s809_s26 + $0x48] sm:$0xff] %vm509_vm2, %v418_v0 }
  0xfc   : > { %535 = vst.msk [vmem:[%s809_s26 + $0xc8] sm:$0xff] %vm509_vm2, %v482_v2 }
  0xfd   : > { %v675_v3 = vpop.f32.mrb[12].mxu0 }
  0xfe   : > { %v439_v4 = vadd.f32 %v675_v3, %v804_v18  ;;  %v691_v5 = vpop.f32.mrb[12].mxu1  ;;  %v430_v6 = vpop.f32.mrb[13].mxu0 }
  0xff   : > { %v503_v7 = vadd.f32 %v691_v5, %v804_v18  ;;  %v431_v8 = vadd.f32 %v804_v18, %v430_v6  ;;  %v494_v9 = vpop.f32.mrb[13].mxu1  ;;  %v676_v10 = vpop.f32.mrb[14].mxu0 }
 0x100   : > { %524 = vst.msk [vmem:[%s809_s26 + $0x70] sm:$0xff] %vm509_vm2, %v439_v4  ;;  %v495_v11 = vadd.f32 %v804_v18, %v494_v9  ;;  %v442_v12 = vadd.f32 %v676_v10, %v804_v18  ;;  %v692_v13 = vpop.f32.mrb[14].mxu1  ;;  %v433_v14 = vpop.f32.mrb[15].mxu0 }
 0x101   : > { %540 = vst.msk [vmem:[%s809_s26 + $0xf0] sm:$0xff] %vm509_vm2, %v503_v7  ;;  %522 = vst.msk [vmem:[%s809_s26 + $0x60] sm:$0xff] %vm509_vm2, %v431_v8  ;;  %v506_v15 = vadd.f32 %v692_v13, %v804_v18  ;;  %v434_v16 = vadd.f32 %v804_v18, %v433_v14  ;;  %v497_v17 = vpop.f32.mrb[15].mxu1 }
 0x102   : > { %538 = vst.msk [vmem:[%s809_s26 + $0xe0] sm:$0xff] %vm509_vm2, %v495_v11  ;;  %525 = vst.msk [vmem:[%s809_s26 + $0x78] sm:$0xff] %vm509_vm2, %v442_v12  ;;  %v498_v19 = vadd.f32 %v804_v18, %v497_v17 }
 0x103   : > { %541 = vst.msk [vmem:[%s809_s26 + $0xf8] sm:$0xff] %vm509_vm2, %v506_v15  ;;  %523 = vst.msk [vmem:[%s809_s26 + $0x68] sm:$0xff] %vm509_vm2, %v434_v16 }
 0x104   : > { %539 = vst.msk [vmem:[%s809_s26 + $0xe8] sm:$0xff] %vm509_vm2, %v498_v19 }
 0x105 PF: > { %s13_s12 = sadd.s32 1, %s727_s12  }
 0x106   : > { %p10_p4 = scmp.ge.s32.totalorder %s13_s12, 4  }
 0x108   :  { %12 = sbr.rel (!%p10_p4) target bundleno = 1 (0x1), region = 62 }

// kernel: ss2d_block_forward.7
= control target key start
LH: loop header
LB: loop body
LE: loop exit
PB: predicated region body
PF: predicated region fallthrough
CT: control target
= control target key end

     0   :  { %s1186_s12 = smov 0   ;;  %s1683_s0 = inlined_call_operand.vmem [shape: bf16[512,32], index: 0, kind: input, shape index: {}]   ;;  %s1684_s1 = inlined_call_operand.vmem [shape: bf16[32,64], index: 1, kind: input, shape index: {}]   ;;  %s1685_s2 = inlined_call_operand.vmem [shape: f32[1,64], index: 2, kind: input, shape index: {}]   ;;  %s1686_s3 = inlined_call_operand.vmem [shape: f32[512,64], index: 3, kind: output, shape index: {}]  }
   0x1 LB: > { %s900_s13 = sadd.s32 4294967295, %s1164_s12   ;;  %p904_p0 = scmp.ge.s32.totalorder %s1164_s12, 1  ;;  %s1164_s12 = sphi %s1186_s12, %s13_s12  }
   0x2   : > { %p138_p1 = scmp.lt.s32.totalorder %s1164_s12, 3 }
   0x4   : > { %p139_p2 = pnand %p904_p0, %p138_p1 }
   0x5   : > { %v1012_v0 = vld [vmem:[%s1684_s1] sm:$0xff] (!%p139_p2)   ;;  %s905_s16 = sshll.u32 (!%p139_p2), %s900_s13, 5  ;;  %v1013_v1 = vld [vmem:[%s1684_s1 + $0x8] sm:$0xff] (!%p139_p2)   ;;  %vm310_vm0 = vcmask (!%p139_p2), 261120   ;;  %vm811_vm3 = vcmask (!%p139_p2), 523264  }
   0x6   : > { %142 = sbr.rel (%p139_p2) target bundleno = 335 (0x14f), region = 32  ;;  %p163_p3 = scmp.lt.s32.totalorder (!%p139_p2), %s905_s16, 63  ;;  %964 = vmatprep.subr.bf16.mxu0 (!%p139_p2), %v1012_v0  ;;  %1000 = vmatprep.subr.bf16.mxu1 (!%p139_p2), %v1012_v0  ;;  %v1243_v18 = vld [vmem:[%s1685_s2] ss:$0 sm:$0xff] (!%p139_p2) }
   0x7   : > { %965 = vmatpush3.bf16.msra.mxu0 (!%p139_p2), %v1012_v0  ;;  %1002 = vmatpush3.bf16.msra.mxu1 (!%p139_p2), %v1012_v0 }
   0x8   : > { %966 = vmatprep.subr.bf16.mxu0 (!%p139_p2), %v1013_v1  ;;  %1001 = vmatprep.subr.bf16.mxu1 (!%p139_p2), %v1013_v1 }
   0xb   : > { %967 = vmatpush3.bf16.msra.mxu0 (!%p139_p2), %v1013_v1  ;;  %1003 = vmatpush3.bf16.msra.mxu1 (!%p139_p2), %v1013_v1 }
   0xd   : > { %s1688_s16 = smov (!%p163_p3, %s905_s16), 63 }
   0xe   : > { %s906_s19 = sshll.u32 %s1688_s16, 2  ;;  %s908_s25 = sshll.u32 %s1688_s16, 3 }
   0xf   : > { %s1206_s22 = scalar_lea.vmem %s1683_s0, %s906_s19  ;;  %s1368_s28 = scalar_lea.vmem %s1686_s3, %s908_s25 }
  0x10   : > { %v1014_v2 = vld [vmem:[%s1206_s22] sm:$0xff]   ;;  %v1016_v4 = vld [vmem:[%s1206_s22 + $0x8] sm:$0xff]   ;;  %v1018_v6 = vld [vmem:[%s1206_s22 + $0x10] sm:$0xff]  }
  0x11   : > { %v1015_v3 = vld [vmem:[%s1206_s22 + $0x40] sm:$0xff]   ;;  %968 = vmatprep.mubr.msk.bf16.mxu0 %vm310_vm0, %v1014_v2  ;;  %v1017_v5 = vld [vmem:[%s1206_s22 + $0x48] sm:$0xff]   ;;  %v1019_v7 = vld [vmem:[%s1206_s22 + $0x50] sm:$0xff]   ;;  %v776_v2 = vlaneseq }
  0x12   : > { %984 = vmatprep.mubr.msk.bf16.mxu1 %vm310_vm0, %v1015_v3  ;;  %969 = vmatmul.mubr.msk.bf16.vlgmr.msra.gmra.mrb[0].mxu0 %vm310_vm0, %v1016_v4  ;;  %v1020_v8 = vld [vmem:[%s1206_s22 + $0x18] sm:$0xff]   ;;  %v1022_v10 = vld [vmem:[%s1206_s22 + $0x20] sm:$0xff]   ;;  %v1024_v12 = vld [vmem:[%s1206_s22 + $0x28] sm:$0xff]  }
  0x13   : > { %985 = vmatmul.mubr.msk.bf16.vlgmr.msra.gmra.mrb[0].mxu1 %vm310_vm0, %v1017_v5  ;;  %972 = vmatprep.mubr.msk.bf16.mxu0 %vm310_vm0, %v1018_v6  ;;  %v1021_v9 = vld [vmem:[%s1206_s22 + $0x58] sm:$0xff]   ;;  %v1023_v11 = vld [vmem:[%s1206_s22 + $0x60] sm:$0xff]   ;;  %v1025_v13 = vld [vmem:[%s1206_s22 + $0x68] sm:$0xff]  }
  0x14   : > { %988 = vmatprep.mubr.msk.bf16.mxu1 %vm310_vm0, %v1019_v7  ;;  %v1026_v14 = vld [vmem:[%s1206_s22 + $0x30] sm:$0xff]   ;;  %v1028_v16 = vld [vmem:[%s1206_s22 + $0x38] sm:$0xff]  }
  0x15   : > { %v1027_v15 = vld [vmem:[%s1206_s22 + $0x70] sm:$0xff]   ;;  %v1029_v17 = vld [vmem:[%s1206_s22 + $0x78] sm:$0xff]  }
  0x1a   : > { %973 = vmatmul.mubr.msk.bf16.gmra.mrb[4].mxu0 %vm310_vm0, %v1020_v8 }
  0x1b   : > { %989 = vmatmul.mubr.msk.bf16.gmra.mrb[4].mxu1 %vm310_vm0, %v1021_v9  ;;  %976 = vmatprep.mubr.msk.bf16.mxu0 %vm310_vm0, %v1022_v10 }
  0x1c   : > { %992 = vmatprep.mubr.msk.bf16.mxu1 %vm310_vm0, %v1023_v11 }
  0x22   : > { %977 = vmatmul.mubr.msk.bf16.gmra.mrb[8].mxu0 %vm310_vm0, %v1024_v12 }
  0x23   : > { %993 = vmatmul.mubr.msk.bf16.gmra.mrb[8].mxu1 %vm310_vm0, %v1025_v13  ;;  %980 = vmatprep.mubr.msk.bf16.mxu0 %vm310_vm0, %v1026_v14 }
  0x24   : > { %996 = vmatprep.mubr.msk.bf16.mxu1 %vm310_vm0, %v1027_v15  ;;  %v1294_v15 = vand.u32 127, %v776_v2 }
  0x26   : > { %vm778_vm1 = vcmp.lt.s32.totalorder %v1294_v15, 32 }
  0x2a   : > { %981 = vmatmul.mubr.msk.bf16.gmra.mrb[12].mxu0 %vm310_vm0, %v1028_v16 }
  0x2b   : > { %997 = vmatmul.mubr.msk.bf16.gmra.mrb[12].mxu1 %vm310_vm0, %v1029_v17 }
  0xe5   : > { %v970_v19 = vpop.f32.mrb[0].mxu0 }
  0xe6   : > { %v1246_v20 = vadd.f32 %v970_v19, %v1243_v18  ;;  %v986_v21 = vpop.f32.mrb[0].mxu1  ;;  %v393_v22 = vpop.f32.mrb[1].mxu0 }
  0xe7   : > { %v1249_v23 = vadd.f32 %v986_v21, %v1243_v18  ;;  %v1252_v24 = vadd.f32 %v1243_v18, %v393_v22  ;;  %v457_v25 = vpop.f32.mrb[1].mxu1  ;;  %v971_v26 = vpop.f32.mrb[2].mxu0 }
  0xe8   : > { %v554_v27 = vmin.f32 %v1246_v20, 20.0  ;;  %v1256_v28 = vadd.f32 %v1243_v18, %v457_v25  ;;  %v1259_v29 = vadd.f32 %v971_v26, %v1243_v18  ;;  %v987_v30 = vpop.f32.mrb[2].mxu1  ;;  %v396_v31 = vpop.f32.mrb[3].mxu0  ;;  %vm522_vm2 = vcmp.gt.f32.partialorder %v1246_v20, 20.0 }
  0xe9   : > { %v570_v32 = vmin.f32 %v1249_v23, 20.0  ;;  %v552_v33 = vmin.f32 %v1252_v24, 20.0  ;;  %v460_v34 = vpop.f32.mrb[3].mxu1  ;;  %v1266_v40 = vadd.f32 %v987_v30, %v1243_v18  ;;  %v1269_v42 = vadd.f32 %v1243_v18, %v396_v31 }
  0xea   : > { %v588_v35 = vmul.f32 1.442695, %v554_v27  ;;  %v568_v36 = vmin.f32 %v1256_v28, 20.0  ;;  %v555_v39 = vmin.f32 %v1259_v29, 20.0  ;;  %v1272_v43 = vadd.f32 %v1243_v18, %v460_v34 }
  0xeb   : > { %v620_v37 = vmul.f32 1.442695, %v570_v32  ;;  %v584_v38 = vmul.f32 1.442695, %v552_v33  ;;  %v571_v45 = vmin.f32 %v1266_v40, 20.0  ;;  %v553_v47 = vmin.f32 %v1269_v42, 20.0 }
  0xec   : > { %1030 = vpow2.f32 %v588_v35  ;;  %v616_v41 = vmul.f32 1.442695, %v568_v36  ;;  %v590_v44 = vmul.f32 1.442695, %v555_v39  ;;  %v569_v51 = vmin.f32 %v1272_v43, 20.0 }
  0xed   : > { %1032 = vpow2.f32 %v620_v37  ;;  %v974_v46 = vpop.f32.mrb[4].mxu0  ;;  %v622_v50 = vmul.f32 1.442695, %v571_v45  ;;  %v586_v55 = vmul.f32 1.442695, %v553_v47  ;;  %vm538_vm4 = vcmp.gt.f32.partialorder %v1249_v23, 20.0 }
  0xee   : > { %1034 = vpow2.f32 %v584_v38  ;;  %v990_v48 = vpop.f32.mrb[4].mxu1  ;;  %v409_v49 = vpop.f32.mrb[5].mxu0  ;;  %v1278_v52 = vadd.f32 %v974_v46, %v1243_v18  ;;  %v618_v60 = vmul.f32 1.442695, %v569_v51  ;;  %vm520_vm5 = vcmp.gt.f32.partialorder %v1252_v24, 20.0 }
  0xef   : > { %1036 = vpow2.f32 %v616_v41  ;;  %v473_v53 = vpop.f32.mrb[5].mxu1  ;;  %v975_v54 = vpop.f32.mrb[6].mxu0  ;;  %v1281_v56 = vadd.f32 %v990_v48, %v1243_v18  ;;  %v1284_v57 = vadd.f32 %v1243_v18, %v409_v49  ;;  %vm536_vm6 = vcmp.gt.f32.partialorder %v1256_v28, 20.0 }
  0xf0   : > { %1038 = vpow2.f32 %v590_v44  ;;  %v991_v58 = vpop.f32.mrb[6].mxu1  ;;  %v412_v59 = vpop.f32.mrb[7].mxu0  ;;  %v558_v61 = vmin.f32 %v1278_v52, 20.0  ;;  %v1290_v5 = vadd.f32 %v1243_v18, %v473_v53  ;;  %v1297_v17 = vadd.f32 %v975_v54, %v1243_v18 }
  0xf1   : > { %1040 = vpow2.f32 %v622_v50  ;;  %v476_v62 = vpop.f32.mrb[7].mxu1  ;;  %v574_v63 = vmin.f32 %v1281_v56, 20.0  ;;  %v556_v1 = vmin.f32 %v1284_v57, 20.0  ;;  %v1307_v32 = vadd.f32 %v991_v58, %v1243_v18 }
  0xf2   : > { %1042 = vpow2.f32 %v586_v55  ;;  %v596_v0 = vmul.f32 1.442695, %v558_v61  ;;  %v572_v25 = vmin.f32 %v1290_v5, 20.0  ;;  %v1310_v35 = vadd.f32 %v1243_v18, %v412_v59 }
  0xf3   : > { %1044 = vpow2.f32 %v618_v60  ;;  %v628_v3 = vmul.f32 1.442695, %v574_v63  ;;  %v592_v4 = vmul.f32 1.442695, %v556_v1  ;;  %v1313_v36 = vadd.f32 %v1243_v18, %v476_v62 }
  0xf4   : > { %1046 = vpow2.f32 %v596_v0  ;;  %v559_v39 = vmin.f32 %v1297_v17, 20.0  ;;  %v624_v46 = vmul.f32 1.442695, %v572_v25  ;;  %v575_v50 = vmin.f32 %v1307_v32, 20.0 }
  0xf5   : > { %v978_v6 = vpop.f32.mrb[8].mxu0  ;;  %1048 = vpow2.f32 %v628_v3  ;;  %v557_v58 = vmin.f32 %v1310_v35, 20.0  ;;  %v573_v59 = vmin.f32 %v1313_v36, 20.0  ;;  %vm523_vm7 = vcmp.gt.f32.partialorder %v1259_v29, 20.0 }
  0xf6   : > { %v1031_v7 = vpop.eup %1030  ;;  %v994_v8 = vpop.f32.mrb[8].mxu1  ;;  %1050 = vpow2.f32 %v592_v4  ;;  %v1318_v41 = vadd.f32 %v978_v6, %v1243_v18  ;;  %vm539_vm8 = vcmp.gt.f32.partialorder %v1266_v40, 20.0  ;;  %vm521_vm9 = vcmp.gt.f32.partialorder %v1269_v42, 20.0 }
  0xf7   : > { %v425_v9 = vpop.f32.mrb[9].mxu0  ;;  %v1033_v10 = vpop.eup %1032  ;;  %v650_v11 = vadd.f32 1.0, %v1031_v7  ;;  %v1322_v47 = vadd.f32 %v994_v8, %v1243_v18  ;;  %v598_v8 = vmul.f32 1.442695, %v559_v39  ;;  %vm537_vm10 = vcmp.gt.f32.partialorder %v1272_v43, 20.0 }
  0xf8   : > { %v489_v12 = vpop.f32.mrb[9].mxu1  ;;  %v1292_v13 = vpop.f32.mrb[10].mxu0  ;;  %v666_v16 = vadd.f32 1.0, %v1033_v10  ;;  %v1329_v51 = vadd.f32 %v1243_v18, %v425_v9  ;;  %v562_v1 = vmin.f32 %v1318_v41, 20.0  ;;  %vm526_vm11 = vcmp.gt.f32.partialorder %v1278_v52, 20.0 }
  0xf9   : > { %v1035_v14 = vpop.eup %1034  ;;  %v1299_v19 = vpop.f32.mrb[10].mxu1  ;;  %1052 = vlog2.f32 %v650_v11  ;;  %v1339_v60 = vadd.f32 %v1243_v18, %v489_v12  ;;  %v578_v2 = vmin.f32 %v1322_v47, 20.0  ;;  %v630_v12 = vmul.f32 1.442695, %v575_v50 }
  0xfa   : > { %v1037_v21 = vpop.eup %1036  ;;  %v648_v22 = vadd.f32 1.0, %v1035_v14  ;;  %v1302_v26 = vpop.f32.mrb[11].mxu0  ;;  %1054 = vlog2.f32 %v666_v16  ;;  %v560_v9 = vmin.f32 %v1329_v51, 20.0  ;;  %v1362_v25 = vadd.f32 %v1292_v13, %v1243_v18 }
  0xfb   : > { %v1304_v27 = vpop.f32.mrb[11].mxu1  ;;  %v1039_v30 = vpop.eup %1038  ;;  %v664_v31 = vadd.f32 1.0, %v1037_v21  ;;  %v576_v14 = vmin.f32 %v1339_v60, 20.0  ;;  %v594_v21 = vmul.f32 1.442695, %v557_v58  ;;  %vm542_vm12 = vcmp.gt.f32.partialorder %v1281_v56, 20.0 }
  0xfc   : > { %v1041_v33 = vpop.eup %1040  ;;  %1056 = vlog2.f32 %v648_v22  ;;  %v651_v34 = vadd.f32 1.0, %v1039_v30  ;;  %v626_v22 = vmul.f32 1.442695, %v573_v59  ;;  %v600_v39 = vmul.f32 1.442695, %v560_v9 }
  0xfd   : > { %v1043_v37 = vpop.eup %1042  ;;  %1058 = vlog2.f32 %v664_v31  ;;  %v667_v38 = vadd.f32 1.0, %v1041_v33  ;;  %v1324_v48 = vpop.f32.mrb[12].mxu0  ;;  %v604_v33 = vmul.f32 1.442695, %v562_v1  ;;  %vm524_vm13 = vcmp.gt.f32.partialorder %v1284_v57, 20.0 }
  0xfe   : > { %v1045_v44 = vpop.eup %1044  ;;  %1060 = vlog2.f32 %v651_v34  ;;  %v649_v45 = vadd.f32 1.0, %v1043_v37  ;;  %v1331_v53 = vpop.f32.mrb[12].mxu1  ;;  %v636_v34 = vmul.f32 1.442695, %v578_v2  ;;  %vm540_vm14 = vcmp.gt.f32.partialorder %v1290_v5, 20.0 }
  0xff   : > { %1062 = vlog2.f32 %v667_v38  ;;  %v665_v49 = vadd.f32 1.0, %v1045_v44  ;;  %v1333_v54 = vpop.f32.mrb[13].mxu0  ;;  %v1047_v55 = vpop.eup %1046  ;;  %v632_v44 = vmul.f32 1.442695, %v576_v14  ;;  %vm527_vm15 = vcmp.gt.f32.partialorder %v1297_v17, 20.0 }
 0x100   : > { %1064 = vlog2.f32 %v649_v45  ;;  %v1341_v61 = vpop.f32.mrb[13].mxu1  ;;  %v1343_v62 = vpop.f32.mrb[14].mxu0  ;;  %v654_v0 = vadd.f32 1.0, %v1047_v55  ;;  %vm543_vm0 = vcmp.gt.f32.partialorder %v1307_v32, 20.0 }
 0x101   : > { %v1049_v63 = vpop.eup %1048  ;;  %1066 = vlog2.f32 %v665_v49  ;;  %v1348_v3 = vpop.f32.mrb[14].mxu1  ;;  %v563_v49 = vmin.f32 %v1362_v25, 20.0 }
 0x102   : > { %v1350_v4 = vpop.f32.mrb[15].mxu0  ;;  %v1051_v6 = vpop.eup %1050  ;;  %v670_v7 = vadd.f32 1.0, %v1049_v63  ;;  %1068 = vpow2.f32 %v624_v46 }
 0x103   : > { %v1354_v10 = vpop.f32.mrb[15].mxu1  ;;  %1070 = vlog2.f32 %v654_v0  ;;  %v652_v11 = vadd.f32 1.0, %v1051_v6  ;;  %v1053_v16 = vpop.eup %1052 }
 0x104   : > { %1072 = vlog2.f32 %v670_v7  ;;  %v1055_v30 = vpop.eup %1054  ;;  %v685_v31 = vmul.f32 0.6931472, %v1053_v16 }
 0x105   : > { %1074 = vlog2.f32 %v652_v11  ;;  %v717_v38 = vmul.f32 0.6931472, %v1055_v30 }
 0x106   : > { %v1057_v37 = vpop.eup %1056  ;;  %1076 = vpow2.f32 %v598_v8  ;;  %v746_v45 = vsel %vm522_vm2, %v1246_v20, %v685_v31  ;;  %vm525_vm2 = vcmp.gt.f32.partialorder %v1310_v35, 20.0 }
 0x107   : > { %v1059_v13 = vpop.eup %1058  ;;  %v681_v46 = vmul.f32 0.6931472, %v1057_v37  ;;  %1078 = vpow2.f32 %v630_v12  ;;  %v781_v55 = vsel %vm778_vm1, %v746_v45, %v1246_v20  ;;  %v762_v58 = vsel %vm538_vm4, %v1249_v23, %v717_v38 }
 0x108   : > { %v1061_v50 = vpop.eup %1060  ;;  %v713_v59 = vmul.f32 0.6931472, %v1059_v13  ;;  %1080 = vpow2.f32 %v594_v21  ;;  %814 = vst.msk [vmem:[%s1368_s28 + $0x10] sm:$0xff] %vm811_vm3, %v781_v55  ;;  %v797_v0 = vsel %vm778_vm1, %v762_v58, %v1249_v23  ;;  %v1437_v13 = vadd.f32 %v1299_v19, %v1243_v18 }
 0x109   : > { %v1063_v63 = vpop.eup %1062  ;;  %v744_v20 = vsel %vm520_vm5, %v1252_v24, %v681_v46  ;;  %v687_v1 = vmul.f32 0.6931472, %v1061_v50  ;;  %1082 = vpow2.f32 %v626_v22  ;;  %830 = vst.msk [vmem:[%s1368_s28 + $0x90] sm:$0xff] %vm811_vm3, %v797_v0  ;;  %vm541_vm4 = vcmp.gt.f32.partialorder %v1313_v36, 20.0 }
 0x10a   : > { %v1065_v2 = vpop.eup %1064  ;;  %v779_v6 = vsel %vm778_vm1, %v744_v20, %v1252_v24  ;;  %v760_v7 = vsel %vm536_vm6, %v1256_v28, %v713_v59  ;;  %v719_v23 = vmul.f32 0.6931472, %v1063_v63  ;;  %1084 = vpow2.f32 %v604_v33 }
 0x10b   : > { %v1067_v8 = vpop.eup %1066  ;;  %812 = vst.msk [vmem:[%s1368_s28] sm:$0xff] %vm811_vm3, %v779_v6  ;;  %v795_v9 = vsel %vm778_vm1, %v760_v7, %v1256_v28  ;;  %v747_v11 = vsel %vm523_vm7, %v1259_v29, %v687_v1  ;;  %v683_v24 = vmul.f32 0.6931472, %v1065_v2  ;;  %1086 = vpow2.f32 %v636_v34 }
 0x10c   : > { %v1069_v12 = vpop.eup %1068  ;;  %828 = vst.msk [vmem:[%s1368_s28 + $0x80] sm:$0xff] %vm811_vm3, %v795_v9  ;;  %v782_v14 = vsel %vm778_vm1, %v747_v11, %v1259_v29  ;;  %v763_v16 = vsel %vm539_vm8, %v1266_v40, %v719_v23  ;;  %v715_v28 = vmul.f32 0.6931472, %v1067_v8  ;;  %1088 = vpow2.f32 %v600_v39 }
 0x10d   : > { %v1071_v21 = vpop.eup %1070  ;;  %815 = vst.msk [vmem:[%s1368_s28 + $0x18] sm:$0xff] %vm811_vm3, %v782_v14  ;;  %v798_v22 = vsel %vm778_vm1, %v763_v16, %v1266_v40  ;;  %v745_v30 = vsel %vm521_vm9, %v1269_v42, %v683_v24  ;;  %v668_v29 = vadd.f32 1.0, %v1069_v12  ;;  %1090 = vpow2.f32 %v632_v44 }
 0x10e   : > { %v1073_v31 = vpop.eup %1072  ;;  %831 = vst.msk [vmem:[%s1368_s28 + $0x98] sm:$0xff] %vm811_vm3, %v798_v22  ;;  %v780_v33 = vsel %vm778_vm1, %v745_v30, %v1269_v42  ;;  %v761_v34 = vsel %vm537_vm10, %v1272_v43, %v715_v28  ;;  %v693_v37 = vmul.f32 0.6931472, %v1071_v21  ;;  %v606_v40 = vmul.f32 1.442695, %v563_v49 }
 0x10f   : > { %v1075_v38 = vpop.eup %1074  ;;  %813 = vst.msk [vmem:[%s1368_s28 + $0x8] sm:$0xff] %vm811_vm3, %v780_v33  ;;  %v796_v39 = vsel %vm778_vm1, %v761_v34, %v1272_v43  ;;  %v725_v44 = vmul.f32 0.6931472, %v1073_v31  ;;  %1092 = vlog2.f32 %v668_v29  ;;  %v1446_v43 = vadd.f32 %v1243_v18, %v1302_v26 }
 0x110   : > { %v1077_v42 = vpop.eup %1076  ;;  %829 = vst.msk [vmem:[%s1368_s28 + $0x88] sm:$0xff] %vm811_vm3, %v796_v39  ;;  %v750_v45 = vsel %vm526_vm11, %v1278_v52, %v693_v37  ;;  %v689_v46 = vmul.f32 0.6931472, %v1075_v38  ;;  %1094 = vpow2.f32 %v606_v40  ;;  %v579_v2 = vmin.f32 %v1437_v13, 20.0 }
 0x111   : > { %v1079_v49 = vpop.eup %1078  ;;  %v785_v19 = vsel %vm778_vm1, %v750_v45, %v1278_v52  ;;  %v766_v50 = vsel %vm542_vm12, %v1281_v56, %v725_v44  ;;  %v655_v55 = vadd.f32 1.0, %v1077_v42  ;;  %v1463_v52 = vadd.f32 %v1243_v18, %v1304_v27 }
 0x112   : > { %v1081_v58 = vpop.eup %1080  ;;  %818 = vst.msk [vmem:[%s1368_s28 + $0x30] sm:$0xff] %vm811_vm3, %v785_v19  ;;  %v801_v26 = vsel %vm778_vm1, %v766_v50, %v1281_v56  ;;  %v748_v59 = vsel %vm524_vm13, %v1284_v57, %v689_v46  ;;  %v671_v63 = vadd.f32 1.0, %v1079_v49  ;;  %v561_v27 = vmin.f32 %v1446_v43, 20.0 }
 0x113   : > { %v1083_v0 = vpop.eup %1082  ;;  %834 = vst.msk [vmem:[%s1368_s28 + $0xb0] sm:$0xff] %vm811_vm3, %v801_v26  ;;  %v783_v20 = vsel %vm778_vm1, %v748_v59, %v1284_v57  ;;  %1096 = vlog2.f32 %v655_v55  ;;  %v653_v1 = vadd.f32 1.0, %v1081_v58  ;;  %v1477_v8 = vadd.f32 %v1324_v48, %v1243_v18 }
 0x114   : > { %v1085_v6 = vpop.eup %1084  ;;  %816 = vst.msk [vmem:[%s1368_s28 + $0x20] sm:$0xff] %vm811_vm3, %v783_v20  ;;  %1098 = vlog2.f32 %v671_v63  ;;  %v669_v56 = vadd.f32 1.0, %v1083_v0  ;;  %v1481_v57 = vadd.f32 %v1331_v53, %v1243_v18  ;;  %v577_v24 = vmin.f32 %v1463_v52, 20.0 }
 0x115   : > { %v1087_v7 = vpop.eup %1086  ;;  %1100 = vlog2.f32 %v653_v1  ;;  %v658_v23 = vadd.f32 1.0, %v1085_v6  ;;  %v1486_v12 = vadd.f32 %v1243_v18, %v1333_v54  ;;  %v638_v48 = vmul.f32 1.442695, %v579_v2 }
 0x116   : > { %v1089_v9 = vpop.eup %1088  ;;  %1102 = vlog2.f32 %v669_v56  ;;  %v674_v11 = vadd.f32 1.0, %v1087_v7  ;;  %v566_v28 = vmin.f32 %v1477_v8, 20.0  ;;  %v602_v21 = vmul.f32 1.442695, %v561_v27 }
 0x117   : > { %v1091_v14 = vpop.eup %1090  ;;  %1104 = vlog2.f32 %v658_v23  ;;  %v656_v16 = vadd.f32 1.0, %v1089_v9  ;;  %v582_v22 = vmin.f32 %v1481_v57, 20.0  ;;  %v564_v54 = vmin.f32 %v1486_v12, 20.0 }
 0x118   : > { %1106 = vlog2.f32 %v674_v11  ;;  %v672_v53 = vadd.f32 1.0, %v1091_v14  ;;  %v634_v33 = vmul.f32 1.442695, %v577_v24  ;;  %v1497_v34 = vadd.f32 %v1243_v18, %v1341_v61 }
 0x119   : > { %v1093_v30 = vpop.eup %1092  ;;  %1108 = vlog2.f32 %v656_v16  ;;  %vm530_vm5 = vcmp.gt.f32.partialorder %v1318_v41, 20.0  ;;  %v612_v40 = vmul.f32 1.442695, %v566_v28  ;;  %v1502_v38 = vadd.f32 %v1343_v62, %v1243_v18 }
 0x11a   : > { %v1095_v29 = vpop.eup %1094  ;;  %v721_v31 = vmul.f32 0.6931472, %v1093_v30  ;;  %1110 = vlog2.f32 %v672_v53  ;;  %vm546_vm6 = vcmp.gt.f32.partialorder %v1322_v47, 20.0  ;;  %v644_v44 = vmul.f32 1.442695, %v582_v22 }
 0x11b   : > { %v659_v37 = vadd.f32 1.0, %v1095_v29  ;;  %1112 = vpow2.f32 %v638_v48  ;;  %v580_v61 = vmin.f32 %v1497_v34, 20.0  ;;  %v608_v46 = vmul.f32 1.442695, %v564_v54 }
 0x11c   : > { %v764_v39 = vsel %vm540_vm14, %v1290_v5, %v721_v31  ;;  %1114 = vpow2.f32 %v602_v21  ;;  %v567_v62 = vmin.f32 %v1502_v38, 20.0  ;;  %vm528_vm7 = vcmp.gt.f32.partialorder %v1329_v51, 20.0 }
 0x11d   : > { %v1097_v42 = vpop.eup %1096  ;;  %v799_v45 = vsel %vm778_vm1, %v764_v39, %v1290_v5  ;;  %1116 = vlog2.f32 %v659_v37  ;;  %v640_v50 = vmul.f32 1.442695, %v580_v61  ;;  %vm544_vm8 = vcmp.gt.f32.partialorder %v1339_v60, 20.0 }
 0x11e   : > { %v1099_v49 = vpop.eup %1098  ;;  %832 = vst.msk [vmem:[%s1368_s28 + $0xa0] sm:$0xff] %vm811_vm3, %v799_v45  ;;  %v695_v19 = vmul.f32 0.6931472, %v1097_v42  ;;  %1118 = vpow2.f32 %v634_v33  ;;  %v614_v26 = vmul.f32 1.442695, %v567_v62  ;;  %v1522_v0 = vadd.f32 %v1348_v3, %v1243_v18 }
 0x11f   : > { %v1101_v55 = vpop.eup %1100  ;;  %v727_v58 = vmul.f32 0.6931472, %v1099_v49  ;;  %1120 = vpow2.f32 %v612_v40  ;;  %v1565_v21 = vadd.f32 %v1243_v18, %v1350_v4  ;;  %vm531_vm9 = vcmp.gt.f32.partialorder %v1362_v25, 20.0 }
 0x120   : > { %v1103_v5 = vpop.eup %1102  ;;  %v751_v59 = vsel %vm527_vm15, %v1297_v17, %v695_v19  ;;  %v691_v63 = vmul.f32 0.6931472, %v1101_v55  ;;  %1122 = vpow2.f32 %v644_v44  ;;  %v583_v16 = vmin.f32 %v1522_v0, 20.0 }
 0x121   : > { %v1105_v20 = vpop.eup %1104  ;;  %v786_v1 = vsel %vm778_vm1, %v751_v59, %v1297_v17  ;;  %v767_v2 = vsel %vm543_vm0, %v1307_v32, %v727_v58  ;;  %v723_v6 = vmul.f32 0.6931472, %v1103_v5  ;;  %1124 = vpow2.f32 %v608_v46 }
 0x122   : > { %v1107_v56 = vpop.eup %1106  ;;  %819 = vst.msk [vmem:[%s1368_s28 + $0x38] sm:$0xff] %vm811_vm3, %v786_v1  ;;  %v802_v3 = vsel %vm778_vm1, %v767_v2, %v1307_v32  ;;  %v749_v27 = vsel %vm525_vm2, %v1310_v35, %v691_v63  ;;  %v701_v17 = vmul.f32 0.6931472, %v1105_v20  ;;  %1126 = vpow2.f32 %v640_v50 }
 0x123   : > { %v1109_v7 = vpop.eup %1108  ;;  %835 = vst.msk [vmem:[%s1368_s28 + $0xb8] sm:$0xff] %vm811_vm3, %v802_v3  ;;  %v784_v23 = vsel %vm778_vm1, %v749_v27, %v1310_v35  ;;  %v765_v9 = vsel %vm541_vm4, %v1313_v36, %v723_v6  ;;  %v733_v32 = vmul.f32 0.6931472, %v1107_v56  ;;  %1128 = vpow2.f32 %v614_v26 }
 0x124   : > { %v1111_v11 = vpop.eup %1110  ;;  %817 = vst.msk [vmem:[%s1368_s28 + $0x28] sm:$0xff] %vm811_vm3, %v784_v23  ;;  %v800_v24 = vsel %vm778_vm1, %v765_v9, %v1313_v36  ;;  %v754_v14 = vsel %vm530_vm5, %v1318_v41, %v701_v17  ;;  %v697_v35 = vmul.f32 0.6931472, %v1109_v7  ;;  %v646_v29 = vmul.f32 1.442695, %v583_v16 }
 0x125   : > { %v1113_v48 = vpop.eup %1112  ;;  %833 = vst.msk [vmem:[%s1368_s28 + $0xa8] sm:$0xff] %vm811_vm3, %v800_v24  ;;  %v789_v28 = vsel %vm778_vm1, %v754_v14, %v1318_v41  ;;  %v770_v36 = vsel %vm546_vm6, %v1322_v47, %v733_v32  ;;  %v729_v53 = vmul.f32 0.6931472, %v1111_v11  ;;  %v1590_v44 = vadd.f32 %v1243_v18, %v1354_v10 }
 0x126   : > { %v1115_v22 = vpop.eup %1114  ;;  %822 = vst.msk [vmem:[%s1368_s28 + $0x50] sm:$0xff] %vm811_vm3, %v789_v28  ;;  %v805_v30 = vsel %vm778_vm1, %v770_v36, %v1322_v47  ;;  %v752_v41 = vsel %vm528_vm7, %v1329_v51, %v697_v35  ;;  %v675_v54 = vadd.f32 1.0, %v1113_v48  ;;  %v565_v42 = vmin.f32 %v1565_v21, 20.0 }
 0x127   : > { %v1117_v31 = vpop.eup %1116  ;;  %838 = vst.msk [vmem:[%s1368_s28 + $0xd0] sm:$0xff] %vm811_vm3, %v805_v30  ;;  %v787_v4 = vsel %vm778_vm1, %v752_v41, %v1329_v51  ;;  %v768_v33 = vsel %vm544_vm8, %v1339_v60, %v729_v53  ;;  %v657_v37 = vadd.f32 1.0, %v1115_v22  ;;  %v581_v49 = vmin.f32 %v1590_v44, 20.0 }
 0x128   : > { %v1119_v47 = vpop.eup %1118  ;;  %820 = vst.msk [vmem:[%s1368_s28 + $0x40] sm:$0xff] %vm811_vm3, %v787_v4  ;;  %v803_v40 = vsel %vm778_vm1, %v768_v33, %v1339_v60  ;;  %v703_v39 = vmul.f32 0.6931472, %v1117_v31  ;;  %1130 = vlog2.f32 %v675_v54  ;;  %v610_v26 = vmul.f32 1.442695, %v565_v42 }
 0x129   : > { %v1121_v61 = vpop.eup %1120  ;;  %836 = vst.msk [vmem:[%s1368_s28 + $0xc0] sm:$0xff] %vm811_vm3, %v803_v40  ;;  %1132 = vlog2.f32 %v657_v37  ;;  %v673_v51 = vadd.f32 1.0, %v1119_v47  ;;  %v642_v59 = vmul.f32 1.442695, %v581_v49  ;;  %vm547_vm10 = vcmp.gt.f32.partialorder %v1437_v13, 20.0 }
 0x12a   : > { %v1123_v45 = vpop.eup %1122  ;;  %v755_v46 = vsel %vm531_vm9, %v1362_v25, %v703_v39  ;;  %v662_v60 = vadd.f32 1.0, %v1121_v61  ;;  %1134 = vpow2.f32 %v646_v29  ;;  %vm529_vm11 = vcmp.gt.f32.partialorder %v1446_v43, 20.0 }
 0x12b   : > { %v1125_v62 = vpop.eup %1124  ;;  %v790_v18 = vsel %vm778_vm1, %v755_v46, %v1362_v25  ;;  %1136 = vlog2.f32 %v673_v51  ;;  %v678_v10 = vadd.f32 1.0, %v1123_v45  ;;  %vm545_vm12 = vcmp.gt.f32.partialorder %v1463_v52, 20.0 }
 0x12c   : > { %v1127_v19 = vpop.eup %1126  ;;  %823 = vst.msk [vmem:[%s1368_s28 + $0x58] sm:$0xff] %vm811_vm3, %v790_v18  ;;  %1138 = vlog2.f32 %v662_v60  ;;  %v660_v50 = vadd.f32 1.0, %v1125_v62  ;;  %vm534_vm13 = vcmp.gt.f32.partialorder %v1477_v8, 20.0  ;;  %vm550_vm14 = vcmp.gt.f32.partialorder %v1481_v57, 20.0 }
 0x12d   : > { %v1129_v55 = vpop.eup %1128  ;;  %1140 = vlog2.f32 %v678_v10  ;;  %v676_v58 = vadd.f32 1.0, %v1127_v19  ;;  %vm532_vm15 = vcmp.gt.f32.partialorder %v1486_v12, 20.0  ;;  %vm548_vm0 = vcmp.gt.f32.partialorder %v1497_v34, 20.0 }
 0x12e   : > { %1142 = vlog2.f32 %v660_v50  ;;  %v663_v5 = vadd.f32 1.0, %v1129_v55  ;;  %vm535_vm2 = vcmp.gt.f32.partialorder %v1502_v38, 20.0  ;;  %vm551_vm4 = vcmp.gt.f32.partialorder %v1522_v0, 20.0 }
 0x12f   : > { %1144 = vlog2.f32 %v676_v58  ;;  %vm533_vm5 = vcmp.gt.f32.partialorder %v1565_v21, 20.0  ;;  %vm549_vm6 = vcmp.gt.f32.partialorder %v1590_v44, 20.0 }
 0x130   : > { %1146 = vlog2.f32 %v663_v5 }
 0x131   : > { %1148 = vpow2.f32 %v610_v26 }
 0x132   : > { %v1131_v25 = vpop.eup %1130  ;;  %1150 = vpow2.f32 %v642_v59 }
 0x133   : > { %v1133_v63 = vpop.eup %1132  ;;  %v735_v20 = vmul.f32 0.6931472, %v1131_v25 }
 0x134   : > { %v1135_v1 = vpop.eup %1134  ;;  %v699_v2 = vmul.f32 0.6931472, %v1133_v63 }
 0x135   : > { %v1137_v6 = vpop.eup %1136  ;;  %v771_v56 = vsel %vm547_vm10, %v1437_v13, %v735_v20  ;;  %v679_v3 = vadd.f32 1.0, %v1135_v1 }
 0x136   : > { %v1139_v27 = vpop.eup %1138  ;;  %v806_v17 = vsel %vm778_vm1, %v771_v56, %v1437_v13  ;;  %v753_v7 = vsel %vm529_vm11, %v1446_v43, %v699_v2  ;;  %v731_v23 = vmul.f32 0.6931472, %v1137_v6 }
 0x137   : > { %v1141_v9 = vpop.eup %1140  ;;  %839 = vst.msk [vmem:[%s1368_s28 + $0xd8] sm:$0xff] %vm811_vm3, %v806_v17  ;;  %v788_v32 = vsel %vm778_vm1, %v753_v7, %v1446_v43  ;;  %v709_v11 = vmul.f32 0.6931472, %v1139_v27  ;;  %1152 = vlog2.f32 %v679_v3 }
 0x138   : > { %v1143_v24 = vpop.eup %1142  ;;  %821 = vst.msk [vmem:[%s1368_s28 + $0x48] sm:$0xff] %vm811_vm3, %v788_v32  ;;  %v769_v13 = vsel %vm545_vm12, %v1463_v52, %v731_v23  ;;  %v741_v14 = vmul.f32 0.6931472, %v1141_v9 }
 0x139   : > { %v1145_v35 = vpop.eup %1144  ;;  %v804_v16 = vsel %vm778_vm1, %v769_v13, %v1463_v52  ;;  %v758_v43 = vsel %vm534_vm13, %v1477_v8, %v709_v11  ;;  %v705_v48 = vmul.f32 0.6931472, %v1143_v24 }
 0x13a   : > { %v1147_v28 = vpop.eup %1146  ;;  %837 = vst.msk [vmem:[%s1368_s28 + $0xc8] sm:$0xff] %vm811_vm3, %v804_v16  ;;  %v793_v36 = vsel %vm778_vm1, %v758_v43, %v1477_v8  ;;  %v774_v53 = vsel %vm550_vm14, %v1481_v57, %v741_v14  ;;  %v737_v22 = vmul.f32 0.6931472, %v1145_v35 }
 0x13b   : > { %v1149_v52 = vpop.eup %1148  ;;  %826 = vst.msk [vmem:[%s1368_s28 + $0x70] sm:$0xff] %vm811_vm3, %v793_v36  ;;  %v809_v30 = vsel %vm778_vm1, %v774_v53, %v1481_v57  ;;  %v756_v41 = vsel %vm532_vm15, %v1486_v12, %v705_v48  ;;  %v711_v8 = vmul.f32 0.6931472, %v1147_v28 }
 0x13c   : > { %v1151_v54 = vpop.eup %1150  ;;  %842 = vst.msk [vmem:[%s1368_s28 + $0xf0] sm:$0xff] %vm811_vm3, %v809_v30  ;;  %v791_v29 = vsel %vm778_vm1, %v756_v41, %v1486_v12  ;;  %v772_v31 = vsel %vm548_vm0, %v1497_v34, %v737_v22  ;;  %v661_v4 = vadd.f32 1.0, %v1149_v52 }
 0x13d   : > { %824 = vst.msk [vmem:[%s1368_s28 + $0x60] sm:$0xff] %vm811_vm3, %v791_v29  ;;  %v807_v57 = vsel %vm778_vm1, %v772_v31, %v1497_v34  ;;  %v759_v33 = vsel %vm535_vm2, %v1502_v38, %v711_v8  ;;  %v677_v37 = vadd.f32 1.0, %v1151_v54 }
 0x13e   : > { %840 = vst.msk [vmem:[%s1368_s28 + $0xe0] sm:$0xff] %vm811_vm3, %v807_v57  ;;  %v794_v12 = vsel %vm778_vm1, %v759_v33, %v1502_v38  ;;  %1154 = vlog2.f32 %v661_v4 }
 0x13f   : > { %827 = vst.msk [vmem:[%s1368_s28 + $0x78] sm:$0xff] %vm811_vm3, %v794_v12  ;;  %1156 = vlog2.f32 %v677_v37 }
 0x141   : > { %v1153_v47 = vpop.eup %1152 }
 0x142   : > { %v743_v40 = vmul.f32 0.6931472, %v1153_v47 }
 0x144   : > { %v775_v34 = vsel %vm551_vm4, %v1522_v0, %v743_v40 }
 0x145   : > { %v810_v39 = vsel %vm778_vm1, %v775_v34, %v1522_v0 }
 0x146   : > { %843 = vst.msk [vmem:[%s1368_s28 + $0xf8] sm:$0xff] %vm811_vm3, %v810_v39 }
 0x148   : > { %v1155_v61 = vpop.eup %1154 }
 0x149   : > { %v1157_v38 = vpop.eup %1156  ;;  %v707_v51 = vmul.f32 0.6931472, %v1155_v61 }
 0x14a   : > { %v739_v42 = vmul.f32 0.6931472, %v1157_v38 }
 0x14b   : > { %v757_v45 = vsel %vm533_vm5, %v1565_v21, %v707_v51 }
 0x14c   : > { %v792_v46 = vsel %vm778_vm1, %v757_v45, %v1565_v21  ;;  %v773_v60 = vsel %vm549_vm6, %v1590_v44, %v739_v42 }
 0x14d   : > { %825 = vst.msk [vmem:[%s1368_s28 + $0x68] sm:$0xff] %vm811_vm3, %v792_v46  ;;  %v808_v0 = vsel %vm778_vm1, %v773_v60, %v1590_v44 }
 0x14e   : > { %841 = vst.msk [vmem:[%s1368_s28 + $0xe8] sm:$0xff] %vm811_vm3, %v808_v0 }
 0x14f PF: > { %s13_s12 = sadd.s32 1, %s1164_s12  }
 0x150   : > { %p10_p4 = scmp.ge.s32.totalorder %s13_s12, 4  }
 0x152   :  { %12 = sbr.rel (!%p10_p4) target bundleno = 1 (0x1), region = 62 }

// kernel: ss2d_block_forward.6
= control target key start
LH: loop header
LB: loop body
LE: loop exit
PB: predicated region body
PF: predicated region fallthrough
CT: control target
= control target key end

     0   :  { %s2861_s12 = smov 0   ;;  %s5841_s0 = inlined_call_operand.vmem [shape: f32[2,16,16,8], index: 0, kind: input, shape index: {}]   ;;  %s5842_s1 = inlined_call_operand.vmem [shape: f32[3,3,8], index: 1, kind: input, shape index: {}]   ;;  %s5843_s2 = inlined_call_operand.vmem [shape: f32[1,1,8], index: 2, kind: input, shape index: {}]   ;;  %s5844_s3 = inlined_call_operand.vmem [shape: f32[2,16,16,8], index: 3, kind: output, shape index: {}]  }
   0x1 LB: > { %s2598_s13 = sadd.s32 4294967295, %s2838_s12   ;;  %p2602_p0 = scmp.ge.s32.totalorder %s2838_s12, 1  ;;  %s2838_s12 = sphi %s2861_s12, %s13_s12  }
   0x2   : > { %p137_p1 = scmp.lt.s32.totalorder %s2838_s12, 3 }
   0x4   : > { %p138_p2 = pnand %p2602_p0, %p137_p1 }
   0x6   : > { %141 = sbr.rel (%p138_p2) target bundleno = 512 (0x200), region = 32 }
   0xd   : > { %vm171_vm0 = vcmask 64512   ;;  %p2871_p3 = scmp.lt.s32.totalorder %s2598_s13, 1  ;;  %v2840_v0 = vmov 0.0   ;;  %v384_v1 = vlaneseq  ;;  %v383_v9 = vld [vmem:[%s5842_s1 + $0x8] sm:$0x7]  ;;  %vm749_vm1 = vcmask 1045504  }
   0xe   : > { %173 = vst.msk [vmem:[#allocation2 + $0x8] sm:$0xff] %vm171_vm0, %v2840_v0  ;;  %172 = vst.msk [vmem:[#allocation2] sm:$0xff] %vm171_vm0, %v2840_v0  ;;  %v382_v13 = vld [vmem:[%s5842_s1 + $0x4] sm:$0x7]  ;;  %v381_v25 = vld [vmem:[%s5842_s1] sm:$0x7] }
   0xf   : > { %174 = vst.msk [vmem:[#allocation2 + $0x10] sm:$0xff] %vm171_vm0, %v2840_v0  ;;  %175 = vst.msk [vmem:[#allocation2 + $0x18] sm:$0xff] %vm171_vm0, %v2840_v0  ;;  %s6673_s13 = smov (!%p2871_p3, %s2598_s13), 1  ;;  %v385_v5 = vshrl.u32 %v384_v1, 7  ;;  %vm504_vm2 = vcmask 1046528   ;;  %vm2493_vm3 = vcmask 64519  }
  0x10   : > { %176 = vst.msk [vmem:[#allocation2 + $0x20] sm:$0xff] %vm171_vm0, %v2840_v0  ;;  %177 = vst.msk [vmem:[#allocation2 + $0x28] sm:$0xff] %vm171_vm0, %v2840_v0  ;;  %s2610_s15 = sshll.u32 %s6673_s13, 8  ;;  %vm2496_vm4 = vcmask 63488  }
  0x11   : > { %178 = vst.msk [vmem:[#allocation2 + $0x30] sm:$0xff] %vm171_vm0, %v2840_v0  ;;  %179 = vst.msk [vmem:[#allocation2 + $0x38] sm:$0xff] %vm171_vm0, %v2840_v0  ;;  %s3031_s18 = scalar_lea.vmem %s5841_s0, %s2610_s15  ;;  %v438_v20 = vsub.s32 1, %v385_v5  ;;  %v651_v21 = vsub.s32 2, %v385_v5  ;;  %v386_v26 = vsub.s32 0, %v385_v5  ;;  %s3506_s29 = scalar_lea.vmem %s5844_s3, %s2610_s15 }
  0x12   : > { %180 = vst.msk [vmem:[#allocation2 + $0x40] sm:$0xff] %vm171_vm0, %v2840_v0  ;;  %181 = vst.msk [vmem:[#allocation2 + $0x48] sm:$0xff] %vm171_vm0, %v2840_v0  ;;  %v244_v2 = vld [vmem:[%s3031_s18] sm:$0xff]  ;;  %v245_v3 = vld [vmem:[%s3031_s18 + $0x8] sm:$0xff] }
  0x13   : > { %182 = vst.msk [vmem:[#allocation2 + $0x50] sm:$0xff] %vm171_vm0, %v2840_v0  ;;  %183 = vst.msk [vmem:[#allocation2 + $0x58] sm:$0xff] %vm171_vm0, %v2840_v0  ;;  %v246_v4 = vld [vmem:[%s3031_s18 + $0x10] sm:$0xff]  ;;  %v247_v6 = vld [vmem:[%s3031_s18 + $0x18] sm:$0xff]  ;;  %v3081_v30 = vrot.slane %v383_v9, %v438_v20  ;;  %v3083_v31 = vrot.slane %v383_v9, %v651_v21  ;;  %v3091_v35 = vrot.slane %v382_v13, %v438_v20 }
  0x14   : > { %184 = vst.msk [vmem:[#allocation2 + $0x60] sm:$0xff] %vm171_vm0, %v2840_v0  ;;  %185 = vst.msk [vmem:[#allocation2 + $0x68] sm:$0xff] %vm171_vm0, %v2840_v0  ;;  %v248_v7 = vld [vmem:[%s3031_s18 + $0x20] sm:$0xff]  ;;  %v249_v8 = vld [vmem:[%s3031_s18 + $0x28] sm:$0xff]  ;;  %v3093_v36 = vrot.slane %v382_v13, %v651_v21  ;;  %v3095_v37 = vrot.slane %v383_v9, %v386_v26  ;;  %v3103_v41 = vrot.slane %v382_v13, %v386_v26 }
  0x15   : > { %186 = vst.msk [vmem:[#allocation2 + $0x70] sm:$0xff] %vm171_vm0, %v2840_v0  ;;  %187 = vst.msk [vmem:[#allocation2 + $0x78] sm:$0xff] %vm171_vm0, %v2840_v0  ;;  %v250_v10 = vld [vmem:[%s3031_s18 + $0x30] sm:$0xff]  ;;  %v251_v11 = vld [vmem:[%s3031_s18 + $0x38] sm:$0xff]  ;;  %v3113_v45 = vrot.slane %v381_v25, %v386_v26  ;;  %v3118_v48 = vrot.slane %v381_v25, %v438_v20  ;;  %v3120_v49 = vrot.slane %v381_v25, %v651_v21 }
  0x16   : > { %188 = vst.msk [vmem:[#allocation2 + $0x80] sm:$0xff] %vm171_vm0, %v2840_v0  ;;  %189 = vst.msk [vmem:[#allocation2 + $0x88] sm:$0xff] %vm171_vm0, %v2840_v0  ;;  %v252_v12 = vld [vmem:[%s3031_s18 + $0x40] sm:$0xff]  ;;  %v253_v14 = vld [vmem:[%s3031_s18 + $0x48] sm:$0xff] }
  0x17   : > { %190 = vst.msk [vmem:[#allocation2 + $0x90] sm:$0xff] %vm171_vm0, %v2840_v0  ;;  %191 = vst.msk [vmem:[#allocation2 + $0x98] sm:$0xff] %vm171_vm0, %v2840_v0  ;;  %v254_v15 = vld [vmem:[%s3031_s18 + $0x50] sm:$0xff]  ;;  %v255_v16 = vld [vmem:[%s3031_s18 + $0x58] sm:$0xff] }
  0x18   : > { %192 = vst.msk [vmem:[#allocation2 + $0xa0] sm:$0xff] %vm171_vm0, %v2840_v0  ;;  %193 = vst.msk [vmem:[#allocation2 + $0xa8] sm:$0xff] %vm171_vm0, %v2840_v0  ;;  %v256_v17 = vld [vmem:[%s3031_s18 + $0x60] sm:$0xff]  ;;  %v257_v18 = vld [vmem:[%s3031_s18 + $0x68] sm:$0xff] }
  0x19   : > { %194 = vst.msk [vmem:[#allocation2 + $0xb0] sm:$0xff] %vm171_vm0, %v2840_v0  ;;  %195 = vst.msk [vmem:[#allocation2 + $0xb8] sm:$0xff] %vm171_vm0, %v2840_v0  ;;  %v258_v19 = vld [vmem:[%s3031_s18 + $0x70] sm:$0xff]  ;;  %v259_v22 = vld [vmem:[%s3031_s18 + $0x78] sm:$0xff] }
  0x1a   : > { %196 = vst.msk [vmem:[#allocation2 + $0xc0] sm:$0xff] %vm171_vm0, %v2840_v0  ;;  %197 = vst.msk [vmem:[#allocation2 + $0xc8] sm:$0xff] %vm171_vm0, %v2840_v0  ;;  %v260_v23 = vld [vmem:[%s3031_s18 + $0x80] sm:$0xff]  ;;  %v261_v24 = vld [vmem:[%s3031_s18 + $0x88] sm:$0xff] }
  0x1b   : > { %198 = vst.msk [vmem:[#allocation2 + $0xd0] sm:$0xff] %vm171_vm0, %v2840_v0  ;;  %199 = vst.msk [vmem:[#allocation2 + $0xd8] sm:$0xff] %vm171_vm0, %v2840_v0  ;;  %v262_v27 = vld [vmem:[%s3031_s18 + $0x90] sm:$0xff]  ;;  %v263_v28 = vld [vmem:[%s3031_s18 + $0x98] sm:$0xff] }
  0x1c   : > { %200 = vst.msk [vmem:[#allocation2 + $0xe0] sm:$0xff] %vm171_vm0, %v2840_v0  ;;  %201 = vst.msk [vmem:[#allocation2 + $0xe8] sm:$0xff] %vm171_vm0, %v2840_v0  ;;  %v264_v29 = vld [vmem:[%s3031_s18 + $0xa0] sm:$0xff]  ;;  %v265_v32 = vld [vmem:[%s3031_s18 + $0xa8] sm:$0xff] }
  0x1d   : > { %202 = vst.msk [vmem:[#allocation2 + $0xf0] sm:$0xff] %vm171_vm0, %v2840_v0  ;;  %203 = vst.msk [vmem:[#allocation2 + $0xf8] sm:$0xff] %vm171_vm0, %v2840_v0  ;;  %v266_v33 = vld [vmem:[%s3031_s18 + $0xb0] sm:$0xff]  ;;  %v267_v34 = vld [vmem:[%s3031_s18 + $0xb8] sm:$0xff] }
  0x1e   : > { %204 = vst.msk [vmem:[#allocation2 + $0x100] sm:$0xff] %vm171_vm0, %v2840_v0  ;;  %205 = vst.msk [vmem:[#allocation2 + $0x108] sm:$0xff] %vm171_vm0, %v2840_v0  ;;  %v268_v38 = vld [vmem:[%s3031_s18 + $0xc0] sm:$0xff]  ;;  %v269_v39 = vld [vmem:[%s3031_s18 + $0xc8] sm:$0xff] }
  0x1f   : > { %206 = vst.msk [vmem:[#allocation2 + $0x110] sm:$0xff] %vm171_vm0, %v2840_v0  ;;  %207 = vst.msk [vmem:[#allocation2 + $0x118] sm:$0xff] %vm171_vm0, %v2840_v0  ;;  %v270_v40 = vld [vmem:[%s3031_s18 + $0xd0] sm:$0xff]  ;;  %v271_v44 = vld [vmem:[%s3031_s18 + $0xd8] sm:$0xff] }
  0x20   : > { %208 = vst.msk [vmem:[#allocation2 + $0x120] sm:$0xff] %vm171_vm0, %v2840_v0  ;;  %209 = vst.msk [vmem:[#allocation2 + $0x128] sm:$0xff] %vm171_vm0, %v2840_v0  ;;  %v272_v46 = vld [vmem:[%s3031_s18 + $0xe0] sm:$0xff]  ;;  %v273_v47 = vld [vmem:[%s3031_s18 + $0xe8] sm:$0xff] }
  0x21   : > { %210 = vst.msk [vmem:[#allocation2 + $0x130] sm:$0xff] %vm171_vm0, %v2840_v0  ;;  %211 = vst.msk [vmem:[#allocation2 + $0x138] sm:$0xff] %vm171_vm0, %v2840_v0  ;;  %v274_v52 = vld [vmem:[%s3031_s18 + $0xf0] sm:$0xff]  ;;  %v275_v57 = vld [vmem:[%s3031_s18 + $0xf8] sm:$0xff] }
  0x22   : > { %212 = vst.msk [vmem:[#allocation2 + $0x140] sm:$0xff] %vm171_vm0, %v2840_v0  ;;  %213 = vst.msk [vmem:[#allocation2 + $0x148] sm:$0xff] %vm171_vm0, %v2840_v0  ;;  %v309_v58 = vld [vmem:[#allocation2] sm:$0xff]  ;;  %v310_v63 = vld [vmem:[#allocation2 + $0x8] sm:$0xff] }
  0x23   : > { %214 = vst.msk [vmem:[#allocation2 + $0x150] sm:$0xff] %vm171_vm0, %v2840_v0  ;;  %215 = vst.msk [vmem:[#allocation2 + $0x158] sm:$0xff] %vm171_vm0, %v2840_v0  ;;  %v389_v13 = vmul.f32 %v3113_v45, %v310_v63  ;;  %v311_v20 = vld [vmem:[#allocation2 + $0x10] sm:$0xff]  ;;  %v312_v25 = vld [vmem:[#allocation2 + $0x18] sm:$0xff] }
  0x24   : > { %216 = vst.msk [vmem:[#allocation2 + $0x160] sm:$0xff] %vm171_vm0, %v2840_v0  ;;  %217 = vst.msk [vmem:[#allocation2 + $0x168] sm:$0xff] %vm171_vm0, %v2840_v0 }
  0x25   : > { %218 = vst.msk [vmem:[#allocation2 + $0x170] sm:$0xff] %vm171_vm0, %v2840_v0  ;;  %219 = vst.msk [vmem:[#allocation2 + $0x178] sm:$0xff] %vm171_vm0, %v2840_v0 }
  0x26   : > { %220 = vst.msk [vmem:[#allocation2 + $0x180] sm:$0xff] %vm171_vm0, %v2840_v0  ;;  %221 = vst.msk [vmem:[#allocation2 + $0x188] sm:$0xff] %vm171_vm0, %v2840_v0 }
  0x27   : > { %222 = vst.msk [vmem:[#allocation2 + $0x190] sm:$0xff] %vm171_vm0, %v2840_v0  ;;  %223 = vst.msk [vmem:[#allocation2 + $0x198] sm:$0xff] %vm171_vm0, %v2840_v0 }
  0x28   : > { %224 = vst.msk [vmem:[#allocation2 + $0x1a0] sm:$0xff] %vm171_vm0, %v2840_v0  ;;  %225 = vst.msk [vmem:[#allocation2 + $0x1a8] sm:$0xff] %vm171_vm0, %v2840_v0 }
  0x29   : > { %226 = vst.msk [vmem:[#allocation2 + $0x1b0] sm:$0xff] %vm171_vm0, %v2840_v0  ;;  %227 = vst.msk [vmem:[#allocation2 + $0x1b8] sm:$0xff] %vm171_vm0, %v2840_v0 }
  0x2a   : > { %228 = vst.msk [vmem:[#allocation2 + $0x1c0] sm:$0xff] %vm171_vm0, %v2840_v0  ;;  %229 = vst.msk [vmem:[#allocation2 + $0x1c8] sm:$0xff] %vm171_vm0, %v2840_v0 }
  0x2b   : > { %230 = vst.msk [vmem:[#allocation2 + $0x1d0] sm:$0xff] %vm171_vm0, %v2840_v0  ;;  %231 = vst.msk [vmem:[#allocation2 + $0x1d8] sm:$0xff] %vm171_vm0, %v2840_v0 }
  0x2c   : > { %232 = vst.msk [vmem:[#allocation2 + $0x1e0] sm:$0xff] %vm171_vm0, %v2840_v0  ;;  %233 = vst.msk [vmem:[#allocation2 + $0x1e8] sm:$0xff] %vm171_vm0, %v2840_v0 }
  0x2d   : > { %234 = vst.msk [vmem:[#allocation2 + $0x1f0] sm:$0xff] %vm171_vm0, %v2840_v0  ;;  %235 = vst.msk [vmem:[#allocation2 + $0x1f8] sm:$0xff] %vm171_vm0, %v2840_v0 }
  0x2e   : > { %236 = vst.msk [vmem:[#allocation2 + $0x200] sm:$0xff] %vm171_vm0, %v2840_v0  ;;  %237 = vst.msk [vmem:[#allocation2 + $0x208] sm:$0xff] %vm171_vm0, %v2840_v0 }
  0x2f   : > { %238 = vst.msk [vmem:[#allocation2 + $0x210] sm:$0xff] %vm171_vm0, %v2840_v0  ;;  %239 = vst.msk [vmem:[#allocation2 + $0x218] sm:$0xff] %vm171_vm0, %v2840_v0 }
  0x30   : > { %240 = vst.msk [vmem:[#allocation2 + $0x220] sm:$0xff] %vm171_vm0, %v2840_v0  ;;  %241 = vst.msk [vmem:[#allocation2 + $0x228] sm:$0xff] %vm171_vm0, %v2840_v0 }
  0x31   : > { %242 = vst.msk [vmem:[#allocation2 + $0x230] sm:$0xff] %vm171_vm0, %v2840_v0  ;;  %243 = vst.msk [vmem:[#allocation2 + $0x238] sm:$0xff] %vm171_vm0, %v2840_v0  ;;  %v388_v0 = vmul.f32 %v3113_v45, %v309_v58 }
  0x32   : > { %277 = vst.msk [vmem:[#allocation2 + $0x28] sm:$0xff] %vm171_vm0, %v244_v2  ;;  %278 = vst.msk [vmem:[#allocation2 + $0x30] sm:$0xff] %vm171_vm0, %v245_v3 }
  0x33   : > { %279 = vst.msk [vmem:[#allocation2 + $0x48] sm:$0xff] %vm171_vm0, %v246_v4  ;;  %280 = vst.msk [vmem:[#allocation2 + $0x50] sm:$0xff] %vm171_vm0, %v247_v6  ;;  %v313_v4 = vld [vmem:[#allocation2 + $0x20] sm:$0xff]  ;;  %v440_v6 = vmul.f32 %v3118_v48, %v310_v63 }
  0x34   : > { %281 = vst.msk [vmem:[#allocation2 + $0x68] sm:$0xff] %vm171_vm0, %v248_v7  ;;  %282 = vst.msk [vmem:[#allocation2 + $0x70] sm:$0xff] %vm171_vm0, %v249_v8  ;;  %v3176_v7 = vmul.f32 %v3120_v49, %v310_v63 }
  0x35   : > { %283 = vst.msk [vmem:[#allocation2 + $0x88] sm:$0xff] %vm171_vm0, %v250_v10  ;;  %284 = vst.msk [vmem:[#allocation2 + $0x90] sm:$0xff] %vm171_vm0, %v251_v11  ;;  %v317_v10 = vld [vmem:[#allocation2 + $0x40] sm:$0xff]  ;;  %v3181_v11 = vmul.f32 %v3113_v45, %v313_v4 }
  0x36   : > { %285 = vst.msk [vmem:[#allocation2 + $0xa8] sm:$0xff] %vm171_vm0, %v252_v12  ;;  %286 = vst.msk [vmem:[#allocation2 + $0xb0] sm:$0xff] %vm171_vm0, %v253_v14  ;;  %v394_v21 = vmul.f32 %v3113_v45, %v317_v10 }
  0x37   : > { %287 = vst.msk [vmem:[#allocation2 + $0xc8] sm:$0xff] %vm171_vm0, %v254_v15  ;;  %288 = vst.msk [vmem:[#allocation2 + $0xd0] sm:$0xff] %vm171_vm0, %v255_v16  ;;  %v505_v16 = vrot.slane %v440_v6, 1 }
  0x38   : > { %289 = vst.msk [vmem:[#allocation2 + $0xe8] sm:$0xff] %vm171_vm0, %v256_v17  ;;  %290 = vst.msk [vmem:[#allocation2 + $0xf0] sm:$0xff] %vm171_vm0, %v257_v18  ;;  %v750_v17 = vrot.slane %v3176_v7, 2  ;;  %v930_v18 = vmul.f32 %v3103_v41, %v313_v4 }
  0x39   : > { %291 = vst.msk [vmem:[#allocation2 + $0x108] sm:$0xff] %vm171_vm0, %v258_v19  ;;  %292 = vst.msk [vmem:[#allocation2 + $0x110] sm:$0xff] %vm171_vm0, %v259_v22  ;;  %v3172_v5 = vld [vmem:[#allocation2 + $0x28] sm:$0xff]  ;;  %v601_v26 = vadd.f32 %v505_v16, %v388_v0 }
  0x3a   : > { %293 = vst.msk [vmem:[#allocation2 + $0x128] sm:$0xff] %vm171_vm0, %v260_v23  ;;  %294 = vst.msk [vmem:[#allocation2 + $0x130] sm:$0xff] %vm171_vm0, %v261_v24  ;;  %v3105_v42 = vld [vmem:[#allocation2 + $0x50] sm:$0xff]  ;;  %v3185_v12 = vmul.f32 %v3091_v35, %v3172_v5  ;;  %v3189_v15 = vld [vmem:[#allocation2 + $0x48] sm:$0xff]  ;;  %v3195_v19 = vmul.f32 %v3093_v36, %v3172_v5  ;;  %v3203_v23 = vmul.f32 %v3103_v41, %v317_v10 }
  0x3b   : > { %295 = vst.msk [vmem:[#allocation2 + $0x148] sm:$0xff] %vm171_vm0, %v262_v27  ;;  %296 = vst.msk [vmem:[#allocation2 + $0x150] sm:$0xff] %vm171_vm0, %v263_v28  ;;  %v3107_v43 = vld [vmem:[#allocation2 + $0x70] sm:$0xff]  ;;  %v3124_v50 = vmul.f32 %v3081_v30, %v3105_v42  ;;  %v3128_v51 = vmul.f32 %v3083_v31, %v3105_v42  ;;  %v3135_v53 = vmul.f32 %v3095_v37, %v3105_v42 }
  0x3c   : > { %297 = vst.msk [vmem:[#allocation2 + $0x168] sm:$0xff] %vm171_vm0, %v264_v29  ;;  %298 = vst.msk [vmem:[#allocation2 + $0x170] sm:$0xff] %vm171_vm0, %v265_v32  ;;  %v3139_v54 = vmul.f32 %v3091_v35, %v3105_v42  ;;  %v3143_v55 = vmul.f32 %v3093_v36, %v3105_v42  ;;  %v3147_v56 = vmul.f32 %v3081_v30, %v3107_v43  ;;  %v1094_v24 = vrot.slane %v3185_v12, 1  ;;  %v316_v29 = vld [vmem:[#allocation2 + $0x38] sm:$0xff] }
  0x3d   : > { %299 = vst.msk [vmem:[#allocation2 + $0x188] sm:$0xff] %vm171_vm0, %v266_v33  ;;  %300 = vst.msk [vmem:[#allocation2 + $0x190] sm:$0xff] %vm171_vm0, %v267_v34  ;;  %v3154_v60 = vmul.f32 %v3103_v41, %v3105_v42  ;;  %v3158_v61 = vmul.f32 %v3095_v37, %v3107_v43  ;;  %v3162_v62 = vmul.f32 %v3083_v31, %v3107_v43  ;;  %v1927_v1 = vrot.slane %v3128_v51, 2  ;;  %v320_v34 = vld [vmem:[#allocation2 + $0x58] sm:$0xff] }
  0x3e   : > { %301 = vst.msk [vmem:[#allocation2 + $0x1a8] sm:$0xff] %vm171_vm0, %v268_v38  ;;  %302 = vst.msk [vmem:[#allocation2 + $0x1b0] sm:$0xff] %vm171_vm0, %v269_v39  ;;  %v3170_v3 = vmul.f32 %v3113_v45, %v3105_v42  ;;  %v3200_v22 = vmul.f32 %v3118_v48, %v3189_v15  ;;  %v1618_v27 = vmul.f32 %v3081_v30, %v3189_v15 }
  0x3f   : > { %303 = vst.msk [vmem:[#allocation2 + $0x1c8] sm:$0xff] %vm171_vm0, %v270_v40  ;;  %304 = vst.msk [vmem:[#allocation2 + $0x1d0] sm:$0xff] %vm171_vm0, %v271_v44  ;;  %v3210_v28 = vmul.f32 %v3083_v31, %v3189_v15  ;;  %v390_v32 = vmul.f32 %v3113_v45, %v311_v20  ;;  %v441_v38 = vmul.f32 %v3118_v48, %v311_v20 }
  0x40   : > { %305 = vst.msk [vmem:[#allocation2 + $0x1e8] sm:$0xff] %vm171_vm0, %v272_v46  ;;  %306 = vst.msk [vmem:[#allocation2 + $0x1f0] sm:$0xff] %vm171_vm0, %v273_v47  ;;  %v5845_v33 = vrot.slane %v3200_v22, 1  ;;  %v654_v39 = vmul.f32 %v3120_v49, %v311_v20  ;;  %v655_v40 = vmul.f32 %v3120_v49, %v312_v25  ;;  %v878_v44 = vadd.f32 %v750_v17, %v601_v26 }
  0x41   : > { %307 = vst.msk [vmem:[#allocation2 + $0x208] sm:$0xff] %vm171_vm0, %v274_v52  ;;  %308 = vst.msk [vmem:[#allocation2 + $0x210] sm:$0xff] %vm171_vm0, %v275_v57  ;;  %v1338_v46 = vrot.slane %v3195_v19, 2  ;;  %v1518_v47 = vmul.f32 %v3095_v37, %v317_v10  ;;  %v1682_v52 = vrot.slane %v1618_v27, 1  ;;  %v3219_v57 = vld [vmem:[#allocation2 + $0x30] sm:$0xff]  ;;  %v1926_v58 = vrot.slane %v3210_v28, 2 }
  0x42   : > { %v506_v63 = vrot.slane %v441_v38, 1  ;;  %v3223_v0 = vmul.f32 %v3120_v49, %v316_v29  ;;  %v751_v4 = vrot.slane %v654_v39, 2  ;;  %v3227_v6 = vadd.f32 %v5845_v33, %v394_v21 }
  0x43   : > { %v978_v7 = vadd.f32 %v930_v18, %v878_v44  ;;  %v3230_v12 = vmul.f32 %v3120_v49, %v320_v34  ;;  %v753_v19 = vrot.slane %v655_v40, 2  ;;  %v932_v20 = vmul.f32 %v3103_v41, %v3219_v57 }
  0x44   : > { %v603_v10 = vadd.f32 %v506_v63, %v390_v32  ;;  %v1031_v25 = vmul.f32 %v3091_v35, %v3219_v57  ;;  %v1243_v26 = vmul.f32 %v3093_v36, %v3219_v57  ;;  %v1244_v21 = vmul.f32 %v3093_v36, %v316_v29 }
  0x45   : > { %v1190_v27 = vadd.f32 %v1094_v24, %v978_v7  ;;  %v754_v28 = vsel %vm749_vm1, %v751_v4, %v753_v19  ;;  %v3241_v18 = vmul.f32 %v3093_v36, %v320_v34  ;;  %v1832_v40 = vmul.f32 %v3083_v31, %v320_v34 }
  0x46   : > { %v880_v38 = vadd.f32 %v754_v28, %v603_v10  ;;  %v1095_v39 = vrot.slane %v1031_v25, 1  ;;  %v1339_v32 = vrot.slane %v1243_v26, 2  ;;  %v758_v33 = vrot.slane %v3223_v0, 2 }
  0x47   : > { %v1466_v44 = vadd.f32 %v1338_v46, %v1190_v27  ;;  %v1341_v9 = vrot.slane %v1244_v21, 2  ;;  %v507_v14 = vsel %vm504_vm2, %v505_v16, %v506_v63  ;;  %v1929_v7 = vrot.slane %v1832_v40, 2  ;;  %v321_v16 = vld [vmem:[#allocation2 + $0x60] sm:$0xff]  ;;  %v3253_v63 = vld [vmem:[#allocation2 + $0x68] sm:$0xff] }
  0x48   : > { %v980_v2 = vadd.f32 %v932_v20, %v880_v38  ;;  %v602_v8 = vadd.f32 %v507_v14, %v389_v13  ;;  %v752_v19 = vsel %vm749_vm1, %v750_v17, %v751_v4  ;;  %v931_v25 = vmul.f32 %v3103_v41, %v3172_v5 }
  0x49   : > { %v1566_v29 = vadd.f32 %v1518_v47, %v1466_v44  ;;  %v1342_v10 = vsel %vm749_vm1, %v1339_v32, %v1341_v9  ;;  %v1346_v26 = vrot.slane %v3241_v18, 2  ;;  %v1096_v28 = vsel %vm504_vm2, %v1094_v24, %v1095_v39 }
  0x4a   : > { %v1192_v34 = vadd.f32 %v1095_v39, %v980_v2  ;;  %v879_v27 = vadd.f32 %v752_v19, %v602_v8  ;;  %v1930_v14 = vsel %vm749_vm1, %v1927_v1, %v1929_v7  ;;  %v1340_v17 = vsel %vm749_vm1, %v1338_v46, %v1339_v32  ;;  %v3264_v2 = vld [vmem:[%s5843_s2] ss:$0 sm:$0xff] }
  0x4b   : > { %v1778_v13 = vadd.f32 %v1682_v52, %v1566_v29  ;;  %v1519_v9 = vmul.f32 %v3095_v37, %v3189_v15  ;;  %v6088_v47 = vrot.slane %v3124_v50, 1  ;;  %v3271_v20 = vmul.f32 %v3118_v48, %v3172_v5 }
  0x4c   : > { %v1468_v8 = vadd.f32 %v1342_v10, %v1192_v34  ;;  %v979_v24 = vadd.f32 %v931_v25, %v879_v27  ;;  %v397_v46 = vmul.f32 %v3113_v45, %v321_v16  ;;  %v3276_v38 = vmul.f32 %v3118_v48, %v3253_v63 }
  0x4d   : > { %v1684_v4 = vsel %vm504_vm2, %v1682_v52, %v6088_v47  ;;  %v2054_v21 = vadd.f32 %v1926_v58, %v1778_v13  ;;  %v3280_v39 = vmul.f32 %v3120_v49, %v3172_v5  ;;  %v5850_v52 = vrot.slane %v3271_v20, 1 }
  0x4e   : > { %6089 = vst [vmem:[#allocation3_spill] sm:$0xff] %v3276_v38  ;;  %v1568_v32 = vadd.f32 %v3135_v53, %v1468_v8  ;;  %v1191_v40 = vadd.f32 %v1096_v28, %v979_v24  ;;  %v3286_v44 = vmul.f32 %v3091_v35, %v3189_v15  ;;  %v1928_v19 = vsel %vm749_vm1, %v1926_v58, %v1927_v1 }
  0x4f   : > { %v3289_v7 = vadd.f32 %v3264_v2, %v2054_v21  ;;  %v5846_v29 = vrot.slane %v3276_v38, 1  ;;  %v3297_v5 = vmul.f32 %v3093_v36, %v3189_v15  ;;  %v6090_v53 = vmov %v6088_v47  ;;  %v324_v21 = vld [vmem:[#allocation2 + $0x78] sm:$0xff] }
  0x50   : > { %v1780_v10 = vadd.f32 %v6090_v53, %v1568_v32  ;;  %v1467_v25 = vadd.f32 %v1340_v17, %v1191_v40  ;;  %v604_v34 = vadd.f32 %v5850_v52, %v3181_v11  ;;  %v5849_v27 = vrot.slane %v3280_v39, 2 }
  0x51   : > { %v2157_v51 = vsub.f32 0.0, %v3289_v7  ;;  %v3308_v1 = vadd.f32 %v5846_v29, %v397_v46  ;;  %v3311_v58 = vmul.f32 %v3103_v41, %v321_v16  ;;  %v5848_v28 = vrot.slane %v3286_v44, 1  ;;  %v3360_v29 = vld [vmem:[#allocation2 + $0x88] sm:$0xff] }
  0x52   : > { %v2056_v50 = vadd.f32 %v1930_v14, %v1780_v10  ;;  %v1567_v13 = vadd.f32 %v1519_v9, %v1467_v25  ;;  %v881_v17 = vadd.f32 %v5849_v27, %v604_v34  ;;  %v5847_v11 = vrot.slane %v3297_v5, 2 }
  0x53   : > { %v2205_v8 = vmul.f32 1.442695, %v2157_v51  ;;  %v3319_v24 = vmul.f32 %v3081_v30, %v3253_v63  ;;  %v3323_v47 = vmul.f32 %v3083_v31, %v3253_v63  ;;  %v3327_v46 = vmul.f32 %v3118_v48, %v3219_v57 }
  0x54   : > { %v3330_v14 = vadd.f32 %v3264_v2, %v2056_v50  ;;  %v1779_v9 = vadd.f32 %v1684_v4, %v1567_v13  ;;  %v981_v32 = vadd.f32 %v3203_v23, %v881_v17  ;;  %v1521_v40 = vmul.f32 %v3095_v37, %v321_v16 }
  0x55   : > { %2621 = vpow2.f32 %v2205_v8  ;;  %v393_v53 = vmul.f32 %v3113_v45, %v3219_v57  ;;  %v5851_v10 = vrot.slane %v3327_v46, 1  ;;  %v3339_v25 = vmul.f32 %v3120_v49, %v3219_v57 }
  0x56   : > { %v2159_v34 = vsub.f32 0.0, %v3330_v14  ;;  %v2055_v51 = vadd.f32 %v1928_v19, %v1779_v9  ;;  %v1193_v4 = vadd.f32 %v5848_v28, %v981_v32  ;;  %v3345_v23 = vmul.f32 %v3120_v49, %v324_v21  ;;  %v325_v32 = vld [vmem:[#allocation2 + $0x80] sm:$0xff] }
  0x57   : > { %v5853_v16 = vrot.slane %v3319_v24, 1  ;;  %v5854_v50 = vrot.slane %v3323_v47, 2  ;;  %v606_v13 = vadd.f32 %v5851_v10, %v393_v53  ;;  %v5852_v17 = vrot.slane %v3339_v25, 2 }
  0x58   : > { %v2209_v57 = vmul.f32 1.442695, %v2159_v34  ;;  %v3353_v8 = vadd.f32 %v3264_v2, %v2055_v51  ;;  %v1469_v19 = vadd.f32 %v5847_v11, %v1193_v4  ;;  %v3358_v9 = vmul.f32 %v3093_v36, %v324_v21 }
  0x59   : > { %v759_v53 = vsel %vm749_vm1, %v5852_v17, %v758_v33  ;;  %v6091_v51 = vrot.slane %v3143_v55, 2  ;;  %v1835_v11 = vmul.f32 %v3083_v31, %v324_v21  ;;  %v400_v10 = vmul.f32 %v3113_v45, %v325_v32 }
  0x5a   : > { %2623 = vpow2.f32 %v2209_v57  ;;  %v2158_v28 = vsub.f32 0.0, %v3353_v8  ;;  %v1569_v27 = vadd.f32 %v1521_v40, %v1469_v19  ;;  %v883_v52 = vadd.f32 %v759_v53, %v606_v13 }
  0x5b   : > { %v1347_v4 = vsel %vm749_vm1, %v6091_v51, %v1346_v26  ;;  %v1934_v0 = vrot.slane %v1835_v11, 2  ;;  %v3378_v33 = vmul.f32 %v3118_v48, %v3360_v29  ;;  %v3382_v18 = vmul.f32 %v3120_v49, %v3189_v15 }
  0x5c   : > { %v2207_v17 = vmul.f32 1.442695, %v2158_v28  ;;  %v1781_v26 = vadd.f32 %v5853_v16, %v1569_v27  ;;  %v983_v21 = vadd.f32 %v3154_v60, %v883_v52  ;;  %v3389_v40 = vmul.f32 %v3091_v35, %v3253_v63 }
  0x5d   : > { %6092 = vst [vmem:[#allocation4_spill] sm:$0xff] %v3378_v33  ;;  %6093 = vst [vmem:[#allocation5_spill] sm:$0xff] %v3382_v18  ;;  %v5855_v13 = vrot.slane %v3378_v33, 1  ;;  %v5856_v57 = vrot.slane %v3382_v18, 2  ;;  %v3396_v15 = vmul.f32 %v3093_v36, %v3253_v63  ;;  %v6096_v60 = vrot.slane %v3139_v54, 1 }
  0x5e   : > { %6094 = vst [vmem:[#allocation6_spill] sm:$0xff] %v3389_v40  ;;  %2625 = vpow2.f32 %v2207_v17  ;;  %v2057_v27 = vadd.f32 %v5854_v50, %v1781_v26  ;;  %v3403_v28 = vmul.f32 %v3103_v41, %v325_v32  ;;  %v6097_v53 = vrot.slane %v3162_v62, 2 }
  0x5f   : > { %6095 = vst [vmem:[#allocation7_spill] sm:$0xff] %v3396_v15  ;;  %v1195_v52 = vadd.f32 %v6096_v60, %v983_v21  ;;  %v2622_v19 = vpop.eup %2621  ;;  %v3410_v16 = vadd.f32 %v5855_v13, %v400_v10  ;;  %v884_v17 = vadd.f32 %v5856_v57, %v3227_v6  ;;  %v5857_v26 = vrot.slane %v3389_v40, 1 }
  0x60   : > { %v1935_v51 = vsel %vm749_vm1, %v6097_v53, %v1934_v0  ;;  %v2301_v50 = vadd.f32 1.0, %v2622_v19  ;;  %v3417_v21 = vadd.f32 %v3264_v2, %v2057_v27  ;;  %v3421_v34 = vmul.f32 %v3081_v30, %v3360_v29  ;;  %v328_v53 = vld [vmem:[#allocation2 + $0x98] sm:$0xff] }
  0x61   : > { %v1471_v60 = vadd.f32 %v1347_v4, %v1195_v52  ;;  %v984_v0 = vadd.f32 %v3311_v58, %v884_v17  ;;  %v5858_v10 = vrot.slane %v3396_v15, 2  ;;  %v3427_v13 = vmul.f32 %v3118_v48, %v3105_v42 }
  0x62   : > { %6098 = vst [vmem:[#allocation8_spill] sm:$0xff] %v3421_v34  ;;  %v3431_v6 = vmul.f32 %v3120_v49, %v3105_v42  ;;  %2627 = vrcp.f32 %v2301_v50  ;;  %v2160_v4 = vsub.f32 0.0, %v3417_v21  ;;  %v1524_v52 = vmul.f32 %v3095_v37, %v325_v32 }
  0x63   : > { %v1571_v27 = vadd.f32 %v3158_v61, %v1471_v60  ;;  %v1196_v58 = vadd.f32 %v5857_v26, %v984_v0  ;;  %v3441_v17 = vmul.f32 %v3083_v31, %v3360_v29  ;;  %v5859_v57 = vrot.slane %v3427_v13, 1 }
  0x64   : > { %v2624_v42 = vpop.eup %2623  ;;  %v2211_v50 = vmul.f32 1.442695, %v2160_v4  ;;  %v6100_v11 = vrot.slane %v3147_v56, 1  ;;  %v3447_v61 = vmul.f32 %v3120_v49, %v328_v53  ;;  %v5860_v32 = vrot.slane %v3431_v6, 2 }
  0x65   : > { %6099 = vst [vmem:[#allocation9_spill] sm:$0xff] %v3441_v17  ;;  %v2303_v60 = vadd.f32 1.0, %v2624_v42  ;;  %v1472_v0 = vadd.f32 %v5858_v10, %v1196_v58  ;;  %v609_v26 = vadd.f32 %v5859_v57, %v3170_v3  ;;  %v938_v19 = vmul.f32 %v3103_v41, %v3107_v43  ;;  %v3466_v58 = vld [vmem:[#allocation2 + $0x90] sm:$0xff] }
  0x66   : > { %v1783_v59 = vadd.f32 %v6100_v11, %v1571_v27  ;;  %2629 = vpow2.f32 %v2211_v50  ;;  %v6101_v11 = vrot.slane %v3230_v12, 2  ;;  %v3464_v42 = vmul.f32 %v3091_v35, %v3107_v43 }
  0x67   : > { %2631 = vrcp.f32 %v2303_v60  ;;  %v1572_v10 = vadd.f32 %v1524_v52, %v1472_v0  ;;  %v3470_v57 = vmul.f32 %v3093_v36, %v3107_v43  ;;  %v6104_v52 = vrot.slane %v3421_v34, 1 }
  0x68   : > { %v2059_v4 = vadd.f32 %v1935_v51, %v1783_v59  ;;  %v764_v27 = vsel %vm749_vm1, %v5860_v32, %v6101_v11  ;;  %6102 = vst [vmem:[#allocation10_spill] sm:$0xff] %v3464_v42  ;;  %v2626_v59 = vpop.eup %2625  ;;  %v5862_v11 = vrot.slane %v3464_v42, 1  ;;  %v3487_v51 = vmul.f32 %v3081_v30, %v3466_v58 }
  0x69   : > { %v886_v3 = vadd.f32 %v764_v27, %v609_v26  ;;  %6103 = vst [vmem:[#allocation11_spill] sm:$0xff] %v3470_v57  ;;  %v2302_v32 = vadd.f32 1.0, %v2626_v59  ;;  %v1784_v26 = vadd.f32 %v6104_v52, %v1572_v10  ;;  %v3491_v50 = vmul.f32 %v3083_v31, %v3466_v58  ;;  %v3499_v52 = vld [vmem:[#allocation2 + $0xa8] sm:$0xff] }
  0x6a   : > { %v3473_v12 = vadd.f32 %v3264_v2, %v2059_v4  ;;  %v3483_v4 = vmul.f32 %v3093_v36, %v328_v53  ;;  %6105 = vst [vmem:[#allocation12_spill] sm:$0xff] %v3487_v51  ;;  %v6107_v59 = vrot.slane %v3441_v17, 2  ;;  %v6108_v33 = vrot.slane %v3358_v9, 2  ;;  %v329_v17 = vld [vmem:[#allocation2 + $0xa0] sm:$0xff] }
  0x6b   : > { %v986_v60 = vadd.f32 %v938_v19, %v886_v3  ;;  %6106 = vst [vmem:[#allocation13_spill] sm:$0xff] %v3491_v50  ;;  %2633 = vrcp.f32 %v2302_v32  ;;  %v1526_v3 = vmul.f32 %v3095_v37, %v3466_v58  ;;  %v3522_v9 = vmul.f32 %v3118_v48, %v3499_v52 }
  0x6c   : > { %v2162_v27 = vsub.f32 0.0, %v3473_v12  ;;  %v2060_v10 = vadd.f32 %v6107_v59, %v1784_v26  ;;  %v2628_v0 = vpop.eup %2627  ;;  %v6109_v26 = vrot.slane %v3470_v57, 2  ;;  %v5871_v59 = vrot.slane %v3487_v51, 1 }
  0x6d   : > { %v1198_v19 = vadd.f32 %v5862_v11, %v986_v60  ;;  %v1838_v11 = vmul.f32 %v3083_v31, %v328_v53  ;;  %v2445_v34 = vmul.f32 %v2628_v0, %v3289_v7  ;;  %6110 = vst [vmem:[#allocation14_spill] sm:$0xff] %v3522_v9  ;;  %v403_v0 = vmul.f32 %v3113_v45, %v329_v17 }
  0x6e   : > { %v2215_v32 = vmul.f32 1.442695, %v2162_v27  ;;  %v1352_v60 = vsel %vm749_vm1, %v6109_v26, %v6108_v33  ;;  %v3517_v38 = vadd.f32 %v3264_v2, %v2060_v10  ;;  %v3526_v33 = vmul.f32 %v3120_v49, %v3253_v63 }
  0x6f   : > { %v1474_v15 = vadd.f32 %v1352_v60, %v1198_v19  ;;  %v1939_v27 = vrot.slane %v1838_v11, 2  ;;  %2494 = vst.msk [vmem:[%s3506_s29 - $0x7] sm:$0x80] %vm2493_vm3, %v2445_v34  ;;  %v3534_v10 = vmul.f32 %v3091_v35, %v3360_v29  ;;  %v3541_v63 = vmul.f32 %v3093_v36, %v3360_v29 }
  0x70   : > { %2635 = vpow2.f32 %v2215_v32  ;;  %6111 = vst [vmem:[#allocation15_spill] sm:$0xff] %v3526_v33  ;;  %v2163_v7 = vsub.f32 0.0, %v3517_v38  ;;  %v2630_v11 = vpop.eup %2629  ;;  %v3546_v40 = vmul.f32 %v3103_v41, %v329_v17  ;;  %v6114_v32 = vrot.slane %v3491_v50, 2 }
  0x71   : > { %v1574_v53 = vadd.f32 %v1526_v3, %v1474_v15  ;;  %6112 = vst [vmem:[#allocation16_spill] sm:$0xff] %v3534_v10  ;;  %6113 = vst [vmem:[#allocation17_spill] sm:$0xff] %v3541_v63  ;;  %v2632_v34 = vpop.eup %2631  ;;  %v2304_v15 = vadd.f32 1.0, %v2630_v11  ;;  %v6115_v57 = vrot.slane %v3526_v33, 2  ;;  %v5872_v18 = vrot.slane %v3534_v10, 1 }
  0x72   : > { %v2217_v3 = vmul.f32 1.442695, %v2163_v7  ;;  %v2447_v19 = vmul.f32 %v2632_v34, %v3330_v14  ;;  %v1940_v26 = vsel %vm749_vm1, %v6114_v32, %v1939_v27  ;;  %v6116_v11 = vrot.slane %v3522_v9, 1  ;;  %v332_v14 = vld [vmem:[#allocation2 + $0xb8] sm:$0xff] }
  0x73   : > { %v1786_v60 = vadd.f32 %v5871_v59, %v1574_v53  ;;  %v887_v42 = vadd.f32 %v6115_v57, %v3308_v1  ;;  %2637 = vrcp.f32 %v2304_v15  ;;  %v3562_v59 = vmul.f32 %v3081_v30, %v3499_v52 }
  0x74   : > { %v3558_v53 = vadd.f32 %v6116_v11, %v403_v0  ;;  %2497 = vst.msk [vmem:[%s3506_s29 + $0x9] sm:$0x7f] %vm2496_vm4, %v2447_v19  ;;  %2639 = vpow2.f32 %v2217_v3  ;;  %v3570_v57 = vmul.f32 %v3083_v31, %v3499_v52  ;;  %v3578_v34 = vmul.f32 %v3118_v48, %v3107_v43 }
  0x75   : > { %v2062_v7 = vadd.f32 %v1940_v26, %v1786_v60  ;;  %6117 = vst [vmem:[#allocation18_spill] sm:$0xff] %v3562_v59  ;;  %v987_v27 = vadd.f32 %v3403_v28, %v887_v42  ;;  %v2634_v32 = vpop.eup %2633  ;;  %v1527_v26 = vmul.f32 %v3095_v37, %v329_v17  ;;  %v3582_v28 = vmul.f32 %v3120_v49, %v3107_v43  ;;  %v3609_v60 = vld [vmem:[#allocation2 + $0xb0] sm:$0xff] }
  0x76   : > { %6118 = vst [vmem:[#allocation19_spill] sm:$0xff] %v3570_v57  ;;  %6119 = vst [vmem:[#allocation20_spill] sm:$0xff] %v3578_v34  ;;  %v2446_v42 = vmul.f32 %v2634_v32, %v3353_v8  ;;  %v399_v15 = vmul.f32 %v3113_v45, %v3107_v43  ;;  %v3590_v3 = vmul.f32 %v3120_v49, %v332_v14  ;;  %v6121_v8 = vrot.slane %v3541_v63, 2 }
  0x77   : > { %v3573_v0 = vadd.f32 %v3264_v2, %v2062_v7  ;;  %6120 = vst [vmem:[#allocation21_spill] sm:$0xff] %v3582_v28  ;;  %v1199_v19 = vadd.f32 %v5872_v18, %v987_v27  ;;  %v3603_v43 = vmul.f32 %v3091_v35, %v3466_v58  ;;  %v3607_v18 = vmul.f32 %v3093_v36, %v3466_v58 }
  0x78   : > { %2495 = vst.msk [vmem:[%s3506_s29 + $0x1] sm:$0xff] %vm171_vm0, %v2446_v42  ;;  %v6124_v9 = vrot.slane %v3578_v34, 1  ;;  %v6125_v63 = vrot.slane %v3345_v23, 2  ;;  %v941_v50 = vmul.f32 %v3103_v41, %v3466_v58  ;;  %v333_v23 = vld [vmem:[#allocation2 + $0xc0] sm:$0xff] }
  0x79   : > { %v2165_v17 = vsub.f32 0.0, %v3573_v0  ;;  %v1475_v27 = vadd.f32 %v6121_v8, %v1199_v19  ;;  %6122 = vst [vmem:[#allocation22_spill] sm:$0xff] %v3603_v43  ;;  %6123 = vst [vmem:[#allocation23_spill] sm:$0xff] %v3607_v18  ;;  %v6126_v19 = vrot.slane %v3582_v28, 2  ;;  %v5880_v33 = vrot.slane %v3607_v18, 2 }
  0x7a   : > { %v2636_v1 = vpop.eup %2635  ;;  %v612_v42 = vadd.f32 %v6124_v9, %v399_v15  ;;  %v3624_v9 = vmul.f32 %v3093_v36, %v332_v14  ;;  %v3626_v15 = vld [vmem:[#allocation2 + $0xc8] sm:$0xff] }
  0x7b   : > { %v2306_v7 = vadd.f32 1.0, %v2636_v1  ;;  %v2221_v11 = vmul.f32 1.442695, %v2165_v17  ;;  %v769_v8 = vsel %vm749_vm1, %v6126_v19, %v6125_v63  ;;  %v1575_v32 = vadd.f32 %v1527_v26, %v1475_v27 }
  0x7c   : > { %v889_v1 = vadd.f32 %v769_v8, %v612_v42  ;;  %v6127_v63 = vrot.slane %v3562_v59, 1  ;;  %v1529_v27 = vmul.f32 %v3095_v37, %v3609_v60  ;;  %v6129_v8 = vrot.slane %v3483_v4, 2 }
  0x7d   : > { %2641 = vrcp.f32 %v2306_v7  ;;  %v3634_v7 = vmul.f32 %v3081_v30, %v3609_v60  ;;  %v2638_v42 = vpop.eup %2637  ;;  %v6131_v59 = vrot.slane %v3570_v57, 2  ;;  %v3652_v4 = vmul.f32 %v3118_v48, %v3626_v15 }
  0x7e   : > { %2643 = vpow2.f32 %v2221_v11  ;;  %v1787_v26 = vadd.f32 %v6127_v63, %v1575_v32  ;;  %v989_v19 = vadd.f32 %v941_v50, %v889_v1  ;;  %v1357_v10 = vsel %vm749_vm1, %v5880_v33, %v6129_v8  ;;  %v2640_v63 = vpop.eup %2639 }
  0x7f   : > { %6128 = vst [vmem:[#allocation24_spill] sm:$0xff] %v3634_v7  ;;  %v3643_v11 = vmul.f32 %v3083_v31, %v3609_v60  ;;  %v1841_v32 = vmul.f32 %v3083_v31, %v332_v14  ;;  %v2448_v17 = vmul.f32 %v2638_v42, %v3417_v21  ;;  %v406_v50 = vmul.f32 %v3113_v45, %v333_v23 }
  0x80   : > { %v2063_v28 = vadd.f32 %v6131_v59, %v1787_v26  ;;  %6132 = vst [vmem:[#allocation26_spill] sm:$0xff] %v3652_v4  ;;  %v2307_v1 = vadd.f32 1.0, %v2640_v63  ;;  %v6133_v8 = vrot.slane %v3603_v43, 1  ;;  %v5885_v14 = vrot.slane %v3652_v4, 1 }
  0x81   : > { %6130 = vst [vmem:[#allocation25_spill] sm:$0xff] %v3643_v11  ;;  %v5884_v18 = vrot.slane %v3643_v11, 2  ;;  %v1944_v51 = vrot.slane %v1841_v32, 2  ;;  %2498 = vst.msk [vmem:[%s3506_s29 + $0x9] sm:$0x80] %vm2493_vm3, %v2448_v17  ;;  %v3666_v26 = vmul.f32 %v3120_v49, %v3360_v29  ;;  %v3671_v32 = vmul.f32 %v3091_v35, %v3499_v52 }
  0x82   : > { %v1201_v33 = vadd.f32 %v6133_v8, %v989_v19  ;;  %v3660_v21 = vadd.f32 %v3264_v2, %v2063_v28  ;;  %2645 = vrcp.f32 %v2307_v1  ;;  %v3676_v63 = vmul.f32 %v3103_v41, %v333_v23 }
  0x83   : > { %6134 = vst [vmem:[#allocation27_spill] sm:$0xff] %v3666_v26  ;;  %6135 = vst [vmem:[#allocation28_spill] sm:$0xff] %v3671_v32  ;;  %v5886_v28 = vrot.slane %v3666_v26, 2  ;;  %v3680_v8 = vmul.f32 %v3093_v36, %v3499_v52  ;;  %v1530_v57 = vmul.f32 %v3095_v37, %v333_v23  ;;  %v3716_v11 = vmul.f32 %v3120_v49, %v3466_v58 }
  0x84   : > { %v1477_v42 = vadd.f32 %v1357_v10, %v1201_v33  ;;  %v2166_v17 = vsub.f32 0.0, %v3660_v21  ;;  %v1945_v33 = vsel %vm749_vm1, %v5884_v18, %v1944_v51  ;;  %v3687_v10 = vadd.f32 %v5885_v14, %v406_v50  ;;  %v336_v14 = vld [vmem:[#allocation2 + $0xd8] sm:$0xff] }
  0x85   : > { %6136 = vst [vmem:[#allocation29_spill] sm:$0xff] %v3680_v8  ;;  %v890_v19 = vadd.f32 %v5886_v28, %v3410_v16  ;;  %v6138_v51 = vrot.slane %v3634_v7, 1  ;;  %v3707_v16 = vmul.f32 %v3118_v48, %v3466_v58  ;;  %6141 = vst [vmem:[#allocation33_spill] sm:$0xff] %v3716_v11  ;;  %v6142_v26 = vrot.slane %v3671_v32, 1 }
  0x86   : > { %v1577_v29 = vadd.f32 %v1529_v27, %v1477_v42  ;;  %v2223_v59 = vmul.f32 1.442695, %v2166_v17  ;;  %v3696_v27 = vmul.f32 %v3081_v30, %v3626_v15  ;;  %v3703_v17 = vmul.f32 %v3083_v31, %v3626_v15 }
  0x87   : > { %v2642_v42 = vpop.eup %2641  ;;  %6140 = vst [vmem:[#allocation32_spill] sm:$0xff] %v3707_v16  ;;  %v990_v1 = vadd.f32 %v3546_v40, %v890_v19  ;;  %v5891_v4 = vrot.slane %v3707_v16, 1  ;;  %v3724_v40 = vmul.f32 %v3120_v49, %v336_v14  ;;  %v5896_v19 = vrot.slane %v3716_v11, 2 }
  0x88   : > { %6137 = vst [vmem:[#allocation30_spill] sm:$0xff] %v3696_v27  ;;  %v1789_v18 = vadd.f32 %v6138_v51, %v1577_v29  ;;  %6139 = vst [vmem:[#allocation31_spill] sm:$0xff] %v3703_v17  ;;  %v2644_v23 = vpop.eup %2643  ;;  %v2450_v28 = vmul.f32 %v2642_v42, %v3473_v12  ;;  %2647 = vpow2.f32 %v2223_v59  ;;  %v402_v29 = vmul.f32 %v3113_v45, %v3466_v58 }
  0x89   : > { %v2309_v51 = vadd.f32 1.0, %v2644_v23  ;;  %v1202_v7 = vadd.f32 %v6142_v26, %v990_v1  ;;  %v3728_v59 = vmul.f32 %v3091_v35, %v3609_v60  ;;  %v6144_v26 = vrot.slane %v3680_v8, 2 }
  0x8a   : > { %v2065_v50 = vadd.f32 %v1945_v33, %v1789_v18  ;;  %2500 = vst.msk [vmem:[%s3506_s29 + $0x19] sm:$0x7f] %vm2496_vm4, %v2450_v28  ;;  %v615_v58 = vadd.f32 %v5891_v4, %v402_v29  ;;  %v3736_v28 = vld [vmem:[#allocation2 + $0xd0] sm:$0xff]  ;;  %v944_v42 = vmul.f32 %v3103_v41, %v3609_v60 }
  0x8b   : > { %6143 = vst [vmem:[#allocation34_spill] sm:$0xff] %v3728_v59  ;;  %2649 = vrcp.f32 %v2309_v51  ;;  %v1478_v33 = vadd.f32 %v6144_v26, %v1202_v7  ;;  %v6146_v51 = vrot.slane %v3447_v61, 2  ;;  %v3755_v26 = vmul.f32 %v3093_v36, %v336_v14 }
  0x8c   : > { %v3731_v18 = vadd.f32 %v3264_v2, %v2065_v50  ;;  %v3745_v50 = vmul.f32 %v3093_v36, %v3609_v60  ;;  %v2646_v23 = vpop.eup %2645  ;;  %v1532_v61 = vmul.f32 %v3095_v37, %v3736_v28 }
  0x8d   : > { %v774_v4 = vsel %vm749_vm1, %v5896_v19, %v6146_v51  ;;  %v2451_v1 = vmul.f32 %v2646_v23, %v3517_v38  ;;  %v1578_v12 = vadd.f32 %v1530_v57, %v1478_v33  ;;  %v3764_v51 = vmul.f32 %v3083_v31, %v3736_v28  ;;  %v3766_v19 = vld [vmem:[#allocation2 + $0xe8] sm:$0xff]  ;;  %v337_v23 = vld [vmem:[#allocation2 + $0xe0] sm:$0xff] }
  0x8e   : > { %6145 = vst [vmem:[#allocation35_spill] sm:$0xff] %v3745_v50  ;;  %v2168_v29 = vsub.f32 0.0, %v3731_v18  ;;  %v892_v8 = vadd.f32 %v774_v4, %v615_v58  ;;  %v5899_v32 = vrot.slane %v3745_v50, 2  ;;  %v6148_v38 = vrot.slane %v3696_v27, 1 }
  0x8f   : > { %6147 = vst [vmem:[#allocation36_spill] sm:$0xff] %v3764_v51  ;;  %2501 = vst.msk [vmem:[%s3506_s29 + $0x19] sm:$0x80] %vm2493_vm3, %v2451_v1  ;;  %v3774_v58 = vmul.f32 %v3081_v30, %v3736_v28  ;;  %v1844_v33 = vmul.f32 %v3083_v31, %v336_v14  ;;  %v5903_v43 = vrot.slane %v3764_v51, 2  ;;  %v409_v50 = vmul.f32 %v3113_v45, %v337_v23 }
  0x90   : > { %v2227_v16 = vmul.f32 1.442695, %v2168_v29  ;;  %v1790_v57 = vadd.f32 %v6148_v38, %v1578_v12  ;;  %v992_v4 = vadd.f32 %v944_v42, %v892_v8  ;;  %v6150_v29 = vrot.slane %v3624_v9, 2 }
  0x91   : > { %6149 = vst [vmem:[#allocation37_spill] sm:$0xff] %v3774_v58  ;;  %v6151_v8 = vrot.slane %v3703_v17, 2  ;;  %v6152_v38 = vrot.slane %v3728_v59, 1  ;;  %v1949_v14 = vrot.slane %v1844_v33, 2  ;;  %v3812_v1 = vmul.f32 %v3093_v36, %v3626_v15 }
  0x92   : > { %2651 = vpow2.f32 %v2227_v16  ;;  %v1362_v7 = vsel %vm749_vm1, %v5899_v32, %v6150_v29  ;;  %v2648_v12 = vpop.eup %2647  ;;  %v3790_v16 = vmul.f32 %v3118_v48, %v3766_v19  ;;  %v3795_v29 = vmul.f32 %v3120_v49, %v3499_v52 }
  0x93   : > { %v2066_v42 = vadd.f32 %v6151_v8, %v1790_v57  ;;  %v1204_v27 = vadd.f32 %v6152_v38, %v992_v4  ;;  %v2310_v9 = vadd.f32 1.0, %v2648_v12  ;;  %v3799_v32 = vmul.f32 %v3091_v35, %v3626_v15  ;;  %6156 = vst [vmem:[#allocation41_spill] sm:$0xff] %v3812_v1 }
  0x94   : > { %6153 = vst [vmem:[#allocation38_spill] sm:$0xff] %v3790_v16  ;;  %6154 = vst [vmem:[#allocation39_spill] sm:$0xff] %v3795_v29  ;;  %v5902_v8 = vrot.slane %v3790_v16, 1  ;;  %v5904_v38 = vrot.slane %v3795_v29, 2  ;;  %v3808_v52 = vmul.f32 %v3103_v41, %v337_v23  ;;  %v1950_v33 = vsel %vm749_vm1, %v5903_v43, %v1949_v14 }
  0x95   : > { %6155 = vst [vmem:[#allocation40_spill] sm:$0xff] %v3799_v32  ;;  %v3802_v57 = vadd.f32 %v3264_v2, %v2066_v42  ;;  %v1480_v4 = vadd.f32 %v1362_v7, %v1204_v27  ;;  %v2650_v12 = vpop.eup %2649  ;;  %2653 = vrcp.f32 %v2310_v9  ;;  %v5907_v59 = vrot.slane %v3799_v32, 1 }
  0x96   : > { %v2453_v42 = vmul.f32 %v2650_v12, %v3573_v0  ;;  %v3821_v9 = vadd.f32 %v5902_v8, %v409_v50  ;;  %v893_v17 = vadd.f32 %v5904_v38, %v3558_v53  ;;  %v3829_v0 = vmul.f32 %v3081_v30, %v3766_v19  ;;  %v340_v8 = vld [vmem:[#allocation2 + $0xf8] sm:$0xff] }
  0x97   : > { %v2169_v27 = vsub.f32 0.0, %v3802_v57  ;;  %v1580_v7 = vadd.f32 %v1532_v61, %v1480_v4  ;;  %v6158_v4 = vrot.slane %v3774_v58, 1  ;;  %v3838_v50 = vmul.f32 %v3083_v31, %v3766_v19  ;;  %v3895_v58 = vld [vmem:[#allocation2 + $0x108] sm:$0xff] }
  0x98   : > { %6157 = vst [vmem:[#allocation42_spill] sm:$0xff] %v3829_v0  ;;  %2503 = vst.msk [vmem:[%s3506_s29 + $0x29] sm:$0x7f] %vm2496_vm4, %v2453_v42  ;;  %v993_v53 = vadd.f32 %v3676_v63, %v893_v17  ;;  %v1533_v43 = vmul.f32 %v3095_v37, %v337_v23  ;;  %v3844_v38 = vmul.f32 %v3118_v48, %v3609_v60  ;;  %v6163_v16 = vrot.slane %v3590_v3, 2 }
  0x99   : > { %v2229_v61 = vmul.f32 1.442695, %v2169_v27  ;;  %v1792_v14 = vadd.f32 %v6158_v4, %v1580_v7  ;;  %6159 = vst [vmem:[#allocation43_spill] sm:$0xff] %v3838_v50  ;;  %v3848_v42 = vmul.f32 %v3120_v49, %v3609_v60  ;;  %v405_v4 = vmul.f32 %v3113_v45, %v3609_v60 }
  0x9a   : > { %6160 = vst [vmem:[#allocation44_spill] sm:$0xff] %v3844_v38  ;;  %v1205_v63 = vadd.f32 %v5907_v59, %v993_v53  ;;  %v5910_v17 = vrot.slane %v3844_v38, 1  ;;  %v3857_v23 = vmul.f32 %v3120_v49, %v340_v8  ;;  %v3866_v60 = vmul.f32 %v3091_v35, %v3736_v28 }
  0x9b   : > { %6161 = vst [vmem:[#allocation45_spill] sm:$0xff] %v3848_v42  ;;  %2655 = vpow2.f32 %v2229_v61  ;;  %v2068_v27 = vadd.f32 %v1950_v33, %v1792_v14  ;;  %v3868_v14 = vld [vmem:[#allocation2 + $0xf0] sm:$0xff]  ;;  %v6162_v53 = vrot.slane %v3812_v1, 2  ;;  %v3881_v33 = vmul.f32 %v3093_v36, %v3736_v28 }
  0x9c   : > { %v2652_v12 = vpop.eup %2651  ;;  %v618_v7 = vadd.f32 %v5910_v17, %v405_v4  ;;  %v947_v1 = vmul.f32 %v3103_v41, %v3736_v28  ;;  %v6166_v38 = vrot.slane %v3829_v0, 1 }
  0x9d   : > { %v2312_v51 = vadd.f32 1.0, %v2652_v12  ;;  %v3861_v61 = vadd.f32 %v3264_v2, %v2068_v27  ;;  %v1481_v59 = vadd.f32 %v6162_v53, %v1205_v63  ;;  %v6164_v12 = vrot.slane %v3848_v42, 2  ;;  %6165 = vst [vmem:[#allocation46_spill] sm:$0xff] %v3881_v33 }
  0x9e   : > { %v3887_v63 = vmul.f32 %v3093_v36, %v340_v8  ;;  %v1535_v42 = vmul.f32 %v3095_v37, %v3868_v14 }
  0x9f   : > { %v779_v27 = vsel %vm749_vm1, %v6164_v12, %v6163_v16  ;;  %2657 = vrcp.f32 %v2312_v51  ;;  %v2171_v32 = vsub.f32 0.0, %v3861_v61  ;;  %v2654_v4 = vpop.eup %2653  ;;  %v1581_v3 = vadd.f32 %v1533_v43, %v1481_v59 }
  0xa0   : > { %v895_v17 = vadd.f32 %v779_v27, %v618_v7  ;;  %v5917_v16 = vrot.slane %v3881_v33, 2  ;;  %v2454_v12 = vmul.f32 %v2654_v4, %v3660_v21  ;;  %v5918_v51 = vrot.slane %v3866_v60, 1  ;;  %v341_v7 = vld [vmem:[#allocation2 + $0x100] sm:$0xff] }
  0xa1   : > { %v2233_v29 = vmul.f32 1.442695, %v2171_v32  ;;  %v1793_v11 = vadd.f32 %v6166_v38, %v1581_v3  ;;  %v3902_v59 = vmul.f32 %v3083_v31, %v3868_v14  ;;  %v6168_v21 = vrot.slane %v3755_v26, 2 }
  0xa2   : > { %v995_v34 = vadd.f32 %v947_v1, %v895_v17  ;;  %2504 = vst.msk [vmem:[%s3506_s29 + $0x29] sm:$0x80] %vm2493_vm3, %v2454_v12  ;;  %v3913_v38 = vmul.f32 %v3081_v30, %v3868_v14  ;;  %v1847_v1 = vmul.f32 %v3083_v31, %v340_v8  ;;  %v6170_v17 = vrot.slane %v3838_v50, 2 }
  0xa3   : > { %6167 = vst [vmem:[#allocation47_spill] sm:$0xff] %v3902_v59  ;;  %2659 = vpow2.f32 %v2233_v29  ;;  %v1367_v32 = vsel %vm749_vm1, %v5917_v16, %v6168_v21  ;;  %v3923_v26 = vmul.f32 %v3118_v48, %v3895_v58  ;;  %v412_v21 = vmul.f32 %v3113_v45, %v341_v7 }
  0xa4   : > { %6169 = vst [vmem:[#allocation48_spill] sm:$0xff] %v3913_v38  ;;  %v2069_v27 = vadd.f32 %v6170_v17, %v1793_v11  ;;  %v1207_v4 = vadd.f32 %v5918_v51, %v995_v34  ;;  %v1954_v12 = vrot.slane %v1847_v1, 2  ;;  %v3928_v16 = vmul.f32 %v3120_v49, %v3626_v15 }
  0xa5   : > { %6171 = vst [vmem:[#allocation49_spill] sm:$0xff] %v3923_v26  ;;  %v2656_v3 = vpop.eup %2655  ;;  %v3932_v11 = vmul.f32 %v3091_v35, %v3766_v19  ;;  %v5922_v51 = vrot.slane %v3923_v26, 1  ;;  %v3941_v43 = vmul.f32 %v3103_v41, %v341_v7  ;;  %v3945_v15 = vmul.f32 %v3093_v36, %v3766_v19 }
  0xa6   : > { %6172 = vst [vmem:[#allocation50_spill] sm:$0xff] %v3928_v16  ;;  %v2313_v8 = vadd.f32 1.0, %v2656_v3  ;;  %v3935_v34 = vadd.f32 %v3264_v2, %v2069_v27  ;;  %v1483_v17 = vadd.f32 %v1367_v32, %v1207_v4  ;;  %v5924_v1 = vrot.slane %v3928_v16, 2 }
  0xa7   : > { %6173 = vst [vmem:[#allocation51_spill] sm:$0xff] %v3932_v11  ;;  %6174 = vst [vmem:[#allocation52_spill] sm:$0xff] %v3945_v15  ;;  %v6175_v27 = vrot.slane %v3902_v59, 2  ;;  %v3953_v53 = vadd.f32 %v5922_v51, %v412_v21  ;;  %v5925_v0 = vrot.slane %v3932_v11, 1  ;;  %v5928_v26 = vrot.slane %v3945_v15, 2  ;;  %v344_v21 = vld [vmem:[#allocation2 + $0x118] sm:$0xff] }
  0xa8   : > { %2661 = vrcp.f32 %v2313_v8  ;;  %v2172_v3 = vsub.f32 0.0, %v3935_v34  ;;  %v1583_v29 = vadd.f32 %v1535_v42, %v1483_v17  ;;  %v896_v50 = vadd.f32 %v5924_v1, %v3687_v10 }
  0xa9   : > { %v1955_v32 = vsel %vm749_vm1, %v6175_v27, %v1954_v12  ;;  %v2658_v4 = vpop.eup %2657  ;;  %v3961_v8 = vmul.f32 %v3081_v30, %v3895_v58  ;;  %v6177_v12 = vrot.slane %v3913_v38, 1  ;;  %v1536_v16 = vmul.f32 %v3095_v37, %v341_v7 }
  0xaa   : > { %v2456_v42 = vmul.f32 %v2658_v4, %v3731_v18  ;;  %v2235_v17 = vmul.f32 1.442695, %v2172_v3  ;;  %v996_v51 = vadd.f32 %v3808_v52, %v896_v50  ;;  %v3971_v10 = vmul.f32 %v3083_v31, %v3895_v58 }
  0xab   : > { %6176 = vst [vmem:[#allocation53_spill] sm:$0xff] %v3961_v8  ;;  %v1795_v27 = vadd.f32 %v6177_v12, %v1583_v29  ;;  %v3975_v1 = vmul.f32 %v3118_v48, %v3736_v28  ;;  %v3982_v3 = vmul.f32 %v3120_v49, %v3736_v28  ;;  %v408_v7 = vmul.f32 %v3113_v45, %v3736_v28  ;;  %v4000_v29 = vld [vmem:[#allocation2 + $0x110] sm:$0xff] }
  0xac   : > { %6178 = vst [vmem:[#allocation54_spill] sm:$0xff] %v3971_v10  ;;  %2506 = vst.msk [vmem:[%s3506_s29 + $0x39] sm:$0x7f] %vm2496_vm4, %v2456_v42  ;;  %2663 = vpow2.f32 %v2235_v17  ;;  %v1208_v50 = vadd.f32 %v5925_v0, %v996_v51  ;;  %v3990_v12 = vmul.f32 %v3120_v49, %v344_v21  ;;  %v6183_v17 = vrot.slane %v3724_v40, 2 }
  0xad   : > { %6179 = vst [vmem:[#allocation55_spill] sm:$0xff] %v3975_v1  ;;  %v2071_v18 = vadd.f32 %v1955_v32, %v1795_v27  ;;  %6180 = vst [vmem:[#allocation56_spill] sm:$0xff] %v3982_v3  ;;  %v2660_v52 = vpop.eup %2659  ;;  %v5929_v4 = vrot.slane %v3975_v1, 1  ;;  %v3998_v27 = vmul.f32 %v3091_v35, %v3868_v14  ;;  %v6184_v11 = vrot.slane %v3982_v3, 2  ;;  %v4034_v3 = vld [vmem:[#allocation2 + $0x128] sm:$0xff] }
  0xae   : > { %v2315_v42 = vadd.f32 1.0, %v2660_v52  ;;  %v1484_v28 = vadd.f32 %v5928_v26, %v1208_v50  ;;  %v950_v50 = vmul.f32 %v3103_v41, %v3868_v14 }
  0xaf   : > { %v3993_v32 = vadd.f32 %v3264_v2, %v2071_v18  ;;  %6181 = vst [vmem:[#allocation57_spill] sm:$0xff] %v3998_v27  ;;  %v621_v0 = vadd.f32 %v5929_v4, %v408_v7  ;;  %v4009_v18 = vmul.f32 %v3093_v36, %v3868_v14  ;;  %v784_v59 = vsel %vm749_vm1, %v6184_v11, %v6183_v17  ;;  %v345_v4 = vld [vmem:[#allocation2 + $0x120] sm:$0xff] }
  0xb0   : > { %2665 = vrcp.f32 %v2315_v42  ;;  %v1584_v26 = vadd.f32 %v1536_v16, %v1484_v28  ;;  %v4020_v7 = vmul.f32 %v3093_v36, %v344_v21  ;;  %v4027_v11 = vmul.f32 %v3083_v31, %v4000_v29 }
  0xb1   : > { %6182 = vst [vmem:[#allocation58_spill] sm:$0xff] %v4009_v18  ;;  %v2174_v52 = vsub.f32 0.0, %v3993_v32  ;;  %v898_v51 = vadd.f32 %v784_v59, %v621_v0  ;;  %v6186_v0 = vrot.slane %v3961_v8, 1  ;;  %v1538_v28 = vmul.f32 %v3095_v37, %v4000_v29 }
  0xb2   : > { %v2662_v42 = vpop.eup %2661  ;;  %6185 = vst [vmem:[#allocation59_spill] sm:$0xff] %v4027_v11  ;;  %v6188_v38 = vrot.slane %v4009_v18, 2  ;;  %v4057_v18 = vmul.f32 %v3118_v48, %v4034_v3 }
  0xb3   : > { %v2239_v15 = vmul.f32 1.442695, %v2174_v52  ;;  %v2457_v17 = vmul.f32 %v2662_v42, %v3802_v57  ;;  %v1796_v16 = vadd.f32 %v6186_v0, %v1584_v26  ;;  %v998_v59 = vadd.f32 %v950_v50, %v898_v51 }
  0xb4   : > { %v6187_v52 = vrot.slane %v3887_v63, 2  ;;  %v4043_v57 = vmul.f32 %v3081_v30, %v4000_v29  ;;  %v1850_v26 = vmul.f32 %v3083_v31, %v344_v21  ;;  %v6190_v51 = vrot.slane %v3971_v10, 2  ;;  %6192 = vst [vmem:[#allocation61_spill] sm:$0xff] %v4057_v18 }
  0xb5   : > { %2667 = vpow2.f32 %v2239_v15  ;;  %2507 = vst.msk [vmem:[%s3506_s29 + $0x39] sm:$0x80] %vm2493_vm3, %v2457_v17  ;;  %v6191_v42 = vrot.slane %v3998_v27, 1  ;;  %v4061_v21 = vmul.f32 %v3120_v49, %v3766_v19  ;;  %v4075_v0 = vmul.f32 %v3093_v36, %v3895_v58 }
  0xb6   : > { %v1372_v40 = vsel %vm749_vm1, %v6188_v38, %v6187_v52  ;;  %6189 = vst [vmem:[#allocation60_spill] sm:$0xff] %v4043_v57  ;;  %v2072_v50 = vadd.f32 %v6190_v51, %v1796_v16  ;;  %v2664_v8 = vpop.eup %2663  ;;  %v1959_v38 = vrot.slane %v1850_v26, 2  ;;  %v415_v52 = vmul.f32 %v3113_v45, %v345_v4 }
  0xb7   : > { %v1210_v15 = vadd.f32 %v6191_v42, %v998_v59  ;;  %6193 = vst [vmem:[#allocation62_spill] sm:$0xff] %v4061_v21  ;;  %v2316_v17 = vadd.f32 1.0, %v2664_v8  ;;  %v4068_v51 = vmul.f32 %v3091_v35, %v3895_v58  ;;  %v5939_v42 = vrot.slane %v4057_v18, 1  ;;  %6195 = vst [vmem:[#allocation64_spill] sm:$0xff] %v4075_v0 }
  0xb8   : > { %v4064_v16 = vadd.f32 %v3264_v2, %v2072_v50  ;;  %v5940_v63 = vrot.slane %v4061_v21, 2  ;;  %v4079_v8 = vmul.f32 %v3103_v41, %v345_v4  ;;  %v6196_v50 = vrot.slane %v4027_v11, 2  ;;  %v349_v21 = vld [vmem:[#allocation2 + $0x140] sm:$0xff] }
  0xb9   : > { %v1486_v59 = vadd.f32 %v1372_v40, %v1210_v15  ;;  %6194 = vst [vmem:[#allocation63_spill] sm:$0xff] %v4068_v51  ;;  %2669 = vrcp.f32 %v2316_v17  ;;  %v4086_v26 = vadd.f32 %v5939_v42, %v415_v52  ;;  %v5941_v10 = vrot.slane %v4068_v51, 1 }
  0xba   : > { %v2175_v19 = vsub.f32 0.0, %v4064_v16  ;;  %v2666_v40 = vpop.eup %2665  ;;  %v1960_v15 = vsel %vm749_vm1, %v6196_v50, %v1959_v38  ;;  %v899_v17 = vadd.f32 %v5940_v63, %v3821_v9  ;;  %v6197_v27 = vrot.slane %v4043_v57, 1  ;;  %v348_v9 = vld [vmem:[#allocation2 + $0x138] sm:$0xff] }
  0xbb   : > { %v1586_v2 = vadd.f32 %v1538_v28, %v1486_v59  ;;  %v2459_v28 = vmul.f32 %v2666_v40, %v3861_v61  ;;  %v4097_v11 = vmul.f32 %v3081_v30, %v4034_v3  ;;  %v5943_v52 = vrot.slane %v4075_v0, 2 }
  0xbc   : > { %v2241_v59 = vmul.f32 1.442695, %v2175_v19  ;;  %v999_v38 = vadd.f32 %v3941_v43, %v899_v17  ;;  %v4103_v50 = vmul.f32 %v3083_v31, %v4034_v3  ;;  %v4107_v61 = vmul.f32 %v3118_v48, %v3868_v14  ;;  %v4143_v17 = vld [vmem:[#allocation2 + $0x130] sm:$0xff] }
  0xbd   : > { %v1798_v1 = vadd.f32 %v6197_v27, %v1586_v2  ;;  %6198 = vst [vmem:[#allocation65_spill] sm:$0xff] %v4097_v11  ;;  %2509 = vst.msk [vmem:[%s3506_s29 + $0x49] sm:$0x7f] %vm2496_vm4, %v2459_v28  ;;  %v1539_v19 = vmul.f32 %v3095_v37, %v345_v4  ;;  %v4114_v43 = vmul.f32 %v3120_v49, %v3868_v14  ;;  %v6203_v18 = vrot.slane %v3857_v23, 2 }
  0xbe   : > { %6199 = vst [vmem:[#allocation66_spill] sm:$0xff] %v4103_v50  ;;  %6200 = vst [vmem:[#allocation67_spill] sm:$0xff] %v4107_v61  ;;  %2671 = vpow2.f32 %v2241_v59  ;;  %v1211_v40 = vadd.f32 %v5941_v10, %v999_v38  ;;  %v411_v42 = vmul.f32 %v3113_v45, %v3868_v14  ;;  %v5944_v63 = vrot.slane %v4107_v61, 1 }
  0xbf   : > { %v2074_v27 = vadd.f32 %v1960_v15, %v1798_v1  ;;  %6201 = vst [vmem:[#allocation68_spill] sm:$0xff] %v4114_v43  ;;  %v2668_v2 = vpop.eup %2667  ;;  %v4125_v1 = vld [vmem:[%s5843_s2] ss:$0 sm:$0xff]  ;;  %v4131_v15 = vmul.f32 %v3120_v49, %v348_v9  ;;  %v5948_v59 = vrot.slane %v4114_v43, 2  ;;  %v4141_v10 = vmul.f32 %v3091_v35, %v4000_v29  ;;  %v4168_v43 = vld [vmem:[#allocation2 + $0x148] sm:$0xff] }
  0xc0   : > { %v2318_v28 = vadd.f32 1.0, %v2668_v2  ;;  %v1487_v38 = vadd.f32 %v5943_v52, %v1211_v40  ;;  %v624_v2 = vadd.f32 %v5944_v63, %v411_v42  ;;  %v4153_v52 = vmul.f32 %v3093_v36, %v4000_v29 }
  0xc1   : > { %v4128_v4 = vadd.f32 %v4125_v1, %v2074_v27  ;;  %6202 = vst [vmem:[#allocation69_spill] sm:$0xff] %v4141_v10  ;;  %v789_v40 = vsel %vm749_vm1, %v5948_v59, %v6203_v18  ;;  %v953_v14 = vmul.f32 %v3103_v41, %v4000_v29  ;;  %v4158_v0 = vmul.f32 %v3093_v36, %v348_v9 }
  0xc2   : > { %2673 = vrcp.f32 %v2318_v28  ;;  %6204 = vst [vmem:[#allocation70_spill] sm:$0xff] %v4153_v52  ;;  %v1587_v42 = vadd.f32 %v1539_v19, %v1487_v38  ;;  %v901_v63 = vadd.f32 %v789_v40, %v624_v2  ;;  %v5954_v57 = vrot.slane %v4141_v10, 1 }
  0xc3   : > { %v2177_v27 = vsub.f32 0.0, %v4128_v4  ;;  %v2670_v28 = vpop.eup %2669  ;;  %v5953_v18 = vrot.slane %v4153_v52, 2  ;;  %v6205_v19 = vrot.slane %v4097_v11, 1  ;;  %v1541_v40 = vmul.f32 %v3095_v37, %v4143_v17 }
  0xc4   : > { %v2460_v59 = vmul.f32 %v2670_v28, %v3935_v34  ;;  %v1001_v2 = vadd.f32 %v953_v14, %v901_v63  ;;  %v4173_v23 = vmul.f32 %v3081_v30, %v4143_v17  ;;  %v4177_v34 = vmul.f32 %v3083_v31, %v4143_v17 }
  0xc5   : > { %v2245_v51 = vmul.f32 1.442695, %v2177_v27  ;;  %v1799_v38 = vadd.f32 %v6205_v19, %v1587_v42  ;;  %v6208_v63 = vrot.slane %v4103_v50, 2  ;;  %v1853_v19 = vmul.f32 %v3083_v31, %v348_v9 }
  0xc6   : > { %6206 = vst [vmem:[#allocation71_spill] sm:$0xff] %v4173_v23  ;;  %6207 = vst [vmem:[#allocation72_spill] sm:$0xff] %v4177_v34  ;;  %v1213_v42 = vadd.f32 %v5954_v57, %v1001_v2  ;;  %v418_v61 = vmul.f32 %v3113_v45, %v349_v21  ;;  %v4208_v57 = vmul.f32 %v3091_v35, %v4034_v3 }
  0xc7   : > { %2675 = vpow2.f32 %v2245_v51  ;;  %2510 = vst.msk [vmem:[%s3506_s29 + $0x49] sm:$0x80] %vm2493_vm3, %v2460_v59  ;;  %v2075_v14 = vadd.f32 %v6208_v63, %v1799_v38  ;;  %v6209_v51 = vrot.slane %v4020_v7, 2  ;;  %v4195_v59 = vmul.f32 %v3118_v48, %v4168_v43 }
  0xc8   : > { %v2672_v27 = vpop.eup %2671  ;;  %v4199_v38 = vmul.f32 %v3120_v49, %v3895_v58  ;;  %6212 = vst [vmem:[#allocation75_spill] sm:$0xff] %v4208_v57  ;;  %v4212_v11 = vmul.f32 %v3093_v36, %v4034_v3 }
  0xc9   : > { %v1377_v28 = vsel %vm749_vm1, %v5953_v18, %v6209_v51  ;;  %6210 = vst [vmem:[#allocation73_spill] sm:$0xff] %v4195_v59  ;;  %v2319_v7 = vadd.f32 1.0, %v2672_v27  ;;  %v4202_v2 = vadd.f32 %v4125_v1, %v2075_v14  ;;  %v1964_v51 = vrot.slane %v1853_v19, 2 }
  0xca   : > { %6211 = vst [vmem:[#allocation74_spill] sm:$0xff] %v4199_v38  ;;  %v1489_v63 = vadd.f32 %v1377_v28, %v1213_v42  ;;  %v5959_v9 = vrot.slane %v4195_v59, 1  ;;  %6213 = vst [vmem:[#allocation76_spill] sm:$0xff] %v4212_v11  ;;  %v5960_v14 = vrot.slane %v4173_v23, 1  ;;  %v6214_v28 = vrot.slane %v4177_v34, 2 }
  0xcb   : > { %2677 = vrcp.f32 %v2319_v7  ;;  %v2178_v58 = vsub.f32 0.0, %v4202_v2  ;;  %v6215_v50 = vrot.slane %v4199_v38, 2  ;;  %v4227_v7 = vmul.f32 %v3103_v41, %v349_v21  ;;  %v4301_v38 = vld [vmem:[#allocation2 + $0x168] sm:$0xff] }
  0xcc   : > { %v1589_v27 = vadd.f32 %v1541_v40, %v1489_v63  ;;  %v2674_v42 = vpop.eup %2673  ;;  %v1965_v19 = vsel %vm749_vm1, %v6214_v28, %v1964_v51  ;;  %v4221_v18 = vadd.f32 %v5959_v9, %v418_v61  ;;  %v5962_v34 = vrot.slane %v4208_v57, 1  ;;  %v352_v51 = vld [vmem:[#allocation2 + $0x158] sm:$0xff] }
  0xcd   : > { %v902_v52 = vadd.f32 %v6215_v50, %v3953_v53  ;;  %v2462_v40 = vmul.f32 %v2674_v42, %v3993_v32  ;;  %v2247_v63 = vmul.f32 1.442695, %v2178_v58  ;;  %v5963_v61 = vrot.slane %v4212_v11, 2 }
  0xce   : > { %v1801_v10 = vadd.f32 %v5960_v14, %v1589_v27  ;;  %v4237_v9 = vmul.f32 %v3081_v30, %v4168_v43  ;;  %v4241_v53 = vmul.f32 %v3083_v31, %v4168_v43  ;;  %v4247_v50 = vmul.f32 %v3118_v48, %v4000_v29 }
  0xcf   : > { %v1002_v28 = vadd.f32 %v4079_v8, %v902_v52  ;;  %2512 = vst.msk [vmem:[%s3506_s29 + $0x59] sm:$0x7f] %vm2496_vm4, %v2462_v40  ;;  %2679 = vpow2.f32 %v2247_v63  ;;  %v4251_v8 = vmul.f32 %v3120_v49, %v4000_v29  ;;  %v1542_v27 = vmul.f32 %v3095_v37, %v349_v21 }
  0xd0   : > { %6216 = vst [vmem:[#allocation77_spill] sm:$0xff] %v4237_v9  ;;  %6217 = vst [vmem:[#allocation78_spill] sm:$0xff] %v4241_v53  ;;  %v2077_v32 = vadd.f32 %v1965_v19, %v1801_v10  ;;  %v414_v42 = vmul.f32 %v3113_v45, %v4000_v29  ;;  %v4259_v40 = vmul.f32 %v3120_v49, %v352_v51  ;;  %v5967_v63 = vrot.slane %v4247_v50, 1 }
  0xd1   : > { %6218 = vst [vmem:[#allocation79_spill] sm:$0xff] %v4247_v50  ;;  %6219 = vst [vmem:[#allocation80_spill] sm:$0xff] %v4251_v8  ;;  %v2676_v52 = vpop.eup %2675  ;;  %v1214_v58 = vadd.f32 %v5962_v34, %v1002_v28  ;;  %v4272_v29 = vmul.f32 %v3091_v35, %v4143_v17  ;;  %v4274_v34 = vld [vmem:[#allocation2 + $0x150] sm:$0xff]  ;;  %v6221_v14 = vrot.slane %v3990_v12, 2  ;;  %v4287_v11 = vmul.f32 %v3093_v36, %v4143_v17 }
  0xd2   : > { %v2321_v10 = vadd.f32 1.0, %v2676_v52  ;;  %v4262_v19 = vadd.f32 %v4125_v1, %v2077_v32  ;;  %v627_v52 = vadd.f32 %v5967_v63, %v414_v42  ;;  %v956_v12 = vmul.f32 %v3103_v41, %v4143_v17 }
  0xd3   : > { %v1490_v59 = vadd.f32 %v5963_v61, %v1214_v58  ;;  %6220 = vst [vmem:[#allocation81_spill] sm:$0xff] %v4272_v29  ;;  %v6222_v58 = vrot.slane %v4251_v8, 2  ;;  %6223 = vst [vmem:[#allocation82_spill] sm:$0xff] %v4287_v11  ;;  %v1544_v21 = vmul.f32 %v3095_v37, %v4274_v34 }
  0xd4   : > { %2681 = vrcp.f32 %v2321_v10  ;;  %v2180_v32 = vsub.f32 0.0, %v4262_v19  ;;  %v4290_v10 = vmul.f32 %v3093_v36, %v352_v51 }
  0xd5   : > { %v794_v61 = vsel %vm749_vm1, %v6222_v58, %v6221_v14  ;;  %v1590_v28 = vadd.f32 %v1542_v27, %v1490_v59  ;;  %v2678_v57 = vpop.eup %2677  ;;  %v6224_v14 = vrot.slane %v4237_v9, 1  ;;  %v5972_v58 = vrot.slane %v4287_v11, 2 }
  0xd6   : > { %v2251_v23 = vmul.f32 1.442695, %v2180_v32  ;;  %v904_v42 = vadd.f32 %v794_v61, %v627_v52  ;;  %v2463_v59 = vmul.f32 %v2678_v57, %v4064_v16  ;;  %v4305_v61 = vmul.f32 %v3081_v30, %v4274_v34  ;;  %v353_v57 = vld [vmem:[#allocation2 + $0x160] sm:$0xff] }
  0xd7   : > { %v1802_v27 = vadd.f32 %v6224_v14, %v1590_v28  ;;  %v4309_v52 = vmul.f32 %v3083_v31, %v4274_v34  ;;  %v6227_v16 = vrot.slane %v4241_v53, 2  ;;  %v6228_v14 = vrot.slane %v4158_v0, 2 }
  0xd8   : > { %2683 = vpow2.f32 %v2251_v23  ;;  %v1004_v32 = vadd.f32 %v956_v12, %v904_v42  ;;  %6225 = vst [vmem:[#allocation83_spill] sm:$0xff] %v4305_v61  ;;  %2513 = vst.msk [vmem:[%s3506_s29 + $0x59] sm:$0x80] %vm2493_vm3, %v2463_v59  ;;  %v1856_v12 = vmul.f32 %v3083_v31, %v352_v51  ;;  %v6229_v9 = vrot.slane %v4272_v29, 1 }
  0xd9   : > { %6226 = vst [vmem:[#allocation84_spill] sm:$0xff] %v4309_v52  ;;  %v2078_v28 = vadd.f32 %v6227_v16, %v1802_v27  ;;  %v1382_v23 = vsel %vm749_vm1, %v5972_v58, %v6228_v14  ;;  %v2680_v63 = vpop.eup %2679  ;;  %v5977_v50 = vrot.slane %v4309_v52, 2  ;;  %v4327_v59 = vmul.f32 %v3118_v48, %v4301_v38 }
  0xda   : > { %v1216_v8 = vadd.f32 %v6229_v9, %v1004_v32  ;;  %v4331_v0 = vmul.f32 %v3120_v49, %v4034_v3  ;;  %v2322_v27 = vadd.f32 1.0, %v2680_v63  ;;  %v1969_v14 = vrot.slane %v1856_v12, 2 }
  0xdb   : > { %6230 = vst [vmem:[#allocation85_spill] sm:$0xff] %v4327_v59  ;;  %v4334_v16 = vadd.f32 %v4125_v1, %v2078_v28  ;;  %v421_v51 = vmul.f32 %v3113_v45, %v353_v57  ;;  %v4341_v42 = vmul.f32 %v3091_v35, %v4168_v43  ;;  %v4347_v28 = vmul.f32 %v3093_v36, %v4168_v43 }
  0xdc   : > { %6231 = vst [vmem:[#allocation86_spill] sm:$0xff] %v4331_v0  ;;  %v1492_v58 = vadd.f32 %v1382_v23, %v1216_v8  ;;  %v5978_v32 = vrot.slane %v4331_v0, 2  ;;  %2685 = vrcp.f32 %v2322_v27  ;;  %v1970_v23 = vsel %vm749_vm1, %v5977_v50, %v1969_v14  ;;  %v357_v0 = vld [vmem:[#allocation2 + $0x180] sm:$0xff] }
  0xdd   : > { %6232 = vst [vmem:[#allocation87_spill] sm:$0xff] %v4341_v42  ;;  %v2181_v3 = vsub.f32 0.0, %v4334_v16  ;;  %6233 = vst [vmem:[#allocation88_spill] sm:$0xff] %v4347_v28  ;;  %v4356_v27 = vmul.f32 %v3103_v41, %v353_v57  ;;  %v6234_v11 = vrot.slane %v4327_v59, 1 }
  0xde   : > { %v2682_v12 = vpop.eup %2681  ;;  %v1592_v8 = vadd.f32 %v1544_v21, %v1492_v58  ;;  %v905_v9 = vadd.f32 %v5978_v32, %v4086_v26  ;;  %v5980_v21 = vrot.slane %v4341_v42, 1  ;;  %v6235_v58 = vrot.slane %v4305_v61, 1  ;;  %v356_v32 = vld [vmem:[#allocation2 + $0x178] sm:$0xff] }
  0xdf   : > { %v2465_v63 = vmul.f32 %v2682_v12, %v4128_v4  ;;  %v2253_v53 = vmul.f32 1.442695, %v2181_v3  ;;  %v4361_v29 = vadd.f32 %v6234_v11, %v421_v51  ;;  %v4370_v26 = vmul.f32 %v3081_v30, %v4301_v38 }
  0xe0   : > { %v1804_v52 = vadd.f32 %v6235_v58, %v1592_v8  ;;  %v1005_v14 = vadd.f32 %v4227_v7, %v905_v9  ;;  %v4376_v11 = vmul.f32 %v3083_v31, %v4301_v38  ;;  %v4380_v4 = vmul.f32 %v3118_v48, %v4143_v17 }
  0xe1   : > { %6236 = vst [vmem:[#allocation89_spill] sm:$0xff] %v4370_v26  ;;  %2515 = vst.msk [vmem:[%s3506_s29 + $0x69] sm:$0x7f] %vm2496_vm4, %v2465_v63  ;;  %2687 = vpow2.f32 %v2253_v53  ;;  %v4384_v7 = vmul.f32 %v3120_v49, %v4143_v17  ;;  %v1545_v63 = vmul.f32 %v3095_v37, %v353_v57  ;;  %v417_v53 = vmul.f32 %v3113_v45, %v4143_v17 }
  0xe2   : > { %6237 = vst [vmem:[#allocation90_spill] sm:$0xff] %v4376_v11  ;;  %6238 = vst [vmem:[#allocation91_spill] sm:$0xff] %v4380_v4  ;;  %v2684_v51 = vpop.eup %2683  ;;  %v2080_v9 = vadd.f32 %v1970_v23, %v1804_v52  ;;  %v1217_v3 = vadd.f32 %v5980_v21, %v1005_v14  ;;  %v5982_v8 = vrot.slane %v4380_v4, 1  ;;  %v4393_v58 = vmul.f32 %v3120_v49, %v356_v32 }
  0xe3   : > { %6239 = vst [vmem:[#allocation92_spill] sm:$0xff] %v4384_v7  ;;  %v2324_v12 = vadd.f32 1.0, %v2684_v51  ;;  %v5983_v50 = vrot.slane %v4384_v7, 2  ;;  %v6240_v52 = vrot.slane %v4347_v28, 2  ;;  %v4404_v57 = vmul.f32 %v3091_v35, %v4274_v34  ;;  %v4414_v28 = vld [vmem:[#allocation2 + $0x170] sm:$0xff]  ;;  %v4432_v7 = vld [vmem:[#allocation2 + $0x188] sm:$0xff] }
  0xe4   : > { %v4397_v59 = vadd.f32 %v4125_v1, %v2080_v9  ;;  %v630_v51 = vadd.f32 %v5982_v8, %v417_v53  ;;  %v6242_v21 = vrot.slane %v4131_v15, 2  ;;  %v959_v14 = vmul.f32 %v3103_v41, %v4274_v34 }
  0xe5   : > { %v1493_v23 = vadd.f32 %v6240_v52, %v1217_v3  ;;  %6241 = vst [vmem:[#allocation93_spill] sm:$0xff] %v4404_v57  ;;  %2689 = vrcp.f32 %v2324_v12  ;;  %v4421_v12 = vmul.f32 %v3093_v36, %v4274_v34  ;;  %v5991_v17 = vrot.slane %v4404_v57, 1 }
  0xe6   : > { %v799_v9 = vsel %vm749_vm1, %v5983_v50, %v6242_v21  ;;  %v2183_v3 = vsub.f32 0.0, %v4397_v59  ;;  %v2686_v53 = vpop.eup %2685  ;;  %v4426_v21 = vmul.f32 %v3093_v36, %v356_v32  ;;  %v4502_v57 = vmul.f32 %v3081_v30, %v4432_v7 }
  0xe7   : > { %v1593_v52 = vadd.f32 %v1545_v63, %v1493_v23  ;;  %6243 = vst [vmem:[#allocation94_spill] sm:$0xff] %v4421_v12  ;;  %v907_v8 = vadd.f32 %v799_v9, %v630_v51  ;;  %v2466_v50 = vmul.f32 %v2686_v53, %v4202_v2  ;;  %v6244_v23 = vrot.slane %v4370_v26, 1 }
  0xe8   : > { %v2257_v63 = vmul.f32 1.442695, %v2183_v3  ;;  %v5990_v61 = vrot.slane %v4421_v12, 2  ;;  %v1547_v51 = vmul.f32 %v3095_v37, %v4414_v28  ;;  %v4438_v9 = vmul.f32 %v3081_v30, %v4414_v28  ;;  %6256 = vst [vmem:[#allocation101_spill] sm:$0xff] %v4502_v57 }
  0xe9   : > { %v1805_v42 = vadd.f32 %v6244_v23, %v1593_v52  ;;  %v1007_v4 = vadd.f32 %v959_v14, %v907_v8  ;;  %v4442_v2 = vmul.f32 %v3083_v31, %v4414_v28  ;;  %2516 = vst.msk [vmem:[%s3506_s29 + $0x69] sm:$0x80] %vm2493_vm3, %v2466_v50  ;;  %v6247_v3 = vrot.slane %v4376_v11, 2 }
  0xea   : > { %6245 = vst [vmem:[#allocation95_spill] sm:$0xff] %v4438_v9  ;;  %2691 = vpow2.f32 %v2257_v63  ;;  %v6248_v53 = vrot.slane %v4290_v10, 2  ;;  %v1859_v14 = vmul.f32 %v3083_v31, %v356_v32  ;;  %v424_v50 = vmul.f32 %v3113_v45, %v357_v0 }
  0xeb   : > { %6246 = vst [vmem:[#allocation96_spill] sm:$0xff] %v4442_v2  ;;  %v2081_v52 = vadd.f32 %v6247_v3, %v1805_v42  ;;  %v2688_v23 = vpop.eup %2687  ;;  %v1219_v15 = vadd.f32 %v5991_v17, %v1007_v4  ;;  %v4460_v63 = vmul.f32 %v3118_v48, %v4432_v7  ;;  %v4467_v32 = vmul.f32 %v3120_v49, %v4168_v43 }
  0xec   : > { %v1387_v8 = vsel %vm749_vm1, %v5990_v61, %v6248_v53  ;;  %v2325_v42 = vadd.f32 1.0, %v2688_v23  ;;  %v1974_v3 = vrot.slane %v1859_v14, 2  ;;  %v4473_v17 = vmul.f32 %v3091_v35, %v4301_v38 }
  0xed   : > { %6249 = vst [vmem:[#allocation97_spill] sm:$0xff] %v4460_v63  ;;  %v4463_v10 = vadd.f32 %v4125_v1, %v2081_v52  ;;  %6250 = vst [vmem:[#allocation98_spill] sm:$0xff] %v4467_v32  ;;  %v1495_v4 = vadd.f32 %v1387_v8, %v1219_v15  ;;  %v5996_v14 = vrot.slane %v4467_v32, 2  ;;  %v6252_v11 = vrot.slane %v4442_v2, 2 }
  0xee   : > { %6251 = vst [vmem:[#allocation99_spill] sm:$0xff] %v4473_v17  ;;  %2693 = vrcp.f32 %v2325_v42  ;;  %v4482_v8 = vmul.f32 %v3103_v41, %v357_v0  ;;  %v4486_v53 = vmul.f32 %v3093_v36, %v4301_v38  ;;  %v6254_v52 = vrot.slane %v4460_v63, 1 }
  0xef   : > { %v2184_v23 = vsub.f32 0.0, %v4463_v10  ;;  %v2690_v26 = vpop.eup %2689  ;;  %v1595_v43 = vadd.f32 %v1547_v51, %v1495_v4  ;;  %v1975_v15 = vsel %vm749_vm1, %v6252_v11, %v1974_v3  ;;  %v908_v51 = vadd.f32 %v5996_v14, %v4221_v18 }
  0xf0   : > { %6253 = vst [vmem:[#allocation100_spill] sm:$0xff] %v4486_v53  ;;  %v2468_v42 = vmul.f32 %v2690_v26, %v4262_v19  ;;  %v4491_v12 = vadd.f32 %v6254_v52, %v424_v50  ;;  %v6255_v11 = vrot.slane %v4438_v9, 1  ;;  %v5997_v4 = vrot.slane %v4473_v17, 1  ;;  %v360_v19 = vld [vmem:[#allocation2 + $0x198] sm:$0xff] }
  0xf1   : > { %v2259_v61 = vmul.f32 1.442695, %v2184_v23  ;;  %v1548_v2 = vmul.f32 %v3095_v37, %v357_v0  ;;  %v1008_v26 = vadd.f32 %v4356_v27, %v908_v51  ;;  %v4509_v18 = vmul.f32 %v3083_v31, %v4432_v7 }
  0xf2   : > { %v1807_v3 = vadd.f32 %v6255_v11, %v1595_v43  ;;  %2518 = vst.msk [vmem:[%s3506_s29 + $0x79] sm:$0x7f] %vm2496_vm4, %v2468_v42  ;;  %v4513_v50 = vmul.f32 %v3118_v48, %v4274_v34  ;;  %v6000_v0 = vrot.slane %v4486_v53, 2  ;;  %v420_v52 = vmul.f32 %v3113_v45, %v4274_v34 }
  0xf3   : > { %2695 = vpow2.f32 %v2259_v61  ;;  %6257 = vst [vmem:[#allocation102_spill] sm:$0xff] %v4509_v18  ;;  %v4520_v43 = vmul.f32 %v3120_v49, %v4274_v34  ;;  %v1220_v27 = vadd.f32 %v5997_v4, %v1008_v26  ;;  %v4527_v11 = vmul.f32 %v3120_v49, %v360_v19 }
  0xf4   : > { %6258 = vst [vmem:[#allocation103_spill] sm:$0xff] %v4513_v50  ;;  %v2083_v23 = vadd.f32 %v1975_v15, %v1807_v3  ;;  %v2692_v61 = vpop.eup %2691  ;;  %v6001_v51 = vrot.slane %v4513_v50, 1  ;;  %v4535_v34 = vmul.f32 %v3091_v35, %v4414_v28  ;;  %v6262_v63 = vrot.slane %v4259_v40, 2 }
  0xf5   : > { %6259 = vst [vmem:[#allocation104_spill] sm:$0xff] %v4520_v43  ;;  %v2327_v15 = vadd.f32 1.0, %v2692_v61  ;;  %v1496_v26 = vadd.f32 %v6000_v0, %v1220_v27  ;;  %v4544_v61 = vmul.f32 %v3093_v36, %v4414_v28  ;;  %v6263_v17 = vrot.slane %v4520_v43, 2 }
  0xf6   : > { %v4530_v3 = vadd.f32 %v4125_v1, %v2083_v23  ;;  %6260 = vst [vmem:[#allocation105_spill] sm:$0xff] %v4535_v34  ;;  %v633_v42 = vadd.f32 %v6001_v51, %v420_v52  ;;  %v4546_v23 = vld [vmem:[#allocation2 + $0x190] sm:$0xff]  ;;  %v962_v0 = vmul.f32 %v3103_v41, %v4414_v28  ;;  %v6009_v40 = vrot.slane %v4535_v34, 1 }
  0xf7   : > { %6261 = vst [vmem:[#allocation106_spill] sm:$0xff] %v4544_v61  ;;  %2697 = vrcp.f32 %v2327_v15  ;;  %v804_v27 = vsel %vm749_vm1, %v6263_v17, %v6262_v63  ;;  %v1596_v51 = vadd.f32 %v1548_v2, %v1496_v26  ;;  %v6008_v9 = vrot.slane %v4544_v61, 2  ;;  %v361_v17 = vld [vmem:[#allocation2 + $0x1a0] sm:$0xff]  ;;  %v4563_v63 = vld [vmem:[#allocation2 + $0x1a8] sm:$0xff] }
  0xf8   : > { %v2186_v14 = vsub.f32 0.0, %v4530_v3  ;;  %v2694_v52 = vpop.eup %2693  ;;  %v910_v53 = vadd.f32 %v804_v27, %v633_v42  ;;  %v4561_v43 = vmul.f32 %v3093_v36, %v360_v19  ;;  %v6264_v50 = vrot.slane %v4502_v57, 1 }
  0xf9   : > { %v2469_v15 = vmul.f32 %v2694_v52, %v4334_v16  ;;  %v1550_v42 = vmul.f32 %v3095_v37, %v4546_v23  ;;  %v4571_v26 = vmul.f32 %v3081_v30, %v4546_v23  ;;  %v6266_v16 = vrot.slane %v4426_v21, 2 }
  0xfa   : > { %v2263_v32 = vmul.f32 1.442695, %v2186_v14  ;;  %v1808_v33 = vadd.f32 %v6264_v50, %v1596_v51  ;;  %v1010_v2 = vadd.f32 %v962_v0, %v910_v53  ;;  %v4582_v50 = vmul.f32 %v3083_v31, %v4546_v23 }
  0xfb   : > { %6265 = vst [vmem:[#allocation107_spill] sm:$0xff] %v4571_v26  ;;  %2519 = vst.msk [vmem:[%s3506_s29 + $0x79] sm:$0x80] %vm2493_vm3, %v2469_v15  ;;  %v1392_v14 = vsel %vm749_vm1, %v6008_v9, %v6266_v16  ;;  %v1862_v53 = vmul.f32 %v3083_v31, %v360_v19  ;;  %v6268_v51 = vrot.slane %v4509_v18, 2  ;;  %v4592_v21 = vmul.f32 %v3118_v48, %v4563_v63 }
  0xfc   : > { %2699 = vpow2.f32 %v2263_v32  ;;  %6267 = vst [vmem:[#allocation108_spill] sm:$0xff] %v4582_v50  ;;  %v1222_v52 = vadd.f32 %v6009_v40, %v1010_v2  ;;  %v427_v32 = vmul.f32 %v3113_v45, %v361_v17  ;;  %v4597_v19 = vmul.f32 %v3120_v49, %v4301_v38 }
  0xfd   : > { %v2696_v0 = vpop.eup %2695  ;;  %v2084_v27 = vadd.f32 %v6268_v51, %v1808_v33  ;;  %6269 = vst [vmem:[#allocation109_spill] sm:$0xff] %v4592_v21  ;;  %v1979_v9 = vrot.slane %v1862_v53, 2  ;;  %v6014_v51 = vrot.slane %v4592_v21, 1  ;;  %v4608_v53 = vmul.f32 %v3091_v35, %v4432_v7 }
  0xfe   : > { %v2328_v15 = vadd.f32 1.0, %v2696_v0  ;;  %6270 = vst [vmem:[#allocation110_spill] sm:$0xff] %v4597_v19  ;;  %v1498_v2 = vadd.f32 %v1392_v14, %v1222_v52  ;;  %v6016_v0 = vrot.slane %v4597_v19, 2  ;;  %v4616_v14 = vmul.f32 %v3093_v36, %v4432_v7 }
  0xff   : > { %v4600_v4 = vadd.f32 %v4125_v1, %v2084_v27  ;;  %6271 = vst [vmem:[#allocation111_spill] sm:$0xff] %v4608_v53  ;;  %v4612_v27 = vmul.f32 %v3103_v41, %v361_v17  ;;  %v4623_v40 = vadd.f32 %v6014_v51, %v427_v32  ;;  %v6275_v61 = vrot.slane %v4571_v26, 1 }
 0x100   : > { %2701 = vrcp.f32 %v2328_v15  ;;  %v1598_v16 = vadd.f32 %v1550_v42, %v1498_v2  ;;  %6272 = vst [vmem:[#allocation112_spill] sm:$0xff] %v4616_v14  ;;  %v6273_v15 = vrot.slane %v4582_v50, 2  ;;  %v911_v42 = vadd.f32 %v6016_v0, %v4361_v29 }
 0x101   : > { %v2187_v38 = vsub.f32 0.0, %v4600_v4  ;;  %v2698_v52 = vpop.eup %2697  ;;  %v4630_v2 = vmul.f32 %v3081_v30, %v4563_v63  ;;  %v6018_v51 = vrot.slane %v4616_v14, 2  ;;  %v1551_v21 = vmul.f32 %v3095_v37, %v361_v17 }
 0x102   : > { %v1980_v33 = vsel %vm749_vm1, %v6273_v15, %v1979_v9  ;;  %v2471_v18 = vmul.f32 %v2698_v52, %v4397_v59  ;;  %v1810_v50 = vadd.f32 %v6275_v61, %v1598_v16  ;;  %v6017_v9 = vrot.slane %v4608_v53, 1  ;;  %v364_v15 = vld [vmem:[#allocation2 + $0x1b8] sm:$0xff] }
 0x103   : > { %6274 = vst [vmem:[#allocation113_spill] sm:$0xff] %v4630_v2  ;;  %v2265_v57 = vmul.f32 1.442695, %v2187_v38  ;;  %v1011_v32 = vadd.f32 %v4482_v8, %v911_v42  ;;  %v4641_v29 = vmul.f32 %v3083_v31, %v4563_v63  ;;  %v4647_v61 = vmul.f32 %v3118_v48, %v4414_v28 }
 0x104   : > { %2521 = vst.msk [vmem:[%s3506_s29 + $0x89] sm:$0x7f] %vm2496_vm4, %v2471_v18  ;;  %v2086_v59 = vadd.f32 %v1980_v33, %v1810_v50  ;;  %v4651_v16 = vmul.f32 %v3120_v49, %v4414_v28  ;;  %v423_v52 = vmul.f32 %v3113_v45, %v4414_v28  ;;  %v4675_v28 = vmul.f32 %v3093_v36, %v4546_v23 }
 0x105   : > { %6276 = vst [vmem:[#allocation114_spill] sm:$0xff] %v4641_v29  ;;  %2703 = vpow2.f32 %v2265_v57  ;;  %6277 = vst [vmem:[#allocation115_spill] sm:$0xff] %v4647_v61  ;;  %v1223_v17 = vadd.f32 %v6017_v9, %v1011_v32  ;;  %v4659_v57 = vmul.f32 %v3120_v49, %v364_v15  ;;  %v6024_v33 = vrot.slane %v4647_v61, 1 }
 0x106   : > { %6278 = vst [vmem:[#allocation116_spill] sm:$0xff] %v4651_v16  ;;  %v2700_v8 = vpop.eup %2699  ;;  %v4662_v50 = vadd.f32 %v4125_v1, %v2086_v59  ;;  %v6026_v42 = vrot.slane %v4651_v16, 2  ;;  %v4671_v9 = vmul.f32 %v3091_v35, %v4546_v23  ;;  %6280 = vst [vmem:[#allocation118_spill] sm:$0xff] %v4675_v28  ;;  %v965_v19 = vmul.f32 %v3103_v41, %v4546_v23  ;;  %v4693_v16 = vld [vmem:[#allocation2 + $0x1c8] sm:$0xff] }
 0x107   : > { %v2330_v18 = vadd.f32 1.0, %v2700_v8  ;;  %v1499_v0 = vadd.f32 %v6018_v51, %v1223_v17  ;;  %v4677_v8 = vld [vmem:[#allocation2 + $0x1b0] sm:$0xff]  ;;  %v636_v38 = vadd.f32 %v6024_v33, %v423_v52  ;;  %v6281_v17 = vrot.slane %v4393_v58, 2  ;;  %v365_v33 = vld [vmem:[#allocation2 + $0x1c0] sm:$0xff] }
 0x108   : > { %6279 = vst [vmem:[#allocation117_spill] sm:$0xff] %v4671_v9  ;;  %v2189_v59 = vsub.f32 0.0, %v4662_v50  ;;  %v4704_v53 = vmul.f32 %v3081_v30, %v4677_v8  ;;  %v430_v58 = vmul.f32 %v3113_v45, %v365_v33 }
 0x109   : > { %2705 = vrcp.f32 %v2330_v18  ;;  %v809_v51 = vsel %vm749_vm1, %v6026_v42, %v6281_v17  ;;  %v1599_v14 = vadd.f32 %v1551_v21, %v1499_v0  ;;  %v6028_v18 = vrot.slane %v4675_v28, 2 }
 0x10a   : > { %v2702_v32 = vpop.eup %2701  ;;  %v2269_v61 = vmul.f32 1.442695, %v2189_v59  ;;  %v913_v52 = vadd.f32 %v809_v51, %v636_v38  ;;  %v6282_v17 = vrot.slane %v4630_v2, 1  ;;  %v4698_v21 = vmul.f32 %v3093_v36, %v364_v15  ;;  %6283 = vst [vmem:[#allocation119_spill] sm:$0xff] %v4704_v53 }
 0x10b   : > { %v2472_v26 = vmul.f32 %v2702_v32, %v4463_v10  ;;  %v1553_v0 = vmul.f32 %v3095_v37, %v4677_v8  ;;  %v4710_v51 = vmul.f32 %v3083_v31, %v4677_v8  ;;  %v6285_v38 = vrot.slane %v4641_v29, 2 }
 0x10c   : > { %v1811_v42 = vadd.f32 %v6282_v17, %v1599_v14  ;;  %2707 = vpow2.f32 %v2269_v61  ;;  %v1013_v10 = vadd.f32 %v965_v19, %v913_v52  ;;  %v1865_v14 = vmul.f32 %v3083_v31, %v364_v15 }
 0x10d   : > { %2522 = vst.msk [vmem:[%s3506_s29 + $0x89] sm:$0x80] %vm2493_vm3, %v2472_v26  ;;  %6284 = vst [vmem:[#allocation120_spill] sm:$0xff] %v4710_v51  ;;  %v6286_v59 = vrot.slane %v4561_v43, 2  ;;  %v4723_v26 = vmul.f32 %v3118_v48, %v4693_v16  ;;  %v6288_v61 = vrot.slane %v4671_v9, 1  ;;  %v6033_v15 = vrot.slane %v4710_v51, 2 }
 0x10e   : > { %v2087_v32 = vadd.f32 %v6285_v38, %v1811_v42  ;;  %v1984_v29 = vrot.slane %v1865_v14, 2  ;;  %v4730_v43 = vmul.f32 %v3120_v49, %v4432_v7  ;;  %v4741_v14 = vmul.f32 %v3091_v35, %v4563_v63 }
 0x10f   : > { %v1397_v17 = vsel %vm749_vm1, %v6028_v18, %v6286_v59  ;;  %6287 = vst [vmem:[#allocation121_spill] sm:$0xff] %v4723_v26  ;;  %v2704_v19 = vpop.eup %2703  ;;  %v1225_v52 = vadd.f32 %v6288_v61, %v1013_v10  ;;  %v6034_v18 = vrot.slane %v4723_v26, 1 }
 0x110   : > { %6289 = vst [vmem:[#allocation122_spill] sm:$0xff] %v4730_v43  ;;  %v2331_v42 = vadd.f32 1.0, %v2704_v19  ;;  %v4733_v38 = vadd.f32 %v4125_v1, %v2087_v32  ;;  %v6035_v10 = vrot.slane %v4730_v43, 2  ;;  %6290 = vst [vmem:[#allocation123_spill] sm:$0xff] %v4741_v14  ;;  %v4745_v19 = vmul.f32 %v3103_v41, %v365_v33  ;;  %v4833_v43 = vld [vmem:[#allocation2 + $0x1e8] sm:$0xff] }
 0x111   : > { %v1501_v2 = vadd.f32 %v1397_v17, %v1225_v52  ;;  %v4749_v32 = vmul.f32 %v3093_v36, %v4563_v63  ;;  %v1985_v52 = vsel %vm749_vm1, %v6033_v15, %v1984_v29  ;;  %v4756_v59 = vadd.f32 %v6034_v18, %v430_v58 }
 0x112   : > { %2709 = vrcp.f32 %v2331_v42  ;;  %v2190_v7 = vsub.f32 0.0, %v4733_v38  ;;  %v914_v42 = vadd.f32 %v6035_v10, %v4491_v12  ;;  %v6037_v34 = vrot.slane %v4741_v14, 1  ;;  %v368_v12 = vld [vmem:[#allocation2 + $0x1d8] sm:$0xff] }
 0x113   : > { %6291 = vst [vmem:[#allocation124_spill] sm:$0xff] %v4749_v32  ;;  %v2706_v17 = vpop.eup %2705  ;;  %v1601_v61 = vadd.f32 %v1553_v0, %v1501_v2  ;;  %v4765_v2 = vmul.f32 %v3081_v30, %v4693_v16  ;;  %v6293_v0 = vrot.slane %v4704_v53, 1  ;;  %v1554_v58 = vmul.f32 %v3095_v37, %v365_v33 }
 0x114   : > { %v2474_v28 = vmul.f32 %v2706_v17, %v4530_v3  ;;  %v2271_v9 = vmul.f32 1.442695, %v2190_v7  ;;  %v1014_v15 = vadd.f32 %v4612_v27, %v914_v42  ;;  %v4773_v18 = vmul.f32 %v3083_v31, %v4693_v16 }
 0x115   : > { %6292 = vst [vmem:[#allocation125_spill] sm:$0xff] %v4765_v2  ;;  %v1813_v29 = vadd.f32 %v6293_v0, %v1601_v61  ;;  %v4780_v7 = vmul.f32 %v3118_v48, %v4546_v23  ;;  %v4784_v17 = vmul.f32 %v3120_v49, %v4546_v23  ;;  %v4793_v10 = vmul.f32 %v3120_v49, %v368_v12 }
 0x116   : > { %6294 = vst [vmem:[#allocation126_spill] sm:$0xff] %v4773_v18  ;;  %2524 = vst.msk [vmem:[%s3506_s29 + $0x99] sm:$0x7f] %vm2496_vm4, %v2474_v28  ;;  %2711 = vpow2.f32 %v2271_v9  ;;  %v2708_v27 = vpop.eup %2707  ;;  %v1226_v61 = vadd.f32 %v6037_v34, %v1014_v15  ;;  %v426_v9 = vmul.f32 %v3113_v45, %v4546_v23  ;;  %v4804_v34 = vmul.f32 %v3091_v35, %v4677_v8  ;;  %v4806_v23 = vld [vmem:[#allocation2 + $0x1d0] sm:$0xff] }
 0x117   : > { %6295 = vst [vmem:[#allocation127_spill] sm:$0xff] %v4780_v7  ;;  %6296 = vst [vmem:[#allocation128_spill] sm:$0xff] %v4784_v17  ;;  %v2089_v33 = vadd.f32 %v1985_v52, %v1813_v29  ;;  %v2333_v28 = vadd.f32 1.0, %v2708_v27  ;;  %v6039_v0 = vrot.slane %v4780_v7, 1  ;;  %v6040_v3 = vrot.slane %v4784_v17, 2 }
 0x118   : > { %v6297_v52 = vrot.slane %v4749_v32, 2  ;;  %v6298_v42 = vrot.slane %v4527_v11, 2  ;;  %v968_v32 = vmul.f32 %v3103_v41, %v4677_v8  ;;  %v1556_v53 = vmul.f32 %v3095_v37, %v4806_v23 }
 0x119   : > { %v4797_v26 = vadd.f32 %v4125_v1, %v2089_v33  ;;  %2713 = vrcp.f32 %v2333_v28  ;;  %v639_v27 = vadd.f32 %v6039_v0, %v426_v9  ;;  %v4823_v28 = vmul.f32 %v3093_v36, %v368_v12 }
 0x11a   : > { %v1502_v29 = vadd.f32 %v6297_v52, %v1226_v61  ;;  %v814_v33 = vsel %vm749_vm1, %v6040_v3, %v6298_v42  ;;  %v4817_v61 = vmul.f32 %v3093_v36, %v4677_v8  ;;  %v6048_v42 = vrot.slane %v4804_v34, 1 }
 0x11b   : > { %v2192_v52 = vsub.f32 0.0, %v4797_v26  ;;  %v916_v0 = vadd.f32 %v814_v33, %v639_v27  ;;  %v4838_v27 = vmul.f32 %v3081_v30, %v4806_v23  ;;  %v4842_v33 = vmul.f32 %v3083_v31, %v4806_v23 }
 0x11c   : > { %6299 = vst [vmem:[#allocation129_spill] sm:$0xff] %v4817_v61  ;;  %v1602_v15 = vadd.f32 %v1554_v58, %v1502_v29  ;;  %v2710_v9 = vpop.eup %2709  ;;  %v6047_v3 = vrot.slane %v4817_v61, 2  ;;  %v6300_v58 = vrot.slane %v4765_v2, 1 }
 0x11d   : > { %v2475_v51 = vmul.f32 %v2710_v9, %v4600_v4  ;;  %v2275_v14 = vmul.f32 1.442695, %v2192_v52  ;;  %v1016_v17 = vadd.f32 %v968_v32, %v916_v0  ;;  %6301 = vst [vmem:[#allocation130_spill] sm:$0xff] %v4838_v27  ;;  %6302 = vst [vmem:[#allocation131_spill] sm:$0xff] %v4842_v33  ;;  %v369_v4 = vld [vmem:[#allocation2 + $0x1e0] sm:$0xff]  ;;  %v6304_v9 = vrot.slane %v4698_v21, 2 }
 0x11e   : > { %v1814_v29 = vadd.f32 %v6300_v58, %v1602_v15  ;;  %v6303_v15 = vrot.slane %v4773_v18, 2  ;;  %v1868_v0 = vmul.f32 %v3083_v31, %v368_v12  ;;  %v6053_v7 = vrot.slane %v4842_v33, 2 }
 0x11f   : > { %2525 = vst.msk [vmem:[%s3506_s29 + $0x99] sm:$0x80] %vm2493_vm3, %v2475_v51  ;;  %2715 = vpow2.f32 %v2275_v14  ;;  %v1402_v32 = vsel %vm749_vm1, %v6047_v3, %v6304_v9  ;;  %v1228_v11 = vadd.f32 %v6048_v42, %v1016_v17  ;;  %v4859_v51 = vmul.f32 %v3118_v48, %v4833_v43 }
 0x120   : > { %v2090_v52 = vadd.f32 %v6303_v15, %v1814_v29  ;;  %v2712_v58 = vpop.eup %2711  ;;  %v4863_v14 = vmul.f32 %v3120_v49, %v4563_v63  ;;  %v1989_v15 = vrot.slane %v1868_v0, 2  ;;  %v433_v12 = vmul.f32 %v3113_v45, %v369_v4 }
 0x121   : > { %6305 = vst [vmem:[#allocation132_spill] sm:$0xff] %v4859_v51  ;;  %v2334_v21 = vadd.f32 1.0, %v2712_v58  ;;  %v1504_v9 = vadd.f32 %v1402_v32, %v1228_v11  ;;  %v4873_v42 = vmul.f32 %v3091_v35, %v4693_v16  ;;  %v6309_v2 = vrot.slane %v4859_v51, 1 }
 0x122   : > { %6306 = vst [vmem:[#allocation133_spill] sm:$0xff] %v4863_v14  ;;  %v4866_v29 = vadd.f32 %v4125_v1, %v2090_v52  ;;  %v6054_v3 = vrot.slane %v4863_v14, 2  ;;  %v4879_v52 = vmul.f32 %v3093_v36, %v4693_v16  ;;  %v1990_v32 = vsel %vm749_vm1, %v6053_v7, %v1989_v15 }
 0x123   : > { %6307 = vst [vmem:[#allocation134_spill] sm:$0xff] %v4873_v42  ;;  %2717 = vrcp.f32 %v2334_v21  ;;  %v2714_v0 = vpop.eup %2713  ;;  %v1604_v11 = vadd.f32 %v1556_v53, %v1504_v9  ;;  %v4888_v21 = vmul.f32 %v3103_v41, %v369_v4  ;;  %v4893_v61 = vadd.f32 %v6309_v2, %v433_v12 }
 0x124   : > { %v2193_v63 = vsub.f32 0.0, %v4866_v29  ;;  %6308 = vst [vmem:[#allocation135_spill] sm:$0xff] %v4879_v52  ;;  %v917_v17 = vadd.f32 %v6054_v3, %v4623_v40  ;;  %v2477_v58 = vmul.f32 %v2714_v0, %v4662_v50  ;;  %v6056_v53 = vrot.slane %v4873_v42, 1  ;;  %v372_v3 = vld [vmem:[#allocation2 + $0x1f8] sm:$0xff] }
 0x125   : > { %v6310_v9 = vrot.slane %v4838_v27, 1  ;;  %v4902_v40 = vmul.f32 %v3081_v30, %v4833_v43  ;;  %v4908_v50 = vmul.f32 %v3083_v31, %v4833_v43  ;;  %v4912_v2 = vmul.f32 %v3118_v48, %v4677_v8 }
 0x126   : > { %v2277_v18 = vmul.f32 1.442695, %v2193_v63  ;;  %v1017_v15 = vadd.f32 %v4745_v19, %v917_v17  ;;  %2527 = vst.msk [vmem:[%s3506_s29 + $0xa9] sm:$0x7f] %vm2496_vm4, %v2477_v58  ;;  %v4916_v19 = vmul.f32 %v3120_v49, %v4677_v8  ;;  %v1557_v63 = vmul.f32 %v3095_v37, %v369_v4 }
 0x127   : > { %v1816_v33 = vadd.f32 %v6310_v9, %v1604_v11  ;;  %6311 = vst [vmem:[#allocation136_spill] sm:$0xff] %v4902_v40  ;;  %6312 = vst [vmem:[#allocation137_spill] sm:$0xff] %v4908_v50  ;;  %v6057_v11 = vrot.slane %v4912_v2, 1  ;;  %v4926_v9 = vmul.f32 %v3120_v49, %v372_v3  ;;  %v6315_v0 = vrot.slane %v4659_v57, 2 }
 0x128   : > { %2719 = vpow2.f32 %v2277_v18  ;;  %v1229_v17 = vadd.f32 %v6056_v53, %v1017_v15  ;;  %v429_v18 = vmul.f32 %v3113_v45, %v4677_v8  ;;  %v6058_v7 = vrot.slane %v4916_v19, 2 }
 0x129   : > { %v2092_v12 = vadd.f32 %v1990_v32, %v1816_v33  ;;  %v2716_v58 = vpop.eup %2715  ;;  %v6313_v32 = vrot.slane %v4879_v52, 2  ;;  %v4936_v8 = vmul.f32 %v3091_v35, %v4806_v23  ;;  %v5010_v57 = vmul.f32 %v3093_v36, %v4833_v43 }
 0x12a   : > { %v2336_v51 = vadd.f32 1.0, %v2716_v58  ;;  %v642_v53 = vadd.f32 %v6057_v11, %v429_v18  ;;  %v819_v58 = vsel %vm749_vm1, %v6058_v7, %v6315_v0  ;;  %v971_v18 = vmul.f32 %v3103_v41, %v4806_v23 }
 0x12b   : > { %v4930_v33 = vadd.f32 %v4125_v1, %v2092_v12  ;;  %v1505_v4 = vadd.f32 %v6313_v32, %v1229_v17  ;;  %6314 = vst [vmem:[#allocation138_spill] sm:$0xff] %v4936_v8  ;;  %v4948_v1 = vmul.f32 %v3093_v36, %v4806_v23  ;;  %v4950_v12 = vld [vmem:[#allocation2 + $0x1f0] sm:$0xff]  ;;  %v4957_v0 = vmul.f32 %v3093_v36, %v372_v3 }
 0x12c   : > { %2721 = vrcp.f32 %v2336_v51  ;;  %v919_v15 = vadd.f32 %v819_v58, %v642_v53  ;;  %v6317_v51 = vrot.slane %v4902_v40, 1  ;;  %v1559_v14 = vmul.f32 %v3095_v37, %v4950_v12  ;;  %6324 = vst [vmem:[#allocation144_spill] sm:$0xff] %v5010_v57 }
 0x12d   : > { %6316 = vst [vmem:[#allocation139_spill] sm:$0xff] %v4948_v1  ;;  %v2195_v17 = vsub.f32 0.0, %v4930_v33  ;;  %v1605_v32 = vadd.f32 %v1557_v63, %v1505_v4  ;;  %v2718_v11 = vpop.eup %2717  ;;  %v6063_v7 = vrot.slane %v4948_v1, 2  ;;  %v6064_v63 = vrot.slane %v4936_v8, 1 }
 0x12e   : > { %v2478_v52 = vmul.f32 %v2718_v11, %v4733_v38  ;;  %v1019_v4 = vadd.f32 %v971_v18, %v919_v15  ;;  %v4968_v53 = vmul.f32 %v3081_v30, %v4950_v12  ;;  %v4972_v58 = vmul.f32 %v3083_v31, %v4950_v12 }
 0x12f   : > { %v2281_v42 = vmul.f32 1.442695, %v2195_v17  ;;  %v1817_v27 = vadd.f32 %v6317_v51, %v1605_v32  ;;  %v6320_v38 = vrot.slane %v4908_v50, 2  ;;  %v6321_v17 = vrot.slane %v4823_v28, 2 }
 0x130   : > { %6318 = vst [vmem:[#allocation140_spill] sm:$0xff] %v4968_v53  ;;  %6319 = vst [vmem:[#allocation141_spill] sm:$0xff] %v4972_v58  ;;  %v1871_v32 = vmul.f32 %v3083_v31, %v372_v3  ;;  %v1231_v51 = vadd.f32 %v6064_v63, %v1019_v4  ;;  %v5000_v4 = vld [vmem:[#allocation2 + $0x208] sm:$0xff]  ;;  %v6325_v40 = vrot.slane %v4972_v58, 2  ;;  %v5046_v58 = vmul.f32 %v3120_v49, %v4806_v23 }
 0x131   : > { %2528 = vst.msk [vmem:[%s3506_s29 + $0xa9] sm:$0x80] %vm2493_vm3, %v2478_v52  ;;  %2723 = vpow2.f32 %v2281_v42  ;;  %v2093_v11 = vadd.f32 %v6320_v38, %v1817_v27  ;;  %v1407_v15 = vsel %vm749_vm1, %v6063_v7, %v6321_v17  ;;  %v373_v42 = vld [vmem:[#allocation2 + $0x200] sm:$0xff]  ;;  %v4990_v27 = vmul.f32 %v3120_v49, %v4693_v16 }
 0x132   : > { %v2720_v18 = vpop.eup %2719  ;;  %v4995_v38 = vld [vmem:[%s5843_s2] ss:$0 sm:$0xff]  ;;  %v1994_v17 = vrot.slane %v1871_v32, 2  ;;  %v5004_v7 = vmul.f32 %v3091_v35, %v4833_v43  ;;  %v1507_v63 = vadd.f32 %v1407_v15, %v1231_v51  ;;  %v5014_v32 = vmul.f32 %v3103_v41, %v373_v42  ;;  %6330 = vst [vmem:[#allocation148_spill] sm:$0xff] %v5046_v58 }
 0x133   : > { %6322 = vst [vmem:[#allocation142_spill] sm:$0xff] %v4990_v27  ;;  %v2337_v28 = vadd.f32 1.0, %v2720_v18  ;;  %v4998_v3 = vadd.f32 %v4995_v38, %v2093_v11  ;;  %v6069_v18 = vrot.slane %v4990_v27, 2  ;;  %v1560_v52 = vmul.f32 %v3095_v37, %v373_v42 }
 0x134   : > { %6323 = vst [vmem:[#allocation143_spill] sm:$0xff] %v5004_v7  ;;  %v1607_v50 = vadd.f32 %v1559_v14, %v1507_v63  ;;  %v1995_v15 = vsel %vm749_vm1, %v6325_v40, %v1994_v17  ;;  %v5031_v14 = vmul.f32 %v3118_v48, %v4806_v23  ;;  %v6328_v63 = vrot.slane %v4968_v53, 1 }
 0x135   : > { %2725 = vrcp.f32 %v2337_v28  ;;  %v2196_v11 = vsub.f32 0.0, %v4998_v3  ;;  %v920_v51 = vadd.f32 %v6069_v18, %v4756_v59  ;;  %v5025_v28 = vmul.f32 %v3081_v30, %v5000_v4 }
 0x136   : > { %v2722_v16 = vpop.eup %2721  ;;  %6327 = vst [vmem:[#allocation146_spill] sm:$0xff] %v5031_v14  ;;  %v1819_v59 = vadd.f32 %v6328_v63, %v1607_v50  ;;  %v5039_v18 = vmul.f32 %v3083_v31, %v5000_v4  ;;  %v432_v42 = vmul.f32 %v3113_v45, %v4806_v23  ;;  %v6073_v8 = vrot.slane %v5031_v14, 1 }
 0x137   : > { %6326 = vst [vmem:[#allocation145_spill] sm:$0xff] %v5025_v28  ;;  %v2283_v1 = vmul.f32 1.442695, %v2196_v11  ;;  %v2480_v40 = vmul.f32 %v2722_v16, %v4797_v26  ;;  %v1020_v17 = vadd.f32 %v4888_v21, %v920_v51  ;;  %v376_v11 = vld [vmem:[#allocation2 + $0x218] sm:$0xff]  ;;  %v6331_v21 = vrot.slane %v5004_v7, 1  ;;  %v5073_v7 = vld [vmem:[#allocation2 + $0x210] sm:$0xff] }
 0x138   : > { %6329 = vst [vmem:[#allocation147_spill] sm:$0xff] %v5039_v18  ;;  %v2095_v26 = vadd.f32 %v1995_v15, %v1819_v59  ;;  %v645_v63 = vadd.f32 %v6073_v8, %v432_v42  ;;  %v6077_v53 = vrot.slane %v5046_v58, 2  ;;  %v5062_v23 = vmul.f32 %v3093_v36, %v4950_v12 }
 0x139   : > { %2727 = vpow2.f32 %v2283_v1  ;;  %2530 = vst.msk [vmem:[%s3506_s29 + $0xb9] sm:$0x7f] %vm2496_vm4, %v2480_v40  ;;  %v1232_v50 = vadd.f32 %v6331_v21, %v1020_v17  ;;  %v5055_v1 = vmul.f32 %v3091_v35, %v4950_v12  ;;  %v5065_v15 = vmul.f32 %v3093_v36, %v376_v11 }
 0x13a   : > { %v5068_v59 = vadd.f32 %v4995_v38, %v2095_v26  ;;  %v6332_v17 = vrot.slane %v5010_v57, 2  ;;  %v6333_v42 = vrot.slane %v4793_v10, 2  ;;  %v974_v27 = vmul.f32 %v3103_v41, %v4950_v12 }
 0x13b   : > { %v2724_v51 = vpop.eup %2723  ;;  %v5088_v58 = vmul.f32 %v3081_v30, %v5073_v7  ;;  %v5103_v14 = vmul.f32 %v3120_v49, %v4833_v43  ;;  %v6338_v43 = vrot.slane %v4957_v0, 2 }
 0x13c   : > { %v2339_v40 = vadd.f32 1.0, %v2724_v51  ;;  %v1508_v21 = vadd.f32 %v6332_v17, %v1232_v50  ;;  %v824_v8 = vsel %vm749_vm1, %v6077_v53, %v6333_v42  ;;  %v2198_v50 = vsub.f32 0.0, %v5068_v59 }
 0x13d   : > { %v922_v16 = vadd.f32 %v824_v8, %v645_v63  ;;  %v5092_v42 = vmul.f32 %v3083_v31, %v5073_v7  ;;  %v1874_v53 = vmul.f32 %v3083_v31, %v376_v11  ;;  %v6335_v51 = vrot.slane %v5025_v28, 1 }
 0x13e   : > { %2729 = vrcp.f32 %v2339_v40  ;;  %v1608_v17 = vadd.f32 %v1560_v52, %v1508_v21  ;;  %v2287_v26 = vmul.f32 1.442695, %v2198_v50  ;;  %v1562_v63 = vmul.f32 %v3095_v37, %v5073_v7 }
 0x13f   : > { %v2726_v57 = vpop.eup %2725  ;;  %6334 = vst [vmem:[#allocation149_spill] sm:$0xff] %v5092_v42  ;;  %v1022_v8 = vadd.f32 %v974_v27, %v922_v16  ;;  %v1999_v10 = vrot.slane %v1874_v53, 2  ;;  %v6337_v11 = vrot.slane %v5055_v1, 1  ;;  %v377_v27 = vld [vmem:[#allocation2 + $0x220] sm:$0xff]  ;;  %v5111_v16 = vld [vmem:[#allocation2 + $0x228] sm:$0xff]  ;;  %v5115_v50 = vmul.f32 %v3091_v35, %v5000_v4 }
 0x140   : > { %v2481_v40 = vmul.f32 %v2726_v57, %v4866_v29  ;;  %v1820_v52 = vadd.f32 %v6335_v51, %v1608_v17  ;;  %2731 = vpow2.f32 %v2287_v26  ;;  %v6336_v29 = vrot.slane %v5039_v18, 2 }
 0x141   : > { %v1234_v51 = vadd.f32 %v6337_v11, %v1022_v8  ;;  %v6339_v17 = vrot.slane %v5062_v23, 2  ;;  %v5126_v8 = vmul.f32 %v3093_v36, %v5000_v4  ;;  %v6341_v18 = vrot.slane %v5092_v42, 2 }
 0x142   : > { %2531 = vst.msk [vmem:[%s3506_s29 + $0xb9] sm:$0x80] %vm2493_vm3, %v2481_v40  ;;  %v2096_v57 = vadd.f32 %v6336_v29, %v1820_v52  ;;  %v6081_v52 = vrot.slane %v5103_v14, 2  ;;  %v1563_v40 = vmul.f32 %v3095_v37, %v377_v27  ;;  %v5141_v28 = vmul.f32 %v3081_v30, %v5111_v16 }
 0x143   : > { %v2728_v53 = vpop.eup %2727  ;;  %v1412_v26 = vsel %vm749_vm1, %v6339_v17, %v6338_v43  ;;  %6340 = vst [vmem:[#allocation150_spill] sm:$0xff] %v5126_v8  ;;  %v2000_v0 = vsel %vm749_vm1, %v6341_v18, %v1999_v10  ;;  %v6083_v17 = vrot.slane %v5115_v50, 1  ;;  %v5148_v10 = vmul.f32 %v3083_v31, %v5111_v16 }
 0x144   : > { %v2340_v29 = vadd.f32 1.0, %v2728_v53  ;;  %v5129_v11 = vadd.f32 %v4995_v38, %v2096_v57  ;;  %v1510_v21 = vadd.f32 %v1412_v26, %v1234_v51  ;;  %v923_v43 = vadd.f32 %v6081_v52, %v4893_v61 }
 0x145   : > { %v435_v61 = vmul.f32 %v3113_v45, %v4950_v12  ;;  %v5154_v27 = vmul.f32 %v3118_v48, %v4950_v12  ;;  %v1727_v52 = vrot.slane %v5141_v28, 1  ;;  %v5169_v48 = vmul.f32 %v3091_v35, %v5073_v7 }
 0x146   : > { %2733 = vrcp.f32 %v2340_v29  ;;  %v2199_v57 = vsub.f32 0.0, %v5129_v11  ;;  %v1610_v51 = vadd.f32 %v1562_v63, %v1510_v21  ;;  %v1023_v18 = vadd.f32 %v5014_v32, %v923_v43 }
 0x147   : > { %v6342_v63 = vrot.slane %v5088_v58, 1  ;;  %v5161_v32 = vmul.f32 %v3120_v49, %v4950_v12  ;;  %v6084_v42 = vrot.slane %v5154_v27, 1  ;;  %v5174_v49 = vmul.f32 %v3093_v36, %v5073_v7 }
 0x148   : > { %v2730_v26 = vpop.eup %2729  ;;  %v2289_v29 = vmul.f32 1.442695, %v2199_v57  ;;  %v1235_v53 = vadd.f32 %v6083_v17, %v1023_v18  ;;  %v6344_v36 = vrot.slane %v4926_v9, 2  ;;  %v6671_v28 = vrot.slane %v5148_v10, 2 }
 0x149   : > { %v1822_v21 = vadd.f32 %v6342_v63, %v1610_v51  ;;  %v2483_v43 = vmul.f32 %v2730_v26, %v4930_v33  ;;  %v379_v51 = vld [vmem:[#allocation2 + $0x230] sm:$0xff]  ;;  %v6085_v63 = vrot.slane %v5161_v32, 2  ;;  %v6343_v33 = vrot.slane %v5126_v8, 2  ;;  %v380_v26 = vld [vmem:[#allocation2 + $0x238] sm:$0xff] }
 0x14a   : > { %2735 = vpow2.f32 %v2289_v29  ;;  %v648_v35 = vadd.f32 %v6084_v42, %v435_v61  ;;  %v2732_v29 = vpop.eup %2731  ;;  %v5196_v42 = vmul.f32 %v3083_v31, %v379_v51 }
 0x14b   : > { %v2098_v57 = vadd.f32 %v2000_v0, %v1822_v21  ;;  %2533 = vst.msk [vmem:[%s3506_s29 + $0xc9] sm:$0x7f] %vm2496_vm4, %v2483_v43  ;;  %v1511_v12 = vadd.f32 %v6343_v33, %v1235_v53  ;;  %v977_v0 = vmul.f32 %v3103_v41, %v5073_v7  ;;  %v829_v43 = vsel %vm749_vm1, %v6085_v63, %v6344_v36  ;;  %v2815_v53 = vld [vmem:[#allocation2 + $0x28] sm:$0xff] }
 0x14c   : > { %v1414_v33 = vrot.slane %v5174_v49, 2  ;;  %v2342_v17 = vadd.f32 1.0, %v2732_v29  ;;  %v925_v61 = vadd.f32 %v829_v43, %v648_v35  ;;  %v5205_v36 = vmul.f32 %v3081_v30, %v379_v51 }
 0x14d   : > { %v5186_v21 = vadd.f32 %v4995_v38, %v2098_v57  ;;  %v1611_v18 = vadd.f32 %v1563_v40, %v1511_v12  ;;  %v6345_v57 = vrot.slane %v5065_v15, 2  ;;  %v1877_v63 = vmul.f32 %v3083_v31, %v380_v26 }
 0x14e   : > { %2737 = vrcp.f32 %v2342_v17  ;;  %v1025_v12 = vadd.f32 %v977_v0, %v925_v61  ;;  %v2002_v35 = vrot.slane %v5196_v42, 2  ;;  %v392_v8 = vmul.f32 %v2815_v53, %v3113_v45 }
 0x14f   : > { %v2201_v7 = vsub.f32 0.0, %v5186_v21  ;;  %v1417_v9 = vsel %vm749_vm1, %v1414_v33, %v6345_v57  ;;  %v1823_v40 = vadd.f32 %v1727_v52, %v1611_v18  ;;  %v2004_v15 = vrot.slane %v1877_v63, 2 }
 0x150   : > { %v2734_v29 = vpop.eup %2733  ;;  %v6346_v57 = vrot.slane %v3327_v46, 1  ;;  %v6347_v30 = vrot.slane %v3271_v20, 1  ;;  %v6348_v26 = vrot.slane %v5148_v10, 2  ;;  %v6349_v0 = vrot.slane %v5169_v48, 1 }
 0x151   : > { %v2293_v43 = vmul.f32 1.442695, %v2201_v7  ;;  %v2484_v17 = vmul.f32 %v2734_v29, %v4998_v3  ;;  %v1565_v7 = vmul.f32 %v3095_v37, %v379_v51  ;;  %v1728_v53 = vrot.slane %v5205_v36, 1 }
 0x152   : > { %v510_v31 = vsel %vm504_vm2, %v6347_v30, %v6346_v57  ;;  %v2099_v18 = vadd.f32 %v6348_v26, %v1823_v40  ;;  %v1237_v61 = vadd.f32 %v6349_v0, %v1025_v12  ;;  %v6350_v3 = vrot.slane %v3339_v25, 2  ;;  %v2816_v12 = vld [vmem:[#allocation2 + $0x48] sm:$0xff] }
 0x153   : > { %2739 = vpow2.f32 %v2293_v43  ;;  %v605_v63 = vadd.f32 %v510_v31, %v392_v8  ;;  %2534 = vst.msk [vmem:[%s3506_s29 + $0xc9] sm:$0x80] %vm2493_vm3, %v2484_v17  ;;  %v6351_v29 = vrot.slane %v3280_v39, 2  ;;  %v2005_v51 = vsel %vm749_vm1, %v2002_v35, %v2004_v15 }
 0x154   : > { %v5226_v46 = vadd.f32 %v4995_v38, %v2099_v18  ;;  %v1513_v20 = vadd.f32 %v1417_v9, %v1237_v61  ;;  %v2736_v57 = vpop.eup %2735  ;;  %v934_v43 = vmul.f32 %v2816_v12, %v3103_v41  ;;  %v6352_v30 = vrot.slane %v3139_v54, 1 }
 0x155   : > { %v757_v40 = vsel %vm749_vm1, %v6351_v29, %v6350_v3  ;;  %v6353_v9 = vrot.slane %v3286_v44, 1  ;;  %v2343_v25 = vadd.f32 1.0, %v2736_v57  ;;  %v395_v26 = vmul.f32 %v2816_v12, %v3113_v45 }
 0x156   : > { %v882_v8 = vadd.f32 %v757_v40, %v605_v63  ;;  %v2202_v39 = vsub.f32 0.0, %v5226_v46  ;;  %v1613_v17 = vadd.f32 %v1565_v7, %v1513_v20  ;;  %v6354_v0 = vrot.slane %v3143_v55, 2  ;;  %v2817_v63 = vld [vmem:[#allocation2 + $0x68] sm:$0xff] }
 0x157   : > { %v1099_v31 = vsel %vm504_vm2, %v6353_v9, %v6352_v30  ;;  %v6355_v15 = vrot.slane %v3297_v5, 2  ;;  %v1522_v54 = vmul.f32 %v2817_v63, %v3095_v37  ;;  %v6356_v44 = vrot.slane %v3427_v13, 1  ;;  %v6363_v30 = vld [vmem:[#allocation5_spill] sm:$0xff] }
 0x158   : > { %v982_v18 = vadd.f32 %v934_v43, %v882_v8  ;;  %v6357_v3 = vrot.slane %v3200_v22, 1  ;;  %2741 = vrcp.f32 %v2343_v25  ;;  %v2295_v7 = vmul.f32 1.442695, %v2202_v39 }
 0x159   : > { %v1345_v61 = vsel %vm749_vm1, %v6355_v15, %v6354_v0  ;;  %v1825_v20 = vadd.f32 %v1728_v53, %v1613_v17  ;;  %v6358_v5 = vrot.slane %v3147_v56, 1  ;;  %v6359_v57 = vrot.slane %v3319_v24, 1 }
 0x15a   : > { %v513_v29 = vsel %vm504_vm2, %v6357_v3, %v6356_v44  ;;  %v1194_v55 = vadd.f32 %v1099_v31, %v982_v18  ;;  %v6360_v12 = vrot.slane %v3162_v62, 2  ;;  %v6361_v13 = vrot.slane %v3323_v47, 2  ;;  %v2738_v31 = vpop.eup %2737  ;;  %v6367_v18 = vld [vmem:[#allocation6_spill] sm:$0xff] }
 0x15b   : > { %v608_v40 = vadd.f32 %v513_v29, %v395_v26  ;;  %v1687_v8 = vsel %vm504_vm2, %v6359_v57, %v6358_v5  ;;  %v6362_v43 = vrot.slane %v3431_v6, 2  ;;  %v6364_v9 = vrot.slane %v6363_v30, 2  ;;  %v6365_v26 = vld [vmem:[#allocation10_spill] sm:$0xff]  ;;  %v6369_v29 = vld [vmem:[#allocation11_spill] sm:$0xff]  ;;  %v6377_v30 = vld [vmem:[#allocation12_spill] sm:$0xff] }
 0x15c   : > { %v1933_v22 = vsel %vm749_vm1, %v6361_v13, %v6360_v12  ;;  %2743 = vpow2.f32 %v2295_v7  ;;  %v2101_v56 = vadd.f32 %v2005_v51, %v1825_v20  ;;  %v937_v24 = vmul.f32 %v2817_v63, %v3103_v41  ;;  %v6371_v7 = vld [vmem:[#allocation7_spill] sm:$0xff]  ;;  %v2818_v13 = vld [vmem:[#allocation2 + $0x88] sm:$0xff] }
 0x15d   : > { %v762_v25 = vsel %vm749_vm1, %v6364_v9, %v6362_v43  ;;  %v2486_v17 = vmul.f32 %v2738_v31, %v5068_v59  ;;  %v1470_v62 = vadd.f32 %v1345_v61, %v1194_v55  ;;  %v6366_v47 = vrot.slane %v6365_v26, 1  ;;  %v6373_v59 = vld [vmem:[#allocation20_spill] sm:$0xff]  ;;  %v6375_v55 = vld [vmem:[#allocation3_spill] sm:$0xff]  ;;  %v2740_v12 = vpop.eup %2739 }
 0x15e   : > { %v885_v39 = vadd.f32 %v762_v25, %v608_v40  ;;  %v6368_v0 = vrot.slane %v6367_v18, 1  ;;  %v398_v15 = vmul.f32 %v2817_v63, %v3113_v45  ;;  %v5282_v44 = vadd.f32 %v4995_v38, %v2101_v56  ;;  %v6379_v25 = vld [vmem:[#allocation8_spill] sm:$0xff]  ;;  %v6381_v18 = vld [vmem:[#allocation21_spill] sm:$0xff] }
 0x15f   : > { %v6370_v51 = vrot.slane %v6369_v29, 2  ;;  %v6372_v20 = vrot.slane %v6371_v7, 2  ;;  %v6374_v61 = vrot.slane %v6373_v59, 1  ;;  %v6376_v5 = vrot.slane %v6375_v55, 1  ;;  %2536 = vst.msk [vmem:[%s3506_s29 + $0xd9] sm:$0x7f] %vm2496_vm4, %v2486_v17 }
 0x160   : > { %v1102_v6 = vsel %vm504_vm2, %v6368_v0, %v6366_v47  ;;  %v985_v3 = vadd.f32 %v937_v24, %v885_v39  ;;  %v1570_v63 = vadd.f32 %v1522_v54, %v1470_v62  ;;  %v1525_v43 = vmul.f32 %v2818_v13, %v3095_v37  ;;  %v6383_v29 = vld [vmem:[#allocation15_spill] sm:$0xff]  ;;  %v6385_v62 = vld [vmem:[#allocation13_spill] sm:$0xff] }
 0x161   : > { %v1350_v40 = vsel %vm749_vm1, %v6372_v20, %v6370_v51  ;;  %v516_v57 = vsel %vm504_vm2, %v6376_v5, %v6374_v61  ;;  %v6378_v9 = vrot.slane %v6377_v30, 1  ;;  %v6380_v31 = vrot.slane %v6379_v25, 1  ;;  %v6387_v20 = vld [vmem:[#allocation9_spill] sm:$0xff] }
 0x162   : > { %v611_v39 = vadd.f32 %v516_v57, %v398_v15  ;;  %v2345_v24 = vadd.f32 1.0, %v2740_v12  ;;  %v2204_v26 = vsub.f32 0.0, %v5282_v44  ;;  %v1197_v47 = vadd.f32 %v1102_v6, %v985_v3  ;;  %v6389_v6 = vld [vmem:[#allocation22_spill] sm:$0xff]  ;;  %v6391_v12 = vld [vmem:[#allocation16_spill] sm:$0xff] }
 0x163   : > { %v1690_v56 = vsel %vm504_vm2, %v6380_v31, %v6378_v9  ;;  %v6382_v0 = vrot.slane %v6381_v18, 2  ;;  %v6384_v51 = vrot.slane %v6383_v29, 2  ;;  %v1782_v17 = vadd.f32 %v1687_v8, %v1570_v63  ;;  %v6393_v31 = vld [vmem:[#allocation32_spill] sm:$0xff] }
 0x164   : > { %v6386_v7 = vrot.slane %v6385_v62, 2  ;;  %v6388_v59 = vrot.slane %v6387_v20, 2  ;;  %v940_v15 = vmul.f32 %v2818_v13, %v3103_v41  ;;  %2745 = vrcp.f32 %v2345_v24  ;;  %v2742_v24 = vpop.eup %2741 }
 0x165   : > { %v767_v54 = vsel %vm749_vm1, %v6384_v51, %v6382_v0  ;;  %v2299_v5 = vmul.f32 1.442695, %v2204_v26  ;;  %v1473_v57 = vadd.f32 %v1350_v40, %v1197_v47  ;;  %v6390_v3 = vrot.slane %v6389_v6, 1  ;;  %v6395_v0 = vld [vmem:[#allocation4_spill] sm:$0xff]  ;;  %v6397_v26 = vld [vmem:[#allocation23_spill] sm:$0xff]  ;;  %v6399_v51 = vld [vmem:[#allocation17_spill] sm:$0xff] }
 0x166   : > { %v1938_v61 = vsel %vm749_vm1, %v6388_v59, %v6386_v7  ;;  %v888_v55 = vadd.f32 %v767_v54, %v611_v39  ;;  %v6392_v30 = vrot.slane %v6391_v12, 1  ;;  %v2058_v25 = vadd.f32 %v1933_v22, %v1782_v17  ;;  %v2819_v22 = vld [vmem:[#allocation2 + $0xa8] sm:$0xff]  ;;  %v6405_v12 = vld [vmem:[#allocation33_spill] sm:$0xff] }
 0x167   : > { %v401_v63 = vmul.f32 %v2818_v13, %v3113_v45  ;;  %v6394_v18 = vrot.slane %v6393_v31, 1  ;;  %v6396_v29 = vrot.slane %v6395_v0, 1  ;;  %2747 = vpow2.f32 %v2299_v5  ;;  %v6401_v5 = vld [vmem:[#allocation24_spill] sm:$0xff]  ;;  %v6407_v31 = vld [vmem:[#allocation27_spill] sm:$0xff] }
 0x168   : > { %v1105_v9 = vsel %vm504_vm2, %v6392_v30, %v6390_v3  ;;  %v988_v8 = vadd.f32 %v940_v15, %v888_v55  ;;  %v1573_v40 = vadd.f32 %v1525_v43, %v1473_v57  ;;  %v6398_v47 = vrot.slane %v6397_v26, 2  ;;  %v2744_v55 = vpop.eup %2743  ;;  %v6403_v57 = vld [vmem:[#allocation18_spill] sm:$0xff] }
 0x169   : > { %v519_v39 = vsel %vm504_vm2, %v6396_v29, %v6394_v18  ;;  %v6400_v54 = vrot.slane %v6399_v51, 2  ;;  %v1528_v17 = vmul.f32 %v2819_v22, %v3095_v37  ;;  %v2487_v13 = vmul.f32 %v2742_v24, %v5129_v11  ;;  %v6409_v29 = vld [vmem:[#allocation25_spill] sm:$0xff]  ;;  %v6411_v24 = vld [vmem:[#allocation19_spill] sm:$0xff] }
 0x16a   : > { %v5333_v7 = vadd.f32 %v4995_v38, %v2058_v25  ;;  %v1200_v20 = vadd.f32 %v1105_v9, %v988_v8  ;;  %v614_v59 = vadd.f32 %v519_v39, %v401_v63  ;;  %v1785_v15 = vadd.f32 %v1690_v56, %v1573_v40 }
 0x16b   : > { %v1355_v62 = vsel %vm749_vm1, %v6400_v54, %v6398_v47  ;;  %v6402_v43 = vrot.slane %v6401_v5, 1  ;;  %v6404_v6 = vrot.slane %v6403_v57, 1  ;;  %v6406_v30 = vrot.slane %v6405_v12, 2  ;;  %2537 = vst.msk [vmem:[%s3506_s29 + $0xd9] sm:$0x80] %vm2493_vm3, %v2487_v13  ;;  %v6413_v47 = vld [vmem:[#allocation34_spill] sm:$0xff] }
 0x16c   : > { %v6408_v18 = vrot.slane %v6407_v31, 2  ;;  %v943_v11 = vmul.f32 %v2819_v22, %v3103_v41  ;;  %v2346_v9 = vadd.f32 1.0, %v2744_v55  ;;  %v2161_v25 = vsub.f32 0.0, %v5333_v7  ;;  %v6415_v54 = vld [vmem:[#allocation28_spill] sm:$0xff] }
 0x16d   : > { %v1693_v3 = vsel %vm504_vm2, %v6404_v6, %v6402_v43  ;;  %v1476_v56 = vadd.f32 %v1355_v62, %v1200_v20  ;;  %v2061_v63 = vadd.f32 %v1938_v61, %v1785_v15  ;;  %v6410_v39 = vrot.slane %v6409_v29, 2  ;;  %v6417_v20 = vld [vmem:[#allocation35_spill] sm:$0xff]  ;;  %v6419_v15 = vld [vmem:[#allocation29_spill] sm:$0xff]  ;;  %v6423_v29 = vld [vmem:[#allocation14_spill] sm:$0xff] }
 0x16e   : > { %v772_v0 = vsel %vm749_vm1, %v6408_v18, %v6406_v30  ;;  %v6412_v40 = vrot.slane %v6411_v24, 2  ;;  %v6414_v51 = vrot.slane %v6413_v47, 1  ;;  %v6416_v5 = vrot.slane %v6415_v54, 1  ;;  %v2820_v30 = vld [vmem:[#allocation2 + $0xc8] sm:$0xff]  ;;  %v6427_v24 = vld [vmem:[#allocation30_spill] sm:$0xff] }
 0x16f   : > { %v891_v8 = vadd.f32 %v772_v0, %v614_v59  ;;  %v404_v13 = vmul.f32 %v2819_v22, %v3113_v45  ;;  %2749 = vrcp.f32 %v2346_v9  ;;  %v2213_v55 = vmul.f32 1.442695, %v2161_v25  ;;  %v6421_v18 = vld [vmem:[#allocation44_spill] sm:$0xff] }
 0x170   : > { %v1943_v26 = vsel %vm749_vm1, %v6412_v40, %v6410_v39  ;;  %v1108_v43 = vsel %vm504_vm2, %v6416_v5, %v6414_v51  ;;  %v1576_v57 = vadd.f32 %v1528_v17, %v1476_v56  ;;  %v5361_v61 = vadd.f32 %v4995_v38, %v2061_v63  ;;  %v2746_v56 = vpop.eup %2745  ;;  %v6425_v63 = vld [vmem:[#allocation37_spill] sm:$0xff]  ;;  %v6431_v5 = vld [vmem:[#allocation39_spill] sm:$0xff] }
 0x171   : > { %v991_v62 = vadd.f32 %v943_v11, %v891_v8  ;;  %v6418_v59 = vrot.slane %v6417_v20, 2  ;;  %v6420_v6 = vrot.slane %v6419_v15, 2  ;;  %v1531_v31 = vmul.f32 %v2820_v30, %v3095_v37  ;;  %v6429_v51 = vld [vmem:[#allocation45_spill] sm:$0xff] }
 0x172   : > { %v6422_v0 = vrot.slane %v6421_v18, 1  ;;  %v6424_v22 = vrot.slane %v6423_v29, 1  ;;  %2751 = vpow2.f32 %v2213_v55  ;;  %v1788_v17 = vadd.f32 %v1693_v3, %v1576_v57 }
 0x173   : > { %v1360_v12 = vsel %vm749_vm1, %v6420_v6, %v6418_v59  ;;  %v1203_v11 = vadd.f32 %v1108_v43, %v991_v62  ;;  %v2164_v8 = vsub.f32 0.0, %v5361_v61  ;;  %v6426_v39 = vrot.slane %v6425_v63, 1  ;;  %v2748_v62 = vpop.eup %2747  ;;  %v6433_v6 = vld [vmem:[#allocation36_spill] sm:$0xff] }
 0x174   : > { %v522_v9 = vsel %vm504_vm2, %v6424_v22, %v6422_v0  ;;  %v6428_v40 = vrot.slane %v6427_v24, 1  ;;  %v6430_v54 = vrot.slane %v6429_v51, 2  ;;  %v6432_v20 = vrot.slane %v6431_v5, 2  ;;  %v6435_v0 = vld [vmem:[#allocation31_spill] sm:$0xff]  ;;  %v6438_v63 = vld [vmem:[#allocation40_spill] sm:$0xff] }
 0x175   : > { %v617_v25 = vadd.f32 %v522_v9, %v404_v13  ;;  %v946_v3 = vmul.f32 %v2820_v30, %v3103_v41  ;;  %v2489_v43 = vmul.f32 %v2746_v56, %v5186_v21  ;;  %v2064_v13 = vadd.f32 %v1943_v26, %v1788_v17  ;;  %v6442_v21 = vld [vmem:[#allocation41_spill] sm:$0xff]  ;;  %v6444_v5 = vld [vmem:[#allocation55_spill] sm:$0xff] }
 0x176   : > { %v1696_v47 = vsel %vm504_vm2, %v6428_v40, %v6426_v39  ;;  %v777_v59 = vsel %vm749_vm1, %v6432_v20, %v6430_v54  ;;  %v1479_v55 = vadd.f32 %v1360_v12, %v1203_v11  ;;  %v2219_v15 = vmul.f32 1.442695, %v2164_v8  ;;  %v6440_v40 = vld [vmem:[#allocation46_spill] sm:$0xff] }
 0x177   : > { %v894_v57 = vadd.f32 %v777_v59, %v617_v25  ;;  %v6434_v18 = vrot.slane %v6433_v6, 2  ;;  %v6436_v29 = vrot.slane %v6435_v0, 2  ;;  %v6437_v9 = vrot.slane %v3866_v60, 1  ;;  %2539 = vst.msk [vmem:[%s3506_s29 + $0xe9] sm:$0x7f] %vm2496_vm4, %v2489_v43  ;;  %v2821_v60 = vld [vmem:[#allocation2 + $0xe8] sm:$0xff] }
 0x178   : > { %v6439_v39 = vrot.slane %v6438_v63, 1  ;;  %v6441_v51 = vrot.slane %v6440_v40, 2  ;;  %v6443_v26 = vrot.slane %v6442_v21, 2  ;;  %v2348_v17 = vadd.f32 1.0, %v2748_v62  ;;  %v6446_v59 = vld [vmem:[#allocation26_spill] sm:$0xff]  ;;  %v6448_v0 = vld [vmem:[#allocation48_spill] sm:$0xff] }
 0x179   : > { %v1948_v22 = vsel %vm749_vm1, %v6436_v29, %v6434_v18  ;;  %v5405_v11 = vadd.f32 %v4995_v38, %v2064_v13  ;;  %v1579_v25 = vadd.f32 %v1531_v31, %v1479_v55  ;;  %v994_v56 = vadd.f32 %v946_v3, %v894_v57  ;;  %v6450_v3 = vld [vmem:[#allocation42_spill] sm:$0xff]  ;;  %v6456_v40 = vld [vmem:[#allocation56_spill] sm:$0xff] }
 0x17a   : > { %v1111_v24 = vsel %vm504_vm2, %v6439_v39, %v6437_v9  ;;  %v1365_v12 = vsel %vm749_vm1, %v6443_v26, %v6441_v51  ;;  %2753 = vpow2.f32 %v2219_v15  ;;  %v1534_v8 = vmul.f32 %v2821_v60, %v3095_v37  ;;  %v6452_v15 = vld [vmem:[#allocation47_spill] sm:$0xff]  ;;  %v6458_v21 = vld [vmem:[#allocation50_spill] sm:$0xff] }
 0x17b   : > { %v407_v54 = vmul.f32 %v2820_v30, %v3113_v45  ;;  %v6445_v20 = vrot.slane %v6444_v5, 1  ;;  %v6447_v6 = vrot.slane %v6446_v59, 1  ;;  %2755 = vrcp.f32 %v2348_v17  ;;  %v6454_v30 = vld [vmem:[#allocation43_spill] sm:$0xff] }
 0x17c   : > { %v2167_v43 = vsub.f32 0.0, %v5405_v11  ;;  %v1791_v62 = vadd.f32 %v1696_v47, %v1579_v25  ;;  %v1206_v13 = vadd.f32 %v1111_v24, %v994_v56  ;;  %v6449_v31 = vrot.slane %v6448_v0, 1  ;;  %v2750_v24 = vpop.eup %2749 }
 0x17d   : > { %v525_v18 = vsel %vm504_vm2, %v6447_v6, %v6445_v20  ;;  %v6451_v55 = vrot.slane %v6450_v3, 1  ;;  %v6453_v29 = vrot.slane %v6452_v15, 2  ;;  %v6455_v9 = vrot.slane %v6454_v30, 2  ;;  %v6460_v6 = vld [vmem:[#allocation57_spill] sm:$0xff] }
 0x17e   : > { %v620_v39 = vadd.f32 %v525_v18, %v407_v54  ;;  %v6457_v51 = vrot.slane %v6456_v40, 2  ;;  %v6459_v26 = vrot.slane %v6458_v21, 2  ;;  %v2225_v17 = vmul.f32 1.442695, %v2167_v43  ;;  %v6470_v40 = vld [vmem:[#allocation52_spill] sm:$0xff] }
 0x17f   : > { %v1699_v57 = vsel %vm504_vm2, %v6451_v55, %v6449_v31  ;;  %v1953_v63 = vsel %vm749_vm1, %v6455_v9, %v6453_v29  ;;  %v2067_v25 = vadd.f32 %v1948_v22, %v1791_v62  ;;  %v1482_v56 = vadd.f32 %v1365_v12, %v1206_v13  ;;  %v6462_v31 = vld [vmem:[#allocation51_spill] sm:$0xff]  ;;  %v2752_v55 = vpop.eup %2751  ;;  %v6466_v62 = vld [vmem:[#allocation38_spill] sm:$0xff] }
 0x180   : > { %v782_v47 = vsel %vm749_vm1, %v6459_v26, %v6457_v51  ;;  %v949_v5 = vmul.f32 %v2821_v60, %v3103_v41  ;;  %v2490_v20 = vmul.f32 %v2750_v24, %v5226_v46  ;;  %v6461_v0 = vrot.slane %v6460_v6, 1  ;;  %v6464_v12 = vld [vmem:[#allocation67_spill] sm:$0xff]  ;;  %v6468_v9 = vld [vmem:[#allocation58_spill] sm:$0xff] }
 0x181   : > { %v897_v59 = vadd.f32 %v782_v47, %v620_v39  ;;  %v6463_v54 = vrot.slane %v6462_v31, 1  ;;  %v410_v3 = vmul.f32 %v2821_v60, %v3113_v45  ;;  %2757 = vpow2.f32 %v2225_v17  ;;  %v2822_v47 = vld [vmem:[#allocation2 + $0x108] sm:$0xff] }
 0x182   : > { %v5439_v15 = vadd.f32 %v4995_v38, %v2067_v25  ;;  %v1582_v22 = vadd.f32 %v1534_v8, %v1482_v56  ;;  %v6465_v43 = vrot.slane %v6464_v12, 1  ;;  %v6467_v13 = vrot.slane %v6466_v62, 1  ;;  %2540 = vst.msk [vmem:[%s3506_s29 + $0xe9] sm:$0x80] %vm2493_vm3, %v2490_v20  ;;  %v6472_v17 = vld [vmem:[#allocation68_spill] sm:$0xff]  ;;  %v6474_v56 = vld [vmem:[#allocation62_spill] sm:$0xff] }
 0x183   : > { %v1114_v18 = vsel %vm504_vm2, %v6463_v54, %v6461_v0  ;;  %v2305_v29 = vadd.f32 1.0, %v2752_v55  ;;  %v997_v30 = vadd.f32 %v949_v5, %v897_v59  ;;  %v6469_v39 = vrot.slane %v6468_v9, 2  ;;  %v6478_v12 = vld [vmem:[#allocation53_spill] sm:$0xff] }
 0x184   : > { %v528_v46 = vsel %vm504_vm2, %v6467_v13, %v6465_v43  ;;  %v6471_v60 = vrot.slane %v6470_v40, 2  ;;  %v2170_v26 = vsub.f32 0.0, %v5439_v15  ;;  %v1794_v8 = vadd.f32 %v1699_v57, %v1582_v22  ;;  %v6480_v43 = vld [vmem:[#allocation69_spill] sm:$0xff]  ;;  %v6482_v13 = vld [vmem:[#allocation63_spill] sm:$0xff] }
 0x185   : > { %v623_v21 = vadd.f32 %v528_v46, %v410_v3  ;;  %v1537_v24 = vmul.f32 %v2822_v47, %v3095_v37  ;;  %v6473_v25 = vrot.slane %v6472_v17, 2  ;;  %v6475_v6 = vrot.slane %v6474_v56, 2  ;;  %v6476_v3 = vld [vmem:[#allocation60_spill] sm:$0xff]  ;;  %v6488_v56 = vld [vmem:[#allocation79_spill] sm:$0xff] }
 0x186   : > { %v1370_v51 = vsel %vm749_vm1, %v6471_v60, %v6469_v39  ;;  %2759 = vrcp.f32 %v2305_v29  ;;  %v1209_v5 = vadd.f32 %v1114_v18, %v997_v30  ;;  %v952_v0 = vmul.f32 %v2822_v47, %v3103_v41  ;;  %v2754_v39 = vpop.eup %2753  ;;  %v6484_v30 = vld [vmem:[#allocation70_spill] sm:$0xff]  ;;  %v6486_v60 = vld [vmem:[#allocation64_spill] sm:$0xff] }
 0x187   : > { %v787_v20 = vsel %vm749_vm1, %v6475_v6, %v6473_v25  ;;  %v2231_v31 = vmul.f32 1.442695, %v2170_v26  ;;  %v2070_v54 = vadd.f32 %v1953_v63, %v1794_v8  ;;  %v6477_v55 = vrot.slane %v6476_v3, 1  ;;  %v2756_v8 = vpop.eup %2755 }
 0x188   : > { %v900_v59 = vadd.f32 %v787_v20, %v623_v21  ;;  %v6479_v57 = vrot.slane %v6478_v12, 1  ;;  %v6481_v62 = vrot.slane %v6480_v43, 1  ;;  %v6483_v46 = vrot.slane %v6482_v13, 1  ;;  %v6490_v20 = vld [vmem:[#allocation49_spill] sm:$0xff]  ;;  %v2823_v12 = vld [vmem:[#allocation2 + $0x128] sm:$0xff]  ;;  %v6494_v43 = vld [vmem:[#allocation74_spill] sm:$0xff] }
 0x189   : > { %v1485_v29 = vadd.f32 %v1370_v51, %v1209_v5  ;;  %v6485_v40 = vrot.slane %v6484_v30, 2  ;;  %v6487_v21 = vrot.slane %v6486_v60, 2  ;;  %v413_v26 = vmul.f32 %v2822_v47, %v3113_v45 }
 0x18a   : > { %v1702_v22 = vsel %vm504_vm2, %v6479_v57, %v6477_v55  ;;  %v1117_v9 = vsel %vm504_vm2, %v6483_v46, %v6481_v62  ;;  %v1000_v18 = vadd.f32 %v952_v0, %v900_v59  ;;  %v2308_v17 = vadd.f32 1.0, %v2754_v39  ;;  %v6492_v57 = vld [vmem:[#allocation80_spill] sm:$0xff] }
 0x18b   : > { %v1375_v63 = vsel %vm749_vm1, %v6487_v21, %v6485_v40  ;;  %2761 = vpow2.f32 %v2231_v31  ;;  %v5478_v25 = vadd.f32 %v4995_v38, %v2070_v54  ;;  %v6489_v6 = vrot.slane %v6488_v56, 1  ;;  %v6498_v40 = vld [vmem:[#allocation54_spill] sm:$0xff] }
 0x18c   : > { %v6491_v51 = vrot.slane %v6490_v20, 1  ;;  %v2492_v59 = vmul.f32 %v2756_v8, %v5282_v44  ;;  %v1585_v0 = vadd.f32 %v1537_v24, %v1485_v29  ;;  %v1212_v3 = vadd.f32 %v1117_v9, %v1000_v18  ;;  %v2758_v9 = vpop.eup %2757  ;;  %v6496_v18 = vld [vmem:[#allocation59_spill] sm:$0xff]  ;;  %v6504_v20 = vld [vmem:[#allocation72_spill] sm:$0xff] }
 0x18d   : > { %2763 = vrcp.f32 %v2308_v17  ;;  %v2173_v47 = vsub.f32 0.0, %v5478_v25  ;;  %v1540_v31 = vmul.f32 %v2823_v12, %v3095_v37  ;;  %v6493_v54 = vrot.slane %v6492_v57, 2  ;;  %v6502_v17 = vld [vmem:[#allocation65_spill] sm:$0xff] }
 0x18e   : > { %v531_v5 = vsel %vm504_vm2, %v6491_v51, %v6489_v6  ;;  %v6495_v62 = vrot.slane %v6494_v43, 2  ;;  %2542 = vst.msk [vmem:[%s3506_s29 + $0xf9] sm:$0x7f] %vm2496_vm4, %v2492_v59  ;;  %v1797_v46 = vadd.f32 %v1702_v22, %v1585_v0  ;;  %v1488_v39 = vadd.f32 %v1375_v63, %v1212_v3  ;;  %v6506_v63 = vld [vmem:[#allocation66_spill] sm:$0xff] }
 0x18f   : > { %v626_v55 = vadd.f32 %v531_v5, %v413_v26  ;;  %v955_v24 = vmul.f32 %v2823_v12, %v3103_v41  ;;  %v2237_v29 = vmul.f32 1.442695, %v2173_v47  ;;  %v6497_v30 = vrot.slane %v6496_v18, 2  ;;  %v6500_v26 = vld [vmem:[#allocation71_spill] sm:$0xff]  ;;  %v6508_v47 = vld [vmem:[#allocation81_spill] sm:$0xff] }
 0x190   : > { %v792_v13 = vsel %vm749_vm1, %v6495_v62, %v6493_v54  ;;  %v6499_v60 = vrot.slane %v6498_v40, 2  ;;  %v6501_v8 = vrot.slane %v6500_v26, 1  ;;  %v6503_v56 = vrot.slane %v6502_v17, 1  ;;  %v6510_v54 = vld [vmem:[#allocation75_spill] sm:$0xff]  ;;  %v6514_v40 = vld [vmem:[#allocation61_spill] sm:$0xff]  ;;  %v2824_v17 = vld [vmem:[#allocation2 + $0x148] sm:$0xff] }
 0x191   : > { %v903_v44 = vadd.f32 %v792_v13, %v626_v55  ;;  %v6505_v22 = vrot.slane %v6504_v20, 2  ;;  %v6507_v51 = vrot.slane %v6506_v63, 2  ;;  %v2311_v59 = vadd.f32 1.0, %v2758_v9  ;;  %v6512_v18 = vld [vmem:[#allocation91_spill] sm:$0xff]  ;;  %v2760_v9 = vpop.eup %2759 }
 0x192   : > { %v1958_v21 = vsel %vm749_vm1, %v6499_v60, %v6497_v30  ;;  %v1705_v6 = vsel %vm504_vm2, %v6503_v56, %v6501_v8  ;;  %v1588_v3 = vadd.f32 %v1540_v31, %v1488_v39  ;;  %2765 = vpow2.f32 %v2237_v29 }
 0x193   : > { %v1963_v5 = vsel %vm749_vm1, %v6507_v51, %v6505_v22  ;;  %v2073_v0 = vadd.f32 %v1958_v21, %v1797_v46  ;;  %v1003_v55 = vadd.f32 %v955_v24, %v903_v44  ;;  %v6509_v57 = vrot.slane %v6508_v47, 1  ;;  %v6516_v24 = vld [vmem:[#allocation82_spill] sm:$0xff]  ;;  %v6518_v21 = vld [vmem:[#allocation76_spill] sm:$0xff]  ;;  %v6524_v47 = vld [vmem:[#allocation83_spill] sm:$0xff] }
 0x194   : > { %v6511_v43 = vrot.slane %v6510_v54, 1  ;;  %v416_v13 = vmul.f32 %v2823_v12, %v3113_v45  ;;  %v6513_v30 = vrot.slane %v6512_v18, 1  ;;  %v6515_v60 = vrot.slane %v6514_v40, 1  ;;  %v6526_v54 = vld [vmem:[#allocation77_spill] sm:$0xff] }
 0x195   : > { %2767 = vrcp.f32 %v2311_v59  ;;  %v5523_v31 = vadd.f32 %v4995_v38, %v2073_v0  ;;  %v1800_v46 = vadd.f32 %v1705_v6, %v1588_v3  ;;  %v2449_v44 = vmul.f32 %v2760_v9, %v5333_v7  ;;  %v6520_v59 = vld [vmem:[#allocation92_spill] sm:$0xff]  ;;  %v6522_v6 = vld [vmem:[#allocation86_spill] sm:$0xff] }
 0x196   : > { %v1120_v62 = vsel %vm504_vm2, %v6511_v43, %v6509_v57  ;;  %v534_v26 = vsel %vm504_vm2, %v6515_v60, %v6513_v30  ;;  %v6517_v29 = vrot.slane %v6516_v24, 2  ;;  %v6519_v12 = vrot.slane %v6518_v21, 2 }
 0x197   : > { %v1215_v39 = vadd.f32 %v1120_v62, %v1003_v55  ;;  %v1543_v56 = vmul.f32 %v2824_v17, %v3095_v37  ;;  %v629_v20 = vadd.f32 %v534_v26, %v416_v13  ;;  %v2176_v22 = vsub.f32 0.0, %v5523_v31  ;;  %v2762_v55 = vpop.eup %2761  ;;  %2499 = vst.msk [vmem:[%s3506_s29 + $0x11] sm:$0xff] %vm171_vm0, %v2449_v44  ;;  %v6530_v44 = vld [vmem:[#allocation87_spill] sm:$0xff] }
 0x198   : > { %v1380_v8 = vsel %vm749_vm1, %v6519_v12, %v6517_v29  ;;  %v2076_v63 = vadd.f32 %v1963_v5, %v1800_v46  ;;  %v6521_v0 = vrot.slane %v6520_v59, 2  ;;  %v6523_v3 = vrot.slane %v6522_v6, 2  ;;  %v2764_v26 = vpop.eup %2763  ;;  %v6528_v46 = vld [vmem:[#allocation93_spill] sm:$0xff]  ;;  %v6532_v12 = vld [vmem:[#allocation103_spill] sm:$0xff] }
 0x199   : > { %v1491_v51 = vadd.f32 %v1380_v8, %v1215_v39  ;;  %v6525_v57 = vrot.slane %v6524_v47, 1  ;;  %v6527_v43 = vrot.slane %v6526_v54, 1  ;;  %v958_v18 = vmul.f32 %v2824_v17, %v3103_v41 }
 0x19a   : > { %v797_v7 = vsel %vm749_vm1, %v6523_v3, %v6521_v0  ;;  %v2314_v5 = vadd.f32 1.0, %v2762_v55  ;;  %v2243_v30 = vmul.f32 1.442695, %v2176_v22  ;;  %v5547_v40 = vadd.f32 %v4995_v38, %v2076_v63  ;;  %v6536_v0 = vld [vmem:[#allocation84_spill] sm:$0xff]  ;;  %v6538_v3 = vld [vmem:[#allocation78_spill] sm:$0xff] }
 0x19b   : > { %v1708_v62 = vsel %vm504_vm2, %v6527_v43, %v6525_v57  ;;  %v906_v13 = vadd.f32 %v797_v7, %v629_v20  ;;  %v1591_v60 = vadd.f32 %v1543_v56, %v1491_v51  ;;  %v6529_v39 = vrot.slane %v6528_v46, 1  ;;  %v6534_v20 = vld [vmem:[#allocation73_spill] sm:$0xff]  ;;  %v6540_v43 = vld [vmem:[#allocation94_spill] sm:$0xff] }
 0x19c   : > { %v6531_v24 = vrot.slane %v6530_v44, 1  ;;  %v419_v21 = vmul.f32 %v2824_v17, %v3113_v45  ;;  %v6533_v8 = vrot.slane %v6532_v12, 1  ;;  %v6535_v59 = vrot.slane %v6534_v20, 1 }
 0x19d   : > { %v1006_v9 = vadd.f32 %v958_v18, %v906_v13  ;;  %v2452_v63 = vmul.f32 %v2764_v26, %v5361_v61  ;;  %2769 = vrcp.f32 %v2314_v5  ;;  %v2179_v56 = vsub.f32 0.0, %v5547_v40  ;;  %v6542_v61 = vld [vmem:[#allocation88_spill] sm:$0xff] }
 0x19e   : > { %v1123_v29 = vsel %vm504_vm2, %v6531_v24, %v6529_v39  ;;  %v537_v22 = vsel %vm504_vm2, %v6535_v59, %v6533_v8  ;;  %v1803_v51 = vadd.f32 %v1708_v62, %v1591_v60  ;;  %2771 = vpow2.f32 %v2243_v30  ;;  %v6544_v62 = vld [vmem:[#allocation104_spill] sm:$0xff]  ;;  %v6546_v60 = vld [vmem:[#allocation98_spill] sm:$0xff]  ;;  %v2766_v39 = vpop.eup %2765  ;;  %v6548_v59 = vld [vmem:[#allocation95_spill] sm:$0xff] }
 0x19f   : > { %v6537_v6 = vrot.slane %v6536_v0, 2  ;;  %v6539_v7 = vrot.slane %v6538_v3, 2  ;;  %v1218_v17 = vadd.f32 %v1123_v29, %v1006_v9  ;;  %v632_v47 = vadd.f32 %v537_v22, %v419_v21  ;;  %2502 = vst.msk [vmem:[%s3506_s29 + $0x21] sm:$0xff] %vm171_vm0, %v2452_v63  ;;  %v2825_v9 = vld [vmem:[#allocation2 + $0x168] sm:$0xff]  ;;  %v2768_v12 = vpop.eup %2767  ;;  %v6550_v63 = vld [vmem:[#allocation89_spill] sm:$0xff] }
 0x1a0   : > { %v2249_v57 = vmul.f32 1.442695, %v2179_v56  ;;  %v6541_v13 = vrot.slane %v6540_v43, 2  ;;  %v6543_v18 = vrot.slane %v6542_v61, 2  ;;  %v6545_v30 = vrot.slane %v6544_v62, 2 }
 0x1a1   : > { %v1968_v55 = vsel %vm749_vm1, %v6539_v7, %v6537_v6  ;;  %v6547_v26 = vrot.slane %v6546_v60, 2  ;;  %v1546_v24 = vmul.f32 %v2825_v9, %v3095_v37  ;;  %v961_v21 = vmul.f32 %v2825_v9, %v3103_v41  ;;  %v6552_v7 = vld [vmem:[#allocation105_spill] sm:$0xff] }
 0x1a2   : > { %v2079_v54 = vadd.f32 %v1968_v55, %v1803_v51  ;;  %v1385_v5 = vsel %vm749_vm1, %v6543_v18, %v6541_v13  ;;  %v2317_v8 = vadd.f32 1.0, %v2766_v39  ;;  %2773 = vpow2.f32 %v2249_v57  ;;  %v6556_v13 = vld [vmem:[#allocation115_spill] sm:$0xff]  ;;  %v6558_v18 = vld [vmem:[#allocation85_spill] sm:$0xff] }
 0x1a3   : > { %v802_v46 = vsel %vm749_vm1, %v6547_v26, %v6545_v30  ;;  %v1494_v44 = vadd.f32 %v1385_v5, %v1218_v17  ;;  %v6549_v22 = vrot.slane %v6548_v59, 1  ;;  %v6551_v56 = vrot.slane %v6550_v63, 1  ;;  %v6554_v17 = vld [vmem:[#allocation99_spill] sm:$0xff]  ;;  %v6560_v30 = vld [vmem:[#allocation96_spill] sm:$0xff]  ;;  %v6562_v26 = vld [vmem:[#allocation90_spill] sm:$0xff] }
 0x1a4   : > { %v909_v29 = vadd.f32 %v802_v46, %v632_v47  ;;  %v5582_v20 = vadd.f32 %v4995_v38, %v2079_v54  ;;  %v2455_v0 = vmul.f32 %v2768_v12, %v5405_v11  ;;  %v6553_v55 = vrot.slane %v6552_v7, 1  ;;  %v2826_v59 = vld [vmem:[#allocation2 + $0x188] sm:$0xff]  ;;  %v6568_v63 = vld [vmem:[#allocation107_spill] sm:$0xff] }
 0x1a5   : > { %v1711_v51 = vsel %vm504_vm2, %v6551_v56, %v6549_v22  ;;  %v1594_v6 = vadd.f32 %v1546_v24, %v1494_v44  ;;  %v6555_v47 = vrot.slane %v6554_v17, 1  ;;  %2775 = vrcp.f32 %v2317_v8  ;;  %v6564_v24 = vld [vmem:[#allocation106_spill] sm:$0xff] }
 0x1a6   : > { %v1009_v3 = vadd.f32 %v961_v21, %v909_v29  ;;  %v2182_v57 = vsub.f32 0.0, %v5582_v20  ;;  %v422_v54 = vmul.f32 %v2825_v9, %v3113_v45  ;;  %v6557_v61 = vrot.slane %v6556_v13, 1  ;;  %2505 = vst.msk [vmem:[%s3506_s29 + $0x31] sm:$0xff] %vm171_vm0, %v2455_v0  ;;  %v6566_v21 = vld [vmem:[#allocation100_spill] sm:$0xff] }
 0x1a7   : > { %v1126_v43 = vsel %vm504_vm2, %v6555_v47, %v6553_v55  ;;  %v6559_v5 = vrot.slane %v6558_v18, 1  ;;  %v1806_v11 = vadd.f32 %v1711_v51, %v1594_v6  ;;  %v6561_v60 = vrot.slane %v6560_v30, 2  ;;  %v6570_v51 = vld [vmem:[#allocation101_spill] sm:$0xff]  ;;  %v6576_v18 = vld [vmem:[#allocation116_spill] sm:$0xff] }
 0x1a8   : > { %v6563_v46 = vrot.slane %v6562_v26, 2  ;;  %v1221_v44 = vadd.f32 %v1126_v43, %v1009_v3  ;;  %v6565_v29 = vrot.slane %v6564_v24, 2  ;;  %v6567_v9 = vrot.slane %v6566_v21, 2  ;;  %v6572_v3 = vld [vmem:[#allocation108_spill] sm:$0xff]  ;;  %v6574_v43 = vld [vmem:[#allocation102_spill] sm:$0xff]  ;;  %v2770_v26 = vpop.eup %2769 }
 0x1a9   : > { %v540_v62 = vsel %vm504_vm2, %v6559_v5, %v6557_v61  ;;  %v2255_v8 = vmul.f32 1.442695, %v2182_v57  ;;  %v1549_v22 = vmul.f32 %v2826_v59, %v3095_v37  ;;  %v6569_v56 = vrot.slane %v6568_v63, 1  ;;  %v6578_v5 = vld [vmem:[#allocation110_spill] sm:$0xff] }
 0x1aa   : > { %v1973_v39 = vsel %vm749_vm1, %v6563_v46, %v6561_v60  ;;  %v1390_v12 = vsel %vm749_vm1, %v6567_v9, %v6565_v29  ;;  %v6571_v0 = vrot.slane %v6570_v51, 1  ;;  %v635_v7 = vadd.f32 %v540_v62, %v422_v54  ;;  %v6580_v29 = vld [vmem:[#allocation127_spill] sm:$0xff]  ;;  %v6582_v9 = vld [vmem:[#allocation97_spill] sm:$0xff] }
 0x1ab   : > { %v2082_v55 = vadd.f32 %v1973_v39, %v1806_v11  ;;  %v1497_v17 = vadd.f32 %v1390_v12, %v1221_v44  ;;  %v6573_v47 = vrot.slane %v6572_v3, 2  ;;  %v6575_v13 = vrot.slane %v6574_v43, 2  ;;  %v2772_v11 = vpop.eup %2771  ;;  %v6584_v51 = vld [vmem:[#allocation117_spill] sm:$0xff]  ;;  %v6590_v43 = vld [vmem:[#allocation112_spill] sm:$0xff] }
 0x1ac   : > { %v1714_v6 = vsel %vm504_vm2, %v6571_v0, %v6569_v56  ;;  %v6577_v57 = vrot.slane %v6576_v18, 2  ;;  %v6579_v30 = vrot.slane %v6578_v5, 2  ;;  %2777 = vpow2.f32 %v2255_v8 }
 0x1ad   : > { %v1978_v61 = vsel %vm749_vm1, %v6575_v13, %v6573_v47  ;;  %v964_v54 = vmul.f32 %v2826_v59, %v3103_v41  ;;  %v425_v62 = vmul.f32 %v2826_v59, %v3113_v45  ;;  %v2458_v39 = vmul.f32 %v2770_v26, %v5439_v15 }
 0x1ae   : > { %v807_v60 = vsel %vm749_vm1, %v6579_v30, %v6577_v57  ;;  %v5634_v44 = vadd.f32 %v4995_v38, %v2082_v55  ;;  %v1597_v24 = vadd.f32 %v1549_v22, %v1497_v17  ;;  %v6581_v21 = vrot.slane %v6580_v29, 1  ;;  %v6588_v55 = vld [vmem:[#allocation118_spill] sm:$0xff]  ;;  %v6592_v57 = vld [vmem:[#allocation128_spill] sm:$0xff] }
 0x1af   : > { %v912_v46 = vadd.f32 %v807_v60, %v635_v7  ;;  %v6583_v12 = vrot.slane %v6582_v9, 1  ;;  %v2320_v56 = vadd.f32 1.0, %v2772_v11  ;;  %v6585_v0 = vrot.slane %v6584_v51, 1  ;;  %v6586_v7 = vld [vmem:[#allocation111_spill] sm:$0xff]  ;;  %2508 = vst.msk [vmem:[%s3506_s29 + $0x41] sm:$0xff] %vm171_vm0, %v2458_v39  ;;  %v6594_v30 = vld [vmem:[#allocation122_spill] sm:$0xff] }
 0x1b0   : > { %v6587_v3 = vrot.slane %v6586_v7, 1  ;;  %v2185_v15 = vsub.f32 0.0, %v5634_v44  ;;  %v1809_v22 = vadd.f32 %v1714_v6, %v1597_v24  ;;  %v6589_v17 = vrot.slane %v6588_v55, 2  ;;  %v2827_v11 = vld [vmem:[#allocation2 + $0x1a8] sm:$0xff] }
 0x1b1   : > { %v543_v63 = vsel %vm504_vm2, %v6583_v12, %v6581_v21  ;;  %v1012_v8 = vadd.f32 %v964_v54, %v912_v46  ;;  %v6591_v13 = vrot.slane %v6590_v43, 2  ;;  %v6593_v5 = vrot.slane %v6592_v57, 2  ;;  %v2774_v46 = vpop.eup %2773 }
 0x1b2   : > { %v1129_v59 = vsel %vm504_vm2, %v6587_v3, %v6585_v0  ;;  %v638_v47 = vadd.f32 %v543_v63, %v425_v62  ;;  %v6595_v60 = vrot.slane %v6594_v30, 2  ;;  %2779 = vrcp.f32 %v2320_v56  ;;  %v2776_v9 = vpop.eup %2775  ;;  %v6596_v63 = vld [vmem:[#allocation119_spill] sm:$0xff]  ;;  %v6598_v0 = vld [vmem:[#allocation113_spill] sm:$0xff] }
 0x1b3   : > { %v1395_v18 = vsel %vm749_vm1, %v6591_v13, %v6589_v17  ;;  %v1224_v54 = vadd.f32 %v1129_v59, %v1012_v8  ;;  %v967_v39 = vmul.f32 %v2827_v11, %v3103_v41  ;;  %v2323_v6 = vadd.f32 1.0, %v2774_v46  ;;  %v6601_v59 = vld [vmem:[#allocation123_spill] sm:$0xff] }
 0x1b4   : > { %v812_v26 = vsel %vm749_vm1, %v6595_v60, %v6593_v5  ;;  %v2261_v24 = vmul.f32 1.442695, %v2185_v15  ;;  %v2085_v29 = vadd.f32 %v1978_v61, %v1809_v22  ;;  %v1552_v21 = vmul.f32 %v2827_v11, %v3095_v37  ;;  %v6608_v60 = vld [vmem:[#allocation114_spill] sm:$0xff] }
 0x1b5   : > { %v915_v62 = vadd.f32 %v812_v26, %v638_v47  ;;  %v1500_v12 = vadd.f32 %v1395_v18, %v1224_v54  ;;  %v6597_v51 = vrot.slane %v6596_v63, 1  ;;  %v6599_v7 = vrot.slane %v6598_v0, 1  ;;  %v6604_v18 = vld [vmem:[#allocation109_spill] sm:$0xff] }
 0x1b6   : > { %v6600_v8 = vrot.slane %v4804_v34, 1  ;;  %v6602_v47 = vrot.slane %v6601_v59, 1  ;;  %v2461_v15 = vmul.f32 %v2776_v9, %v5478_v25  ;;  %2781 = vrcp.f32 %v2323_v6  ;;  %v6606_v25 = vld [vmem:[#allocation120_spill] sm:$0xff]  ;;  %v6610_v54 = vld [vmem:[#allocation129_spill] sm:$0xff] }
 0x1b7   : > { %v1717_v3 = vsel %vm504_vm2, %v6599_v7, %v6597_v51  ;;  %v1015_v56 = vadd.f32 %v967_v39, %v915_v62  ;;  %v5673_v61 = vadd.f32 %v4995_v38, %v2085_v29  ;;  %v428_v22 = vmul.f32 %v2827_v11, %v3113_v45  ;;  %v6612_v11 = vld [vmem:[#allocation124_spill] sm:$0xff]  ;;  %v6615_v51 = vld [vmem:[#allocation133_spill] sm:$0xff] }
 0x1b8   : > { %v1132_v55 = vsel %vm504_vm2, %v6602_v47, %v6600_v8  ;;  %2783 = vpow2.f32 %v2261_v24  ;;  %v1600_v17 = vadd.f32 %v1552_v21, %v1500_v12  ;;  %v6603_v13 = vrot.slane %v4912_v2, 1  ;;  %2511 = vst.msk [vmem:[%s3506_s29 + $0x51] sm:$0xff] %vm171_vm0, %v2461_v15  ;;  %v2778_v24 = vpop.eup %2777  ;;  %v2828_v9 = vld [vmem:[#allocation2 + $0x1c8] sm:$0xff] }
 0x1b9   : > { %v1227_v43 = vadd.f32 %v1132_v55, %v1015_v56  ;;  %v6605_v57 = vrot.slane %v6604_v18, 1  ;;  %v2188_v5 = vsub.f32 0.0, %v5673_v61  ;;  %v6607_v30 = vrot.slane %v6606_v25, 2  ;;  %v6621_v18 = vld [vmem:[#allocation131_spill] sm:$0xff] }
 0x1ba   : > { %v6609_v26 = vrot.slane %v6608_v60, 2  ;;  %v6611_v62 = vrot.slane %v6610_v54, 2  ;;  %v6613_v39 = vrot.slane %v6612_v11, 2  ;;  %v1812_v29 = vadd.f32 %v1717_v3, %v1600_v17  ;;  %v6619_v3 = vld [vmem:[#allocation125_spill] sm:$0xff]  ;;  %v6625_v60 = vld [vmem:[#allocation146_spill] sm:$0xff] }
 0x1bb   : > { %v546_v34 = vsel %vm504_vm2, %v6605_v57, %v6603_v13  ;;  %v1555_v12 = vmul.f32 %v2828_v9, %v3095_v37  ;;  %v6614_v63 = vrot.slane %v4916_v19, 2  ;;  %v6616_v0 = vrot.slane %v6615_v51, 2  ;;  %v6623_v19 = vld [vmem:[#allocation126_spill] sm:$0xff]  ;;  %v6633_v51 = vld [vmem:[#allocation139_spill] sm:$0xff] }
 0x1bc   : > { %v1983_v46 = vsel %vm749_vm1, %v6609_v26, %v6607_v30  ;;  %v1400_v2 = vsel %vm749_vm1, %v6613_v39, %v6611_v62  ;;  %v641_v6 = vadd.f32 %v546_v34, %v428_v22  ;;  %v2326_v56 = vadd.f32 1.0, %v2778_v24  ;;  %v6617_v22 = vld [vmem:[#allocation130_spill] sm:$0xff]  ;;  %v2780_v11 = vpop.eup %2779 }
 0x1bd   : > { %v1503_v21 = vadd.f32 %v1400_v2, %v1227_v43  ;;  %v817_v7 = vsel %vm749_vm1, %v6616_v0, %v6614_v63  ;;  %v2267_v8 = vmul.f32 1.442695, %v2188_v5  ;;  %v970_v47 = vmul.f32 %v2828_v9, %v3103_v41 }
 0x1be   : > { %v918_v59 = vadd.f32 %v817_v7, %v641_v6  ;;  %v2088_v55 = vadd.f32 %v1983_v46, %v1812_v29  ;;  %v6618_v13 = vrot.slane %v6617_v22, 1  ;;  %v6620_v17 = vrot.slane %v6619_v3, 1  ;;  %v6627_v46 = vld [vmem:[#allocation121_spill] sm:$0xff]  ;;  %v6629_v6 = vld [vmem:[#allocation138_spill] sm:$0xff]  ;;  %v6635_v7 = vld [vmem:[#allocation135_spill] sm:$0xff] }
 0x1bf   : > { %v1603_v15 = vadd.f32 %v1555_v12, %v1503_v21  ;;  %v6622_v57 = vrot.slane %v6621_v18, 2  ;;  %v6624_v34 = vrot.slane %v6623_v19, 2  ;;  %2785 = vrcp.f32 %v2326_v56  ;;  %v6631_v29 = vld [vmem:[#allocation134_spill] sm:$0xff]  ;;  %v6641_v19 = vld [vmem:[#allocation140_spill] sm:$0xff] }
 0x1c0   : > { %v1720_v43 = vsel %vm504_vm2, %v6620_v17, %v6618_v13  ;;  %v1018_v30 = vadd.f32 %v970_v47, %v918_v59  ;;  %v431_v5 = vmul.f32 %v2828_v9, %v3113_v45  ;;  %v6626_v26 = vrot.slane %v6625_v60, 1  ;;  %v6637_v13 = vld [vmem:[#allocation148_spill] sm:$0xff]  ;;  %v6639_v17 = vld [vmem:[#allocation142_spill] sm:$0xff]  ;;  %v2782_v18 = vpop.eup %2781 }
 0x1c1   : > { %v1988_v25 = vsel %vm749_vm1, %v6624_v34, %v6622_v57  ;;  %v6628_v54 = vrot.slane %v6627_v46, 1  ;;  %2787 = vpow2.f32 %v2267_v8  ;;  %v5718_v39 = vadd.f32 %v4995_v38, %v2088_v55 }
 0x1c2   : > { %v1815_v2 = vadd.f32 %v1720_v43, %v1603_v15  ;;  %v6630_v24 = vrot.slane %v6629_v6, 1  ;;  %v6632_v21 = vrot.slane %v6631_v29, 1  ;;  %v2464_v9 = vmul.f32 %v2780_v11, %v5523_v31  ;;  %v2829_v15 = vld [vmem:[#allocation2 + $0x1e8] sm:$0xff]  ;;  %v2784_v46 = vpop.eup %2783 }
 0x1c3   : > { %v549_v62 = vsel %vm504_vm2, %v6628_v54, %v6626_v26  ;;  %v6634_v0 = vrot.slane %v6633_v51, 2  ;;  %v6636_v56 = vrot.slane %v6635_v7, 2  ;;  %v2191_v47 = vsub.f32 0.0, %v5718_v39 }
 0x1c4   : > { %v1135_v12 = vsel %vm504_vm2, %v6632_v21, %v6630_v24  ;;  %v644_v8 = vadd.f32 %v549_v62, %v431_v5  ;;  %v2091_v55 = vadd.f32 %v1988_v25, %v1815_v2  ;;  %v1558_v22 = vmul.f32 %v2829_v15, %v3095_v37  ;;  %2514 = vst.msk [vmem:[%s3506_s29 + $0x61] sm:$0xff] %vm171_vm0, %v2464_v9  ;;  %v6645_v2 = vld [vmem:[#allocation141_spill] sm:$0xff] }
 0x1c5   : > { %v1230_v63 = vadd.f32 %v1135_v12, %v1018_v30  ;;  %v1405_v59 = vsel %vm749_vm1, %v6636_v56, %v6634_v0  ;;  %v6638_v3 = vrot.slane %v6637_v13, 2  ;;  %v6640_v43 = vrot.slane %v6639_v17, 2  ;;  %v6643_v30 = vld [vmem:[#allocation136_spill] sm:$0xff]  ;;  %v6647_v24 = vld [vmem:[#allocation137_spill] sm:$0xff] }
 0x1c6   : > { %v6642_v34 = vrot.slane %v6641_v19, 1  ;;  %v6644_v5 = vrot.slane %v6643_v30, 1  ;;  %v973_v26 = vmul.f32 %v2829_v15, %v3103_v41  ;;  %v2467_v54 = vmul.f32 %v2782_v18, %v5547_v40  ;;  %v6656_v17 = vld [vmem:[#allocation144_spill] sm:$0xff] }
 0x1c7   : > { %v822_v31 = vsel %vm749_vm1, %v6640_v43, %v6638_v3  ;;  %v1506_v57 = vadd.f32 %v1405_v59, %v1230_v63  ;;  %v2273_v62 = vmul.f32 1.442695, %v2191_v47  ;;  %v5748_v11 = vadd.f32 %v4995_v38, %v2091_v55  ;;  %v6650_v38 = vld [vmem:[#allocation143_spill] sm:$0xff] }
 0x1c8   : > { %v1723_v25 = vsel %vm504_vm2, %v6644_v5, %v6642_v34  ;;  %v921_v60 = vadd.f32 %v822_v31, %v644_v8  ;;  %v6646_v6 = vrot.slane %v6645_v2, 2  ;;  %v6648_v29 = vrot.slane %v6647_v24, 2  ;;  %2517 = vst.msk [vmem:[%s3506_s29 + $0x71] sm:$0xff] %vm171_vm0, %v2467_v54  ;;  %v6653_v8 = vld [vmem:[#allocation132_spill] sm:$0xff] }
 0x1c9   : > { %v2329_v12 = vadd.f32 1.0, %v2784_v46  ;;  %v1606_v9 = vadd.f32 %v1558_v22, %v1506_v57  ;;  %v434_v51 = vmul.f32 %v2829_v15, %v3113_v45  ;;  %2789 = vpow2.f32 %v2273_v62  ;;  %v2786_v19 = vpop.eup %2785  ;;  %v2830_v5 = vld [vmem:[#allocation2 + $0x208] sm:$0xff] }
 0x1ca   : > { %v1993_v21 = vsel %vm749_vm1, %v6648_v29, %v6646_v6  ;;  %v1021_v63 = vadd.f32 %v973_v26, %v921_v60  ;;  %v2194_v40 = vsub.f32 0.0, %v5748_v11  ;;  %v6649_v0 = vrot.slane %v5055_v1, 1 }
 0x1cb   : > { %v6651_v7 = vrot.slane %v6650_v38, 1  ;;  %v6652_v59 = vrot.slane %v5154_v27, 1  ;;  %v6654_v47 = vrot.slane %v6653_v8, 1  ;;  %2791 = vrcp.f32 %v2329_v12  ;;  %v2788_v60 = vpop.eup %2787 }
 0x1cc   : > { %v1818_v22 = vadd.f32 %v1723_v25, %v1606_v9  ;;  %v2279_v13 = vmul.f32 1.442695, %v2194_v40  ;;  %v6655_v3 = vrot.slane %v5062_v23, 2  ;;  %v6657_v43 = vrot.slane %v6656_v17, 2  ;;  %v6665_v9 = vld [vmem:[#allocation149_spill] sm:$0xff] }
 0x1cd   : > { %v1138_v56 = vsel %vm504_vm2, %v6651_v7, %v6649_v0  ;;  %v552_v55 = vsel %vm504_vm2, %v6654_v47, %v6652_v59  ;;  %v6658_v31 = vrot.slane %v5161_v32, 2  ;;  %v6659_v18 = vrot.slane %v5103_v14, 2 }
 0x1ce   : > { %v1233_v45 = vadd.f32 %v1138_v56, %v1021_v63  ;;  %v647_v15 = vadd.f32 %v552_v55, %v434_v51  ;;  %v1410_v1 = vsel %vm749_vm1, %v6657_v43, %v6655_v3  ;;  %v976_v57 = vmul.f32 %v3103_v41, %v5000_v4  ;;  %v2831_v41 = vld [vmem:[%s5843_s2] ss:$0 sm:$0xff] }
 0x1cf   : > { %v827_v27 = vsel %vm749_vm1, %v6659_v18, %v6658_v31  ;;  %v2094_v34 = vadd.f32 %v1993_v21, %v1818_v22  ;;  %v1561_v23 = vmul.f32 %v2830_v5, %v3095_v37  ;;  %v2470_v26 = vmul.f32 %v2786_v19, %v5582_v20  ;;  %v6663_v20 = vld [vmem:[#allocation145_spill] sm:$0xff]  ;;  %v6667_v51 = vld [vmem:[#allocation147_spill] sm:$0xff] }
 0x1d0   : > { %v1509_v30 = vadd.f32 %v1410_v1, %v1233_v45  ;;  %v924_v25 = vadd.f32 %v827_v27, %v647_v15  ;;  %2793 = vpow2.f32 %v2279_v13  ;;  %v6660_v32 = vrot.slane %v5169_v48, 1 }
 0x1d1   : > { %v6661_v14 = vrot.slane %v5115_v50, 1  ;;  %v2332_v54 = vadd.f32 1.0, %v2788_v60  ;;  %v2149_v4 = vadd.f32 %v2831_v41, %v2094_v34  ;;  %2520 = vst.msk [vmem:[%s3506_s29 + $0x81] sm:$0xff] %vm171_vm0, %v2470_v26  ;;  %v6662_v6 = vrot.slane %v5088_v58, 1  ;;  %v6669_v58 = vld [vmem:[#allocation150_spill] sm:$0xff] }
 0x1d2   : > { %v1609_v62 = vadd.f32 %v1561_v23, %v1509_v30  ;;  %v1024_v2 = vadd.f32 %v976_v57, %v924_v25  ;;  %v6664_v24 = vrot.slane %v6663_v20, 1  ;;  %v1564_v50 = vmul.f32 %v3095_v37, %v5111_v16 }
 0x1d3   : > { %v1141_v46 = vsel %vm504_vm2, %v6661_v14, %v6660_v32  ;;  %2795 = vrcp.f32 %v2332_v54  ;;  %v2197_v29 = vsub.f32 0.0, %v2149_v4  ;;  %v6666_v63 = vrot.slane %v6665_v9, 2  ;;  %v2790_v16 = vpop.eup %2789 }
 0x1d4   : > { %v1726_v48 = vsel %vm504_vm2, %v6664_v24, %v6662_v6  ;;  %v1236_v12 = vadd.f32 %v1141_v46, %v1024_v2  ;;  %v6668_v40 = vrot.slane %v6667_v51, 2  ;;  %v6670_v38 = vrot.slane %v6669_v58, 2 }
 0x1d5   : > { %v1821_v21 = vadd.f32 %v1726_v48, %v1609_v62  ;;  %v2285_v56 = vmul.f32 1.442695, %v2197_v29  ;;  %v1729_v8 = vsel %vm504_vm2, %v1727_v52, %v1728_v53  ;;  %v2792_v47 = vpop.eup %2791  ;;  %v2335_v55 = vadd.f32 1.0, %v2790_v16 }
 0x1d6   : > { %v1998_v0 = vsel %vm749_vm1, %v6668_v40, %v6666_v63  ;;  %v1415_v7 = vsel %vm749_vm1, %v6670_v38, %v1414_v33  ;;  %v2473_v45 = vmul.f32 %v2792_v47, %v5634_v44  ;;  %v2003_v52 = vsel %vm749_vm1, %v6671_v28, %v2002_v35 }
 0x1d7   : > { %v2097_v59 = vadd.f32 %v1998_v0, %v1821_v21  ;;  %v1512_v37 = vadd.f32 %v1415_v7, %v1236_v12  ;;  %2797 = vpow2.f32 %v2285_v56 }
 0x1d8   : > { %2799 = vrcp.f32 %v2335_v55  ;;  %2523 = vst.msk [vmem:[%s3506_s29 + $0x91] sm:$0xff] %vm171_vm0, %v2473_v45 }
 0x1d9   : > { %v2152_v22 = vadd.f32 %v2831_v41, %v2097_v59  ;;  %v1612_v49 = vadd.f32 %v1564_v50, %v1512_v37 }
 0x1da   : > { %v2794_v13 = vpop.eup %2793 }
 0x1db   : > { %v2200_v33 = vsub.f32 0.0, %v2152_v22  ;;  %v1824_v15 = vadd.f32 %v1729_v8, %v1612_v49  ;;  %v2338_v36 = vadd.f32 1.0, %v2794_v13 }
 0x1dd   : > { %v2291_v53 = vmul.f32 1.442695, %v2200_v33  ;;  %v2100_v3 = vadd.f32 %v2003_v52, %v1824_v15  ;;  %v2796_v17 = vpop.eup %2795  ;;  %2801 = vrcp.f32 %v2338_v36 }
 0x1de   : > { %v2476_v43 = vmul.f32 %v2796_v17, %v5673_v61 }
 0x1df   : > { %v2155_v44 = vadd.f32 %v2831_v41, %v2100_v3  ;;  %2803 = vpow2.f32 %v2291_v53 }
 0x1e0   : > { %2526 = vst.msk [vmem:[%s3506_s29 + $0xa1] sm:$0xff] %vm171_vm0, %v2476_v43 }
 0x1e1   : > { %v2203_v1 = vsub.f32 0.0, %v2155_v44  ;;  %v2798_v31 = vpop.eup %2797 }
 0x1e2   : > { %v2341_v18 = vadd.f32 1.0, %v2798_v31  ;;  %v2800_v10 = vpop.eup %2799 }
 0x1e3   : > { %v2297_v42 = vmul.f32 1.442695, %v2203_v1  ;;  %v2479_v35 = vmul.f32 %v2800_v10, %v5718_v39 }
 0x1e5   : > { %2805 = vpow2.f32 %v2297_v42  ;;  %2529 = vst.msk [vmem:[%s3506_s29 + $0xb1] sm:$0xff] %vm171_vm0, %v2479_v35 }
 0x1e6   : > { %2807 = vrcp.f32 %v2341_v18 }
 0x1e7   : > { %v2802_v27 = vpop.eup %2801 }
 0x1e8   : > { %v2482_v61 = vmul.f32 %v2802_v27, %v5748_v11 }
 0x1e9   : > { %v2804_v57 = vpop.eup %2803 }
 0x1ea   : > { %v2344_v19 = vadd.f32 1.0, %v2804_v57  ;;  %2532 = vst.msk [vmem:[%s3506_s29 + $0xc1] sm:$0xff] %vm171_vm0, %v2482_v61 }
 0x1ec   : > { %2809 = vrcp.f32 %v2344_v19 }
 0x1ef   : > { %v2806_v34 = vpop.eup %2805 }
 0x1f0   : > { %v2808_v30 = vpop.eup %2807  ;;  %v2347_v5 = vadd.f32 1.0, %v2806_v34 }
 0x1f1   : > { %v2485_v23 = vmul.f32 %v2808_v30, %v2149_v4 }
 0x1f2   : > { %2811 = vrcp.f32 %v2347_v5 }
 0x1f3   : > { %2535 = vst.msk [vmem:[%s3506_s29 + $0xd1] sm:$0xff] %vm171_vm0, %v2485_v23 }
 0x1f6   : > { %v2810_v39 = vpop.eup %2809 }
 0x1f7   : > { %v2488_v25 = vmul.f32 %v2810_v39, %v2152_v22 }
 0x1f9   : > { %2538 = vst.msk [vmem:[%s3506_s29 + $0xe1] sm:$0xff] %vm171_vm0, %v2488_v25 }
 0x1fc   : > { %v2812_v60 = vpop.eup %2811 }
 0x1fd   : > { %v2491_v26 = vmul.f32 %v2812_v60, %v2155_v44 }
 0x1ff   : > { %2541 = vst.msk [vmem:[%s3506_s29 + $0xf1] sm:$0xff] %vm171_vm0, %v2491_v26 }
 0x200 PF: > { %s13_s12 = sadd.s32 1, %s2838_s12  }
 0x201   : > { %p10_p4 = scmp.ge.s32.totalorder %s13_s12, 4  }
 0x203   :  { %12 = sbr.rel (!%p10_p4) target bundleno = 1 (0x1), region = 63 }

// kernel: ss2d_block_forward.8
= control target key start
LH: loop header
LB: loop body
LE: loop exit
PB: predicated region body
PF: predicated region fallthrough
CT: control target
= control target key end

     0   :  { %s1864_s21 = smov 0   ;;  %s1866_s22 = smov 0   ;;  %s2251_s0 = inlined_call_operand.vmem [shape: f32[2,256,32], index: 0, kind: input, shape index: {}]   ;;  %s2252_s1 = inlined_call_operand.vmem [shape: f32[2,256,32], index: 1, kind: input, shape index: {}]   ;;  %s2253_s2 = inlined_call_operand.vmem [shape: f32[2,256,16], index: 2, kind: input, shape index: {}]   ;;  %s2254_s3 = inlined_call_operand.vmem [shape: f32[2,256,16], index: 3, kind: input, shape index: {}]   ;;  %s2255_s4 = inlined_call_operand.vmem [shape: f32[16,32], index: 4, kind: input, shape index: {}]   ;;  %s2256_s5 = inlined_call_operand.vmem [shape: f32[1,32], index: 5, kind: input, shape index: {}]   ;;  %s2257_s6 = inlined_call_operand.vmem [shape: f32[2,256,32], index: 6, kind: output, shape index: {}]  }
   0x1   :  { %s1868_s23 = smov 0   ;;  %s1870_s24 = smov 0  }
   0x2   :  { %s1872_s25 = smov 0  }
   0x3 LB: > { %s25_s26 = sadd.s32 1, %s1802_s23  ;;  %s28_s27 = sadd.s32 1, %s1806_s24  ;;  %s1810_s25 = sphi %s1872_s25, %s16_s25   ;;  %s1806_s24 = sphi %s1870_s24, %s2269_s24   ;;  %s1802_s23 = sphi %s1868_s23, %s2268_s23   ;;  %s1798_s22 = sphi %s1866_s22, %s2267_s22   ;;  %s1794_s21 = sphi %s1864_s21, %s2266_s21  }
   0x4   : > { %p26_p0 = scmp.ge.s32.totalorder %s25_s26, 2  ;;  %p1527_p1 = scmp.ge.s32.totalorder %s1810_s25, 1 }
   0x5   : > { %p284_p2 = scmp.lt.s32.totalorder %s1810_s25, 5 }
   0x6   : > { %s2271_s26 = smov (%p26_p0, %s25_s26), 0  ;;  %s2273_s27 = smov (!%p26_p0, %s28_s27), %s1806_s24 }
   0x7   : > { %p285_p3 = pnand %p1527_p1, %p284_p2  ;;  %p30_p4 = scmp.ge.s32.totalorder %s2273_s27, 2 }
   0x8   : > { %s1528_s28 = sshll.u32 (!%p285_p3), %s1794_s21, 4  ;;  %p350_p5 = scmp.lt.s32.totalorder (!%p285_p3), %s1798_s22, 1 }
   0x9   : > { %s2275_s27 = smov (%p30_p4, %s2273_s27), 0  ;;  %288 = sbr.rel (%p285_p3) target bundleno = 445 (0x1bd), region = 44 }
   0xa   : > { %p352_p6 = scmp.lt.s32.totalorder (!%p285_p3), %s1528_s28, 31  ;;  %p1543_p7 = scmp.ne.s32.totalorder (!%p285_p3), %s1794_s21, 0 }
  0x10   : > { %s2277_s22 = smov (!%p350_p5, %s1798_s22), 1  ;;  %s2279_s28 = smov (!%p352_p6, %s1528_s28), 31 }
  0x11   : > { %s1529_s29 = sshll.u32 %s2277_s22, 5  ;;  %402 = sbr.rel (%p1543_p7) target bundleno = 24 (0x18), region = 48  ;;  %vm403_vm0 = vcmask (!%p1543_p7), 261120   ;;  %v1824_v0 = vmov (!%p1543_p7), 0.0  }
  0x12   : > { %s355_s30 = sadd.s32 %s1529_s29, %s2279_s28  ;;  %404 = vst.msk [vmem:[#allocation2] sm:$0xff] (!%p1543_p7), %vm403_vm0, %v1824_v0  ;;  %405 = vst.msk [vmem:[#allocation2 + $0x8] sm:$0xff] (!%p1543_p7), %vm403_vm0, %v1824_v0 }
  0x13   : > { %s1897_s7 = sshll.u32 %s355_s30, 3 }
  0x14   : > { %s357_s10 = scalar_lea.vmem %s2251_s0, %s1897_s7  ;;  %s367_s13 = scalar_lea.vmem %s2252_s1, %s1897_s7 }
  0x15   : > { %s377_s16 = scalar_lea.vmem %s2253_s2, %s1897_s7  ;;  %s387_s19 = scalar_lea.vmem %s2254_s3, %s1897_s7 }
  0x16   : > { %s397_s28 = scalar_lea.vmem %s2257_s6, %s1897_s7 }
  0x18 PF: > { %v1923_v1 = vld [vmem:[%s2255_s4] sm:$0xff]  ;;  %v1928_v2 = vld [vmem:[%s2255_s4 + $0x8] sm:$0xff]  ;;  %v409_v4 = vlaneseq  ;;  %s1951_s21 = smov 0  }
  0x19   : > { %v1933_v3 = vld [vmem:[%s2256_s5] sm:$0x1]  ;;  %v417_v6 = vld [vmem:[#allocation2 + $0x8] sm:$0xff]  }
  0x1a   : > { %v416_v5 = vld [vmem:[#allocation2] sm:$0xff]   ;;  %v1935_v7 = vshrl.u32 %v409_v4, 7  ;;  %v413_v8 = vand.u32 127, %v409_v4 }
  0x1c   : > { %v411_v9 = vadd.s32 8, %v1935_v7  ;;  %vm1939_vm1 = vcmp.eq.s32.totalorder %v1935_v7, %v413_v8 }
  0x1e   : > { %vm1943_vm2 = vcmp.eq.s32.totalorder %v411_v9, %v413_v8 }
  0x1f LB: >> { %v1963_v12 = vsub.s32 0, %v1935_v7  ;;  %v1966_v13 = vsub.s32 1, %v1935_v7  ;;  %v1969_v14 = vsub.s32 2, %v1935_v7  ;;  %s1972_s14 = sshll.u32 %s1822_s21, 3  ;;  %v1987_v16 = vsub.s32 3, %v1935_v7  ;;  %s423_s21 = sadd.s32 1, %s1822_s21   ;;  %s1822_s21 = sphi %s1951_s21, %s423_s21   ;;  %v1818_v5 = vphi %v416_v5, %v2265_v5   ;;  %v1814_v6 = vphi %v417_v6, %v2264_v6  }
  0x20   : >> { %s431_s18 = scalar_lea.vmem %s377_s16, %s1972_s14  ;;  %s429_s29 = scalar_lea.vmem %s367_s13, %s1972_s14  ;;  %vm442_vm3 = vcmask 130048   ;;  %v896_v35 = vsub.s32 4, %v1935_v7  ;;  %v1019_v39 = vsub.s32 5, %v1935_v7  ;;  %v1135_v47 = vsub.s32 6, %v1935_v7 }
  0x21   : >> { %v432_v15 = vld [vmem:[%s431_s18] sm:$0xff]  ;;  %s427_s9 = scalar_lea.vmem %s357_s10, %s1972_s14  ;;  %v1244_v51 = vsub.s32 7, %v1935_v7  ;;  %vm1826_vm4 = vmmov 0   ;;  %s433_s15 = scalar_lea.vmem %s387_s19, %s1972_s14  ;;  %vm543_vm5 = vcmask 253952   ;;  %vm1353_vm6 = vcmask 261120  }
  0x22   : >> { %v439_v17 = vrot.slane %v432_v15, %v1963_v12  ;;  %v430_v18 = vld [vmem:[%s429_s29] sm:$0xff]  ;;  %v548_v19 = vrot.slane %v432_v15, %v1966_v13  ;;  %v679_v20 = vrot.slane %v432_v15, %v1969_v14  ;;  %v788_v34 = vrot.slane %v432_v15, %v1987_v16  ;;  %s1352_s20 = scalar_lea.vmem %s397_s28, %s1972_s14  ;;  %p420_p8 = scmp.ge.s32.totalorder %s423_s21, 16  }
  0x23   : >> { %v1993_v21 = vrot.slane %v430_v18, %v1963_v12  ;;  %v1996_v22 = vrot.slane %v430_v18, %v1966_v13  ;;  %v1999_v23 = vrot.slane %v430_v18, %v1969_v14  ;;  %v2002_v24 = vrot.slane %v430_v18, %v1987_v16  ;;  %v2051_v54 = vld [vmem:[%s427_s9] sm:$0xff] }
  0x24   : >> { %v440_v25 = vsel %vm1939_vm1, %v439_v17, 0.0  ;;  %v549_v26 = vsel %vm1939_vm1, %v548_v19, 0.0  ;;  %v441_v27 = vsel %vm1943_vm2, %v439_v17, 0.0  ;;  %v550_v28 = vsel %vm1943_vm2, %v548_v19, 0.0 }
  0x25   : >> { %v443_v29 = vsel %vm442_vm3, %v440_v25, 0.0  ;;  %v551_v30 = vsel %vm442_vm3, %v549_v26, 0.0  ;;  %v446_v31 = vsel %vm442_vm3, %v441_v27, 0.0  ;;  %v554_v32 = vsel %vm442_vm3, %v550_v28, 0.0 }
  0x26   : >> { %444 = vadd.xlane.f32.xlu0 %v443_v29  ;;  %552 = vadd.xlane.f32.xlu1 %v551_v30  ;;  %v680_v33 = vsel %vm1939_vm1, %v679_v20, 0.0  ;;  %v681_v36 = vsel %vm1943_vm2, %v679_v20, 0.0  ;;  %v789_v40 = vsel %vm1939_vm1, %v788_v34, 0.0  ;;  %v790_v41 = vsel %vm1943_vm2, %v788_v34, 0.0 }
  0x27   : >> { %v682_v37 = vsel %vm442_vm3, %v680_v33, 0.0  ;;  %v685_v38 = vsel %vm442_vm3, %v681_v36, 0.0  ;;  %v897_v42 = vrot.slane %v432_v15, %v896_v35  ;;  %v2029_v43 = vrot.slane %v430_v18, %v896_v35 }
  0x28   : >> { %v2031_v44 = vrot.slane %v430_v18, %v1019_v39  ;;  %v791_v45 = vsel %vm442_vm3, %v789_v40, 0.0  ;;  %v794_v46 = vsel %vm442_vm3, %v790_v41, 0.0  ;;  %v1020_v50 = vrot.slane %v432_v15, %v1019_v39 }
  0x29   : >> { %v898_v48 = vsel %vm1939_vm1, %v897_v42, 0.0  ;;  %v899_v49 = vsel %vm1943_vm2, %v897_v42, 0.0  ;;  %v2047_v52 = vrot.slane %v430_v18, %v1135_v47  ;;  %v2049_v53 = vrot.slane %v430_v18, %v1244_v51 }
  0x2a   : >> { %447 = vadd.xlane.f32.xlu0 %v446_v31  ;;  %555 = vadd.xlane.f32.xlu1 %v554_v32  ;;  %v900_v55 = vsel %vm442_vm3, %v898_v48, 0.0  ;;  %v903_v56 = vsel %vm442_vm3, %v899_v49, 0.0  ;;  %v1021_v57 = vsel %vm1939_vm1, %v1020_v50, 0.0  ;;  %v1022_v58 = vsel %vm1943_vm2, %v1020_v50, 0.0 }
  0x2b   : >> { %v1136_v59 = vrot.slane %v432_v15, %v1135_v47  ;;  %v435_v60 = vmul.f32 %v430_v18, %v2051_v54  ;;  %v1023_v61 = vsel %vm442_vm3, %v1021_v57, 0.0  ;;  %v1026_v62 = vsel %vm442_vm3, %v1022_v58, 0.0 }
  0x2c   : >> { %v1245_v63 = vrot.slane %v432_v15, %v1244_v51  ;;  %v1827_v27 = vmov 0.0   ;;  %v453_v30 = vmul.f32 %v1993_v21, %v1923_v1  ;;  %v454_v31 = vmul.f32 %v1993_v21, %v1928_v2 }
  0x2d   : >> { %v1137_v0 = vsel %vm1939_vm1, %v1136_v59, 0.0  ;;  %v1138_v4 = vsel %vm1943_vm2, %v1136_v59, 0.0  ;;  %v2067_v8 = vrot.slane %v435_v60, %v1963_v12  ;;  %v2070_v9 = vrot.slane %v435_v60, %v1966_v13  ;;  %1583 = vmatprep.mubr.msk.f32.mxu0 %vm1826_vm4, %v1827_v27  ;;  %1590 = vmatprep.mubr.msk.f32.mxu1 %vm1826_vm4, %v1827_v27 }
  0x2e   : >> { %683 = vadd.xlane.f32.xlu0 %v682_v37  ;;  %686 = vadd.xlane.f32.xlu1 %v685_v38  ;;  %v2073_v17 = vrot.slane %v435_v60, %v1969_v14  ;;  %v1139_v18 = vsel %vm442_vm3, %v1137_v0, 0.0  ;;  %v1142_v15 = vsel %vm442_vm3, %v1138_v4, 0.0  ;;  %v1246_v19 = vsel %vm1939_vm1, %v1245_v63, 0.0 }
  0x2f   : >> { %v1247_v20 = vsel %vm1943_vm2, %v1245_v63, 0.0  ;;  %v1825_v12 = vmov 0.0|0.0   ;;  %v2084_v13 = vrot.slane %v435_v60, %v1987_v16  ;;  %v1248_v14 = vsel %vm442_vm3, %v1246_v19, 0.0 }
  0x30   : >> { %1635 = vmatprep.subr.bf16.mxu0 %v1825_v12  ;;  %1638 = vmatprep.subr.bf16.mxu1 %v1825_v12  ;;  %v1251_v25 = vsel %vm442_vm3, %v1247_v20, 0.0  ;;  %v2088_v26 = vrot.slane %v435_v60, %v896_v35  ;;  %v2094_v28 = vrot.slane %v435_v60, %v1019_v39  ;;  %v2096_v16 = vrot.slane %v435_v60, %v1135_v47 }
  0x31   : >> { %v2098_v29 = vrot.slane %v435_v60, %v1244_v51  ;;  %v455_v32 = vmul.f32 1.442695, %v453_v30  ;;  %v561_v33 = vmul.f32 %v1996_v22, %v1923_v1  ;;  %v457_v34 = vmul.f32 1.442695, %v454_v31 }
  0x32   : >> { %792 = vadd.xlane.f32.xlu0 %v791_v45  ;;  %795 = vadd.xlane.f32.xlu1 %v794_v46  ;;  %v562_v35 = vmul.f32 %v1996_v22, %v1928_v2  ;;  %v692_v37 = vmul.f32 %v1999_v23, %v1923_v1  ;;  %v693_v39 = vmul.f32 %v1999_v23, %v1928_v2 }
  0x33   : >> { %1728 = vpow2.f32 %v455_v32  ;;  %v563_v36 = vmul.f32 1.442695, %v561_v33  ;;  %v801_v40 = vmul.f32 %v2002_v24, %v1923_v1  ;;  %v802_v42 = vmul.f32 %v2002_v24, %v1928_v2 }
  0x34   : >> { %1730 = vpow2.f32 %v457_v34  ;;  %v565_v38 = vmul.f32 1.442695, %v562_v35  ;;  %v694_v21 = vmul.f32 1.442695, %v692_v37  ;;  %v696_v41 = vmul.f32 1.442695, %v693_v39 }
  0x35   : >> { %1732 = vpow2.f32 %v563_v36  ;;  %v803_v45 = vmul.f32 1.442695, %v801_v40  ;;  %v910_v46 = vmul.f32 %v2029_v43, %v1923_v1  ;;  %v911_v47 = vmul.f32 %v2029_v43, %v1928_v2  ;;  %v2144_v40 = vld [vmem:[%s433_s15] sm:$0xff] }
  0x36   : >> { %901 = vadd.xlane.f32.xlu0 %v900_v55  ;;  %904 = vadd.xlane.f32.xlu1 %v903_v56  ;;  %1734 = vpow2.f32 %v565_v38  ;;  %v805_v23 = vmul.f32 1.442695, %v802_v42  ;;  %v1033_v51 = vmul.f32 %v2031_v44, %v1923_v1  ;;  %v1034_v59 = vmul.f32 %v2031_v44, %v1928_v2 }
  0x37   : >> { %1736 = vpow2.f32 %v694_v21  ;;  %v912_v50 = vmul.f32 1.442695, %v910_v46  ;;  %v914_v58 = vmul.f32 1.442695, %v911_v47  ;;  %v1150_v20 = vmul.f32 %v2047_v52, %v1928_v2 }
  0x38   : >> { %1738 = vpow2.f32 %v696_v41  ;;  %v1037_v19 = vmul.f32 1.442695, %v1034_v59  ;;  %v1258_v31 = vmul.f32 %v2049_v53, %v1923_v1  ;;  %v1259_v41 = vmul.f32 %v2049_v53, %v1928_v2 }
  0x39   : >> { %1740 = vpow2.f32 %v803_v45  ;;  %v1153_v37 = vmul.f32 1.442695, %v1150_v20 }
  0x3a   : >> { %1024 = vadd.xlane.f32.xlu0 %v1023_v61  ;;  %1027 = vadd.xlane.f32.xlu1 %v1026_v62  ;;  %1742 = vpow2.f32 %v805_v23  ;;  %v1035_v61 = vmul.f32 1.442695, %v1033_v51  ;;  %v1149_v62 = vmul.f32 %v2047_v52, %v1923_v1  ;;  %v1260_v42 = vmul.f32 1.442695, %v1258_v31 }
  0x3b   : >> { %1744 = vpow2.f32 %v912_v50 }
  0x3c   : >> { %1746 = vpow2.f32 %v914_v58  ;;  %v1151_v30 = vmul.f32 1.442695, %v1149_v62 }
  0x3d   : >> { %v1729_v22 = vpop.eup %1728  ;;  %1748 = vpow2.f32 %v1035_v61 }
  0x3e   : >> { %1140 = vadd.xlane.f32.xlu0 %v1139_v18  ;;  %1143 = vadd.xlane.f32.xlu1 %v1142_v15  ;;  %v459_v48 = vmul.f32 %v1818_v5, %v1729_v22  ;;  %v1731_v49 = vpop.eup %1730  ;;  %1750 = vpow2.f32 %v1037_v19 }
  0x3f   : >> { %v1733_v57 = vpop.eup %1732  ;;  %v460_v5 = vmul.f32 %v1814_v6, %v1731_v49  ;;  %1752 = vpow2.f32 %v1151_v30 }
  0x40   : >> { %v1735_v4 = vpop.eup %1734  ;;  %1754 = vpow2.f32 %v1153_v37  ;;  %v943_v37 = vrot.slane %v2144_v40, 4 }
  0x41   : >> { %v1737_v44 = vpop.eup %1736  ;;  %1756 = vpow2.f32 %v1260_v42 }
  0x42   : >> { %1249 = vadd.xlane.f32.xlu0 %v1248_v14  ;;  %1252 = vadd.xlane.f32.xlu1 %v1251_v25 }
  0xb3   : >> { %v445_v55 = vpop.xlane.xlu0 %444  ;;  %v553_v24 = vpop.xlane.xlu1 %552 }
  0xb4   : >> { %v465_v56 = vmul.f32 %v2067_v8, %v445_v55  ;;  %v573_v60 = vmul.f32 %v2070_v9, %v553_v24  ;;  %v1262_v24 = vmul.f32 1.442695, %v1259_v41 }
  0xb6   : >> { %v467_v43 = vadd.f32 %v465_v56, %v459_v48  ;;  %1758 = vpow2.f32 %v1262_v24 }
  0xb7   : >> { %v448_v63 = vpop.xlane.xlu0 %447  ;;  %v556_v0 = vpop.xlane.xlu1 %555 }
  0xb8   : >> { %v567_v18 = vmul.f32 %v1733_v57, %v467_v43  ;;  %v466_v15 = vmul.f32 %v2067_v8, %v448_v63  ;;  %v574_v25 = vmul.f32 %v2070_v9, %v556_v0  ;;  %v1739_v8 = vpop.eup %1738 }
  0xb9   : >> { %v1741_v9 = vpop.eup %1740 }
  0xba   : >> { %v575_v6 = vadd.f32 %v573_v60, %v567_v18  ;;  %v468_v14 = vadd.f32 %v466_v15, %v460_v5  ;;  %v1743_v46 = vpop.eup %1742 }
  0xbb   : >> { %v684_v32 = vpop.xlane.xlu0 %683  ;;  %v687_v33 = vpop.xlane.xlu1 %686 }
  0xbc   : >> { %v568_v34 = vmul.f32 %v1735_v4, %v468_v14  ;;  %v698_v52 = vmul.f32 %v1737_v44, %v575_v6  ;;  %v704_v35 = vmul.f32 %v2073_v17, %v684_v32  ;;  %v1636_v36 = vpack.c.bf16 %v468_v14, %v467_v43  ;;  %v1745_v50 = vpop.eup %1744 }
  0xbd   : >> { %v705_v21 = vmul.f32 %v2073_v17, %v687_v33  ;;  %v602_v17 = vrot.slane %v2144_v40, 1  ;;  %v1747_v58 = vpop.eup %1746 }
  0xbe   : >> { %v576_v38 = vadd.f32 %v574_v25, %v568_v34  ;;  %v706_v39 = vadd.f32 %v704_v35, %v698_v52  ;;  %1637 = vmatpush3.bf16.msra.mxu0 %v1636_v36  ;;  %v1749_v61 = vpop.eup %1748  ;;  %v820_v25 = vrot.slane %v2144_v40, 3 }
  0xbf   : >> { %v793_v22 = vpop.xlane.xlu0 %792  ;;  %v796_v45 = vpop.xlane.xlu1 %795  ;;  %1641 = vmatprep.subr.bf16.mxu0 %v1825_v12 }
  0xc0   : >> { %v699_v47 = vmul.f32 %v1739_v8, %v576_v38  ;;  %v807_v23 = vmul.f32 %v1741_v9, %v706_v39  ;;  %v813_v48 = vmul.f32 %v2084_v13, %v793_v22  ;;  %v1639_v49 = vpack.c.bf16 %v576_v38, %v575_v6  ;;  %v1751_v15 = vpop.eup %1750 }
  0xc1   : >> { %1584 = vmatmul.mubr.msk.f32.vlgmr.msra.gmra.mrb[0].mxu0 %vm442_vm3, %v2144_v40  ;;  %v814_v55 = vmul.f32 %v2084_v13, %v796_v45  ;;  %v711_v13 = vrot.slane %v2144_v40, 2  ;;  %v1753_v14 = vpop.eup %1752 }
  0xc2   : >> { %v707_v51 = vadd.f32 %v705_v21, %v699_v47  ;;  %v815_v53 = vadd.f32 %v813_v48, %v807_v23  ;;  %1640 = vmatpush3.bf16.msra.mxu1 %v1639_v49  ;;  %1597 = vmatprep.mubr.msk.f32.mxu0 %vm1826_vm4, %v1827_v27  ;;  %v1755_v8 = vpop.eup %1754  ;;  %v1059_v23 = vrot.slane %v2144_v40, 5 }
  0xc3   : >> { %v902_v56 = vpop.xlane.xlu0 %901  ;;  %v905_v57 = vpop.xlane.xlu1 %904  ;;  %1644 = vmatprep.subr.bf16.mxu1 %v1825_v12 }
  0xc4   : >> { %v1642_v59 = vpack.c.bf16 %v707_v51, %v706_v39  ;;  %v808_v43 = vmul.f32 %v1743_v46, %v707_v51  ;;  %v916_v60 = vmul.f32 %v1745_v50, %v815_v53  ;;  %v922_v5 = vmul.f32 %v2088_v26, %v902_v56  ;;  %v1757_v9 = vpop.eup %1756 }
  0xc5   : >> { %1591 = vmatmul.mubr.msk.f32.vlgmr.msra.gmra.mrb[0].mxu1 %vm442_vm3, %v602_v17  ;;  %v923_v0 = vmul.f32 %v2088_v26, %v905_v57  ;;  %v1759_v47 = vpop.eup %1758  ;;  %v1168_v51 = vrot.slane %v2144_v40, 6 }
  0xc6   : >> { %v816_v62 = vadd.f32 %v814_v55, %v808_v43  ;;  %v924_v63 = vadd.f32 %v922_v5, %v916_v60  ;;  %1643 = vmatpush3.bf16.msra.mxu0 %v1642_v59  ;;  %1604 = vmatprep.mubr.msk.f32.mxu1 %vm1826_vm4, %v1827_v27  ;;  %v1277_v55 = vrot.slane %v2144_v40, 7 }
  0xc7   : >> { %v1025_v4 = vpop.xlane.xlu0 %1024  ;;  %v1028_v18 = vpop.xlane.xlu1 %1027  ;;  %1647 = vmatprep.subr.bf16.mxu0 %v1825_v12 }
  0xc8   : >> { %v1645_v44 = vpack.c.bf16 %v816_v62, %v815_v53  ;;  %v917_v19 = vmul.f32 %v1747_v58, %v816_v62  ;;  %v1039_v20 = vmul.f32 %v1749_v61, %v924_v63  ;;  %v1045_v6 = vmul.f32 %v2094_v28, %v1025_v4 }
  0xc9   : >> { %1598 = vmatmul.mubr.msk.f32.vlgmr.msra.gmra.mrb[2].mxu0 %vm442_vm3, %v711_v13  ;;  %v1046_v31 = vmul.f32 %v2094_v28, %v1028_v18 }
  0xca   : >> { %v925_v26 = vadd.f32 %v923_v0, %v917_v19  ;;  %v1047_v30 = vadd.f32 %v1045_v6, %v1039_v20  ;;  %1646 = vmatpush3.bf16.msra.mxu1 %v1645_v44  ;;  %1611 = vmatprep.mubr.msk.f32.mxu0 %vm1826_vm4, %v1827_v27 }
  0xcb   : >> { %v1141_v32 = vpop.xlane.xlu0 %1140  ;;  %v1144_v33 = vpop.xlane.xlu1 %1143  ;;  %1650 = vmatprep.subr.bf16.mxu1 %v1825_v12 }
  0xcc   : >> { %v1648_v34 = vpack.c.bf16 %v925_v26, %v924_v63  ;;  %v1040_v52 = vmul.f32 %v1751_v15, %v925_v26  ;;  %v1155_v35 = vmul.f32 %v1753_v14, %v1047_v30  ;;  %v1161_v36 = vmul.f32 %v2096_v16, %v1141_v32 }
  0xcd   : >> { %1605 = vmatmul.mubr.msk.f32.vlgmr.msra.gmra.mrb[2].mxu1 %vm442_vm3, %v820_v25  ;;  %v1162_v39 = vmul.f32 %v2096_v16, %v1144_v33  ;;  %v926_v63 = vcombine.high %v2051_v54, %v2051_v54 }
  0xce   : >> { %v1048_v38 = vadd.f32 %v1046_v31, %v1040_v52  ;;  %v1163_v28 = vadd.f32 %v1161_v36, %v1155_v35  ;;  %1649 = vmatpush3.bf16.msra.mxu0 %v1648_v34  ;;  %1618 = vmatprep.mubr.msk.f32.mxu1 %vm1826_vm4, %v1827_v27 }
  0xcf   : >> { %v1250_v21 = vpop.xlane.xlu0 %1249  ;;  %v1253_v41 = vpop.xlane.xlu1 %1252  ;;  %1653 = vmatprep.subr.bf16.mxu0 %v1825_v12 }
  0xd0   : >> { %v1651_v42 = vpack.c.bf16 %v1048_v38, %v1047_v30  ;;  %v1156_v22 = vmul.f32 %v1755_v8, %v1048_v38  ;;  %v1264_v45 = vmul.f32 %v1757_v9, %v1163_v28  ;;  %v1270_v46 = vmul.f32 %v2098_v29, %v1250_v21 }
  0xd1   : >> { %1612 = vmatmul.mubr.msk.f32.vlgmr.msra.gmra.mrb[4].mxu0 %vm442_vm3, %v943_v37  ;;  %v1271_v49 = vmul.f32 %v2098_v29, %v1253_v41 }
  0xd2   : >> { %v1164_v48 = vadd.f32 %v1162_v39, %v1156_v22  ;;  %v2181_v5 = vadd.f32 %v1270_v46, %v1264_v45   ;;  %1652 = vmatpush3.bf16.msra.mxu1 %v1651_v42  ;;  %1625 = vmatprep.mubr.msk.f32.mxu0 %vm1826_vm4, %v1827_v27 }
  0xd3   : >> { %1656 = vmatprep.subr.bf16.mxu1 %v1825_v12  ;;  %v1828_v12 = vmov 1966171168  }
  0xd4   : >> { %v2262_v16 = vmov %v2181_v5  ;;  %v1654_v50 = vpack.c.bf16 %v1164_v48, %v1163_v28  ;;  %v1265_v17 = vmul.f32 %v1759_v47, %v1164_v48  ;;  %v579_v24 = vunpack.c.l.s4 %v1828_v12 }
  0xd5   : >> { %1619 = vmatmul.mubr.msk.f32.vlgmr.msra.gmra.mrb[4].mxu1 %vm442_vm3, %v1059_v23  ;;  %1356 = vst.msk [vmem:[#allocation2] sm:$0xff] (%p420_p8), %vm1353_vm6, %v2262_v16 }
  0xd6   : >> { %v2189_v6 = vadd.f32 %v1271_v49, %v1265_v17   ;;  %1655 = vmatpush3.bf16.msra.mxu0 %v1654_v50  ;;  %1632 = vmatprep.mubr.msk.f32.mxu1 %vm1826_vm4, %v1827_v27  ;;  %v580_v56 = vunpack.c.0.s8 %v579_v24  ;;  %v469_v27 = vmul.f32 %v2051_v54, %v1933_v3 }
  0xd8   : >> { %v2263_v53 = vmov %v2189_v6  ;;  %v583_v57 = vsub.s32 %v580_v56, %v1935_v7 }
  0xd9   : >> { %v1657_v29 = vpack.c.bf16 %v2263_v53, %v2262_v16  ;;  %1626 = vmatmul.mubr.msk.f32.vlgmr.msra.gmra.mrb[6].mxu0 %vm442_vm3, %v1168_v51  ;;  %1357 = vst.msk [vmem:[#allocation2 + $0x8] sm:$0xff] (%p420_p8), %vm1353_vm6, %v2263_v53 }
  0xda   : >> { %v584_v58 = vrot.slane %v2051_v54, %v583_v57  ;;  %v933_v19 = vrot.slane %v926_v63, %v583_v57 }
  0xdb   : >> { %1658 = vmatpush3.bf16.msra.mxu1 %v1657_v29 }
  0xdc   : >> { %v585_v59 = vcombine.high %v584_v58, %v584_v58  ;;  %v592_v60 = vrot.slane %v584_v58, %v583_v57  ;;  %v940_v26 = vrot.slane %v933_v19, %v583_v57  ;;  %v1049_v30 = vcombine.high %v933_v19, %v933_v19 }
  0xde   : >> { %1633 = vmatmul.mubr.msk.f32.vlgmr.msra.gmra.mrb[6].mxu1 %vm442_vm3, %v1277_v55  ;;  %v599_v43 = vrot.slane %v585_v59, %v583_v57  ;;  %v708_v62 = vcombine.high %v592_v60, %v592_v60  ;;  %v942_v33 = vmul.f32 %v940_v26, %v1933_v3  ;;  %v1056_v8 = vrot.slane %v1049_v30, %v583_v57 }
  0xdf   : >> { %v1165_v9 = vcombine.high %v940_v26, %v940_v26 }
  0xe0   : >> { %v601_v40 = vmul.f32 %v599_v43, %v1933_v3  ;;  %v710_v15 = vmul.f32 %v708_v62, %v1933_v3  ;;  %v817_v44 = vcombine.high %v599_v43, %v599_v43  ;;  %v1058_v35 = vmul.f32 %v1056_v8, %v1933_v3 }
  0xe1   : >> { %v1167_v39 = vmul.f32 %v1165_v9, %v1933_v3  ;;  %v1274_v21 = vcombine.high %v1056_v8, %v1056_v8 }
  0xe2   : >> { %v819_v14 = vmul.f32 %v817_v44, %v1933_v3 }
  0xe3   : >> { %v1276_v22 = vmul.f32 %v1274_v21, %v1933_v3 }
 0x194   : >> { %v539_v5 = vpop.f32.mrb[0].mxu0 }
 0x195   : >> { %v540_v61 = vadd.f32 %v539_v5, %v469_v27  ;;  %v1585_v13 = vpop.f32.mrb[1].mxu0  ;;  %v2265_v5 = vmov %v2262_v16 }
 0x197   : >> { %544 = vst.msk [vmem:[#allocation3] sm:$0x1] %vm543_vm5, %v540_v61 }
 0x198   : >> { %v671_v0 = vpop.f32.mrb[0].mxu1 }
 0x199   : >> { %v672_v4 = vadd.f32 %v671_v0, %v601_v40  ;;  %v1592_v18 = vpop.f32.mrb[1].mxu1 }
 0x19b   : >> { %675 = vst.msk [vmem:[#allocation3 + $0x1] sm:$0x1] %vm543_vm5, %v672_v4 }
 0x19c   : >> { %v780_v20 = vpop.f32.mrb[2].mxu0 }
 0x19d   : >> { %v781_v6 = vadd.f32 %v780_v20, %v710_v15  ;;  %v1599_v25 = vpop.f32.mrb[3].mxu0 }
 0x19f   : >> { %784 = vst.msk [vmem:[#allocation3 + $0x2] sm:$0x1] %vm543_vm5, %v781_v6  ;;  %v2264_v6 = vmov %v2263_v53 }
 0x1a0   : >> { %v889_v54 = vpop.f32.mrb[2].mxu1 }
 0x1a1   : >> { %v890_v31 = vadd.f32 %v889_v54, %v819_v14  ;;  %v1606_v32 = vpop.f32.mrb[3].mxu1 }
 0x1a3   : >> { %893 = vst.msk [vmem:[#allocation3 + $0x3] sm:$0x1] %vm543_vm5, %v890_v31 }
 0x1a4   : >> { %v1012_v34 = vpop.f32.mrb[4].mxu0 }
 0x1a5   : >> { %v1013_v52 = vadd.f32 %v1012_v34, %v942_v33  ;;  %v1613_v36 = vpop.f32.mrb[5].mxu0 }
 0x1a7   : >> { %1016 = vst.msk [vmem:[#allocation3 + $0x4] sm:$0x1] %vm543_vm5, %v1013_v52 }
 0x1a8   : >> { %v1128_v37 = vpop.f32.mrb[4].mxu1 }
 0x1a9   : >> { %v1129_v38 = vadd.f32 %v1128_v37, %v1058_v35  ;;  %v1620_v28 = vpop.f32.mrb[5].mxu1 }
 0x1ab   : >> { %1132 = vst.msk [vmem:[#allocation3 + $0x5] sm:$0x1] %vm543_vm5, %v1129_v38 }
 0x1ac   : >> { %v1237_v41 = vpop.f32.mrb[6].mxu0 }
 0x1ad   : >> { %v1238_v42 = vadd.f32 %v1237_v41, %v1167_v39  ;;  %v1627_v45 = vpop.f32.mrb[7].mxu0 }
 0x1af   : >> { %1241 = vst.msk [vmem:[#allocation3 + $0x6] sm:$0x1] %vm543_vm5, %v1238_v42 }
 0x1b1   : >> { %v1346_v46 = vpop.f32.mrb[6].mxu1 }
 0x1b2   : >> { %v1347_v47 = vadd.f32 %v1346_v46, %v1276_v22  ;;  %v1634_v23 = vpop.f32.mrb[7].mxu1 }
 0x1b4   : >> { %1350 = vst.msk [vmem:[#allocation3 + $0x7] sm:$0x1] %vm543_vm5, %v1347_v47 }
 0x1b6   : > { %422 = sbr.rel (!%p420_p8) target bundleno = 31 (0x1f), region = 99 }
 0x1bb   : >> { %v1351_v48 = vld [vmem:[#allocation3] sm:$0xff] }
 0x1bc   : >> { %1354 = vst.msk [vmem:[%s1352_s20] sm:$0xff] %vm1353_vm6, %v1351_v48 }
 0x1bd PF: > { %s16_s25 = sadd.s32 1, %s1810_s25   ;;  %s2266_s21 = smov %s1802_s23 }
 0x1be   : > { %p13_p9 = scmp.ge.s32.totalorder %s16_s25, 6   ;;  %s2267_s22 = smov %s1806_s24 }
 0x1bf   : > { %s2268_s23 = smov %s2271_s26  ;;  %s2269_s24 = smov %s2275_s27 }
 0x1c0   :  { %15 = sbr.rel (!%p13_p9) target bundleno = 3 (0x3), region = 110 }

// kernel: ss2d_block_forward.9
= control target key start
LH: loop header
LB: loop body
LE: loop exit
PB: predicated region body
PF: predicated region fallthrough
CT: control target
= control target key end

     0   :  { %s1722_s18 = smov 0   ;;  %s2610_s0 = inlined_call_operand.vmem [shape: f32[512,8], index: 0, kind: input, shape index: {}]   ;;  %s2611_s1 = inlined_call_operand.vmem [shape: f32[512,8], index: 1, kind: input, shape index: {}]   ;;  %s2612_s2 = inlined_call_operand.vmem [shape: f32[1,8], index: 2, kind: input, shape index: {}]   ;;  %s2613_s3 = inlined_call_operand.vmem [shape: f32[1,8], index: 3, kind: input, shape index: {}]   ;;  %s2614_s4 = inlined_call_operand.vmem [shape: bf16[8,4], index: 4, kind: input, shape index: {}]   ;;  %s2615_s5 = inlined_call_operand.vmem [shape: f32[512,4], index: 5, kind: output, shape index: {}]  }
   0x1 LB: > { %s1398_s19 = sadd.s32 4294967295, %s1690_s18   ;;  %p1402_p0 = scmp.ge.s32.totalorder %s1690_s18, 1  ;;  %s1690_s18 = sphi %s1722_s18, %s15_s18  }
   0x2   : > { %p199_p1 = scmp.lt.s32.totalorder %s1690_s18, 3 }
   0x4   : > { %p200_p2 = pnand %p1402_p0, %p199_p1 }
   0x6   : > { %203 = sbr.rel (%p200_p2) target bundleno = 617 (0x269), region = 40 }
   0xd   : > { %s1403_s20 = sshll.u32 %s1398_s19, 5  ;;  %vm283_vm0 = vcmask 64512   ;;  %vm1132_vm1 = vcmask 1043456   ;;  %vm1297_vm2 = vcmask 31744  }
   0xe   : > { %p233_p3 = scmp.lt.s32.totalorder %s1403_s20, 63 }
  0x10   : > { %s2710_s20 = smov (!%p233_p3, %s1403_s20), 63 }
  0x11   : > { %s1730_s21 = sshll.u32 %s2710_s20, 3 }
  0x12   : > { %s1736_s24 = scalar_lea.vmem %s2610_s0, %s1730_s21  ;;  %s2097_s29 = scalar_lea.vmem %s2611_s1, %s1730_s21 }
  0x13   : > { %v1739_v0 = vld [vmem:[%s1736_s24] sm:$0xff]  ;;  %v1745_v2 = vld [vmem:[%s1736_s24 + $0x8] sm:$0xff]  ;;  %v1759_v8 = vld [vmem:[%s1736_s24 + $0x10] sm:$0xff]  ;;  %s2541_s11 = scalar_lea.vmem %s2615_s5, %s1730_s21 }
  0x14   : > { %v1742_v1 = vld [vmem:[%s1736_s24 + $0x80] sm:$0xff]  ;;  %v284_v3 = vsel %vm283_vm0, %v1739_v0, 0.0  ;;  %v1752_v5 = vld [vmem:[%s1736_s24 + $0x88] sm:$0xff]  ;;  %v287_v6 = vsel %vm283_vm0, %v1745_v2, 0.0  ;;  %v1762_v9 = vld [vmem:[%s1736_s24 + $0x18] sm:$0xff]  ;;  %v290_v10 = vsel %vm283_vm0, %v1759_v8, 0.0 }
  0x15   : > { %v332_v4 = vsel %vm283_vm0, %v1742_v1, 0.0  ;;  %285 = vadd.xlane.f32.xlu0 %v284_v3  ;;  %v335_v7 = vsel %vm283_vm0, %v1752_v5, 0.0  ;;  %v293_v11 = vsel %vm283_vm0, %v1762_v9, 0.0  ;;  %v1769_v12 = vld [vmem:[%s1736_s24 + $0x90] sm:$0xff]  ;;  %v1772_v13 = vld [vmem:[%s1736_s24 + $0x98] sm:$0xff]  ;;  %v1779_v16 = vld [vmem:[%s1736_s24 + $0x20] sm:$0xff] }
  0x16   : > { %333 = vadd.xlane.f32.xlu1 %v332_v4  ;;  %v338_v14 = vsel %vm283_vm0, %v1769_v12, 0.0  ;;  %v341_v15 = vsel %vm283_vm0, %v1772_v13, 0.0  ;;  %v1782_v17 = vld [vmem:[%s1736_s24 + $0x28] sm:$0xff]  ;;  %v296_v18 = vsel %vm283_vm0, %v1779_v16, 0.0  ;;  %v1789_v20 = vld [vmem:[%s1736_s24 + $0xa0] sm:$0xff]  ;;  %v1799_v24 = vld [vmem:[%s1736_s24 + $0x30] sm:$0xff] }
  0x17   : > { %v299_v19 = vsel %vm283_vm0, %v1782_v17, 0.0  ;;  %v1792_v21 = vld [vmem:[%s1736_s24 + $0xa8] sm:$0xff]  ;;  %v344_v22 = vsel %vm283_vm0, %v1789_v20, 0.0  ;;  %v1802_v25 = vld [vmem:[%s1736_s24 + $0x38] sm:$0xff]  ;;  %v302_v26 = vsel %vm283_vm0, %v1799_v24, 0.0  ;;  %v1809_v28 = vld [vmem:[%s1736_s24 + $0xb0] sm:$0xff] }
  0x18   : > { %v347_v23 = vsel %vm283_vm0, %v1792_v21, 0.0  ;;  %v305_v27 = vsel %vm283_vm0, %v1802_v25, 0.0  ;;  %v1812_v29 = vld [vmem:[%s1736_s24 + $0xb8] sm:$0xff]  ;;  %v350_v30 = vsel %vm283_vm0, %v1809_v28, 0.0  ;;  %v1819_v32 = vld [vmem:[%s1736_s24 + $0x40] sm:$0xff]  ;;  %v1822_v33 = vld [vmem:[%s1736_s24 + $0x48] sm:$0xff] }
  0x19   : > { %288 = vadd.xlane.f32.xlu0 %v287_v6  ;;  %v353_v31 = vsel %vm283_vm0, %v1812_v29, 0.0  ;;  %v308_v34 = vsel %vm283_vm0, %v1819_v32, 0.0  ;;  %v311_v35 = vsel %vm283_vm0, %v1822_v33, 0.0  ;;  %v1829_v36 = vld [vmem:[%s1736_s24 + $0xc0] sm:$0xff]  ;;  %v1832_v37 = vld [vmem:[%s1736_s24 + $0xc8] sm:$0xff]  ;;  %v1839_v40 = vld [vmem:[%s1736_s24 + $0x50] sm:$0xff] }
  0x1a   : > { %336 = vadd.xlane.f32.xlu1 %v335_v7  ;;  %v356_v38 = vsel %vm283_vm0, %v1829_v36, 0.0  ;;  %v359_v39 = vsel %vm283_vm0, %v1832_v37, 0.0  ;;  %v1842_v41 = vld [vmem:[%s1736_s24 + $0x58] sm:$0xff]  ;;  %v314_v42 = vsel %vm283_vm0, %v1839_v40, 0.0  ;;  %v1849_v44 = vld [vmem:[%s1736_s24 + $0xd0] sm:$0xff]  ;;  %v1859_v48 = vld [vmem:[%s1736_s24 + $0x60] sm:$0xff] }
  0x1b   : > { %v317_v43 = vsel %vm283_vm0, %v1842_v41, 0.0  ;;  %v1852_v45 = vld [vmem:[%s1736_s24 + $0xd8] sm:$0xff]  ;;  %v362_v46 = vsel %vm283_vm0, %v1849_v44, 0.0  ;;  %v1862_v49 = vld [vmem:[%s1736_s24 + $0x68] sm:$0xff]  ;;  %v320_v50 = vsel %vm283_vm0, %v1859_v48, 0.0  ;;  %v1869_v52 = vld [vmem:[%s1736_s24 + $0xe0] sm:$0xff] }
  0x1c   : > { %v365_v47 = vsel %vm283_vm0, %v1852_v45, 0.0  ;;  %v323_v51 = vsel %vm283_vm0, %v1862_v49, 0.0  ;;  %v1872_v53 = vld [vmem:[%s1736_s24 + $0xe8] sm:$0xff]  ;;  %v368_v54 = vsel %vm283_vm0, %v1869_v52, 0.0  ;;  %v1879_v56 = vld [vmem:[%s1736_s24 + $0x70] sm:$0xff]  ;;  %v1882_v57 = vld [vmem:[%s1736_s24 + $0x78] sm:$0xff] }
  0x1d   : > { %291 = vadd.xlane.f32.xlu0 %v290_v10  ;;  %v371_v55 = vsel %vm283_vm0, %v1872_v53, 0.0  ;;  %v326_v58 = vsel %vm283_vm0, %v1879_v56, 0.0  ;;  %v329_v59 = vsel %vm283_vm0, %v1882_v57, 0.0  ;;  %v1889_v60 = vld [vmem:[%s1736_s24 + $0xf0] sm:$0xff]  ;;  %v1892_v61 = vld [vmem:[%s1736_s24 + $0xf8] sm:$0xff] }
  0x1e   : > { %294 = vadd.xlane.f32.xlu1 %v293_v11  ;;  %v374_v62 = vsel %vm283_vm0, %v1889_v60, 0.0  ;;  %v377_v63 = vsel %vm283_vm0, %v1892_v61, 0.0 }
  0x21   : > { %339 = vadd.xlane.f32.xlu0 %v338_v14 }
  0x22   : > { %342 = vadd.xlane.f32.xlu1 %v341_v15 }
  0x25   : > { %297 = vadd.xlane.f32.xlu0 %v296_v18 }
  0x26   : > { %300 = vadd.xlane.f32.xlu1 %v299_v19 }
  0x29   : > { %345 = vadd.xlane.f32.xlu0 %v344_v22 }
  0x2a   : > { %348 = vadd.xlane.f32.xlu1 %v347_v23 }
  0x2d   : > { %303 = vadd.xlane.f32.xlu0 %v302_v26 }
  0x2e   : > { %306 = vadd.xlane.f32.xlu1 %v305_v27 }
  0x31   : > { %351 = vadd.xlane.f32.xlu0 %v350_v30 }
  0x32   : > { %354 = vadd.xlane.f32.xlu1 %v353_v31 }
  0x35   : > { %309 = vadd.xlane.f32.xlu0 %v308_v34 }
  0x36   : > { %312 = vadd.xlane.f32.xlu1 %v311_v35 }
  0x39   : > { %357 = vadd.xlane.f32.xlu0 %v356_v38 }
  0x3a   : > { %360 = vadd.xlane.f32.xlu1 %v359_v39 }
  0x3d   : > { %315 = vadd.xlane.f32.xlu0 %v314_v42 }
  0x3e   : > { %318 = vadd.xlane.f32.xlu1 %v317_v43 }
  0x41   : > { %363 = vadd.xlane.f32.xlu0 %v362_v46 }
  0x42   : > { %366 = vadd.xlane.f32.xlu1 %v365_v47 }
  0x45   : > { %321 = vadd.xlane.f32.xlu0 %v320_v50 }
  0x46   : > { %324 = vadd.xlane.f32.xlu1 %v323_v51 }
  0x49   : > { %369 = vadd.xlane.f32.xlu0 %v368_v54 }
  0x4a   : > { %372 = vadd.xlane.f32.xlu1 %v371_v55 }
  0x4d   : > { %327 = vadd.xlane.f32.xlu0 %v326_v58 }
  0x4e   : > { %330 = vadd.xlane.f32.xlu1 %v329_v59 }
  0x51   : > { %375 = vadd.xlane.f32.xlu0 %v374_v62 }
  0x52   : > { %378 = vadd.xlane.f32.xlu1 %v377_v63 }
  0xa2   : > { %v286_v3 = vpop.xlane.xlu0 %285 }
  0xa3   : > { %v334_v4 = vpop.xlane.xlu1 %333  ;;  %v381_v6 = vmul.f32 0.125, %v286_v3 }
  0xa4   : > { %v397_v7 = vmul.f32 0.125, %v334_v4 }
  0xa5   : > { %v1899_v10 = vsub.f32 %v1739_v0, %v381_v6 }
  0xa6   : > { %v1902_v11 = vsub.f32 %v1742_v1, %v397_v7  ;;  %v289_v14 = vpop.xlane.xlu0 %288 }
  0xa7   : > { %v337_v15 = vpop.xlane.xlu1 %336  ;;  %v382_v18 = vmul.f32 0.125, %v289_v14  ;;  %v445_v22 = vmul.f32 %v1899_v10, %v1899_v10 }
  0xa8   : > { %v398_v19 = vmul.f32 0.125, %v337_v15  ;;  %v461_v23 = vmul.f32 %v1902_v11, %v1902_v11 }
  0xa9   : > { %v1909_v26 = vsub.f32 %v1745_v2, %v382_v18  ;;  %v477_v0 = vsel %vm283_vm0, %v445_v22, 0.0 }
  0xaa   : > { %v1912_v27 = vsub.f32 %v1752_v5, %v398_v19  ;;  %478 = vadd.xlane.f32.xlu0 %v477_v0  ;;  %v292_v1 = vpop.xlane.xlu0 %291  ;;  %v525_v31 = vsel %vm283_vm0, %v461_v23, 0.0 }
  0xab   : > { %v295_v30 = vpop.xlane.xlu1 %294  ;;  %v383_v34 = vmul.f32 0.125, %v292_v1  ;;  %v446_v38 = vmul.f32 %v1909_v26, %v1909_v26 }
  0xac   : > { %v384_v35 = vmul.f32 0.125, %v295_v30  ;;  %v462_v39 = vmul.f32 %v1912_v27, %v1912_v27 }
  0xad   : > { %v1921_v2 = vsub.f32 %v1759_v8, %v383_v34  ;;  %v480_v42 = vsel %vm283_vm0, %v446_v38, 0.0 }
  0xae   : > { %v1924_v5 = vsub.f32 %v1762_v9, %v384_v35  ;;  %526 = vadd.xlane.f32.xlu0 %v525_v31  ;;  %481 = vadd.xlane.f32.xlu1 %v480_v42  ;;  %v340_v43 = vpop.xlane.xlu0 %339  ;;  %v528_v47 = vsel %vm283_vm0, %v462_v39, 0.0 }
  0xaf   : > { %v343_v46 = vpop.xlane.xlu1 %342  ;;  %v399_v50 = vmul.f32 0.125, %v340_v43  ;;  %v447_v54 = vmul.f32 %v1921_v2, %v1921_v2 }
  0xb0   : > { %v400_v51 = vmul.f32 0.125, %v343_v46  ;;  %v448_v8 = vmul.f32 %v1924_v5, %v1924_v5 }
  0xb1   : > { %v1933_v55 = vsub.f32 %v1769_v12, %v399_v50  ;;  %v483_v58 = vsel %vm283_vm0, %v447_v54, 0.0 }
  0xb2   : > { %v1936_v9 = vsub.f32 %v1772_v13, %v400_v51  ;;  %529 = vadd.xlane.f32.xlu1 %v528_v47  ;;  %484 = vadd.xlane.f32.xlu0 %v483_v58  ;;  %v298_v59 = vpop.xlane.xlu0 %297  ;;  %v486_v63 = vsel %vm283_vm0, %v448_v8, 0.0 }
  0xb3   : > { %v301_v62 = vpop.xlane.xlu1 %300  ;;  %v385_v3 = vmul.f32 0.125, %v298_v59  ;;  %v463_v6 = vmul.f32 %v1933_v55, %v1933_v55 }
  0xb4   : > { %v386_v4 = vmul.f32 0.125, %v301_v62  ;;  %v464_v12 = vmul.f32 %v1936_v9, %v1936_v9 }
  0xb5   : > { %v1945_v7 = vsub.f32 %v1779_v16, %v385_v3  ;;  %v531_v14 = vsel %vm283_vm0, %v463_v6, 0.0 }
  0xb6   : > { %v1948_v13 = vsub.f32 %v1782_v17, %v386_v4  ;;  %487 = vadd.xlane.f32.xlu1 %v486_v63  ;;  %532 = vadd.xlane.f32.xlu0 %v531_v14  ;;  %v346_v15 = vpop.xlane.xlu0 %345  ;;  %v534_v19 = vsel %vm283_vm0, %v464_v12, 0.0 }
  0xb7   : > { %2647 = vst [vmem:[#allocation2_spill] sm:$0xff] %v1945_v7  ;;  %v349_v18 = vpop.xlane.xlu1 %348  ;;  %v401_v22 = vmul.f32 0.125, %v346_v15  ;;  %v449_v0 = vmul.f32 %v1945_v7, %v1945_v7 }
  0xb8   : > { %2648 = vst [vmem:[#allocation3_spill] sm:$0xff] %v1948_v13  ;;  %v402_v23 = vmul.f32 0.125, %v349_v18  ;;  %v450_v16 = vmul.f32 %v1948_v13, %v1948_v13  ;;  %v2261_v13 = vld [vmem:[%s2097_s29 + $0xf0] sm:$0xff] }
  0xb9   : > { %v1957_v1 = vsub.f32 %v1789_v20, %v401_v22  ;;  %v489_v30 = vsel %vm283_vm0, %v449_v0, 0.0  ;;  %2677 = vst [vmem:[#allocation32_spill] sm:$0xff] %v2261_v13 }
  0xba   : > { %v1960_v17 = vsub.f32 %v1792_v21, %v402_v23  ;;  %535 = vadd.xlane.f32.xlu1 %v534_v19  ;;  %490 = vadd.xlane.f32.xlu0 %v489_v30  ;;  %v304_v31 = vpop.xlane.xlu0 %303  ;;  %v492_v35 = vsel %vm283_vm0, %v450_v16, 0.0 }
  0xbb   : > { %2649 = vst [vmem:[#allocation4_spill] sm:$0xff] %v1957_v1  ;;  %v307_v34 = vpop.xlane.xlu1 %306  ;;  %v387_v38 = vmul.f32 0.125, %v304_v31  ;;  %v465_v42 = vmul.f32 %v1957_v1, %v1957_v1 }
  0xbc   : > { %2650 = vst [vmem:[#allocation5_spill] sm:$0xff] %v1960_v17  ;;  %v388_v39 = vmul.f32 0.125, %v307_v34  ;;  %v466_v20 = vmul.f32 %v1960_v17, %v1960_v17 }
  0xbd   : > { %v1969_v43 = vsub.f32 %v1799_v24, %v387_v38  ;;  %v537_v46 = vsel %vm283_vm0, %v465_v42, 0.0 }
  0xbe   : > { %v1972_v21 = vsub.f32 %v1802_v25, %v388_v39  ;;  %493 = vadd.xlane.f32.xlu1 %v492_v35  ;;  %538 = vadd.xlane.f32.xlu0 %v537_v46  ;;  %v352_v47 = vpop.xlane.xlu0 %351  ;;  %v540_v51 = vsel %vm283_vm0, %v466_v20, 0.0 }
  0xbf   : > { %2651 = vst [vmem:[#allocation6_spill] sm:$0xff] %v1969_v43  ;;  %v355_v50 = vpop.xlane.xlu1 %354  ;;  %v403_v54 = vmul.f32 0.125, %v352_v47  ;;  %v451_v58 = vmul.f32 %v1969_v43, %v1969_v43 }
  0xc0   : > { %2652 = vst [vmem:[#allocation7_spill] sm:$0xff] %v1972_v21  ;;  %v404_v8 = vmul.f32 0.125, %v355_v50  ;;  %v452_v24 = vmul.f32 %v1972_v21, %v1972_v21 }
  0xc1   : > { %v1981_v59 = vsub.f32 %v1809_v28, %v403_v54  ;;  %v495_v62 = vsel %vm283_vm0, %v451_v58, 0.0 }
  0xc2   : > { %v1984_v25 = vsub.f32 %v1812_v29, %v404_v8  ;;  %541 = vadd.xlane.f32.xlu1 %v540_v51  ;;  %496 = vadd.xlane.f32.xlu0 %v495_v62  ;;  %v310_v63 = vpop.xlane.xlu0 %309  ;;  %v498_v4 = vsel %vm283_vm0, %v452_v24, 0.0 }
  0xc3   : > { %2653 = vst [vmem:[#allocation8_spill] sm:$0xff] %v1981_v59  ;;  %v313_v3 = vpop.xlane.xlu1 %312  ;;  %v389_v6 = vmul.f32 0.125, %v310_v63  ;;  %v467_v14 = vmul.f32 %v1981_v59, %v1981_v59 }
  0xc4   : > { %2654 = vst [vmem:[#allocation9_spill] sm:$0xff] %v1984_v25  ;;  %v390_v12 = vmul.f32 0.125, %v313_v3  ;;  %v468_v28 = vmul.f32 %v1984_v25, %v1984_v25 }
  0xc5   : > { %v1993_v15 = vsub.f32 %v1819_v32, %v389_v6  ;;  %v543_v18 = vsel %vm283_vm0, %v467_v14, 0.0 }
  0xc6   : > { %v1996_v29 = vsub.f32 %v1822_v33, %v390_v12  ;;  %499 = vadd.xlane.f32.xlu1 %v498_v4  ;;  %544 = vadd.xlane.f32.xlu0 %v543_v18  ;;  %v358_v19 = vpop.xlane.xlu0 %357  ;;  %v546_v23 = vsel %vm283_vm0, %v468_v28, 0.0 }
  0xc7   : > { %2655 = vst [vmem:[#allocation10_spill] sm:$0xff] %v1993_v15  ;;  %v361_v22 = vpop.xlane.xlu1 %360  ;;  %v405_v0 = vmul.f32 0.125, %v358_v19  ;;  %v453_v30 = vmul.f32 %v1993_v15, %v1993_v15 }
  0xc8   : > { %2656 = vst [vmem:[#allocation11_spill] sm:$0xff] %v1996_v29  ;;  %v406_v16 = vmul.f32 0.125, %v361_v22  ;;  %v454_v32 = vmul.f32 %v1996_v29, %v1996_v29  ;;  %v2204_v29 = vld [vmem:[%s2097_s29 + $0xd8] sm:$0xff] }
  0xc9   : > { %v2005_v31 = vsub.f32 %v1829_v36, %v405_v0  ;;  %v501_v34 = vsel %vm283_vm0, %v453_v30, 0.0  ;;  %2671 = vst [vmem:[#allocation26_spill] sm:$0xff] %v2204_v29  ;;  %v838_v15 = vsub.f32 0.0, %v2204_v29  ;;  %v2225_v29 = vld [vmem:[%s2097_s29 + $0xe8] sm:$0xff] }
  0xca   : > { %v2008_v33 = vsub.f32 %v1832_v37, %v406_v16  ;;  %547 = vadd.xlane.f32.xlu1 %v546_v23  ;;  %502 = vadd.xlane.f32.xlu0 %v501_v34  ;;  %v316_v35 = vpop.xlane.xlu0 %315  ;;  %v504_v39 = vsel %vm283_vm0, %v454_v32, 0.0  ;;  %2675 = vst [vmem:[#allocation30_spill] sm:$0xff] %v2225_v29 }
  0xcb   : > { %2657 = vst [vmem:[#allocation12_spill] sm:$0xff] %v2005_v31  ;;  %v319_v38 = vpop.xlane.xlu1 %318  ;;  %v391_v42 = vmul.f32 0.125, %v316_v35  ;;  %v469_v46 = vmul.f32 %v2005_v31, %v2005_v31 }
  0xcc   : > { %2658 = vst [vmem:[#allocation13_spill] sm:$0xff] %v2008_v33  ;;  %v392_v20 = vmul.f32 0.125, %v319_v38  ;;  %v470_v36 = vmul.f32 %v2008_v33, %v2008_v33 }
  0xcd   : > { %v2017_v47 = vsub.f32 %v1839_v40, %v391_v42  ;;  %v549_v50 = vsel %vm283_vm0, %v469_v46, 0.0 }
  0xce   : > { %v2020_v37 = vsub.f32 %v1842_v41, %v392_v20  ;;  %505 = vadd.xlane.f32.xlu1 %v504_v39  ;;  %550 = vadd.xlane.f32.xlu0 %v549_v50  ;;  %v364_v51 = vpop.xlane.xlu0 %363  ;;  %v552_v8 = vsel %vm283_vm0, %v470_v36, 0.0  ;;  %v1083_v39 = vld [vmem:[%s2614_s4] sm:$0xf] }
  0xcf   : > { %2659 = vst [vmem:[#allocation14_spill] sm:$0xff] %v2017_v47  ;;  %v367_v54 = vpop.xlane.xlu1 %366  ;;  %v407_v58 = vmul.f32 0.125, %v364_v51  ;;  %v455_v62 = vmul.f32 %v2017_v47, %v2017_v47  ;;  %1482 = vmatprep.subr.msk.bf16.mxu0 %vm1132_vm1, %v1083_v39  ;;  %1483 = vmatprep.subr.msk.bf16.mxu1 %vm1132_vm1, %v1083_v39  ;;  %v1134_v51 = vsel %vm1132_vm1, %v1083_v39, 0 }
  0xd0   : > { %2660 = vst [vmem:[#allocation15_spill] sm:$0xff] %v2020_v37  ;;  %v408_v24 = vmul.f32 0.125, %v367_v54  ;;  %v456_v40 = vmul.f32 %v2020_v37, %v2020_v37  ;;  %1447 = vmatpush3.bf16.msra.mxu0 %v1134_v51  ;;  %1481 = vmatpush3.bf16.msra.mxu1 %v1134_v51  ;;  %v2124_v51 = vld [vmem:[%s2097_s29 + $0x90] sm:$0xff] }
  0xd1   : > { %v2029_v63 = vsub.f32 %v1849_v44, %v407_v58  ;;  %v507_v3 = vsel %vm283_vm0, %v455_v62, 0.0 }
  0xd2   : > { %v2032_v41 = vsub.f32 %v1852_v45, %v408_v24  ;;  %553 = vadd.xlane.f32.xlu1 %v552_v8  ;;  %508 = vadd.xlane.f32.xlu0 %v507_v3  ;;  %v322_v4 = vpop.xlane.xlu0 %321  ;;  %v510_v12 = vsel %vm283_vm0, %v456_v40, 0.0 }
  0xd3   : > { %2661 = vst [vmem:[#allocation16_spill] sm:$0xff] %v2029_v63  ;;  %v325_v6 = vpop.xlane.xlu1 %324  ;;  %v393_v14 = vmul.f32 0.125, %v322_v4  ;;  %v471_v18 = vmul.f32 %v2029_v63, %v2029_v63 }
  0xd4   : > { %2662 = vst [vmem:[#allocation17_spill] sm:$0xff] %v2032_v41  ;;  %v394_v28 = vmul.f32 0.125, %v325_v6  ;;  %v472_v44 = vmul.f32 %v2032_v41, %v2032_v41 }
  0xd5   : > { %v2041_v19 = vsub.f32 %v1859_v48, %v393_v14  ;;  %v555_v22 = vsel %vm283_vm0, %v471_v18, 0.0 }
  0xd6   : > { %v2044_v45 = vsub.f32 %v1862_v49, %v394_v28  ;;  %511 = vadd.xlane.f32.xlu1 %v510_v12  ;;  %556 = vadd.xlane.f32.xlu0 %v555_v22  ;;  %v370_v23 = vpop.xlane.xlu0 %369  ;;  %v558_v16 = vsel %vm283_vm0, %v472_v44, 0.0 }
  0xd7   : > { %2663 = vst [vmem:[#allocation18_spill] sm:$0xff] %v2041_v19  ;;  %v373_v0 = vpop.xlane.xlu1 %372  ;;  %v409_v30 = vmul.f32 0.125, %v370_v23  ;;  %v457_v34 = vmul.f32 %v2041_v19, %v2041_v19  ;;  %v2103_v23 = vld [vmem:[%s2097_s29 + $0x8] sm:$0xff] }
  0xd8   : > { %2664 = vst [vmem:[#allocation19_spill] sm:$0xff] %v2044_v45  ;;  %v410_v32 = vmul.f32 0.125, %v373_v0  ;;  %v458_v48 = vmul.f32 %v2044_v45, %v2044_v45  ;;  %v2106_v0 = vld [vmem:[%s2097_s29 + $0x80] sm:$0xff] }
  0xd9   : > { %v2053_v35 = vsub.f32 %v1869_v52, %v409_v30  ;;  %v513_v38 = vsel %vm283_vm0, %v457_v34, 0.0  ;;  %v812_v30 = vsub.f32 0.0, %v2103_v23  ;;  %v827_v34 = vsub.f32 0.0, %v2106_v0 }
  0xda   : > { %v2056_v49 = vsub.f32 %v1872_v53, %v410_v32  ;;  %559 = vadd.xlane.f32.xlu1 %v558_v16  ;;  %514 = vadd.xlane.f32.xlu0 %v513_v38  ;;  %v328_v42 = vpop.xlane.xlu0 %327  ;;  %v516_v46 = vsel %vm283_vm0, %v458_v48, 0.0  ;;  %v2111_v32 = vld [vmem:[%s2097_s29 + $0x88] sm:$0xff]  ;;  %v2115_v48 = vld [vmem:[%s2097_s29 + $0x10] sm:$0xff] }
  0xdb   : > { %2665 = vst [vmem:[#allocation20_spill] sm:$0xff] %v2053_v35  ;;  %v331_v20 = vpop.xlane.xlu1 %330  ;;  %v395_v36 = vmul.f32 0.125, %v328_v42  ;;  %v473_v52 = vmul.f32 %v2053_v35, %v2053_v35  ;;  %v828_v39 = vsub.f32 0.0, %v2111_v32  ;;  %v845_v42 = vmul.f32 1.442695, %v812_v30  ;;  %v2187_v35 = vld [vmem:[%s2097_s29 + $0x58] sm:$0xff] }
  0xdc   : > { %2666 = vst [vmem:[#allocation21_spill] sm:$0xff] %v2056_v49  ;;  %v396_v50 = vmul.f32 0.125, %v331_v20  ;;  %v474_v53 = vmul.f32 %v2056_v49, %v2056_v49  ;;  %v2119_v20 = vld [vmem:[%s2097_s29 + $0x18] sm:$0xff] }
  0xdd   : > { %v2068_v54 = vsub.f32 %v1879_v56, %v395_v36  ;;  %v561_v58 = vsel %vm283_vm0, %v473_v52, 0.0  ;;  %v875_v36 = vmul.f32 1.442695, %v827_v34  ;;  %v814_v52 = vsub.f32 0.0, %v2119_v20 }
  0xde   : > { %v2071_v8 = vsub.f32 %v1882_v57, %v396_v50  ;;  %517 = vadd.xlane.f32.xlu1 %v516_v46  ;;  %562 = vadd.xlane.f32.xlu0 %v561_v58  ;;  %v376_v24 = vpop.xlane.xlu0 %375  ;;  %v564_v40 = vsel %vm283_vm0, %v474_v53, 0.0  ;;  %v813_v46 = vsub.f32 0.0, %v2115_v48  ;;  %v877_v50 = vmul.f32 1.442695, %v828_v39 }
  0xdf   : > { %2667 = vst [vmem:[#allocation22_spill] sm:$0xff] %v2068_v54  ;;  %v379_v62 = vpop.xlane.xlu1 %378  ;;  %v411_v3 = vmul.f32 0.125, %v376_v24  ;;  %v459_v56 = vmul.f32 %v2068_v54, %v2068_v54  ;;  %v849_v58 = vmul.f32 1.442695, %v814_v52  ;;  %v2127_v24 = vld [vmem:[%s2097_s29 + $0x98] sm:$0xff] }
  0xe0   : > { %2668 = vst [vmem:[#allocation23_spill] sm:$0xff] %v2071_v8  ;;  %v412_v4 = vmul.f32 0.125, %v379_v62  ;;  %v460_v57 = vmul.f32 %v2071_v8, %v2071_v8  ;;  %v847_v53 = vmul.f32 1.442695, %v813_v46  ;;  %v829_v62 = vsub.f32 0.0, %v2124_v51  ;;  %v2174_v8 = vld [vmem:[%s2097_s29 + $0xc8] sm:$0xff] }
  0xe1   : > { %v2080_v6 = vsub.f32 %v1889_v60, %v411_v3  ;;  %v519_v14 = vsel %vm283_vm0, %v459_v56, 0.0 }
  0xe2   : > { %v2083_v12 = vsub.f32 %v1892_v61, %v412_v4  ;;  %565 = vadd.xlane.f32.xlu1 %v564_v40  ;;  %520 = vadd.xlane.f32.xlu0 %v519_v14  ;;  %v522_v28 = vsel %vm283_vm0, %v460_v57, 0.0  ;;  %v2100_v61 = vld [vmem:[%s2097_s29] sm:$0xff]  ;;  %v830_v40 = vsub.f32 0.0, %v2127_v24  ;;  %v879_v3 = vmul.f32 1.442695, %v829_v62 }
  0xe3   : > { %2669 = vst [vmem:[#allocation24_spill] sm:$0xff] %v2080_v6  ;;  %v475_v18 = vmul.f32 %v2080_v6, %v2080_v6  ;;  %v811_v16 = vsub.f32 0.0, %v2100_v61  ;;  %v2132_v4 = vld [vmem:[%s2097_s29 + $0x20] sm:$0xff] }
  0xe4   : > { %2670 = vst [vmem:[#allocation25_spill] sm:$0xff] %v2083_v12  ;;  %v476_v44 = vmul.f32 %v2083_v12, %v2083_v12 }
  0xe5   : > { %v567_v22 = vsel %vm283_vm0, %v475_v18, 0.0  ;;  %v843_v38 = vmul.f32 1.442695, %v811_v16  ;;  %v2135_v18 = vld [vmem:[%s2097_s29 + $0x28] sm:$0xff] }
  0xe6   : > { %523 = vadd.xlane.f32.xlu1 %v522_v28  ;;  %568 = vadd.xlane.f32.xlu0 %v567_v22  ;;  %v570_v60 = vsel %vm283_vm0, %v476_v44, 0.0  ;;  %v881_v28 = vmul.f32 1.442695, %v830_v40  ;;  %v815_v44 = vsub.f32 0.0, %v2132_v4  ;;  %v816_v39 = vsub.f32 0.0, %v2135_v18 }
  0xe7   : > { %1492 = vpow2.f32 %v843_v38 }
  0xe8   : > { %1494 = vpow2.f32 %v845_v42  ;;  %v2143_v42 = vld [vmem:[%s2097_s29 + $0xa8] sm:$0xff]  ;;  %v851_v46 = vmul.f32 1.442695, %v815_v44  ;;  %v2159_v44 = vld [vmem:[%s2097_s29 + $0xb8] sm:$0xff] }
  0xe9   : > { %1496 = vpow2.f32 %v875_v36  ;;  %v832_v40 = vsub.f32 0.0, %v2143_v42 }
  0xea   : > { %571 = vadd.xlane.f32.xlu1 %v570_v60  ;;  %1498 = vpow2.f32 %v877_v50  ;;  %v2139_v60 = vld [vmem:[%s2097_s29 + $0xa0] sm:$0xff]  ;;  %v2147_v50 = vld [vmem:[%s2097_s29 + $0x30] sm:$0xff] }
  0xeb   : > { %1500 = vpow2.f32 %v847_v53  ;;  %v831_v36 = vsub.f32 0.0, %v2139_v60  ;;  %v2150_v53 = vld [vmem:[%s2097_s29 + $0x38] sm:$0xff] }
  0xec   : > { %1502 = vpow2.f32 %v849_v58 }
  0xed   : > { %1504 = vpow2.f32 %v879_v3  ;;  %v2154_v3 = vld [vmem:[%s2097_s29 + $0xb0] sm:$0xff] }
  0xee   : > { %1506 = vpow2.f32 %v881_v28  ;;  %v818_v28 = vsub.f32 0.0, %v2150_v53 }
  0xf0   : > { %v857_v12 = vmul.f32 1.442695, %v818_v28  ;;  %v2181_v28 = vld [vmem:[%s2097_s29 + $0x50] sm:$0xff] }
  0xf1   : > { %v1493_v56 = vpop.eup %1492 }
  0xf2   : > { %v1495_v57 = vpop.eup %1494  ;;  %v907_v22 = vadd.f32 1.0, %v1493_v56  ;;  %v853_v56 = vmul.f32 1.442695, %v816_v39 }
  0xf3   : > { %v1497_v14 = vpop.eup %1496  ;;  %v908_v30 = vadd.f32 1.0, %v1495_v57  ;;  %v817_v57 = vsub.f32 0.0, %v2147_v50 }
  0xf4   : > { %v1499_v16 = vpop.eup %1498  ;;  %v923_v38 = vadd.f32 1.0, %v1497_v14  ;;  %1508 = vrcp.f32 %v907_v22  ;;  %v883_v14 = vmul.f32 1.442695, %v831_v36  ;;  %v2167_v36 = vld [vmem:[%s2097_s29 + $0x48] sm:$0xff] }
  0xf5   : > { %v1501_v34 = vpop.eup %1500  ;;  %v924_v52 = vadd.f32 1.0, %v1499_v16  ;;  %1510 = vrcp.f32 %v908_v30  ;;  %v833_v16 = vsub.f32 0.0, %v2154_v3  ;;  %v2163_v30 = vld [vmem:[%s2097_s29 + $0x40] sm:$0xff]  ;;  %v855_v39 = vmul.f32 1.442695, %v817_v57 }
  0xf6   : > { %v1503_v58 = vpop.eup %1502  ;;  %v909_v62 = vadd.f32 1.0, %v1501_v34  ;;  %1512 = vrcp.f32 %v923_v38  ;;  %v885_v34 = vmul.f32 1.442695, %v832_v40 }
  0xf7   : > { %1514 = vpow2.f32 %v851_v46  ;;  %v910_v22 = vadd.f32 1.0, %v1503_v58  ;;  %v1505_v38 = vpop.eup %1504  ;;  %v834_v46 = vsub.f32 0.0, %v2159_v44  ;;  %v2171_v58 = vld [vmem:[%s2097_s29 + $0xc0] sm:$0xff]  ;;  %v887_v6 = vmul.f32 1.442695, %v833_v16 }
  0xf8   : > { %1516 = vrcp.f32 %v924_v52  ;;  %v819_v52 = vsub.f32 0.0, %v2163_v30  ;;  %v925_v40 = vadd.f32 1.0, %v1505_v38  ;;  %v836_v16 = vsub.f32 0.0, %v2174_v8 }
  0xf9   : > { %1518 = vrcp.f32 %v909_v62  ;;  %v1507_v62 = vpop.eup %1506  ;;  %v889_v54 = vmul.f32 1.442695, %v834_v46  ;;  %v821_v46 = vsub.f32 0.0, %v2181_v28 }
  0xfa   : > { %1520 = vpow2.f32 %v853_v56  ;;  %v820_v56 = vsub.f32 0.0, %v2167_v36  ;;  %v926_v38 = vadd.f32 1.0, %v1507_v62  ;;  %v893_v37 = vmul.f32 1.442695, %v836_v16 }
  0xfb   : > { %1522 = vpow2.f32 %v883_v14  ;;  %v835_v14 = vsub.f32 0.0, %v2171_v58 }
  0xfc   : > { %1524 = vrcp.f32 %v910_v22  ;;  %v859_v22 = vmul.f32 1.442695, %v819_v52  ;;  %v2196_v52 = vld [vmem:[%s2097_s29 + $0xd0] sm:$0xff] }
  0xfd   : > { %1526 = vpow2.f32 %v885_v34  ;;  %v891_v41 = vmul.f32 1.442695, %v835_v14  ;;  %v837_v47 = vsub.f32 0.0, %v2196_v52 }
  0xfe   : > { %v2177_v57 = vpop.eup %1508  ;;  %1528 = vpow2.f32 %v855_v39  ;;  %v861_v39 = vmul.f32 1.442695, %v820_v56  ;;  %v863_v56 = vmul.f32 1.442695, %v821_v46 }
  0xff   : > { %v2183_v49 = vpop.eup %1510  ;;  %1530 = vpow2.f32 %v857_v12  ;;  %v822_v12 = vsub.f32 0.0, %v2187_v35 }
 0x100   : > { %v2189_v34 = vpop.eup %1512  ;;  %1532 = vpow2.f32 %v887_v6 }
 0x101   : > { %v1515_v45 = vpop.eup %1514  ;;  %1534 = vrcp.f32 %v925_v40 }
 0x102   : > { %v2192_v19 = vpop.eup %1516  ;;  %1536 = vpow2.f32 %v889_v54  ;;  %v911_v6 = vadd.f32 1.0, %v1515_v45  ;;  %v865_v54 = vmul.f32 1.442695, %v822_v12  ;;  %v895_v45 = vmul.f32 1.442695, %v837_v47 }
 0x103   : > { %v2198_v63 = vpop.eup %1518  ;;  %1538 = vpow2.f32 %v859_v22 }
 0x104   : > { %v1521_v62 = vpop.eup %1520  ;;  %1540 = vrcp.f32 %v926_v38 }
 0x105   : > { %v1523_v40 = vpop.eup %1522  ;;  %1542 = vpow2.f32 %v861_v39  ;;  %v912_v31 = vadd.f32 1.0, %v1521_v62 }
 0x106   : > { %v2201_v33 = vpop.eup %1524  ;;  %1544 = vpow2.f32 %v891_v41  ;;  %v927_v16 = vadd.f32 1.0, %v1523_v40  ;;  %v2208_v41 = vld [vmem:[%s2097_s29 + $0x60] sm:$0xff] }
 0x107   : > { %v1527_v14 = vpop.eup %1526  ;;  %1546 = vpow2.f32 %v893_v37  ;;  %2672 = vst [vmem:[#allocation27_spill] sm:$0xff] %v2208_v41  ;;  %v823_v47 = vsub.f32 0.0, %v2208_v41 }
 0x108   : > { %v1529_v22 = vpop.eup %1528  ;;  %1548 = vrcp.f32 %v911_v6  ;;  %v928_v46 = vadd.f32 1.0, %v1527_v14  ;;  %v2216_v14 = vld [vmem:[%s2097_s29 + $0x68] sm:$0xff] }
 0x109   : > { %v1531_v38 = vpop.eup %1530  ;;  %1550 = vpow2.f32 %v863_v56  ;;  %v913_v37 = vadd.f32 1.0, %v1529_v22  ;;  %2673 = vst [vmem:[#allocation28_spill] sm:$0xff] %v2216_v14 }
 0x10a   : > { %v1533_v39 = vpop.eup %1532  ;;  %1552 = vpow2.f32 %v865_v54  ;;  %v914_v25 = vadd.f32 1.0, %v1531_v38  ;;  %v897_v54 = vmul.f32 1.442695, %v838_v15  ;;  %v824_v38 = vsub.f32 0.0, %v2216_v14  ;;  %v2222_v15 = vld [vmem:[%s2097_s29 + $0xe0] sm:$0xff] }
 0x10b   : > { %v2210_v12 = vpop.eup %1534  ;;  %1554 = vrcp.f32 %v912_v31  ;;  %v929_v40 = vadd.f32 1.0, %v1533_v39  ;;  %2674 = vst [vmem:[#allocation29_spill] sm:$0xff] %v2222_v15 }
 0x10c   : > { %v1537_v62 = vpop.eup %1536  ;;  %1556 = vrcp.f32 %v927_v16 }
 0x10d   : > { %v1539_v6 = vpop.eup %1538  ;;  %1558 = vpow2.f32 %v895_v45  ;;  %v930_v21 = vadd.f32 1.0, %v1537_v62  ;;  %v867_v45 = vmul.f32 1.442695, %v823_v47  ;;  %v839_v47 = vsub.f32 0.0, %v2222_v15 }
 0x10e   : > { %v2213_v56 = vpop.eup %1540  ;;  %1560 = vrcp.f32 %v928_v46  ;;  %v915_v22 = vadd.f32 1.0, %v1539_v6 }
 0x10f   : > { %v1543_v59 = vpop.eup %1542  ;;  %1562 = vrcp.f32 %v913_v37 }
 0x110   : > { %v1545_v31 = vpop.eup %1544  ;;  %1564 = vrcp.f32 %v914_v25  ;;  %v916_v41 = vadd.f32 1.0, %v1543_v59 }
 0x111   : > { %v1547_v16 = vpop.eup %1546  ;;  %1566 = vrcp.f32 %v929_v40  ;;  %v931_v37 = vadd.f32 1.0, %v1545_v31  ;;  %v869_v40 = vmul.f32 1.442695, %v824_v38 }
 0x112   : > { %v2219_v39 = vpop.eup %1548  ;;  %1568 = vpow2.f32 %v897_v54  ;;  %v932_v25 = vadd.f32 1.0, %v1547_v16  ;;  %v2233_v54 = vld [vmem:[%s2097_s29 + $0x70] sm:$0xff] }
 0x113   : > { %v1551_v46 = vpop.eup %1550  ;;  %1570 = vrcp.f32 %v930_v21  ;;  %2676 = vst [vmem:[#allocation31_spill] sm:$0xff] %v2233_v54 }
 0x114   : > { %v1553_v62 = vpop.eup %1552  ;;  %1572 = vrcp.f32 %v915_v22  ;;  %v917_v59 = vadd.f32 1.0, %v1551_v46  ;;  %v840_v22 = vsub.f32 0.0, %v2225_v29 }
 0x115   : > { %v2227_v6 = vpop.eup %1554  ;;  %1574 = vpow2.f32 %v867_v45  ;;  %v918_v31 = vadd.f32 1.0, %v1553_v62  ;;  %v899_v45 = vmul.f32 1.442695, %v839_v47 }
 0x116   : > { %v2230_v14 = vpop.eup %1556  ;;  %1576 = vrcp.f32 %v916_v41  ;;  %v825_v41 = vsub.f32 0.0, %v2233_v54  ;;  %v901_v47 = vmul.f32 1.442695, %v840_v22  ;;  %v2258_v54 = vmul.f32 %v2189_v34, %v2106_v0  ;;  %v2275_v34 = vld [vmem:[%s2097_s29 + $0xf8] sm:$0xff] }
 0x117   : > { %v1559_v43 = vpop.eup %1558  ;;  %1578 = vrcp.f32 %v931_v37 }
 0x118   : > { %v2236_v16 = vpop.eup %1560  ;;  %1580 = vrcp.f32 %v932_v25  ;;  %v933_v37 = vadd.f32 1.0, %v1559_v43  ;;  %v2247_v25 = vmul.f32 %v2177_v57, %v2100_v61  ;;  %v871_v57 = vmul.f32 1.442695, %v825_v41 }
 0x119   : > { %v2238_v38 = vpop.eup %1562  ;;  %1582 = vpow2.f32 %v869_v40  ;;  %v2251_v40 = vmul.f32 %v2183_v49, %v2103_v23  ;;  %v2265_v49 = vmul.f32 %v2192_v19, %v2111_v32  ;;  %v2269_v23 = vmul.f32 %v2198_v63, %v2115_v48 }
 0x11a   : > { %v2241_v46 = vpop.eup %1564  ;;  %1584 = vrcp.f32 %v917_v59  ;;  %v2279_v19 = vmul.f32 %v2201_v33, %v2119_v20  ;;  %v841_v32 = vsub.f32 0.0, %v2261_v13  ;;  %v2292_v33 = vmul.f32 %v2219_v39, %v2132_v4 }
 0x11b   : > { %v2243_v62 = vpop.eup %1566  ;;  %1586 = vrcp.f32 %v918_v31  ;;  %v842_v20 = vsub.f32 0.0, %v2275_v34 }
 0x137   : > { %v479_v21 = vpop.xlane.xlu0 %478 }
 0x138   : > { %v573_v17 = vmul.f32 0.125, %v479_v21  ;;  %v2254_v21 = vld [vmem:[%s2097_s29 + $0x78] sm:$0xff] }
 0x139   : > { %v826_v0 = vsub.f32 0.0, %v2254_v21 }
 0x13a   : > { %v605_v15 = vadd.f32 1e-05, %v573_v17  ;;  %v1569_v17 = vpop.eup %1568 }
 0x13b   : > { %v482_v29 = vpop.xlane.xlu1 %481  ;;  %v527_v1 = vpop.xlane.xlu0 %526  ;;  %v934_v63 = vadd.f32 1.0, %v1569_v17 }
 0x13c   : > { %1588 = vrsqrt.f32 %v605_v15  ;;  %v574_v43 = vmul.f32 0.125, %v482_v29  ;;  %v589_v59 = vmul.f32 0.125, %v527_v1  ;;  %v1571_v61 = vpop.eup %1570 }
 0x13d   : > { %1590 = vpow2.f32 %v899_v45  ;;  %v2271_v15 = vpop.eup %1572 }
 0x13e   : > { %v606_v1 = vadd.f32 1e-05, %v574_v43  ;;  %v621_v29 = vadd.f32 1e-05, %v589_v59  ;;  %1592 = vrcp.f32 %v933_v37  ;;  %v1575_v31 = vpop.eup %1574  ;;  %v2284_v37 = vmul.f32 %v2210_v12, %v2124_v51 }
 0x13f   : > { %v530_v22 = vpop.xlane.xlu1 %529  ;;  %v485_v7 = vpop.xlane.xlu0 %484  ;;  %1594 = vpow2.f32 %v901_v47  ;;  %v2288_v59 = vmul.f32 %v2213_v56, %v2127_v24  ;;  %v919_v24 = vadd.f32 1.0, %v1575_v31  ;;  %v903_v56 = vmul.f32 1.442695, %v841_v32 }
 0x140   : > { %v1577_v48 = vpop.eup %1576  ;;  %1596 = vrsqrt.f32 %v606_v1  ;;  %v590_v45 = vmul.f32 0.125, %v530_v22  ;;  %v575_v41 = vmul.f32 0.125, %v485_v7  ;;  %v873_v7 = vmul.f32 1.442695, %v826_v0 }
 0x141   : > { %v1579_v43 = vpop.eup %1578  ;;  %1598 = vrsqrt.f32 %v621_v29  ;;  %v2297_v29 = vmul.f32 %v2227_v6, %v2135_v18  ;;  %v2305_v0 = vmul.f32 %v2236_v16, %v2143_v42  ;;  %v2309_v18 = vmul.f32 %v2238_v38, %v2147_v50 }
 0x142   : > { %v1581_v47 = vpop.eup %1580  ;;  %v622_v17 = vadd.f32 1e-05, %v590_v45  ;;  %v607_v1 = vadd.f32 1e-05, %v575_v41  ;;  %1600 = vpow2.f32 %v871_v57  ;;  %v2301_v45 = vmul.f32 %v2230_v14, %v2139_v60  ;;  %v2314_v41 = vld [vmem:[%s2612_s2] ss:$0 sm:$0xff] }
 0x143   : > { %v1583_v22 = vpop.eup %1582  ;;  %v488_v51 = vpop.xlane.xlu1 %487  ;;  %1602 = vrcp.f32 %v934_v63  ;;  %v905_v6 = vmul.f32 1.442695, %v842_v20  ;;  %v2318_v60 = vmul.f32 %v2241_v46, %v2150_v53  ;;  %v2323_v38 = vmul.f32 %v2243_v62, %v2154_v3  ;;  %v2331_v53 = vld [vmem:[%s2613_s3] ss:$0 sm:$0xff] }
 0x144   : > { %v533_v12 = vpop.xlane.xlu0 %532  ;;  %v1585_v13 = vpop.eup %1584  ;;  %1604 = vrsqrt.f32 %v622_v17  ;;  %v576_v4 = vmul.f32 0.125, %v488_v51  ;;  %v2326_v20 = vmul.f32 %v1571_v61, %v2159_v44  ;;  %v2341_v44 = vmul.f32 %v1577_v48, %v2167_v36 }
 0x145   : > { %v591_v39 = vmul.f32 0.125, %v533_v12  ;;  %v1587_v57 = vpop.eup %1586  ;;  %1606 = vrsqrt.f32 %v607_v1  ;;  %v2344_v62 = vmul.f32 %v1579_v43, %v2171_v58 }
 0x146   : > { %v1589_v31 = vpop.eup %1588  ;;  %v608_v63 = vadd.f32 1e-05, %v576_v4  ;;  %1608 = vpow2.f32 %v873_v7 }
 0x147   : > { %v623_v32 = vadd.f32 1e-05, %v591_v39  ;;  %v1591_v42 = vpop.eup %1590  ;;  %v536_v14 = vpop.xlane.xlu1 %535  ;;  %v669_v50 = vmul.f32 %v1589_v31, %v1899_v10  ;;  %1610 = vrcp.f32 %v919_v24  ;;  %v2335_v10 = vmul.f32 %v2271_v15, %v2163_v30 }
 0x148   : > { %v491_v16 = vpop.xlane.xlu0 %490  ;;  %v1593_v17 = vpop.eup %1592  ;;  %1612 = vrsqrt.f32 %v608_v63  ;;  %v592_v1 = vmul.f32 0.125, %v536_v14  ;;  %v920_v24 = vadd.f32 1.0, %v1583_v22  ;;  %v2349_v63 = vmul.f32 %v1581_v47, %v2174_v8 }
 0x149   : > { %v577_v51 = vmul.f32 0.125, %v491_v16  ;;  %v2337_v46 = vpop.eup %1594  ;;  %1614 = vrsqrt.f32 %v623_v32  ;;  %v708_v3 = vmul.f32 %v2314_v41, %v669_v50  ;;  %v2361_v32 = vmul.f32 %v1587_v57, %v2187_v35 }
 0x14a   : > { %v1597_v61 = vpop.eup %1596  ;;  %v624_v7 = vadd.f32 1e-05, %v592_v1  ;;  %1616 = vpow2.f32 %v903_v56 }
 0x14b   : > { %v609_v12 = vadd.f32 1e-05, %v577_v51  ;;  %v1599_v4 = vpop.eup %1598  ;;  %v494_v39 = vpop.xlane.xlu1 %493  ;;  %v670_v15 = vmul.f32 %v1597_v61, %v1909_v26  ;;  %v747_v31 = vadd.f32 %v2331_v53, %v708_v3  ;;  %1618 = vpow2.f32 %v905_v6 }
 0x14c   : > { %v539_v30 = vpop.xlane.xlu0 %538  ;;  %v2351_v36 = vpop.eup %1600  ;;  %1620 = vrsqrt.f32 %v624_v7  ;;  %v578_v58 = vmul.f32 0.125, %v494_v39  ;;  %v685_v43 = vmul.f32 %v1599_v4, %v1902_v11  ;;  %v2358_v26 = vmul.f32 %v1585_v13, %v2181_v28 }
 0x14d   : > { %v593_v48 = vmul.f32 0.125, %v539_v30  ;;  %v2354_v22 = vpop.eup %1602  ;;  %1622 = vrsqrt.f32 %v609_v12  ;;  %v709_v56 = vmul.f32 %v2314_v41, %v670_v15  ;;  %v1035_v51 = vmul.f32 %v2247_v25, %v747_v31 }
 0x14e   : > { %v1605_v8 = vpop.eup %1604  ;;  %v610_v47 = vadd.f32 1e-05, %v578_v58  ;;  %v724_v14 = vmul.f32 %v2314_v41, %v685_v43  ;;  %1624 = vrcp.f32 %v920_v24  ;;  %v935_v13 = vadd.f32 1.0, %v1591_v42 }
 0x14f   : > { %v625_v6 = vadd.f32 1e-05, %v593_v48  ;;  %v1607_v16 = vpop.eup %1606  ;;  %v542_v50 = vpop.xlane.xlu1 %541  ;;  %v748_v1 = vadd.f32 %v2331_v53, %v709_v56  ;;  %v686_v3 = vmul.f32 %v1605_v8, %v1912_v27  ;;  %v2377_v30 = vmul.f32 %v1593_v17, %v2196_v52 }
 0x150   : > { %v497_v11 = vpop.xlane.xlu0 %496  ;;  %v2367_v28 = vpop.eup %1608  ;;  %v671_v35 = vmul.f32 %v1607_v16, %v1921_v2  ;;  %1626 = vrsqrt.f32 %v610_v47  ;;  %v594_v57 = vmul.f32 0.125, %v542_v50  ;;  %v763_v4 = vadd.f32 %v2331_v53, %v724_v14 }
 0x151   : > { %v579_v61 = vmul.f32 0.125, %v497_v11  ;;  %v2370_v7 = vpop.eup %1610  ;;  %1628 = vrsqrt.f32 %v625_v6  ;;  %v1036_v12 = vmul.f32 %v2251_v40, %v748_v1  ;;  %v725_v24 = vmul.f32 %v2314_v41, %v686_v3 }
 0x152   : > { %v1613_v25 = vpop.eup %1612  ;;  %v626_v39 = vadd.f32 1e-05, %v594_v57  ;;  %v710_v42 = vmul.f32 %v2314_v41, %v671_v35  ;;  %v1051_v43 = vmul.f32 %v2258_v54, %v763_v4 }
 0x153   : > { %v611_v27 = vadd.f32 1e-05, %v579_v61  ;;  %v1615_v2 = vpop.eup %1614  ;;  %v672_v15 = vmul.f32 %v1613_v25, %v1924_v5  ;;  %v500_v31 = vpop.xlane.xlu1 %499  ;;  %v1067_v48 = vpack.c.bf16 %v1036_v12, %v1035_v51  ;;  %v764_v40 = vadd.f32 %v2331_v53, %v725_v24  ;;  %v2678_v24 = vld [vmem:[#allocation2_spill] sm:$0xff] }
 0x154   : > { %v545_v58 = vpop.xlane.xlu0 %544  ;;  %v2382_v56 = vpop.eup %1616  ;;  %v687_v8 = vmul.f32 %v1615_v2, %v1933_v55  ;;  %1630 = vrsqrt.f32 %v626_v39  ;;  %v580_v47 = vmul.f32 0.125, %v500_v31  ;;  %v749_v17 = vadd.f32 %v2331_v53, %v710_v42 }
 0x155   : > { %v595_v6 = vmul.f32 0.125, %v545_v58  ;;  %v2385_v14 = vpop.eup %1618  ;;  %1632 = vrsqrt.f32 %v611_v27  ;;  %1448 = vmatprep.mubr.msk.bf16.mxu0 %vm283_vm0, %v1067_v48  ;;  %v1052_v5 = vmul.f32 %v2265_v49, %v764_v40  ;;  %v711_v52 = vmul.f32 %v2314_v41, %v672_v15  ;;  %v2679_v58 = vld [vmem:[#allocation3_spill] sm:$0xff] }
 0x156   : > { %v1621_v16 = vpop.eup %1620  ;;  %v612_v54 = vadd.f32 1e-05, %v580_v47  ;;  %v726_v11 = vmul.f32 %v2314_v41, %v687_v8  ;;  %v2393_v55 = vadd.f32 1.0, %v2337_v46  ;;  %v1037_v61 = vmul.f32 %v2269_v23, %v749_v17 }
 0x157   : > { %v627_v50 = vadd.f32 1e-05, %v595_v6  ;;  %v1623_v1 = vpop.eup %1622  ;;  %v688_v51 = vmul.f32 %v1621_v16, %v1936_v9  ;;  %v548_v3 = vpop.xlane.xlu1 %547  ;;  %v1075_v57 = vpack.c.bf16 %v1052_v5, %v1051_v43  ;;  %v750_v49 = vadd.f32 %v2331_v53, %v711_v52  ;;  %v2680_v6 = vld [vmem:[#allocation4_spill] sm:$0xff] }
 0x158   : > { %v503_v35 = vpop.xlane.xlu0 %502  ;;  %v2398_v12 = vpop.eup %1624  ;;  %v673_v4 = vmul.f32 %v1623_v1, %v2678_v24  ;;  %1634 = vrsqrt.f32 %v612_v54  ;;  %v596_v25 = vmul.f32 0.125, %v548_v3  ;;  %v765_v27 = vadd.f32 %v2331_v53, %v726_v11 }
 0x159   : > { %v581_v39 = vmul.f32 0.125, %v503_v35  ;;  %1636 = vrsqrt.f32 %v627_v50  ;;  %1464 = vmatprep.mubr.msk.bf16.mxu1 %vm283_vm0, %v1075_v57  ;;  %v1038_v46 = vmul.f32 %v2279_v19, %v750_v49  ;;  %v727_v9 = vmul.f32 %v2314_v41, %v688_v51  ;;  %v2681_v35 = vld [vmem:[#allocation5_spill] sm:$0xff] }
 0x15a   : > { %v1627_v42 = vpop.eup %1626  ;;  %v628_v2 = vadd.f32 1e-05, %v596_v25  ;;  %v712_v23 = vmul.f32 %v2314_v41, %v673_v4  ;;  %1638 = vrcp.f32 %v935_v13  ;;  %v1053_v19 = vmul.f32 %v2284_v37, %v765_v27  ;;  %v2682_v25 = vld [vmem:[#allocation6_spill] sm:$0xff] }
 0x15b   : > { %v613_v15 = vadd.f32 1e-05, %v581_v39  ;;  %v1629_v31 = vpop.eup %1628  ;;  %v674_v48 = vmul.f32 %v1627_v42, %v2679_v58  ;;  %v506_v40 = vpop.xlane.xlu1 %505  ;;  %v1068_v8 = vpack.c.bf16 %v1038_v46, %v1037_v61  ;;  %v766_v47 = vadd.f32 %v2331_v53, %v727_v9 }
 0x15c   : > { %v551_v43 = vpop.xlane.xlu0 %550  ;;  %v689_v5 = vmul.f32 %v1629_v31, %v2680_v6  ;;  %1640 = vrsqrt.f32 %v628_v2  ;;  %v582_v52 = vmul.f32 0.125, %v506_v40  ;;  %v751_v54 = vadd.f32 %v2331_v53, %v712_v23  ;;  %v2684_v40 = vld [vmem:[#allocation7_spill] sm:$0xff] }
 0x15d   : > { %v597_v17 = vmul.f32 0.125, %v551_v43  ;;  %1642 = vrsqrt.f32 %v613_v15  ;;  %1449 = vmatmul.mubr.msk.bf16.vlgmr.msra.gmra.mrb[0].mxu0 %vm283_vm0, %v1068_v8  ;;  %v1054_v13 = vmul.f32 %v2288_v59, %v766_v47  ;;  %v713_v16 = vmul.f32 %v2314_v41, %v674_v48 }
 0x15e   : > { %v1631_v50 = vpop.eup %1630  ;;  %v614_v11 = vadd.f32 1e-05, %v582_v52  ;;  %v728_v51 = vmul.f32 %v2314_v41, %v689_v5  ;;  %v2416_v37 = vadd.f32 1.0, %v2351_v36  ;;  %v1039_v4 = vmul.f32 %v2292_v33, %v751_v54  ;;  %v2683_v33 = vld [vmem:[#allocation26_spill] sm:$0xff]  ;;  %v2685_v52 = vld [vmem:[#allocation8_spill] sm:$0xff] }
 0x15f   : > { %v629_v1 = vadd.f32 1e-05, %v597_v17  ;;  %v1633_v3 = vpop.eup %1632  ;;  %v690_v57 = vmul.f32 %v1631_v50, %v2681_v35  ;;  %v554_v49 = vpop.xlane.xlu1 %553  ;;  %v1076_v24 = vpack.c.bf16 %v1054_v13, %v1053_v19  ;;  %v752_v59 = vadd.f32 %v2331_v53, %v713_v16  ;;  %v2686_v35 = vld [vmem:[#allocation9_spill] sm:$0xff] }
 0x160   : > { %v509_v61 = vpop.xlane.xlu0 %508  ;;  %v675_v39 = vmul.f32 %v1633_v3, %v2682_v25  ;;  %1644 = vrsqrt.f32 %v614_v11  ;;  %v598_v46 = vmul.f32 0.125, %v554_v49  ;;  %v767_v42 = vadd.f32 %v2331_v53, %v728_v51 }
 0x161   : > { %v583_v9 = vmul.f32 0.125, %v509_v61  ;;  %1646 = vrsqrt.f32 %v629_v1  ;;  %1465 = vmatmul.mubr.msk.bf16.vlgmr.msra.gmra.mrb[0].mxu1 %vm283_vm0, %v1076_v24  ;;  %v1040_v36 = vmul.f32 %v2297_v29, %v752_v59  ;;  %v729_v27 = vmul.f32 %v2314_v41, %v690_v57 }
 0x162   : > { %v1635_v2 = vpop.eup %1634  ;;  %v630_v15 = vadd.f32 1e-05, %v598_v46  ;;  %v714_v31 = vmul.f32 %v2314_v41, %v675_v39  ;;  %v2429_v58 = vmul.f32 %v2354_v22, %v2683_v33  ;;  %v1055_v6 = vmul.f32 %v2301_v45, %v767_v42 }
 0x163   : > { %v615_v23 = vadd.f32 1e-05, %v583_v9  ;;  %v1637_v48 = vpop.eup %1636  ;;  %v676_v43 = vmul.f32 %v1635_v2, %v2684_v40  ;;  %v512_v8 = vpop.xlane.xlu1 %511  ;;  %v1069_v19 = vpack.c.bf16 %v1040_v36, %v1039_v4  ;;  %v768_v29 = vadd.f32 %v2331_v53, %v729_v27  ;;  %v2687_v4 = vld [vmem:[#allocation10_spill] sm:$0xff] }
 0x164   : > { %v557_v47 = vpop.xlane.xlu0 %556  ;;  %v2434_v5 = vpop.eup %1638  ;;  %v691_v17 = vmul.f32 %v1637_v48, %v2685_v52  ;;  %1648 = vrsqrt.f32 %v630_v15  ;;  %v584_v13 = vmul.f32 0.125, %v512_v8  ;;  %v753_v50 = vadd.f32 %v2331_v53, %v714_v31  ;;  %v2688_v31 = vld [vmem:[#allocation11_spill] sm:$0xff] }
 0x165   : > { %v599_v16 = vmul.f32 0.125, %v557_v47  ;;  %1650 = vrsqrt.f32 %v615_v23  ;;  %1452 = vmatprep.mubr.msk.bf16.mxu0 %vm283_vm0, %v1069_v19  ;;  %v1056_v22 = vmul.f32 %v2305_v0, %v768_v29  ;;  %v715_v54 = vmul.f32 %v2314_v41, %v676_v43  ;;  %v2689_v47 = vld [vmem:[#allocation12_spill] sm:$0xff] }
 0x166   : > { %v1641_v11 = vpop.eup %1640  ;;  %v616_v1 = vadd.f32 1e-05, %v584_v13  ;;  %v730_v45 = vmul.f32 %v2314_v41, %v691_v17  ;;  %1652 = vrcp.f32 %v2393_v55  ;;  %v1041_v0 = vmul.f32 %v2309_v18, %v753_v50  ;;  %v2690_v50 = vld [vmem:[#allocation13_spill] sm:$0xff] }
 0x167   : > { %v631_v51 = vadd.f32 1e-05, %v599_v16  ;;  %v1643_v3 = vpop.eup %1642  ;;  %v692_v57 = vmul.f32 %v1641_v11, %v2686_v35  ;;  %v560_v49 = vpop.xlane.xlu1 %559  ;;  %v1077_v24 = vpack.c.bf16 %v1056_v22, %v1055_v6  ;;  %v754_v59 = vadd.f32 %v2331_v53, %v715_v54 }
 0x168   : > { %v515_v61 = vpop.xlane.xlu0 %514  ;;  %v677_v25 = vmul.f32 %v1643_v3, %v2687_v4  ;;  %1654 = vrsqrt.f32 %v616_v1  ;;  %v600_v39 = vmul.f32 0.125, %v560_v49  ;;  %v769_v36 = vadd.f32 %v2331_v53, %v730_v45 }
 0x169   : > { %v585_v46 = vmul.f32 0.125, %v515_v61  ;;  %1656 = vrsqrt.f32 %v631_v51  ;;  %1468 = vmatprep.mubr.msk.bf16.mxu1 %vm283_vm0, %v1077_v24  ;;  %v1042_v55 = vmul.f32 %v2318_v60, %v754_v59  ;;  %v731_v9 = vmul.f32 %v2314_v41, %v692_v57  ;;  %v2691_v57 = vld [vmem:[#allocation14_spill] sm:$0xff] }
 0x16a   : > { %v1645_v27 = vpop.eup %1644  ;;  %v632_v42 = vadd.f32 1e-05, %v600_v39  ;;  %v716_v15 = vmul.f32 %v2314_v41, %v677_v25  ;;  %v922_v18 = vadd.f32 1.0, %v2367_v28  ;;  %v1057_v60 = vmul.f32 %v2323_v38, %v769_v36 }
 0x16b   : > { %v617_v2 = vadd.f32 1e-05, %v585_v46  ;;  %v1647_v23 = vpop.eup %1646  ;;  %v678_v33 = vmul.f32 %v1645_v27, %v2688_v31  ;;  %v518_v48 = vpop.xlane.xlu1 %517  ;;  %v1070_v43 = vpack.c.bf16 %v1042_v55, %v1041_v0  ;;  %v770_v8 = vadd.f32 %v2331_v53, %v731_v9  ;;  %v2692_v55 = vld [vmem:[#allocation15_spill] sm:$0xff] }
 0x16c   : > { %v563_v40 = vpop.xlane.xlu0 %562  ;;  %v693_v19 = vmul.f32 %v1647_v23, %v2689_v47  ;;  %1658 = vrsqrt.f32 %v632_v42  ;;  %v586_v29 = vmul.f32 0.125, %v518_v48  ;;  %v755_v17 = vadd.f32 %v2331_v53, %v716_v15  ;;  %v2693_v15 = vld [vmem:[#allocation16_spill] sm:$0xff] }
 0x16d   : > { %v601_v6 = vmul.f32 0.125, %v563_v40  ;;  %1660 = vrsqrt.f32 %v617_v2  ;;  %1453 = vmatmul.mubr.msk.bf16.gmra.mrb[4].mxu0 %vm283_vm0, %v1070_v43  ;;  %v1058_v28 = vmul.f32 %v2326_v20, %v770_v8  ;;  %v717_v52 = vmul.f32 %v2314_v41, %v678_v33 }
 0x16e   : > { %v1649_v13 = vpop.eup %1648  ;;  %v618_v16 = vadd.f32 1e-05, %v586_v29  ;;  %v732_v54 = vmul.f32 %v2314_v41, %v693_v19  ;;  %1662 = vrcp.f32 %v2416_v37  ;;  %v1043_v20 = vmul.f32 %v2335_v10, %v755_v17  ;;  %v2694_v29 = vld [vmem:[#allocation17_spill] sm:$0xff] }
 0x16f   : > { %v633_v22 = vadd.f32 1e-05, %v601_v6  ;;  %v1651_v38 = vpop.eup %1650  ;;  %v694_v11 = vmul.f32 %v1649_v13, %v2690_v50  ;;  %v566_v1 = vpop.xlane.xlu1 %565  ;;  %v1078_v45 = vpack.c.bf16 %v1058_v28, %v1057_v60  ;;  %v756_v3 = vadd.f32 %v2331_v53, %v717_v52 }
 0x170   : > { %v521_v51 = vpop.xlane.xlu0 %520  ;;  %v2466_v35 = vpop.eup %1652  ;;  %v679_v49 = vmul.f32 %v1651_v38, %v2691_v57  ;;  %1664 = vrsqrt.f32 %v618_v16  ;;  %v602_v61 = vmul.f32 0.125, %v566_v1  ;;  %v771_v0 = vadd.f32 %v2331_v53, %v732_v54  ;;  %v2695_v16 = vld [vmem:[#allocation18_spill] sm:$0xff] }
 0x171   : > { %v587_v24 = vmul.f32 0.125, %v521_v51  ;;  %1666 = vrsqrt.f32 %v633_v22  ;;  %1469 = vmatmul.mubr.msk.bf16.gmra.mrb[4].mxu1 %vm283_vm0, %v1078_v45  ;;  %v1044_v37 = vmul.f32 %v2341_v44, %v756_v3  ;;  %v733_v59 = vmul.f32 %v2314_v41, %v694_v11  ;;  %v2696_v3 = vld [vmem:[#allocation19_spill] sm:$0xff] }
 0x172   : > { %v1655_v4 = vpop.eup %1654  ;;  %v634_v25 = vadd.f32 1e-05, %v602_v61  ;;  %v718_v10 = vmul.f32 %v2314_v41, %v679_v49  ;;  %1668 = vrcp.f32 %v922_v18  ;;  %v1059_v44 = vmul.f32 %v2344_v62, %v771_v0  ;;  %v2697_v61 = vld [vmem:[#allocation20_spill] sm:$0xff] }
 0x173   : > { %v619_v39 = vadd.f32 1e-05, %v587_v24  ;;  %v1657_v46 = vpop.eup %1656  ;;  %v680_v9 = vmul.f32 %v1655_v4, %v2692_v55  ;;  %v524_v36 = vpop.xlane.xlu1 %523  ;;  %v1071_v42 = vpack.c.bf16 %v1044_v37, %v1043_v20  ;;  %v772_v2 = vadd.f32 %v2331_v53, %v733_v59  ;;  %v2699_v59 = vld [vmem:[#allocation28_spill] sm:$0xff] }
 0x174   : > { %v569_v27 = vpop.xlane.xlu0 %568  ;;  %v695_v23 = vmul.f32 %v1657_v46, %v2693_v15  ;;  %1670 = vrsqrt.f32 %v634_v25  ;;  %v588_v31 = vmul.f32 0.125, %v524_v36  ;;  %v757_v40 = vadd.f32 %v2331_v53, %v718_v10  ;;  %v2700_v36 = vld [vmem:[#allocation21_spill] sm:$0xff]  ;;  %v2703_v15 = vld [vmem:[#allocation30_spill] sm:$0xff] }
 0x175   : > { %v603_v33 = vmul.f32 0.125, %v569_v27  ;;  %1672 = vrsqrt.f32 %v619_v39  ;;  %1456 = vmatprep.mubr.msk.bf16.mxu0 %vm283_vm0, %v1071_v42  ;;  %v1060_v18 = vmul.f32 %v2349_v63, %v772_v2  ;;  %v719_v48 = vmul.f32 %v2314_v41, %v680_v9 }
 0x176   : > { %v1659_v43 = vpop.eup %1658  ;;  %v620_v8 = vadd.f32 1e-05, %v588_v31  ;;  %v734_v47 = vmul.f32 %v2314_v41, %v695_v23  ;;  %v937_v62 = vadd.f32 1.0, %v2382_v56  ;;  %v938_v63 = vadd.f32 1.0, %v2385_v14 }
 0x177   : > { %v635_v60 = vadd.f32 1e-05, %v603_v33  ;;  %v1661_v19 = vpop.eup %1660  ;;  %v696_v6 = vmul.f32 %v1659_v43, %v2694_v29  ;;  %v572_v28 = vpop.xlane.xlu1 %571  ;;  %v1079_v52 = vpack.c.bf16 %v1060_v18, %v1059_v44  ;;  %v758_v17 = vadd.f32 %v2331_v53, %v719_v48  ;;  %v2702_v44 = vld [vmem:[#allocation29_spill] sm:$0xff]  ;;  %v2706_v29 = vld [vmem:[#allocation31_spill] sm:$0xff] }
 0x178   : > { %v1663_v13 = vpop.eup %1662  ;;  %v681_v22 = vmul.f32 %v1661_v19, %v2695_v16  ;;  %1674 = vrsqrt.f32 %v620_v8  ;;  %v604_v54 = vmul.f32 0.125, %v572_v28  ;;  %v1045_v38 = vmul.f32 %v2358_v26, %v757_v40  ;;  %v2704_v8 = vld [vmem:[#allocation23_spill] sm:$0xff]  ;;  %v2705_v19 = vld [vmem:[#allocation24_spill] sm:$0xff] }
 0x179   : > { %1676 = vrsqrt.f32 %v635_v60  ;;  %1472 = vmatprep.mubr.msk.bf16.mxu1 %vm283_vm0, %v1079_v52  ;;  %v1046_v56 = vmul.f32 %v2361_v32, %v758_v17  ;;  %v735_v50 = vmul.f32 %v2314_v41, %v696_v6  ;;  %v773_v11 = vadd.f32 %v2331_v53, %v734_v47  ;;  %v2698_v32 = vld [vmem:[#allocation27_spill] sm:$0xff] }
 0x17a   : > { %v1665_v1 = vpop.eup %1664  ;;  %v636_v51 = vadd.f32 1e-05, %v604_v54  ;;  %v720_v14 = vmul.f32 %v2314_v41, %v681_v22  ;;  %1678 = vrcp.f32 %v937_v62  ;;  %v1015_v37 = vmul.f32 %v2370_v7, %v2698_v32 }
 0x17b   : > { %v1667_v45 = vpop.eup %1666  ;;  %v682_v20 = vmul.f32 %v1665_v1, %v2696_v3  ;;  %v1072_v57 = vpack.c.bf16 %v1046_v56, %v1045_v38  ;;  %v774_v26 = vadd.f32 %v2331_v53, %v735_v50  ;;  %1680 = vrcp.f32 %v938_v63  ;;  %v2707_v56 = vld [vmem:[#allocation25_spill] sm:$0xff]  ;;  %v2708_v1 = vld [vmem:[#allocation32_spill] sm:$0xff] }
 0x17c   : > { %v1669_v49 = vpop.eup %1668  ;;  %v697_v24 = vmul.f32 %v1667_v45, %v2697_v61  ;;  %1682 = vrsqrt.f32 %v636_v51  ;;  %v1016_v0 = vmul.f32 %v2398_v12, %v2699_v59  ;;  %v1061_v4 = vmul.f32 %v2377_v30, %v773_v11  ;;  %v2701_v12 = vld [vmem:[#allocation22_spill] sm:$0xff] }
 0x17d   : > { %1457 = vmatmul.mubr.msk.bf16.gmra.mrb[8].mxu0 %vm283_vm0, %v1072_v57  ;;  %v1062_v25 = vmul.f32 %v2429_v58, %v774_v26  ;;  %v721_v39 = vmul.f32 %v2314_v41, %v682_v20  ;;  %v759_v10 = vadd.f32 %v2331_v53, %v720_v14  ;;  %v1031_v30 = vmul.f32 %v2434_v5, %v2702_v44 }
 0x17e   : > { %v1671_v46 = vpop.eup %1670  ;;  %v736_v55 = vmul.f32 %v2314_v41, %v697_v24  ;;  %v1032_v58 = vmul.f32 %v2466_v35, %v2703_v15  ;;  %v1017_v6 = vmul.f32 %v1663_v13, %v2706_v29  ;;  %v1018_v28 = vmul.f32 %v1669_v49, %v2254_v21 }
 0x17f   : > { %v1673_v9 = vpop.eup %1672  ;;  %v698_v27 = vmul.f32 %v1671_v46, %v2700_v36  ;;  %v1080_v7 = vpack.c.bf16 %v1062_v25, %v1061_v4  ;;  %v760_v42 = vadd.f32 %v2331_v53, %v721_v39  ;;  %v1047_v23 = vmul.f32 %v1015_v37, %v759_v10 }
 0x180   : > { %v683_v2 = vmul.f32 %v1673_v9, %v2701_v12  ;;  %v775_v18 = vadd.f32 %v2331_v53, %v736_v55 }
 0x181   : > { %1473 = vmatmul.mubr.msk.bf16.gmra.mrb[8].mxu1 %vm283_vm0, %v1080_v7  ;;  %v1048_v31 = vmul.f32 %v1016_v0, %v760_v42  ;;  %v737_v33 = vmul.f32 %v2314_v41, %v698_v27 }
 0x182   : > { %v1675_v48 = vpop.eup %1674  ;;  %v722_v40 = vmul.f32 %v2314_v41, %v683_v2  ;;  %v1063_v17 = vmul.f32 %v1031_v30, %v775_v18 }
 0x183   : > { %v1677_v43 = vpop.eup %1676  ;;  %v684_v60 = vmul.f32 %v1675_v48, %v2704_v8  ;;  %v1073_v47 = vpack.c.bf16 %v1048_v31, %v1047_v23  ;;  %v776_v5 = vadd.f32 %v2331_v53, %v737_v33 }
 0x184   : > { %v1679_v62 = vpop.eup %1678  ;;  %v699_v35 = vmul.f32 %v1677_v43, %v2705_v19  ;;  %v761_v22 = vadd.f32 %v2331_v53, %v722_v40 }
 0x185   : > { %v1681_v52 = vpop.eup %1680  ;;  %1460 = vmatprep.mubr.msk.bf16.mxu0 %vm283_vm0, %v1073_v47  ;;  %v1064_v63 = vmul.f32 %v1032_v58, %v776_v5  ;;  %v723_v16 = vmul.f32 %v2314_v41, %v684_v60  ;;  %v1033_v21 = vmul.f32 %v1679_v62, %v2708_v1 }
 0x186   : > { %v1683_v54 = vpop.eup %1682  ;;  %v738_v38 = vmul.f32 %v2314_v41, %v699_v35  ;;  %v1034_v51 = vmul.f32 %v1681_v52, %v2275_v34  ;;  %v1049_v14 = vmul.f32 %v1017_v6, %v761_v22 }
 0x187   : > { %v700_v50 = vmul.f32 %v1683_v54, %v2707_v56  ;;  %v1081_v11 = vpack.c.bf16 %v1064_v63, %v1063_v17  ;;  %v762_v13 = vadd.f32 %v2331_v53, %v723_v16 }
 0x188   : > { %v777_v20 = vadd.f32 %v2331_v53, %v738_v38 }
 0x189   : > { %1476 = vmatprep.mubr.msk.bf16.mxu1 %vm283_vm0, %v1081_v11  ;;  %v1050_v45 = vmul.f32 %v1018_v28, %v762_v13  ;;  %v739_v3 = vmul.f32 %v2314_v41, %v700_v50 }
 0x18a   : > { %v1065_v49 = vmul.f32 %v1033_v21, %v777_v20 }
 0x18b   : > { %v1074_v57 = vpack.c.bf16 %v1050_v45, %v1049_v14  ;;  %v778_v26 = vadd.f32 %v2331_v53, %v739_v3 }
 0x18d   : > { %1461 = vmatmul.mubr.msk.bf16.gmra.mrb[12].mxu0 %vm283_vm0, %v1074_v57  ;;  %v1066_v61 = vmul.f32 %v1034_v51, %v778_v26 }
 0x18f   : > { %v1082_v24 = vpack.c.bf16 %v1066_v61, %v1065_v49 }
 0x191   : > { %1477 = vmatmul.mubr.msk.bf16.gmra.mrb[12].mxu1 %vm283_vm0, %v1082_v24 }
 0x230   : > { %v1450_v34 = vpop.f32.mrb[0].mxu0 }
 0x231   : > { %1300 = vst.msk [vmem:[%s2541_s11 + $0x10] sm:$0xff] %vm1297_vm2, %v1450_v34  ;;  %v1170_v41 = vpop.f32.mrb[1].mxu0 }
 0x232   : > { %1298 = vst.msk [vmem:[%s2541_s11] sm:$0xff] %vm1297_vm2, %v1170_v41  ;;  %v1451_v53 = vpop.f32.mrb[2].mxu0 }
 0x233   : > { %1301 = vst.msk [vmem:[%s2541_s11 + $0x18] sm:$0xff] %vm1297_vm2, %v1451_v53  ;;  %v1173_v32 = vpop.f32.mrb[3].mxu0 }
 0x234   : > { %1299 = vst.msk [vmem:[%s2541_s11 + $0x8] sm:$0xff] %vm1297_vm2, %v1173_v32  ;;  %v1466_v37 = vpop.f32.mrb[0].mxu1 }
 0x235   : > { %1316 = vst.msk [vmem:[%s2541_s11 + $0x90] sm:$0xff] %vm1297_vm2, %v1466_v37  ;;  %v1234_v59 = vpop.f32.mrb[1].mxu1 }
 0x236   : > { %1314 = vst.msk [vmem:[%s2541_s11 + $0x80] sm:$0xff] %vm1297_vm2, %v1234_v59  ;;  %v1467_v0 = vpop.f32.mrb[2].mxu1 }
 0x237   : > { %1317 = vst.msk [vmem:[%s2541_s11 + $0x98] sm:$0xff] %vm1297_vm2, %v1467_v0  ;;  %v1237_v4 = vpop.f32.mrb[3].mxu1 }
 0x238   : > { %1315 = vst.msk [vmem:[%s2541_s11 + $0x88] sm:$0xff] %vm1297_vm2, %v1237_v4 }
 0x240   : > { %v1454_v25 = vpop.f32.mrb[4].mxu0 }
 0x241   : > { %1304 = vst.msk [vmem:[%s2541_s11 + $0x30] sm:$0xff] %vm1297_vm2, %v1454_v25  ;;  %v1186_v39 = vpop.f32.mrb[5].mxu0 }
 0x242   : > { %1302 = vst.msk [vmem:[%s2541_s11 + $0x20] sm:$0xff] %vm1297_vm2, %v1186_v39  ;;  %v1455_v10 = vpop.f32.mrb[6].mxu0 }
 0x243   : > { %1305 = vst.msk [vmem:[%s2541_s11 + $0x38] sm:$0xff] %vm1297_vm2, %v1455_v10  ;;  %v1189_v46 = vpop.f32.mrb[7].mxu0 }
 0x244   : > { %1303 = vst.msk [vmem:[%s2541_s11 + $0x28] sm:$0xff] %vm1297_vm2, %v1189_v46  ;;  %v1470_v55 = vpop.f32.mrb[4].mxu1 }
 0x245   : > { %1320 = vst.msk [vmem:[%s2541_s11 + $0xb0] sm:$0xff] %vm1297_vm2, %v1470_v55  ;;  %v1250_v9 = vpop.f32.mrb[5].mxu1 }
 0x246   : > { %1318 = vst.msk [vmem:[%s2541_s11 + $0xa0] sm:$0xff] %vm1297_vm2, %v1250_v9  ;;  %v1471_v36 = vpop.f32.mrb[6].mxu1 }
 0x247   : > { %1321 = vst.msk [vmem:[%s2541_s11 + $0xb8] sm:$0xff] %vm1297_vm2, %v1471_v36  ;;  %v1253_v27 = vpop.f32.mrb[7].mxu1 }
 0x248   : > { %1319 = vst.msk [vmem:[%s2541_s11 + $0xa8] sm:$0xff] %vm1297_vm2, %v1253_v27 }
 0x250   : > { %v1458_v7 = vpop.f32.mrb[8].mxu0 }
 0x251   : > { %1308 = vst.msk [vmem:[%s2541_s11 + $0x50] sm:$0xff] %vm1297_vm2, %v1458_v7  ;;  %v1202_v42 = vpop.f32.mrb[9].mxu0 }
 0x252   : > { %1306 = vst.msk [vmem:[%s2541_s11 + $0x40] sm:$0xff] %vm1297_vm2, %v1202_v42  ;;  %v1459_v12 = vpop.f32.mrb[10].mxu0 }
 0x253   : > { %1309 = vst.msk [vmem:[%s2541_s11 + $0x58] sm:$0xff] %vm1297_vm2, %v1459_v12  ;;  %v1205_v2 = vpop.f32.mrb[11].mxu0 }
 0x254   : > { %1307 = vst.msk [vmem:[%s2541_s11 + $0x48] sm:$0xff] %vm1297_vm2, %v1205_v2  ;;  %v1474_v44 = vpop.f32.mrb[8].mxu1 }
 0x255   : > { %1324 = vst.msk [vmem:[%s2541_s11 + $0xd0] sm:$0xff] %vm1297_vm2, %v1474_v44  ;;  %v1266_v30 = vpop.f32.mrb[9].mxu1 }
 0x256   : > { %1322 = vst.msk [vmem:[%s2541_s11 + $0xc0] sm:$0xff] %vm1297_vm2, %v1266_v30  ;;  %v1475_v15 = vpop.f32.mrb[10].mxu1 }
 0x257   : > { %1325 = vst.msk [vmem:[%s2541_s11 + $0xd8] sm:$0xff] %vm1297_vm2, %v1475_v15  ;;  %v1269_v58 = vpop.f32.mrb[11].mxu1 }
 0x258   : > { %1323 = vst.msk [vmem:[%s2541_s11 + $0xc8] sm:$0xff] %vm1297_vm2, %v1269_v58 }
 0x260   : > { %v1462_v23 = vpop.f32.mrb[12].mxu0 }
 0x261   : > { %1312 = vst.msk [vmem:[%s2541_s11 + $0x70] sm:$0xff] %vm1297_vm2, %v1462_v23  ;;  %v1218_v31 = vpop.f32.mrb[13].mxu0 }
 0x262   : > { %1310 = vst.msk [vmem:[%s2541_s11 + $0x60] sm:$0xff] %vm1297_vm2, %v1218_v31  ;;  %v1463_v33 = vpop.f32.mrb[14].mxu0 }
 0x263   : > { %1313 = vst.msk [vmem:[%s2541_s11 + $0x78] sm:$0xff] %vm1297_vm2, %v1463_v33  ;;  %v1221_v18 = vpop.f32.mrb[15].mxu0 }
 0x264   : > { %1311 = vst.msk [vmem:[%s2541_s11 + $0x68] sm:$0xff] %vm1297_vm2, %v1221_v18  ;;  %v1478_v48 = vpop.f32.mrb[12].mxu1 }
 0x265   : > { %1328 = vst.msk [vmem:[%s2541_s11 + $0xf0] sm:$0xff] %vm1297_vm2, %v1478_v48  ;;  %v1282_v40 = vpop.f32.mrb[13].mxu1 }
 0x266   : > { %1326 = vst.msk [vmem:[%s2541_s11 + $0xe0] sm:$0xff] %vm1297_vm2, %v1282_v40  ;;  %v1479_v43 = vpop.f32.mrb[14].mxu1 }
 0x267   : > { %1329 = vst.msk [vmem:[%s2541_s11 + $0xf8] sm:$0xff] %vm1297_vm2, %v1479_v43  ;;  %v1285_v8 = vpop.f32.mrb[15].mxu1 }
 0x268   : > { %1327 = vst.msk [vmem:[%s2541_s11 + $0xe8] sm:$0xff] %vm1297_vm2, %v1285_v8 }
 0x269 PF: > { %s15_s18 = sadd.s32 1, %s1690_s18  }
 0x26a   : > { %p12_p4 = scmp.ge.s32.totalorder %s15_s18, 4  }
 0x26c   :  { %14 = sbr.rel (!%p12_p4) target bundleno = 1 (0x1), region = 73 }

</bundles_post_ra>
